<compile_context>
chip_gen: v5e
topology: v5e:2x2
jax: 0.10.0
libtpu: 0.0.40
codegen_flags: <defaults>
</compile_context>

<pallas_src>
import jax
import jax.numpy as jnp
from jax.experimental import pallas as pl
from jax.experimental.pallas import tpu as pltpu

# ---- model dims (match the PyTorch __init__) -------------------------------
ATOM_FEAT = 37          # 37 + 6 bond feats = 43 == GraphConv(input_dim=43)
BOND_FEAT = 6
CONV_W    = 128         # conv_width; 128 + 6 = 134 == GraphConv(input_dim=134)
PRO_FEAT  = 480         # GraphCore(in_features=480)
PRO_H1    = 200
PRO_H2    = 100
HID_M     = 32          # hid_dim_m
HID_P     = 32          # hid_dim_p
N_CLASS   = 2
KHOP      = 2           # GraphCore khop=2

BLOCK_GRAPHS = 64       # graphs per grid step (64*16 = 1024 matmul rows)
_MXU_ROWS    = 256      # target rows per block-diagonal aggregation group
COMPUTE_DTYPE = jnp.bfloat16   # MXU operand dtype (f32 accumulation everywhere)


def _round_up(x, m):
    return pl.cdiv(x, m) * m


# ============================ Pallas kernel =================================

def _gch_branches_kernel(mol_blk_ref, matoms_ref, bsum_ref, mask_ref,
                         pro_blk_ref, patoms_ref,
                         w1m_ref, b1m_ref, w2m_ref, b2m_ref, wom_ref, bom_ref,
                         wbond_ref,
                         w1p_ref, b1p_ref, w2p_ref, b2p_ref, wop_ref, bop_ref,
                         out_ref):
    """Fused molecule + protein graph branches for one block of graphs.

    Molecule (GraphConv x2 + GraphOutput):
        h   = relu( (A+I)@X @ W_x + bsum @ W_b + b )          (x2)
        fp  = sum_n mask * tanh( h @ Wo_x + bsum @ Wo_b + bo )
    Protein (GraphCore x2 + GraphOutput_p, reassociated):
        h   = relu( A_hat @ (X @ W) + b )                     (x2)
        fp  = sum_n tanh( h @ Wo + bo )
    """
    f32 = jnp.float32
    cdt = w1p_ref.dtype                  # MXU operand dtype (bf16 by default)
    bt = out_ref.shape[0]                # graphs in this block
    gb = mol_blk_ref.shape[0]            # block-diagonal groups in this block

    def aggregate(blk, x):
        # Block-diagonal neighbourhood aggregation: (gb, GN, GN) @ (gb, GN, F).
        rows, f = x.shape
        xg = x.astype(cdt).reshape(gb, rows // gb, f)
        y = jnp.einsum('gij,gjf->gif', blk, xg, preferred_element_type=f32)
        return y.reshape(rows, f)

    # ---- shared bond projection: ONE K=6 matmul covers conv1/conv2/readout --
    bond = jnp.dot(bsum_ref[...].astype(cdt), wbond_ref[...],
                   preferred_element_type=f32)                 # (Rm, 128+128+32)
    c1 = w1m_ref.shape[1]
    c2 = c1 + w2m_ref.shape[1]
    bond_l1, bond_l2, bond_out = bond[:, :c1], bond[:, c1:c2], bond[:, c2:]

    # ---- molecule branch ----------------------------------------------------
    mol_blk = mol_blk_ref[...]                                 # (gb, GNm, GNm)
    agg = aggregate(mol_blk, matoms_ref[...])                  # (A+I) @ X
    h = jnp.maximum(
        jnp.dot(agg.astype(cdt), w1m_ref[...], preferred_element_type=f32)
        + bond_l1 + b1m_ref[...], 0.0)                         # (Rm, 128)
    agg = aggregate(mol_blk, h)                                # (A+I) @ h
    h = jnp.maximum(
        jnp.dot(agg.astype(cdt), w2m_ref[...], preferred_element_type=f32)
        + bond_l2 + b2m_ref[...], 0.0)                         # (Rm, 128)
    g = jnp.tanh(
        jnp.dot(h.astype(cdt), wom_ref[...], preferred_element_type=f32)
        + bond_out + bom_ref[...]) * mask_ref[...]             # (Rm, 32)
    nm = g.shape[0] // bt
    fp_m = jnp.sum(g.reshape(bt, nm, -1), axis=1)              # (bt, 32)

    # ---- protein branch -----------------------------------------------------
    pro_blk = pro_blk_ref[...]                                 # (gb, GNp, GNp)
    xw = jnp.dot(patoms_ref[...].astype(cdt), w1p_ref[...],
                 preferred_element_type=f32)                   # (Rp, 200)
    h = jnp.maximum(aggregate(pro_blk, xw) + b1p_ref[...], 0.0)
    xw = jnp.dot(h.astype(cdt), w2p_ref[...], preferred_element_type=f32)
    h = jnp.maximum(aggregate(pro_blk, xw) + b2p_ref[...], 0.0)
    g = jnp.tanh(jnp.dot(h.astype(cdt), wop_ref[...],
                         preferred_element_type=f32) + bop_ref[...])   # (Rp, 32)
    np_ = g.shape[0] // bt
    fp_p = jnp.sum(g.reshape(bt, np_, -1), axis=1)             # (bt, 32)

    out_ref[:, :fp_m.shape[1]] = fp_m
    out_ref[:, fp_m.shape[1]:] = fp_p


# ============================ Pallas wrapper ================================

def _block_diag_groups(adj, group, dtype):
    """(B, N, N) -> (B//group, group*N, group*N) block-diagonal, cast to dtype."""
    b, n, _ = adj.shape
    ng = b // group
    a = adj.reshape(ng, group, n, n).astype(dtype)
    eye_g = jnp.eye(group, dtype=dtype)
    blk = a[:, :, :, None, :] * eye_g[None, :, None, :, None]  # (ng, g, N, g, N)
    return blk.reshape(ng, group * n, group * n)


def gch_branches(adj, m_atoms, bsum, mask, a_hat, p_atoms, kp,
                 *, max_graphs=BLOCK_GRAPHS):
    B, Nm, Fa = m_atoms.shape
    Np = a_hat.shape[1]
    Fp = p_atoms.shape[-1]
    Fb = bsum.shape[-1]
    cd = kp['w1p'].dtype

    # Tiling: `group` graphs per block-diagonal aggregation (~256 rows fills
    # the 256-wide v6e/v7x MXU, 2x128 passes on v5e); `bt` graphs per grid
    # step (>=512 rows amortizes the ~0.35us fixed step cost); keep the grid
    # >= 2 steps whenever the batch allows so v7x shards across both TCs.
    group = max(1, _MXU_ROWS // max(Nm, Np))
    cap = _round_up(max_graphs, group)
    half = _round_up(pl.cdiv(B, 2), group)
    bt = max(group, min(cap, half))
    bp = _round_up(B, bt)

    pad = lambda x: jnp.pad(x, ((0, bp - B),) + ((0, 0),) * (x.ndim - 1))
    adj, m_atoms, bsum, mask, a_hat, p_atoms = map(
        pad, (adj, m_atoms, bsum, mask, a_hat, p_atoms))

    # Block-diagonal adjacency (built directly in the MXU dtype; self-loops
    # folded in for the molecule branch so the kernel never adds +X / +h).
    eye_m = jnp.eye(Nm, dtype=adj.dtype)
    mol_blk = _block_diag_groups(adj + eye_m[None], group, cd)
    pro_blk = _block_diag_groups(a_hat, group, cd)

    m2 = m_atoms.reshape(bp * Nm, Fa)
    b2 = bsum.reshape(bp * Nm, Fb)
    k2 = mask.reshape(bp * Nm, 1)
    p2 = p_atoms.reshape(bp * Np, Fp)

    weights = (kp['w1m'], kp['b1m'], kp['w2m'], kp['b2m'], kp['wom'], kp['bom'],
               kp['wbond'], kp['w1p'], kp['b1p'], kp['w2p'], kp['b2p'],
               kp['wop'], kp['bop'])

    gb = bt // group
    gnm, gnp_ = group * Nm, group * Np

    out = pl.pallas_call(
        _gch_branches_kernel,
        out_shape=jax.ShapeDtypeStruct((bp, HID_M + HID_P), jnp.float32),
        grid=(bp // bt,),
        in_specs=[
            pl.BlockSpec((gb, gnm, gnm),   lambda i: (i, 0, 0)),
            pl.BlockSpec((bt * Nm, Fa),    lambda i: (i, 0)),
            pl.BlockSpec((bt * Nm, Fb),    lambda i: (i, 0)),
            pl.BlockSpec((bt * Nm, 1),     lambda i: (i, 0)),
            pl.BlockSpec((gb, gnp_, gnp_), lambda i: (i, 0, 0)),
            pl.BlockSpec((bt * Np, Fp),    lambda i: (i, 0)),
        ] + [pl.BlockSpec(w.shape, lambda i: (0, 0)) for w in weights],
        out_specs=pl.BlockSpec((bt, HID_M + HID_P), lambda i: (i, 0)),
        compiler_params=pltpu.CompilerParams(
            dimension_semantics=("parallel",),
            vmem_limit_bytes=32 * 1024 * 1024),
    )(mol_blk, m2, b2, k2, pro_blk, p2, *weights)

    return out[:B, :HID_M], out[:B, HID_M:]


# ============================ parameters ====================================

def _linear_params(key, fan_in, fan_out):
    kw, kb = jax.random.split(key)
    lim = 1.0 / jnp.sqrt(jnp.asarray(fan_in, jnp.float32))
    w = jax.random.uniform(kw, (fan_in, fan_out), jnp.float32, -lim, lim)
    b = jax.random.uniform(kb, (1, fan_out), jnp.float32, -lim, lim)
    return w, b


def init_params(key):
    ks = jax.random.split(key, 9)
    return dict(
        # GraphConv linears act on the concatenated [atom_feats | bond_sum]
        # operand (43 / 134 in); stored merged, split once in prepare_params.
        gcn_mol_1=_linear_params(ks[0], ATOM_FEAT + BOND_FEAT, CONV_W),   # 43 -> 128
        gcn_mol_2=_linear_params(ks[1], CONV_W + BOND_FEAT, CONV_W),      # 134 -> 128
        gop=_linear_params(ks[2], CONV_W + BOND_FEAT, HID_M),             # 134 -> hid_m
        gcn_pro_1=_linear_params(ks[3], PRO_FEAT, PRO_H1),                # 480 -> 200
        gcn_pro_2=_linear_params(ks[4], PRO_H1, PRO_H2),                  # 200 -> 100
        gop_p=_linear_params(ks[5], PRO_H2, HID_P),                       # 100 -> hid_p
        fc1=_linear_params(ks[6], HID_M + HID_P, 100),
        fc2=_linear_params(ks[7], 100, 100),
        fc3=_linear_params(ks[8], 100, N_CLASS),
    )


def prepare_params(params, compute_dtype=COMPUTE_DTYPE):
    """One-time kernel weight prep: split atom/bond parts, fuse the three K=6
    bond weights, cast MXU operands to bf16 (done once, NOT per forward)."""
    w1, b1 = params['gcn_mol_1']
    w2, b2 = params['gcn_mol_2']
    wo, bo = params['gop']
    w1p, b1p = params['gcn_pro_1']
    w2p, b2p = params['gcn_pro_2']
    wop, bop = params['gop_p']
    cd = compute_dtype
    return dict(
        w1m=w1[:ATOM_FEAT].astype(cd), b1m=b1,
        w2m=w2[:CONV_W].astype(cd),    b2m=b2,
        wom=wo[:CONV_W].astype(cd),    bom=bo,
        wbond=jnp.concatenate([w1[ATOM_FEAT:], w2[CONV_W:], wo[CONV_W:]],
                              axis=1).astype(cd),                    # (6, 288)
        w1p=w1p.astype(cd), b1p=b1p,
        w2p=w2p.astype(cd), b2p=b2p,
        wop=wop.astype(cd), bop=bop,
        fc1=params['fc1'], fc2=params['fc2'], fc3=params['fc3'],
    )


# ============================ forward pass ==================================

def _graph_glue(m_atoms, m_bonds, m_edges, p_atoms, p_edges):
    """Graph structure prep shared by kernel path and f32 reference."""
    B, Nm, _ = m_atoms.shape
    # TODO(synk): for large Nm build adj via segment_sum instead of one_hot.
    valid = (m_edges >= 0)
    validf = valid.astype(jnp.float32)
    nbr_oh = jax.nn.one_hot(jnp.where(valid, m_edges, 0), Nm, dtype=jnp.float32)
    adj = jnp.sum(nbr_oh * validf[..., None], axis=2)            # (B, Nm, Nm)
    bsum = jnp.sum(m_bonds * validf[..., None], axis=2)          # (B, Nm, 6)
    node_mask = (jnp.sum(valid, axis=-1) != 0).astype(jnp.float32)[..., None]

    # protein: symmetric-normalized adjacency with self-loops, khop power
    Np = p_atoms.shape[1]
    eye = jnp.eye(Np, dtype=jnp.float32)
    a = jnp.maximum(p_edges, eye[None])
    dinv = 1.0 / jnp.sqrt(jnp.maximum(jnp.sum(a, axis=-1), 1e-6))
    a_hat = a * dinv[:, :, None] * dinv[:, None, :]
    for _ in range(KHOP - 1):
        a_hat = jnp.matmul(a_hat, a_hat)
    # TODO(synk): exact GraphCore khop semantics and ratio/top-k pooling unavailable.
    return adj, bsum, node_mask, a_hat


def _mlp_head(p, fp_m, fp_p):
    fp = jnp.concatenate([fp_m, fp_p], axis=1)
    (w1, b1), (w2, b2), (w3, b3) = p['fc1'], p['fc2'], p['fc3']
    h = fp @ w1 + b1            # note: no activations between fc1/fc2 (as in GCH)
    h = h @ w2 + b2
    return jax.nn.sigmoid(h @ w3 + b3)


def gch_forward(kparams, m_atoms, m_bonds, m_edges, p_atoms, p_edges):
    adj, bsum, mask, a_hat = _graph_glue(m_atoms, m_bonds, m_edges,
                                         p_atoms, p_edges)
    fp_m, fp_p = gch_branches(adj, m_atoms, bsum, mask, a_hat, p_atoms, kparams)
    return _mlp_head(kparams, fp_m, fp_p)


def gch_forward_ref(params, m_atoms, m_bonds, m_edges, p_atoms, p_edges):
    """Pure-JAX f32 reference with identical math (tolerance check for bf16)."""
    adj, bsum, mask, a_hat = _graph_glue(m_atoms, m_bonds, m_edges,
                                         p_atoms, p_edges)
    w1, b1 = params['gcn_mol_1']
    w2, b2 = params['gcn_mol_2']
    wo, bo = params['gop']

    def mol_conv(x, w, b):
        nbr = jnp.einsum('bij,bjf->bif', adj, x) + x
        return jax.nn.relu(jnp.concatenate([nbr, bsum], axis=-1) @ w + b)

    h = mol_conv(mol_conv(m_atoms, w1, b1), w2, b2)
    g = jnp.tanh(jnp.concatenate([h, bsum], axis=-1) @ wo + bo) * mask
    fp_m = jnp.sum(g, axis=1)

    w1p, b1p = params['gcn_pro_1']
    w2p, b2p = params['gcn_pro_2']
    wop, bop = params['gop_p']

    def pro_conv(x, w, b):
        return jax.nn.relu(jnp.einsum('bij,bjf->bif', a_hat, x @ w) + b)

    hp = pro_conv(pro_conv(p_atoms, w1p, b1p), w2p, b2p)
    fp_p = jnp.sum(jnp.tanh(hp @ wop + bop), axis=1)
    return _mlp_head(params, fp_m, fp_p)


# ============================ demo ==========================================

if __name__ == "__main__":
    key = jax.random.PRNGKey(0)
    kp_, k1, k2, k3, k4, k5 = jax.random.split(key, 6)

    params = init_params(kp_)
    kparams = prepare_params(params)      # one-time bf16 split/fused weight pack

    B, Nm, DEG, Np = 2, 16, 4, 16
    m_atoms = jax.random.normal(k1, (B, Nm, ATOM_FEAT), jnp.float32)
    m_bonds = jax.random.normal(k2, (B, Nm, DEG, BOND_FEAT), jnp.float32)
    m_edges = jax.random.randint(k3, (B, Nm, DEG), -1, Nm).astype(jnp.int32)
    p_atoms = jax.random.normal(k4, (B, Np, PRO_FEAT), jnp.float32)
    p_adj = (jax.random.uniform(k5, (B, Np, Np)) > 0.7).astype(jnp.float32)
    p_edges = jnp.maximum(p_adj, jnp.swapaxes(p_adj, 1, 2))   # symmetric contacts

    out = jax.jit(gch_forward)(kparams, m_atoms, m_bonds, m_edges,
                               p_atoms, p_edges)
    out = jax.block_until_ready(out)

    ref = jax.jit(gch_forward_ref)(params, m_atoms, m_bonds, m_edges,
                                   p_atoms, p_edges)
    ref = jax.block_until_ready(ref)

    assert out.shape == (B, N_CLASS), out.shape
    assert bool(jnp.all(jnp.isfinite(out)))
    assert bool(jnp.all((out >= 0.0) & (out <= 1.0)))
    max_err = float(jnp.max(jnp.abs(out - ref)))
    assert max_err < 5e-2, f"kernel vs f32 reference mismatch: {max_err}"
    print("KERNEL_OK")
</pallas_src>

<mosaic_0001>
module attributes {stable_mosaic.version = 11 : i64} {
  func.func @_gch_branches_kernel(%arg0: i32, %arg1: memref<1x256x256xbf16, #tpu.memory_space<vmem>>, %arg2: memref<256x37xf32, #tpu.memory_space<vmem>>, %arg3: memref<256x6xf32, #tpu.memory_space<vmem>>, %arg4: memref<256x1xf32, #tpu.memory_space<vmem>>, %arg5: memref<1x256x256xbf16, #tpu.memory_space<vmem>>, %arg6: memref<256x480xf32, #tpu.memory_space<vmem>>, %arg7: memref<37x128xbf16, #tpu.memory_space<vmem>>, %arg8: memref<1x128xf32, #tpu.memory_space<vmem>>, %arg9: memref<128x128xbf16, #tpu.memory_space<vmem>>, %arg10: memref<1x128xf32, #tpu.memory_space<vmem>>, %arg11: memref<128x32xbf16, #tpu.memory_space<vmem>>, %arg12: memref<1x32xf32, #tpu.memory_space<vmem>>, %arg13: memref<6x288xbf16, #tpu.memory_space<vmem>>, %arg14: memref<480x200xbf16, #tpu.memory_space<vmem>>, %arg15: memref<1x200xf32, #tpu.memory_space<vmem>>, %arg16: memref<200x100xbf16, #tpu.memory_space<vmem>>, %arg17: memref<1x100xf32, #tpu.memory_space<vmem>>, %arg18: memref<100x32xbf16, #tpu.memory_space<vmem>>, %arg19: memref<1x32xf32, #tpu.memory_space<vmem>>, %arg20: memref<16x64xf32, #tpu.memory_space<vmem>>) attributes {dimension_semantics = [#tpu.dimension_semantics<parallel>], iteration_bounds = array<i64: 1>, scalar_prefetch = 0 : i64, scratch_operands = 0 : i64, tpu.core_type = #tpu.core_type<tc>, window_params = [{transform_indices = @transform_0, window_bounds = array<i64: 1, 256, 256>}, {transform_indices = @transform_1, window_bounds = array<i64: 256, 37>}, {transform_indices = @transform_2, window_bounds = array<i64: 256, 6>}, {transform_indices = @transform_3, window_bounds = array<i64: 256, 1>}, {transform_indices = @transform_4, window_bounds = array<i64: 1, 256, 256>}, {transform_indices = @transform_5, window_bounds = array<i64: 256, 480>}, {pipeline_mode = #tpu.pipeline_mode<synchronous>, transform_indices = @transform_6, window_bounds = array<i64: 37, 128>}, {pipeline_mode = #tpu.pipeline_mode<synchronous>, transform_indices = @transform_7, window_bounds = array<i64: 1, 128>}, {pipeline_mode = #tpu.pipeline_mode<synchronous>, transform_indices = @transform_8, window_bounds = array<i64: 128, 128>}, {pipeline_mode = #tpu.pipeline_mode<synchronous>, transform_indices = @transform_9, window_bounds = array<i64: 1, 128>}, {pipeline_mode = #tpu.pipeline_mode<synchronous>, transform_indices = @transform_10, window_bounds = array<i64: 128, 32>}, {pipeline_mode = #tpu.pipeline_mode<synchronous>, transform_indices = @transform_11, window_bounds = array<i64: 1, 32>}, {pipeline_mode = #tpu.pipeline_mode<synchronous>, transform_indices = @transform_12, window_bounds = array<i64: 6, 288>}, {pipeline_mode = #tpu.pipeline_mode<synchronous>, transform_indices = @transform_13, window_bounds = array<i64: 480, 200>}, {pipeline_mode = #tpu.pipeline_mode<synchronous>, transform_indices = @transform_14, window_bounds = array<i64: 1, 200>}, {pipeline_mode = #tpu.pipeline_mode<synchronous>, transform_indices = @transform_15, window_bounds = array<i64: 200, 100>}, {pipeline_mode = #tpu.pipeline_mode<synchronous>, transform_indices = @transform_16, window_bounds = array<i64: 1, 100>}, {pipeline_mode = #tpu.pipeline_mode<synchronous>, transform_indices = @transform_17, window_bounds = array<i64: 100, 32>}, {pipeline_mode = #tpu.pipeline_mode<synchronous>, transform_indices = @transform_18, window_bounds = array<i64: 1, 32>}, {transform_indices = @transform_19, window_bounds = array<i64: 16, 64>}]} {
    %c0 = arith.constant 0 : index
    %c0_0 = arith.constant 0 : index
    %0 = vector.load %arg3[%c0, %c0_0] : memref<256x6xf32, #tpu.memory_space<vmem>>, vector<256x6xf32>
    %1 = arith.truncf %0 : vector<256x6xf32> to vector<256x6xbf16>
    %c0_1 = arith.constant 0 : index
    %c0_2 = arith.constant 0 : index
    %2 = vector.load %arg13[%c0_1, %c0_2] : memref<6x288xbf16, #tpu.memory_space<vmem>>, vector<6x288xbf16>
    %cst = arith.constant dense<0.000000e+00> : vector<256x288xf32>
    %3 = tpu.matmul %1, %2, %cst {dimension_numbers = #tpu.dot_dimension_numbers<[1], [0], [0], [1], [0, 0, 1, 1], [], []>} : vector<256x6xbf16>, vector<6x288xbf16>, vector<256x288xf32> -> vector<256x288xf32>
    %4 = vector.extract_strided_slice %3 {offsets = [0, 0], sizes = [256, 128], strides = [1, 1]} : vector<256x288xf32> to vector<256x128xf32>
    %5 = vector.extract_strided_slice %3 {offsets = [0, 128], sizes = [256, 128], strides = [1, 1]} : vector<256x288xf32> to vector<256x128xf32>
    %6 = vector.extract_strided_slice %3 {offsets = [0, 256], sizes = [256, 32], strides = [1, 1]} : vector<256x288xf32> to vector<256x32xf32>
    %c0_3 = arith.constant 0 : index
    %c0_4 = arith.constant 0 : index
    %c0_5 = arith.constant 0 : index
    %7 = vector.load %arg1[%c0_3, %c0_4, %c0_5] : memref<1x256x256xbf16, #tpu.memory_space<vmem>>, vector<1x256x256xbf16>
    %c0_6 = arith.constant 0 : index
    %c0_7 = arith.constant 0 : index
    %8 = vector.load %arg2[%c0_6, %c0_7] : memref<256x37xf32, #tpu.memory_space<vmem>>, vector<256x37xf32>
    %9 = arith.truncf %8 : vector<256x37xf32> to vector<256x37xbf16>
    %10 = vector.shape_cast %9 : vector<256x37xbf16> to vector<1x256x37xbf16>
    "tpu.trace_start"() <{level = 10 : i32, message = "gij,gjf->gif"}> : () -> ()
    %cst_8 = arith.constant dense<0.000000e+00> : vector<1x256x37xf32>
    %11 = tpu.matmul %7, %10, %cst_8 {dimension_numbers = #tpu.dot_dimension_numbers<[2], [1], [1], [2], [0, 0, 0, 1, 1, 2], [0], [0]>} : vector<1x256x256xbf16>, vector<1x256x37xbf16>, vector<1x256x37xf32> -> vector<1x256x37xf32>
    "tpu.trace_stop"() : () -> ()
    %12 = vector.shape_cast %11 : vector<1x256x37xf32> to vector<256x37xf32>
    %13 = arith.truncf %12 : vector<256x37xf32> to vector<256x37xbf16>
    %c0_9 = arith.constant 0 : index
    %c0_10 = arith.constant 0 : index
    %14 = vector.load %arg7[%c0_9, %c0_10] : memref<37x128xbf16, #tpu.memory_space<vmem>>, vector<37x128xbf16>
    %cst_11 = arith.constant dense<0.000000e+00> : vector<256x128xf32>
    %15 = tpu.matmul %13, %14, %cst_11 {dimension_numbers = #tpu.dot_dimension_numbers<[1], [0], [0], [1], [0, 0, 1, 1], [], []>} : vector<256x37xbf16>, vector<37x128xbf16>, vector<256x128xf32> -> vector<256x128xf32>
    %16 = arith.addf %15, %4 : vector<256x128xf32>
    %c0_12 = arith.constant 0 : index
    %c0_13 = arith.constant 0 : index
    %17 = vector.load %arg8[%c0_12, %c0_13] : memref<1x128xf32, #tpu.memory_space<vmem>>, vector<1x128xf32>
    %18 = vector.broadcast %17 : vector<1x128xf32> to vector<256x128xf32>
    %19 = arith.addf %16, %18 : vector<256x128xf32>
    %cst_14 = arith.constant 0.000000e+00 : f32
    %20 = vector.broadcast %cst_14 : f32 to vector<256x128xf32>
    %21 = arith.maximumf %19, %20 : vector<256x128xf32>
    %22 = arith.truncf %21 : vector<256x128xf32> to vector<256x128xbf16>
    %23 = vector.shape_cast %22 : vector<256x128xbf16> to vector<1x256x128xbf16>
    "tpu.trace_start"() <{level = 10 : i32, message = "gij,gjf->gif"}> : () -> ()
    %cst_15 = arith.constant dense<0.000000e+00> : vector<1x256x128xf32>
    %24 = tpu.matmul %7, %23, %cst_15 {dimension_numbers = #tpu.dot_dimension_numbers<[2], [1], [1], [2], [0, 0, 0, 1, 1, 2], [0], [0]>} : vector<1x256x256xbf16>, vector<1x256x128xbf16>, vector<1x256x128xf32> -> vector<1x256x128xf32>
    "tpu.trace_stop"() : () -> ()
    %25 = vector.shape_cast %24 : vector<1x256x128xf32> to vector<256x128xf32>
    %26 = arith.truncf %25 : vector<256x128xf32> to vector<256x128xbf16>
    %c0_16 = arith.constant 0 : index
    %c0_17 = arith.constant 0 : index
    %27 = vector.load %arg9[%c0_16, %c0_17] : memref<128x128xbf16, #tpu.memory_space<vmem>>, vector<128x128xbf16>
    %cst_18 = arith.constant dense<0.000000e+00> : vector<256x128xf32>
    %28 = tpu.matmul %26, %27, %cst_18 {dimension_numbers = #tpu.dot_dimension_numbers<[1], [0], [0], [1], [0, 0, 1, 1], [], []>} : vector<256x128xbf16>, vector<128x128xbf16>, vector<256x128xf32> -> vector<256x128xf32>
    %29 = arith.addf %28, %5 : vector<256x128xf32>
    %c0_19 = arith.constant 0 : index
    %c0_20 = arith.constant 0 : index
    %30 = vector.load %arg10[%c0_19, %c0_20] : memref<1x128xf32, #tpu.memory_space<vmem>>, vector<1x128xf32>
    %31 = vector.broadcast %30 : vector<1x128xf32> to vector<256x128xf32>
    %32 = arith.addf %29, %31 : vector<256x128xf32>
    %cst_21 = arith.constant 0.000000e+00 : f32
    %33 = vector.broadcast %cst_21 : f32 to vector<256x128xf32>
    %34 = arith.maximumf %32, %33 : vector<256x128xf32>
    %35 = arith.truncf %34 : vector<256x128xf32> to vector<256x128xbf16>
    %c0_22 = arith.constant 0 : index
    %c0_23 = arith.constant 0 : index
    %36 = vector.load %arg11[%c0_22, %c0_23] : memref<128x32xbf16, #tpu.memory_space<vmem>>, vector<128x32xbf16>
    %cst_24 = arith.constant dense<0.000000e+00> : vector<256x32xf32>
    %37 = tpu.matmul %35, %36, %cst_24 {dimension_numbers = #tpu.dot_dimension_numbers<[1], [0], [0], [1], [0, 0, 1, 1], [], []>} : vector<256x128xbf16>, vector<128x32xbf16>, vector<256x32xf32> -> vector<256x32xf32>
    %38 = arith.addf %37, %6 : vector<256x32xf32>
    %c0_25 = arith.constant 0 : index
    %c0_26 = arith.constant 0 : index
    %39 = vector.load %arg12[%c0_25, %c0_26] : memref<1x32xf32, #tpu.memory_space<vmem>>, vector<1x32xf32>
    %40 = vector.broadcast %39 : vector<1x32xf32> to vector<256x32xf32>
    %41 = arith.addf %38, %40 : vector<256x32xf32>
    %42 = math.tanh %41 : vector<256x32xf32>
    %c0_27 = arith.constant 0 : index
    %c0_28 = arith.constant 0 : index
    %43 = vector.load %arg4[%c0_27, %c0_28] : memref<256x1xf32, #tpu.memory_space<vmem>>, vector<256x1xf32>
    %44 = vector.broadcast %43 : vector<256x1xf32> to vector<256x32xf32>
    %45 = arith.mulf %42, %44 : vector<256x32xf32>
    %46 = vector.shape_cast %45 : vector<256x32xf32> to vector<16x16x32xf32>
    %cst_29 = arith.constant dense<0.000000e+00> : vector<16x32xf32>
    %47 = vector.multi_reduction <add>, %46, %cst_29 [1] : vector<16x16x32xf32> to vector<16x32xf32>
    %c0_30 = arith.constant 0 : index
    %c0_31 = arith.constant 0 : index
    %c0_32 = arith.constant 0 : index
    %48 = vector.load %arg5[%c0_30, %c0_31, %c0_32] : memref<1x256x256xbf16, #tpu.memory_space<vmem>>, vector<1x256x256xbf16>
    %c0_33 = arith.constant 0 : index
    %c0_34 = arith.constant 0 : index
    %49 = vector.load %arg6[%c0_33, %c0_34] : memref<256x480xf32, #tpu.memory_space<vmem>>, vector<256x480xf32>
    %50 = arith.truncf %49 : vector<256x480xf32> to vector<256x480xbf16>
    %c0_35 = arith.constant 0 : index
    %c0_36 = arith.constant 0 : index
    %51 = vector.load %arg14[%c0_35, %c0_36] : memref<480x200xbf16, #tpu.memory_space<vmem>>, vector<480x200xbf16>
    %cst_37 = arith.constant dense<0.000000e+00> : vector<256x200xf32>
    %52 = tpu.matmul %50, %51, %cst_37 {dimension_numbers = #tpu.dot_dimension_numbers<[1], [0], [0], [1], [0, 0, 1, 1], [], []>} : vector<256x480xbf16>, vector<480x200xbf16>, vector<256x200xf32> -> vector<256x200xf32>
    %53 = arith.truncf %52 : vector<256x200xf32> to vector<256x200xbf16>
    %54 = vector.shape_cast %53 : vector<256x200xbf16> to vector<1x256x200xbf16>
    "tpu.trace_start"() <{level = 10 : i32, message = "gij,gjf->gif"}> : () -> ()
    %cst_38 = arith.constant dense<0.000000e+00> : vector<1x256x200xf32>
    %55 = tpu.matmul %48, %54, %cst_38 {dimension_numbers = #tpu.dot_dimension_numbers<[2], [1], [1], [2], [0, 0, 0, 1, 1, 2], [0], [0]>} : vector<1x256x256xbf16>, vector<1x256x200xbf16>, vector<1x256x200xf32> -> vector<1x256x200xf32>
    "tpu.trace_stop"() : () -> ()
    %56 = vector.shape_cast %55 : vector<1x256x200xf32> to vector<256x200xf32>
    %c0_39 = arith.constant 0 : index
    %c0_40 = arith.constant 0 : index
    %57 = vector.load %arg15[%c0_39, %c0_40] : memref<1x200xf32, #tpu.memory_space<vmem>>, vector<1x200xf32>
    %58 = vector.broadcast %57 : vector<1x200xf32> to vector<256x200xf32>
    %59 = arith.addf %56, %58 : vector<256x200xf32>
    %cst_41 = arith.constant 0.000000e+00 : f32
    %60 = vector.broadcast %cst_41 : f32 to vector<256x200xf32>
    %61 = arith.maximumf %59, %60 : vector<256x200xf32>
    %62 = arith.truncf %61 : vector<256x200xf32> to vector<256x200xbf16>
    %c0_42 = arith.constant 0 : index
    %c0_43 = arith.constant 0 : index
    %63 = vector.load %arg16[%c0_42, %c0_43] : memref<200x100xbf16, #tpu.memory_space<vmem>>, vector<200x100xbf16>
    %cst_44 = arith.constant dense<0.000000e+00> : vector<256x100xf32>
    %64 = tpu.matmul %62, %63, %cst_44 {dimension_numbers = #tpu.dot_dimension_numbers<[1], [0], [0], [1], [0, 0, 1, 1], [], []>} : vector<256x200xbf16>, vector<200x100xbf16>, vector<256x100xf32> -> vector<256x100xf32>
    %65 = arith.truncf %64 : vector<256x100xf32> to vector<256x100xbf16>
    %66 = vector.shape_cast %65 : vector<256x100xbf16> to vector<1x256x100xbf16>
    "tpu.trace_start"() <{level = 10 : i32, message = "gij,gjf->gif"}> : () -> ()
    %cst_45 = arith.constant dense<0.000000e+00> : vector<1x256x100xf32>
    %67 = tpu.matmul %48, %66, %cst_45 {dimension_numbers = #tpu.dot_dimension_numbers<[2], [1], [1], [2], [0, 0, 0, 1, 1, 2], [0], [0]>} : vector<1x256x256xbf16>, vector<1x256x100xbf16>, vector<1x256x100xf32> -> vector<1x256x100xf32>
    "tpu.trace_stop"() : () -> ()
    %68 = vector.shape_cast %67 : vector<1x256x100xf32> to vector<256x100xf32>
    %c0_46 = arith.constant 0 : index
    %c0_47 = arith.constant 0 : index
    %69 = vector.load %arg17[%c0_46, %c0_47] : memref<1x100xf32, #tpu.memory_space<vmem>>, vector<1x100xf32>
    %70 = vector.broadcast %69 : vector<1x100xf32> to vector<256x100xf32>
    %71 = arith.addf %68, %70 : vector<256x100xf32>
    %cst_48 = arith.constant 0.000000e+00 : f32
    %72 = vector.broadcast %cst_48 : f32 to vector<256x100xf32>
    %73 = arith.maximumf %71, %72 : vector<256x100xf32>
    %74 = arith.truncf %73 : vector<256x100xf32> to vector<256x100xbf16>
    %c0_49 = arith.constant 0 : index
    %c0_50 = arith.constant 0 : index
    %75 = vector.load %arg18[%c0_49, %c0_50] : memref<100x32xbf16, #tpu.memory_space<vmem>>, vector<100x32xbf16>
    %cst_51 = arith.constant dense<0.000000e+00> : vector<256x32xf32>
    %76 = tpu.matmul %74, %75, %cst_51 {dimension_numbers = #tpu.dot_dimension_numbers<[1], [0], [0], [1], [0, 0, 1, 1], [], []>} : vector<256x100xbf16>, vector<100x32xbf16>, vector<256x32xf32> -> vector<256x32xf32>
    %c0_52 = arith.constant 0 : index
    %c0_53 = arith.constant 0 : index
    %77 = vector.load %arg19[%c0_52, %c0_53] : memref<1x32xf32, #tpu.memory_space<vmem>>, vector<1x32xf32>
    %78 = vector.broadcast %77 : vector<1x32xf32> to vector<256x32xf32>
    %79 = arith.addf %76, %78 : vector<256x32xf32>
    %80 = math.tanh %79 : vector<256x32xf32>
    %81 = vector.shape_cast %80 : vector<256x32xf32> to vector<16x16x32xf32>
    %cst_54 = arith.constant dense<0.000000e+00> : vector<16x32xf32>
    %82 = vector.multi_reduction <add>, %81, %cst_54 [1] : vector<16x16x32xf32> to vector<16x32xf32>
    %c0_55 = arith.constant 0 : index
    %c0_56 = arith.constant 0 : index
    %83 = vector.load %arg20[%c0_55, %c0_56] : memref<16x64xf32, #tpu.memory_space<vmem>>, vector<16x32xf32>
    tpu.vector_store %arg20[%c0_55, %c0_56], %47 {strides = array<i32>} : memref<16x64xf32, #tpu.memory_space<vmem>>, vector<16x32xf32>,
    %c0_57 = arith.constant 0 : index
    %c32 = arith.constant 32 : index
    %84 = vector.load %arg20[%c0_57, %c32] : memref<16x64xf32, #tpu.memory_space<vmem>>, vector<16x32xf32>
    tpu.vector_store %arg20[%c0_57, %c32], %82 {strides = array<i32>} : memref<16x64xf32, #tpu.memory_space<vmem>>, vector<16x32xf32>,
    return
  }
  func.func @transform_0(%arg0: i32) -> (i32, i32, i32) {
    %c0_i32 = arith.constant 0 : i32
    %c0_i32_0 = arith.constant 0 : i32
    %c0_i32_1 = arith.constant 0 : i32
    return %arg0, %c0_i32, %c0_i32_0 : i32, i32, i32
  }
  func.func @transform_1(%arg0: i32) -> (i32, i32) {
    %c0_i32 = arith.constant 0 : i32
    %c0_i32_0 = arith.constant 0 : i32
    return %arg0, %c0_i32 : i32, i32
  }
  func.func @transform_2(%arg0: i32) -> (i32, i32) {
    %c0_i32 = arith.constant 0 : i32
    %c0_i32_0 = arith.constant 0 : i32
    return %arg0, %c0_i32 : i32, i32
  }
  func.func @transform_3(%arg0: i32) -> (i32, i32) {
    %c0_i32 = arith.constant 0 : i32
    %c0_i32_0 = arith.constant 0 : i32
    return %arg0, %c0_i32 : i32, i32
  }
  func.func @transform_4(%arg0: i32) -> (i32, i32, i32) {
    %c0_i32 = arith.constant 0 : i32
    %c0_i32_0 = arith.constant 0 : i32
    %c0_i32_1 = arith.constant 0 : i32
    return %arg0, %c0_i32, %c0_i32_0 : i32, i32, i32
  }
  func.func @transform_5(%arg0: i32) -> (i32, i32) {
    %c0_i32 = arith.constant 0 : i32
    %c0_i32_0 = arith.constant 0 : i32
    return %arg0, %c0_i32 : i32, i32
  }
  func.func @transform_6(%arg0: i32) -> (i32, i32) {
    %c0_i32 = arith.constant 0 : i32
    %c0_i32_0 = arith.constant 0 : i32
    %c0_i32_1 = arith.constant 0 : i32
    return %c0_i32, %c0_i32_0 : i32, i32
  }
  func.func @transform_7(%arg0: i32) -> (i32, i32) {
    %c0_i32 = arith.constant 0 : i32
    %c0_i32_0 = arith.constant 0 : i32
    %c0_i32_1 = arith.constant 0 : i32
    return %c0_i32, %c0_i32_0 : i32, i32
  }
  func.func @transform_8(%arg0: i32) -> (i32, i32) {
    %c0_i32 = arith.constant 0 : i32
    %c0_i32_0 = arith.constant 0 : i32
    %c0_i32_1 = arith.constant 0 : i32
    return %c0_i32, %c0_i32_0 : i32, i32
  }
  func.func @transform_9(%arg0: i32) -> (i32, i32) {
    %c0_i32 = arith.constant 0 : i32
    %c0_i32_0 = arith.constant 0 : i32
    %c0_i32_1 = arith.constant 0 : i32
    return %c0_i32, %c0_i32_0 : i32, i32
  }
  func.func @transform_10(%arg0: i32) -> (i32, i32) {
    %c0_i32 = arith.constant 0 : i32
    %c0_i32_0 = arith.constant 0 : i32
    %c0_i32_1 = arith.constant 0 : i32
    return %c0_i32, %c0_i32_0 : i32, i32
  }
  func.func @transform_11(%arg0: i32) -> (i32, i32) {
    %c0_i32 = arith.constant 0 : i32
    %c0_i32_0 = arith.constant 0 : i32
    %c0_i32_1 = arith.constant 0 : i32
    return %c0_i32, %c0_i32_0 : i32, i32
  }
  func.func @transform_12(%arg0: i32) -> (i32, i32) {
    %c0_i32 = arith.constant 0 : i32
    %c0_i32_0 = arith.constant 0 : i32
    %c0_i32_1 = arith.constant 0 : i32
    return %c0_i32, %c0_i32_0 : i32, i32
  }
  func.func @transform_13(%arg0: i32) -> (i32, i32) {
    %c0_i32 = arith.constant 0 : i32
    %c0_i32_0 = arith.constant 0 : i32
    %c0_i32_1 = arith.constant 0 : i32
    return %c0_i32, %c0_i32_0 : i32, i32
  }
  func.func @transform_14(%arg0: i32) -> (i32, i32) {
    %c0_i32 = arith.constant 0 : i32
    %c0_i32_0 = arith.constant 0 : i32
    %c0_i32_1 = arith.constant 0 : i32
    return %c0_i32, %c0_i32_0 : i32, i32
  }
  func.func @transform_15(%arg0: i32) -> (i32, i32) {
    %c0_i32 = arith.constant 0 : i32
    %c0_i32_0 = arith.constant 0 : i32
    %c0_i32_1 = arith.constant 0 : i32
    return %c0_i32, %c0_i32_0 : i32, i32
  }
  func.func @transform_16(%arg0: i32) -> (i32, i32) {
    %c0_i32 = arith.constant 0 : i32
    %c0_i32_0 = arith.constant 0 : i32
    %c0_i32_1 = arith.constant 0 : i32
    return %c0_i32, %c0_i32_0 : i32, i32
  }
  func.func @transform_17(%arg0: i32) -> (i32, i32) {
    %c0_i32 = arith.constant 0 : i32
    %c0_i32_0 = arith.constant 0 : i32
    %c0_i32_1 = arith.constant 0 : i32
    return %c0_i32, %c0_i32_0 : i32, i32
  }
  func.func @transform_18(%arg0: i32) -> (i32, i32) {
    %c0_i32 = arith.constant 0 : i32
    %c0_i32_0 = arith.constant 0 : i32
    %c0_i32_1 = arith.constant 0 : i32
    return %c0_i32, %c0_i32_0 : i32, i32
  }
  func.func @transform_19(%arg0: i32) -> (i32, i32) {
    %c0_i32 = arith.constant 0 : i32
    %c0_i32_0 = arith.constant 0 : i32
    return %arg0, %c0_i32 : i32, i32
  }
}

</mosaic_0001>

<bundles_post_ra>
// kernel: gch_forward.1
= control target key start
LH: loop header
LB: loop body
LE: loop exit
PB: predicated region body
PF: predicated region fallthrough
CT: control target
= control target key end

     0   :  { %vm170_vm0 = vcmask 1042432   ;;  %vm121_vm1 = vcmask 48128   ;;  %vm1062_vm2 = vcmask 1041408   ;;  %vm1013_vm3 = vcmask 302080   ;;  %s10327_s12 = inlined_call_operand.vmem [shape: bf16[6,288], index: 12, kind: input, shape index: {}]   ;;  %s10328_s2 = inlined_call_operand.vmem [shape: f32[256,6], index: 2, kind: input, shape index: {}]   ;;  %s10329_s1 = inlined_call_operand.vmem [shape: f32[256,37], index: 1, kind: input, shape index: {}]   ;;  %s10330_s0 = inlined_call_operand.vmem [shape: bf16[1,256,256], index: 0, kind: input, shape index: {}]   ;;  %s10331_s6 = inlined_call_operand.vmem [shape: bf16[37,128], index: 6, kind: input, shape index: {}]   ;;  %s10332_s7 = inlined_call_operand.vmem [shape: f32[1,128], index: 7, kind: input, shape index: {}]   ;;  %s10333_s8 = inlined_call_operand.vmem [shape: bf16[128,128], index: 8, kind: input, shape index: {}]   ;;  %s10334_s9 = inlined_call_operand.vmem [shape: f32[1,128], index: 9, kind: input, shape index: {}]   ;;  %s10335_s10 = inlined_call_operand.vmem [shape: bf16[128,32], index: 10, kind: input, shape index: {}]   ;;  %s10336_s3 = inlined_call_operand.vmem [shape: f32[256,1], index: 3, kind: input, shape index: {}]   ;;  %s10337_s11 = inlined_call_operand.vmem [shape: f32[1,32], index: 11, kind: input, shape index: {}]   ;;  %s10338_s13 = inlined_call_operand.vmem [shape: bf16[480,200], index: 13, kind: input, shape index: {}]   ;;  %s10339_s5 = inlined_call_operand.vmem [shape: f32[256,480], index: 5, kind: input, shape index: {}]   ;;  %s10340_s19 = inlined_call_operand.vmem [shape: f32[16,64], index: 19, kind: output, shape index: {}]   ;;  %s10341_s4 = inlined_call_operand.vmem [shape: bf16[1,256,256], index: 4, kind: input, shape index: {}]   ;;  %s10342_s15 = inlined_call_operand.vmem [shape: bf16[200,100], index: 15, kind: input, shape index: {}]   ;;  %s10343_s14 = inlined_call_operand.vmem [shape: f32[1,200], index: 14, kind: input, shape index: {}]   ;;  %s10344_s17 = inlined_call_operand.vmem [shape: bf16[100,32], index: 17, kind: input, shape index: {}]   ;;  %s10345_s16 = inlined_call_operand.vmem [shape: f32[1,100], index: 16, kind: input, shape index: {}]   ;;  %s10346_s18 = inlined_call_operand.vmem [shape: f32[1,32], index: 18, kind: input, shape index: {}]  }
   0x1   :  { %10403 = sst [smem:[#allocation62_spill]] %s10327_s12  ;;  %vm2229_vm4 = vcmask 261120   ;;  %vm5607_vm5 = vcmask 1041409   ;;  %vm5609_vm6 = vcmask 1042434   ;;  %vm5611_vm7 = vcmask 1043459  }
   0x2   :  { %10404 = sst [smem:[#allocation63_spill]] %s10328_s2  ;;  %vm2958_vm8 = vcmask 785408   ;;  %vm5613_vm9 = vcmask 1044484   ;;  %vm5615_vm10 = vcmask 1045509   ;;  %vm5617_vm11 = vcmask 1046534  }
   0x3   :  { %10405 = sst [smem:[#allocation64_spill]] %s10329_s1  ;;  %vm5619_vm12 = vcmask 1047559   ;;  %vm4678_vm13 = vcmask 1043456   ;;  %vm4629_vm14 = vcmask 588800   ;;  %vm5274_vm15 = vcmask 818176  }
   0x4   :  { %10406 = sst [smem:[#allocation65_spill]] %s10330_s0 }
   0x5   :  { %s10407_s20 = sld [smem:[#allocation62_spill]] }
   0x6   :  { %s10408_s22 = sld [smem:[#allocation63_spill]] }
   0x7   :  { %s10409_s23 = sld [smem:[#allocation64_spill]] }
   0x8   :  { %s10410_s30 = sld [smem:[#allocation65_spill]] }
   0xb   :  { %v111_v0 = vld [vmem:[%s10407_s20] sm:$0x77]  ;;  %v112_v37 = vld [vmem:[%s10407_s20 + $0x8] sm:$0x7] }
   0xc   :  { %v115_v1 = vunpack.c.l.b16 %v111_v0  ;;  %v63_v2 = vld [vmem:[%s10408_s22] sm:$0xff]  ;;  %v64_v3 = vld [vmem:[%s10408_s22 + $0x8] sm:$0xff]  ;;  %v65_v10 = vld [vmem:[%s10408_s22 + $0x10] sm:$0xff]  ;;  %v116_v16 = vunpack.c.h.b16 %v111_v0  ;;  %v117_v38 = vunpack.c.l.b16 %v112_v37 }
   0xd   :  { %v87_v4 = vld [vmem:[%s10408_s22 + $0xc0] sm:$0xff]  ;;  %v88_v5 = vld [vmem:[%s10408_s22 + $0xc8] sm:$0xff]  ;;  %v95_v8 = vpack.c.bf16 %v64_v3, %v63_v2  ;;  %v66_v11 = vld [vmem:[%s10408_s22 + $0x18] sm:$0xff] }
   0xe   :  { %v118_v6 = vpack.c.b16 %v115_v1, %v115_v1  ;;  %v6866_v9 = vpack.c.bf16 %v88_v5, %v87_v4  ;;  %v89_v12 = vld [vmem:[%s10408_s22 + $0xd0] sm:$0xff]  ;;  %v90_v13 = vld [vmem:[%s10408_s22 + $0xd8] sm:$0xff]  ;;  %v96_v14 = vpack.c.bf16 %v66_v11, %v65_v10  ;;  %v119_v17 = vpack.c.b16 %v116_v16, %v116_v16  ;;  %v67_v19 = vld [vmem:[%s10408_s22 + $0x20] sm:$0xff] }
   0xf   :  { %v6883_v15 = vpack.c.bf16 %v90_v13, %v89_v12  ;;  %v68_v20 = vld [vmem:[%s10408_s22 + $0x28] sm:$0xff]  ;;  %v91_v21 = vld [vmem:[%s10408_s22 + $0xe0] sm:$0xff]  ;;  %v69_v25 = vld [vmem:[%s10408_s22 + $0x30] sm:$0xff]  ;;  %v120_v41 = vpack.c.b16 %v117_v38, %v117_v38 }
  0x10   :  { %v172_v7 = vsel %vm170_vm0, %v118_v6, 0  ;;  %v175_v18 = vsel %vm170_vm0, %v119_v17, 0  ;;  %v92_v22 = vld [vmem:[%s10408_s22 + $0xe8] sm:$0xff]  ;;  %v6902_v23 = vpack.c.bf16 %v68_v20, %v67_v19  ;;  %v70_v26 = vld [vmem:[%s10408_s22 + $0x38] sm:$0xff]  ;;  %v93_v27 = vld [vmem:[%s10408_s22 + $0xf0] sm:$0xff] }
  0x11   :  { %187 = vmatpush.bf16.msra.mxu0 %v172_v7  ;;  %6603 = vmatpush.bf16.msra.mxu3 %v172_v7  ;;  %v6904_v24 = vpack.c.bf16 %v92_v22, %v91_v21  ;;  %v94_v28 = vld [vmem:[%s10408_s22 + $0xf8] sm:$0xff]  ;;  %v6923_v29 = vpack.c.bf16 %v70_v26, %v69_v25  ;;  %v71_v31 = vld [vmem:[%s10408_s22 + $0x40] sm:$0xff]  ;;  %v72_v32 = vld [vmem:[%s10408_s22 + $0x48] sm:$0xff]  ;;  %v178_v43 = vsel %vm170_vm0, %v120_v41, 0 }
  0x12   :  { %276 = vmatpush.bf16.msra.mxu1 %v175_v18  ;;  %v6925_v30 = vpack.c.bf16 %v94_v28, %v93_v27  ;;  %v6939_v33 = vpack.c.bf16 %v72_v32, %v71_v31  ;;  %v73_v34 = vld [vmem:[%s10408_s22 + $0x50] sm:$0xff]  ;;  %v74_v35 = vld [vmem:[%s10408_s22 + $0x58] sm:$0xff]  ;;  %v75_v39 = vld [vmem:[%s10408_s22 + $0x60] sm:$0xff]  ;;  %365 = vmatpush.bf16.msra.mxu2 %v178_v43 }
  0x13   :  { %v6953_v36 = vpack.c.bf16 %v74_v35, %v73_v34  ;;  %v76_v40 = vld [vmem:[%s10408_s22 + $0x68] sm:$0xff]  ;;  %v77_v44 = vld [vmem:[%s10408_s22 + $0x70] sm:$0xff]  ;;  %v78_v45 = vld [vmem:[%s10408_s22 + $0x78] sm:$0xff] }
  0x14   :  { %5675 = vmatmul.msk.bf16.vlgmr.msra.gmra.mxu0 %vm121_vm1, %v95_v8  ;;  %5687 = vmatmul.msk.bf16.vlgmr.msra.gmra.mxu3 %vm121_vm1, %v6866_v9  ;;  %v6970_v42 = vpack.c.bf16 %v76_v40, %v75_v39  ;;  %v6986_v46 = vpack.c.bf16 %v78_v45, %v77_v44  ;;  %v79_v47 = vld [vmem:[%s10408_s22 + $0x80] sm:$0xff]  ;;  %v80_v48 = vld [vmem:[%s10408_s22 + $0x88] sm:$0xff]  ;;  %v493_v49 = vld [vmem:[%s10409_s23 + $0x70] sm:$0xff] }
  0x15   :  { %6604 = vmatpush.bf16.msrb.mxu3 %v175_v18  ;;  %5691 = vmatmul.msk.bf16.vlgmr.msra.gmra.mxu1 %vm121_vm1, %v95_v8  ;;  %v494_v50 = vld [vmem:[%s10409_s23 + $0x78] sm:$0xff]  ;;  %v509_v51 = vld [vmem:[%s10409_s23 + $0xf0] sm:$0xff]  ;;  %v525_v52 = vpack.c.bf16 %v493_v49, %v493_v49  ;;  %v7013_v56 = vpack.c.bf16 %v80_v48, %v79_v47  ;;  %v491_v63 = vld [vmem:[%s10409_s23 + $0x60] sm:$0xff] }
  0x16   :  { %5707 = vmatmul.msk.bf16.vlgmr.msra.gmra.mxu2 %vm121_vm1, %v95_v8  ;;  %v526_v53 = vpack.c.bf16 %v494_v50, %v494_v50  ;;  %v510_v54 = vld [vmem:[%s10409_s23 + $0xf8] sm:$0xff]  ;;  %v541_v55 = vpack.c.bf16 %v509_v51, %v509_v51  ;;  %v492_v0 = vld [vmem:[%s10409_s23 + $0x68] sm:$0xff]  ;;  %v507_v1 = vld [vmem:[%s10409_s23 + $0xe0] sm:$0xff]  ;;  %v523_v3 = vpack.c.bf16 %v491_v63, %v491_v63 }
  0x17   :  { %v542_v57 = vpack.c.bf16 %v510_v54, %v510_v54  ;;  %v749_v59 = vunpack.c.l.b16 %v525_v52  ;;  %v524_v4 = vpack.c.bf16 %v492_v0, %v492_v0  ;;  %v508_v5 = vld [vmem:[%s10409_s23 + $0xe8] sm:$0xff]  ;;  %v539_v6 = vpack.c.bf16 %v507_v1, %v507_v1  ;;  %v490_v16 = vld [vmem:[%s10409_s23 + $0x58] sm:$0xff]  ;;  %v487_v34 = vld [vmem:[%s10409_s23 + $0x40] sm:$0xff] }
  0x18   :  { %v750_v60 = vunpack.c.l.b16 %v526_v53  ;;  %v765_v61 = vunpack.c.l.b16 %v541_v55  ;;  %v540_v8 = vpack.c.bf16 %v508_v5, %v508_v5  ;;  %v747_v10 = vunpack.c.l.b16 %v523_v3  ;;  %v506_v21 = vld [vmem:[%s10409_s23 + $0xd8] sm:$0xff]  ;;  %v488_v35 = vld [vmem:[%s10409_s23 + $0x48] sm:$0xff]  ;;  %v503_v37 = vld [vmem:[%s10409_s23 + $0xc0] sm:$0xff] }
  0x19   :  { %6605 = vmatpush.bf16.msra.mxu3 %v178_v43  ;;  %v766_v62 = vunpack.c.l.b16 %v542_v57  ;;  %v748_v11 = vunpack.c.l.b16 %v524_v4  ;;  %v763_v12 = vunpack.c.l.b16 %v539_v6  ;;  %v522_v20 = vpack.c.bf16 %v490_v16, %v490_v16  ;;  %v504_v41 = vld [vmem:[%s10409_s23 + $0xc8] sm:$0xff]  ;;  %v81_v47 = vld [vmem:[%s10408_s22 + $0x90] sm:$0xff]  ;;  %v82_v48 = vld [vmem:[%s10408_s22 + $0x98] sm:$0xff] }
  0x1a   :  { %v774_v2 = vpack.c.b16 %v750_v60, %v749_v59  ;;  %v764_v13 = vunpack.c.l.b16 %v540_v8  ;;  %v538_v25 = vpack.c.bf16 %v506_v21, %v506_v21  ;;  %v519_v39 = vpack.c.bf16 %v487_v34, %v487_v34  ;;  %v485_v53 = vld [vmem:[%s10409_s23 + $0x30] sm:$0xff]  ;;  %v486_v54 = vld [vmem:[%s10409_s23 + $0x38] sm:$0xff]  ;;  %v483_v8 = vld [vmem:[%s10409_s23 + $0x20] sm:$0xff] }
  0x1b   :  { %v782_v7 = vpack.c.b16 %v766_v62, %v765_v61  ;;  %v773_v18 = vpack.c.b16 %v748_v11, %v747_v10  ;;  %v746_v28 = vunpack.c.l.b16 %v522_v20  ;;  %v520_v40 = vpack.c.bf16 %v488_v35, %v488_v35  ;;  %v501_v55 = vld [vmem:[%s10409_s23 + $0xb0] sm:$0xff]  ;;  %v502_v62 = vld [vmem:[%s10409_s23 + $0xb8] sm:$0xff]  ;;  %v484_v10 = vld [vmem:[%s10409_s23 + $0x28] sm:$0xff] }
  0x1c   :  { %v762_v32 = vunpack.c.l.b16 %v538_v25  ;;  %v535_v43 = vpack.c.bf16 %v503_v37, %v503_v37  ;;  %v536_v45 = vpack.c.bf16 %v504_v41, %v504_v41  ;;  %v743_v49 = vunpack.c.l.b16 %v519_v39  ;;  %v499_v11 = vld [vmem:[%s10409_s23 + $0xa0] sm:$0xff]  ;;  %v500_v16 = vld [vmem:[%s10409_s23 + $0xa8] sm:$0xff]  ;;  %v481_v25 = vld [vmem:[%s10409_s23 + $0x10] sm:$0xff] }
  0x1d   :  { %888 = vmatpush.bf16.msrb.mxu0 %v782_v7  ;;  %v744_v50 = vunpack.c.l.b16 %v520_v40  ;;  %v517_v60 = vpack.c.bf16 %v485_v53, %v485_v53  ;;  %v518_v61 = vpack.c.bf16 %v486_v54, %v486_v54  ;;  %v533_v63 = vpack.c.bf16 %v501_v55, %v501_v55 }
  0x1e   :  { %v759_v51 = vunpack.c.l.b16 %v535_v43  ;;  %v760_v52 = vunpack.c.l.b16 %v536_v45  ;;  %v7085_v0 = vpack.c.bf16 %v82_v48, %v81_v47  ;;  %v479_v45 = vld [vmem:[%s10409_s23] sm:$0xff]  ;;  %v480_v47 = vld [vmem:[%s10409_s23 + $0x8] sm:$0xff] }
  0x1f   :  { %v771_v59 = vpack.c.b16 %v744_v50, %v743_v49  ;;  %v741_v4 = vunpack.c.l.b16 %v517_v60  ;;  %v742_v5 = vunpack.c.l.b16 %v518_v61  ;;  %v757_v6 = vunpack.c.l.b16 %v533_v63  ;;  %v495_v48 = vld [vmem:[%s10409_s23 + $0x80] sm:$0xff]  ;;  %v84_v60 = vld [vmem:[%s10408_s22 + $0xa8] sm:$0xff] }
  0x20   :  { %v779_v1 = vpack.c.b16 %v760_v52, %v759_v51  ;;  %v511_v50 = vpack.c.bf16 %v479_v45, %v479_v45  ;;  %v512_v51 = vpack.c.bf16 %v480_v47, %v480_v47  ;;  %v496_v52 = vld [vmem:[%s10409_s23 + $0x88] sm:$0xff]  ;;  %v527_v53 = vpack.c.bf16 %v495_v48, %v495_v48 }
  0x21   :  { %v528_v55 = vpack.c.bf16 %v496_v52, %v496_v52  ;;  %v5749_v52 = vld [vmem:[%s10410_s30 + $0x30] sm:$0xf] }
  0x22   :  { %v735_v61 = vunpack.c.l.b16 %v511_v50  ;;  %v751_v63 = vunpack.c.l.b16 %v527_v53  ;;  %v6450_v53 = vld [vmem:[%s10410_s30 + $0x34] sm:$0xf0] }
  0x24   :  { %5676 = vmatmul.msk.bf16.gmra.mxu0 %vm121_vm1, %v96_v14  ;;  %5688 = vmatmul.msk.bf16.gmra.mxu3 %vm121_vm1, %v6883_v15 }
  0x25   :  { %5692 = vmatmul.msk.bf16.gmra.mxu1 %vm121_vm1, %v96_v14 }
  0x26   :  { %5708 = vmatmul.msk.bf16.gmra.mxu2 %vm121_vm1, %v96_v14  ;;  %v489_v14 = vld [vmem:[%s10409_s23 + $0x50] sm:$0xff] }
  0x27   :  { %v521_v19 = vpack.c.bf16 %v489_v14, %v489_v14  ;;  %v516_v14 = vpack.c.bf16 %v484_v10, %v484_v10 }
  0x29   :  { %v745_v27 = vunpack.c.l.b16 %v521_v19  ;;  %v532_v19 = vpack.c.bf16 %v500_v16, %v500_v16  ;;  %v740_v21 = vunpack.c.l.b16 %v516_v14 }
  0x2b   :  { %v772_v38 = vpack.c.b16 %v746_v28, %v745_v27  ;;  %v482_v27 = vld [vmem:[%s10409_s23 + $0x18] sm:$0xff] }
  0x2c   :  { %v514_v34 = vpack.c.bf16 %v482_v27, %v482_v27  ;;  %v5733_v27 = vld [vmem:[%s10410_s30 + $0x10] sm:$0xf] }
  0x2e   :  { %v738_v41 = vunpack.c.l.b16 %v514_v34 }
  0x34   :  { %5677 = vmatmul.msk.bf16.gmra.mxu0 %vm121_vm1, %v6902_v23  ;;  %5689 = vmatmul.msk.bf16.gmra.mxu3 %vm121_vm1, %v6904_v24 }
  0x35   :  { %5693 = vmatmul.msk.bf16.gmra.mxu1 %vm121_vm1, %v6902_v23 }
  0x36   :  { %5709 = vmatmul.msk.bf16.gmra.mxu2 %vm121_vm1, %v6902_v23  ;;  %v781_v23 = vpack.c.b16 %v764_v13, %v763_v12  ;;  %v770_v12 = vpack.c.b16 %v742_v5, %v741_v4  ;;  %v515_v13 = vpack.c.bf16 %v483_v8, %v483_v8 }
  0x38   :  { %889 = vmatpush.bf16.msrb.mxu0 %v781_v23  ;;  %v739_v20 = vunpack.c.l.b16 %v515_v13  ;;  %v756_v23 = vunpack.c.l.b16 %v532_v19 }
  0x44   :  { %5678 = vmatmul.msk.bf16.gmra.mxu0 %vm121_vm1, %v6923_v29  ;;  %5690 = vmatmul.msk.bf16.gmra.mxu3 %vm121_vm1, %v6925_v30 }
  0x45   :  { %5694 = vmatmul.msk.bf16.gmra.mxu1 %vm121_vm1, %v6923_v29 }
  0x46   :  { %5710 = vmatmul.msk.bf16.gmra.mxu2 %vm121_vm1, %v6923_v29  ;;  %v498_v29 = vld [vmem:[%s10409_s23 + $0x98] sm:$0xff] }
  0x54   :  { %5679 = vmatmul.msk.bf16.gmra.mxu0 %vm121_vm1, %v6939_v33  ;;  %5703 = vmatmul.msk.bf16.vlgmr.msrb.gmra.mxu3 %vm121_vm1, %v6866_v9 }
  0x55   :  { %5695 = vmatmul.msk.bf16.gmra.mxu1 %vm121_vm1, %v6939_v33  ;;  %799 = vmatpush.bf16.msrb.mxu3 %v774_v2  ;;  %v534_v2 = vpack.c.bf16 %v502_v62, %v502_v62  ;;  %v736_v62 = vunpack.c.l.b16 %v512_v51 }
  0x56   :  { %5711 = vmatmul.msk.bf16.gmra.mxu2 %vm121_vm1, %v6939_v33 }
  0x57   :  { %v758_v7 = vunpack.c.l.b16 %v534_v2  ;;  %v767_v4 = vpack.c.b16 %v736_v62, %v735_v61 }
  0x59   :  { %800 = vmatpush.bf16.msrb.mxu3 %v773_v18  ;;  %v778_v18 = vpack.c.b16 %v758_v7, %v757_v6 }
  0x5d   :  { %801 = vmatpush.bf16.msrb.mxu3 %v772_v38  ;;  %v530_v38 = vpack.c.bf16 %v498_v29, %v498_v29 }
  0x61   :  { %802 = vmatpush.bf16.msrb.mxu3 %v771_v59  ;;  %v83_v59 = vld [vmem:[%s10408_s22 + $0xa0] sm:$0xff] }
  0x62   :  { %v7145_v5 = vpack.c.bf16 %v84_v60, %v83_v59  ;;  %v7287_v59 = vor.u32 %v6450_v53, %v5749_v52 }
  0x64   :  { %5680 = vmatmul.msk.bf16.gmra.mxu0 %vm121_vm1, %v6953_v36  ;;  %5704 = vmatmul.msk.bf16.gmra.mxu3 %vm121_vm1, %v6883_v15 }
  0x65   :  { %5696 = vmatmul.msk.bf16.gmra.mxu1 %vm121_vm1, %v6953_v36  ;;  %803 = vmatpush.bf16.msrb.mxu3 %v770_v12  ;;  %v86_v12 = vld [vmem:[%s10408_s22 + $0xb8] sm:$0xff] }
  0x66   :  { %5712 = vmatmul.msk.bf16.gmra.mxu2 %vm121_vm1, %v6953_v36  ;;  %v5727_v36 = vld [vmem:[%s10410_s30 + $0x8] sm:$0xf0] }
  0x74   :  { %5681 = vmatmul.msk.bf16.gmra.mxu0 %vm121_vm1, %v6970_v42  ;;  %5705 = vmatmul.msk.bf16.gmra.mxu3 %vm121_vm1, %v6904_v24 }
  0x75   :  { %5697 = vmatmul.msk.bf16.gmra.mxu1 %vm121_vm1, %v6970_v42 }
  0x76   :  { %5713 = vmatmul.msk.bf16.gmra.mxu2 %vm121_vm1, %v6970_v42  ;;  %v5735_v42 = vld [vmem:[%s10410_s30 + $0x18] sm:$0xf0] }
  0x84   :  { %5682 = vmatmul.msk.bf16.gmra.mxu0 %vm121_vm1, %v6986_v46  ;;  %5706 = vmatmul.msk.bf16.gmra.mxu3 %vm121_vm1, %v6925_v30 }
  0x85   :  { %5698 = vmatmul.msk.bf16.gmra.mxu1 %vm121_vm1, %v6986_v46 }
  0x86   :  { %5714 = vmatmul.msk.bf16.gmra.mxu2 %vm121_vm1, %v6986_v46  ;;  %v5743_v46 = vld [vmem:[%s10410_s30 + $0x28] sm:$0xf0] }
  0x91   :  { %v7015_v58 = vpop.f32.mrf.mxu0 }
  0x92   :  { %v7271_v51 = vpop.f32.mrf.mxu1 }
  0x93   :  { %10416 = vst [vmem:[#allocation7_spill] sm:$0xff] %v7271_v51 }
  0x94   :  { %5683 = vmatmul.msk.bf16.gmra.mxu0 %vm121_vm1, %v7013_v56  ;;  %5719 = vmatmul.msk.bf16.vlgmr.msra.gmra.mxu3 %vm121_vm1, %v6866_v9  ;;  %v505_v9 = vld [vmem:[%s10409_s23 + $0xd0] sm:$0xff] }
  0x95   :  { %v537_v22 = vpack.c.bf16 %v505_v9, %v505_v9  ;;  %v531_v9 = vpack.c.bf16 %v499_v11, %v499_v11  ;;  %5699 = vmatmul.msk.bf16.gmra.mxu1 %vm121_vm1, %v7013_v56  ;;  %v85_v11 = vld [vmem:[%s10408_s22 + $0xb0] sm:$0xff] }
  0x96   :  { %5715 = vmatmul.msk.bf16.gmra.mxu2 %vm121_vm1, %v7013_v56  ;;  %v5751_v56 = vld [vmem:[%s10410_s30 + $0x38] sm:$0xf0] }
  0x97   :  { %v7044_v17 = vpop.f32.mrf.mxu3  ;;  %v761_v31 = vunpack.c.l.b16 %v537_v22  ;;  %v755_v22 = vunpack.c.l.b16 %v531_v9  ;;  %v5725_v9 = vld [vmem:[%s10410_s30] sm:$0xf] }
  0x99   :  { %v7049_v26 = vpop.f32.mrf.mxu0  ;;  %v780_v44 = vpack.c.b16 %v762_v32, %v761_v31  ;;  %v769_v31 = vpack.c.b16 %v740_v21, %v739_v20  ;;  %v513_v32 = vpack.c.bf16 %v481_v25, %v481_v25  ;;  %v777_v37 = vpack.c.b16 %v756_v23, %v755_v22 }
  0x9a   :  { %v7293_v62 = vpop.f32.mrf.mxu1 }
  0x9b   :  { %890 = vmatpush.bf16.msrb.mxu0 %v780_v44  ;;  %804 = vmatpush.bf16.msrb.mxu3 %v769_v31  ;;  %v737_v40 = vunpack.c.l.b16 %v513_v32  ;;  %v754_v44 = vunpack.c.l.b16 %v530_v38  ;;  %v6445_v31 = vld [vmem:[%s10410_s30 + $0x14] sm:$0xf]  ;;  %10419 = vst [vmem:[#allocation10_spill] sm:$0xff] %v7293_v62 }
  0x9c   :  { %v7231_v29 = vor.u32 %v6445_v31, %v5735_v42  ;;  %v5765_v42 = vld [vmem:[%s10410_s30 + $0x50] sm:$0xf] }
  0x9d   :  { %v768_v49 = vpack.c.b16 %v738_v41, %v737_v40  ;;  %v5741_v40 = vld [vmem:[%s10410_s30 + $0x20] sm:$0xf]  ;;  %v6448_v41 = vld [vmem:[%s10410_s30 + $0x24] sm:$0xf0] }
  0x9e   :  { %v7257_v45 = vor.u32 %v6448_v41, %v5741_v40  ;;  %v6454_v41 = vld [vmem:[%s10410_s30 + $0x54] sm:$0xf0] }
  0x9f   :  { %v7080_v57 = vpop.f32.mrf.mxu3  ;;  %891 = vmatpush.bf16.msrb.mxu0 %v779_v1  ;;  %805 = vmatpush.bf16.msrb.mxu3 %v768_v49  ;;  %v752_v1 = vunpack.c.l.b16 %v528_v55  ;;  %v7351_v52 = vor.u32 %v6454_v41, %v5765_v42  ;;  %v6455_v42 = vld [vmem:[%s10410_s30 + $0x64] sm:$0xf] }
  0xa1   :  { %v7087_v3 = vpop.f32.mrf.mxu0  ;;  %v775_v6 = vpack.c.b16 %v752_v1, %v751_v63 }
  0xa3   :  { %892 = vmatpush.bf16.msrb.mxu0 %v778_v18  ;;  %806 = vmatpush.bf16.msrb.mxu3 %v767_v4  ;;  %v6444_v18 = vld [vmem:[%s10410_s30 + $0x4] sm:$0xf0]  ;;  %v7303_v4 = vpop.f32.mrf.mxu1 }
  0xa4   :  { %5684 = vmatmul.msk.bf16.gmra.mxu0 %vm121_vm1, %v7085_v0  ;;  %5720 = vmatmul.msk.bf16.gmra.mxu3 %vm121_vm1, %v6883_v15  ;;  %v497_v15 = vld [vmem:[%s10409_s23 + $0x90] sm:$0xff]  ;;  %v7199_v20 = vor.u32 %v6444_v18, %v5725_v9  ;;  %10421 = vst [vmem:[#allocation12_spill] sm:$0xff] %v7303_v4 }
  0xa5   :  { %v529_v35 = vpack.c.bf16 %v497_v15, %v497_v15  ;;  %5700 = vmatmul.msk.bf16.gmra.mxu1 %vm121_vm1, %v7085_v0  ;;  %v6446_v15 = vld [vmem:[%s10410_s30 + $0x14] sm:$0xf0] }
  0xa6   :  { %v7229_v34 = vor.u32 %v6446_v15, %v5733_v27  ;;  %5716 = vmatmul.msk.bf16.gmra.mxu2 %vm121_vm1, %v7085_v0  ;;  %v5759_v0 = vld [vmem:[%s10410_s30 + $0x48] sm:$0xf0] }
  0xa7   :  { %v7116_v28 = vpop.f32.mrf.mxu3  ;;  %v753_v43 = vunpack.c.l.b16 %v529_v35  ;;  %893 = vmatpush.bf16.msrb.mxu0 %v777_v37 }
  0xa9   :  { %v7121_v39 = vpop.f32.mrf.mxu0  ;;  %v776_v54 = vpack.c.b16 %v754_v44, %v753_v43  ;;  %v6447_v43 = vld [vmem:[%s10410_s30 + $0x24] sm:$0xf] }
  0xaa   :  { %v7259_v47 = vor.u32 %v6447_v43, %v5743_v46  ;;  %v6453_v43 = vld [vmem:[%s10410_s30 + $0x54] sm:$0xf] }
  0xab   :  { %894 = vmatpush.bf16.msrb.mxu0 %v776_v54  ;;  %v6449_v54 = vld [vmem:[%s10410_s30 + $0x34] sm:$0xf]  ;;  %v7325_v27 = vpop.f32.mrf.mxu1 }
  0xac   :  { %v7289_v60 = vor.u32 %v6449_v54, %v5751_v56  ;;  %10424 = vst [vmem:[#allocation15_spill] sm:$0xff] %v7325_v27  ;;  %v5797_v27 = vld [vmem:[%s10410_s30 + $0x90] sm:$0xf] }
  0xae   :  { %10418 = vst [vmem:[#allocation9_spill] sm:$0xff] %v7289_v60 }
  0xaf   :  { %v7143_v2 = vpop.f32.mrf.mxu3  ;;  %895 = vmatpush.bf16.msrb.mxu0 %v775_v6  ;;  %v5757_v6 = vld [vmem:[%s10410_s30 + $0x40] sm:$0xf] }
  0xb1   :  { %v7147_v7 = vpop.f32.mrf.mxu0 }
  0xb3   :  { %v7338_v40 = vpop.f32.mrf.mxu1 }
  0xb4   :  { %5685 = vmatmul.msk.bf16.gmra.mxu0 %vm121_vm1, %v7145_v5  ;;  %5721 = vmatmul.msk.bf16.gmra.mxu3 %vm121_vm1, %v6904_v24  ;;  %v7169_v24 = vpack.c.bf16 %v86_v12, %v85_v11  ;;  %v6452_v11 = vld [vmem:[%s10410_s30 + $0x44] sm:$0xf0]  ;;  %v6451_v12 = vld [vmem:[%s10410_s30 + $0x44] sm:$0xf]  ;;  %10426 = vst [vmem:[#allocation17_spill] sm:$0xff] %v7338_v40 }
  0xb5   :  { %5701 = vmatmul.msk.bf16.gmra.mxu1 %vm121_vm1, %v7145_v5  ;;  %v7319_v18 = vor.u32 %v6452_v11, %v5757_v6 }
  0xb6   :  { %5717 = vmatmul.msk.bf16.gmra.mxu2 %vm121_vm1, %v7145_v5  ;;  %v5767_v5 = vld [vmem:[%s10410_s30 + $0x58] sm:$0xf0] }
  0xb7   :  { %v7155_v8 = vpop.f32.mrf.mxu3  ;;  %v7353_v53 = vor.u32 %v6453_v43, %v5767_v5 }
  0xb9   :  { %v7157_v10 = vpop.f32.mrf.mxu0  ;;  %10428 = vst [vmem:[#allocation19_spill] sm:$0xff] %v7353_v53 }
  0xbb   :  { %v7361_v56 = vpop.f32.mrf.mxu1 }
  0xbc   :  { %10429 = vst [vmem:[#allocation20_spill] sm:$0xff] %v7361_v56 }
  0xbf   :  { %v7167_v13 = vpop.f32.mrf.mxu3 }
  0xc1   :  { %v7171_v33 = vpop.f32.mrf.mxu0 }
  0xc4   :  { %5686 = vmatmul.msk.bf16.gmra.mxu0 %vm121_vm1, %v7169_v24  ;;  %5722 = vmatmul.msk.bf16.gmra.mxu3 %vm121_vm1, %v6925_v30  ;;  %v6443_v30 = vld [vmem:[%s10410_s30 + $0x4] sm:$0xf] }
  0xc5   :  { %v7201_v21 = vor.u32 %v6443_v30, %v5727_v36  ;;  %5702 = vmatmul.msk.bf16.gmra.mxu1 %vm121_vm1, %v7169_v24  ;;  %v7321_v30 = vor.u32 %v6451_v12, %v5759_v0  ;;  %v5773_v12 = vld [vmem:[%s10410_s30 + $0x60] sm:$0xf]  ;;  %v6456_v0 = vld [vmem:[%s10410_s30 + $0x64] sm:$0xf0] }
  0xc6   :  { %5718 = vmatmul.msk.bf16.gmra.mxu2 %vm121_vm1, %v7169_v24  ;;  %v5775_v24 = vld [vmem:[%s10410_s30 + $0x68] sm:$0xf0]  ;;  %v7381_v43 = vor.u32 %v6456_v0, %v5773_v12 }
  0xc7   :  { %v7179_v14 = vpop.f32.mrf.mxu3  ;;  %10423 = vst [vmem:[#allocation14_spill] sm:$0xff] %v7321_v30  ;;  %v7383_v5 = vor.u32 %v6455_v42, %v5775_v24 }
  0xc9   :  { %v7181_v16 = vpop.f32.mrf.mxu0  ;;  %10432 = vst [vmem:[#allocation23_spill] sm:$0xff] %v7383_v5 }
  0xcf   :  { %v7197_v19 = vpop.f32.mrf.mxu3 }
  0xd1   :  { %v7203_v22 = vpop.f32.mrf.mxu0 }
  0xd4   :  { %807 = vmatmul.bf16.vlgmr.msrb.gmra.mxu3 %v7199_v20  ;;  %896 = vmatmul.bf16.vlgmr.msrb.gmra.mxu0 %v7201_v21 }
  0xd7   :  { %v7209_v23 = vpop.f32.mrf.mxu3 }
  0xd8   :  { %10411 = vst [vmem:[#allocation2_spill] sm:$0xff] %v7209_v23 }
  0xd9   :  { %v7211_v25 = vpop.f32.mrf.mxu0 }
  0xdf   :  { %v7227_v32 = vpop.f32.mrf.mxu3 }
  0xe0   :  { %10412 = vst [vmem:[#allocation3_spill] sm:$0xff] %v7227_v32 }
  0xe1   :  { %v7233_v35 = vpop.f32.mrf.mxu0 }
  0xe4   :  { %812 = vmatmul.bf16.gmra.mxu3 %v7229_v34  ;;  %901 = vmatmul.bf16.gmra.mxu0 %v7231_v29 }
  0xe7   :  { %v7239_v37 = vpop.f32.mrf.mxu3 }
  0xe8   :  { %10413 = vst [vmem:[#allocation4_spill] sm:$0xff] %v7239_v37 }
  0xe9   :  { %v7241_v38 = vpop.f32.mrf.mxu0 }
  0xef   :  { %v7255_v44 = vpop.f32.mrf.mxu3 }
  0xf0   :  { %10414 = vst [vmem:[#allocation5_spill] sm:$0xff] %v7255_v44 }
  0xf1   :  { %v7261_v48 = vpop.f32.mrf.mxu0 }
  0xf4   :  { %817 = vmatmul.bf16.gmra.mxu3 %v7257_v45  ;;  %906 = vmatmul.bf16.gmra.mxu0 %v7259_v47 }
  0xf7   :  { %v7267_v49 = vpop.f32.mrf.mxu3 }
  0xf8   :  { %10415 = vst [vmem:[#allocation6_spill] sm:$0xff] %v7267_v49 }
  0xf9   :  { %v7269_v50 = vpop.f32.mrf.mxu0 }
  0xff   :  { %v7285_v55 = vpop.f32.mrf.mxu3 }
 0x100   :  { %10417 = vst [vmem:[#allocation8_spill] sm:$0xff] %v7285_v55 }
 0x101   :  { %v7291_v61 = vpop.f32.mrf.mxu0 }
 0x104   :  { %822 = vmatmul.bf16.gmra.mxu3 %v7287_v59  ;;  %911 = vmatmul.bf16.gmra.mxu0 %v7289_v60 }
 0x107   :  { %v7299_v63 = vpop.f32.mrf.mxu3 }
 0x108   :  { %10420 = vst [vmem:[#allocation11_spill] sm:$0xff] %v7299_v63 }
 0x109   :  { %v7301_v1 = vpop.f32.mrf.mxu0 }
 0x10f   :  { %v7317_v9 = vpop.f32.mrf.mxu3 }
 0x110   :  { %10422 = vst [vmem:[#allocation13_spill] sm:$0xff] %v7317_v9 }
 0x111   :  { %v7323_v36 = vpop.f32.mrf.mxu0 }
 0x114   :  { %827 = vmatmul.bf16.gmra.mxu3 %v7319_v18  ;;  %916 = vmatmul.bf16.gmra.mxu0 %v7321_v30 }
 0x117   :  { %v7331_v15 = vpop.f32.mrf.mxu3 }
 0x118   :  { %10425 = vst [vmem:[#allocation16_spill] sm:$0xff] %v7331_v15 }
 0x119   :  { %v7333_v31 = vpop.f32.mrf.mxu0 }
 0x11f   :  { %v7349_v46 = vpop.f32.mrf.mxu3 }
 0x120   :  { %10427 = vst [vmem:[#allocation18_spill] sm:$0xff] %v7349_v46  ;;  %v997_v46 = vld [vmem:[%s10331_s6 + $0x10] sm:$0x7] }
 0x121   :  { %v7355_v54 = vpop.f32.mrf.mxu0  ;;  %v1007_v9 = vunpack.c.l.b16 %v997_v46  ;;  %v6476_v46 = vld [vmem:[%s10331_s6 + $0x8] sm:$0xff] }
 0x123   :  { %v1010_v63 = vpack.c.b16 %v1007_v9, %v1007_v9  ;;  %v5781_v9 = vld [vmem:[%s10410_s30 + $0x70] sm:$0xf] }
 0x124   :  { %832 = vmatmul.bf16.gmra.mxu3 %v7351_v52  ;;  %921 = vmatmul.bf16.gmra.mxu0 %v7353_v53 }
 0x127   :  { %v7363_v6 = vpop.f32.mrf.mxu3 }
 0x128   :  { %10430 = vst [vmem:[#allocation21_spill] sm:$0xff] %v7363_v6  ;;  %v7385_v6 = vpop.f32.mrf.mxu1 }
 0x129   :  { %v7365_v11 = vpop.f32.mrf.mxu0  ;;  %10433 = vst [vmem:[#allocation24_spill] sm:$0xff] %v7385_v6 }
 0x12f   :  { %v7379_v41 = vpop.f32.mrf.mxu3 }
 0x130   :  { %10431 = vst [vmem:[#allocation22_spill] sm:$0xff] %v7379_v41  ;;  %v6747_v41 = vmov 65535   ;;  %v7403_v49 = vpop.f32.mrf.mxu1 }
 0x131   :  { %v7387_v15 = vpop.f32.mrf.mxu0  ;;  %v1063_v12 = vsel %vm1062_vm2, 4294967295, %v6747_v41  ;;  %10435 = vst [vmem:[#allocation26_spill] sm:$0xff] %v7403_v49  ;;  %v6458_v41 = vld [vmem:[%s10410_s30 + $0x74] sm:$0xf0] }
 0x132   :  { %v1064_v0 = vsel %vm170_vm0, %v1063_v12, 0  ;;  %v5783_v12 = vld [vmem:[%s10410_s30 + $0x78] sm:$0xf0]  ;;  %vm5668_vm0 = vcmask 523520  }
 0x133   :  { %v1066_v24 = vand.u32 %v1064_v0, %v1010_v63  ;;  %v6457_v63 = vld [vmem:[%s10410_s30 + $0x74] sm:$0xf] }
 0x134   :  { %837 = vmatmul.bf16.gmra.mxu3 %v7381_v43  ;;  %926 = vmatmul.bf16.gmra.mxu0 %v7383_v5  ;;  %v7424_v44 = vor.u32 %v6457_v63, %v5783_v12  ;;  %v6459_v63 = vld [vmem:[%s10410_s30 + $0x84] sm:$0xf]  ;;  %v5791_v12 = vld [vmem:[%s10410_s30 + $0x88] sm:$0xf0] }
 0x135   :  { %1073 = vmatpush.bf16.msrb.mxu1 %v1066_v24  ;;  %v6475_v24 = vld [vmem:[%s10331_s6] sm:$0xff] }
 0x136   :  { %10437 = vst [vmem:[#allocation28_spill] sm:$0xff] %v7424_v44 }
 0x137   :  { %v7396_v42 = vpop.f32.mrf.mxu3 }
 0x138   :  { %10434 = vst [vmem:[#allocation25_spill] sm:$0xff] %v7396_v42  ;;  %v7422_v42 = vor.u32 %v6458_v41, %v5781_v9  ;;  %v7430_v32 = vpop.f32.mrf.mxu1  ;;  %v5789_v9 = vld [vmem:[%s10410_s30 + $0x80] sm:$0xf]  ;;  %v6460_v41 = vld [vmem:[%s10410_s30 + $0x84] sm:$0xf0] }
 0x139   :  { %v7398_v55 = vpop.f32.mrf.mxu0  ;;  %1074 = vmatpush.bf16.msrb.mxu1 %v6476_v46  ;;  %10438 = vst [vmem:[#allocation29_spill] sm:$0xff] %v7430_v32  ;;  %v7452_v23 = vor.u32 %v6460_v41, %v5789_v9  ;;  %v7454_v32 = vor.u32 %v6459_v63, %v5791_v12  ;;  %v6462_v9 = vld [vmem:[%s10410_s30 + $0x94] sm:$0xf0]  ;;  %v6461_v41 = vld [vmem:[%s10410_s30 + $0x94] sm:$0xf] }
 0x13a   :  { %v5799_v63 = vld [vmem:[%s10410_s30 + $0x98] sm:$0xf0] }
 0x13b   :  { %10442 = vst [vmem:[#allocation33_spill] sm:$0xff] %v7454_v32  ;;  %v7474_v4 = vor.u32 %v6461_v41, %v5799_v63 }
 0x13d   :  { %1075 = vmatpush.bf16.msrb.mxu1 %v6475_v24  ;;  %10445 = vst [vmem:[#allocation36_spill] sm:$0xff] %v7474_v4 }
 0x13f   :  { %v7417_v0 = vpop.f32.mrf.mxu3 }
 0x140   :  { %10436 = vst [vmem:[#allocation27_spill] sm:$0xff] %v7417_v0  ;;  %v7448_v24 = vpop.f32.mrf.mxu1 }
 0x141   :  { %v7426_v37 = vpop.f32.mrf.mxu0  ;;  %10440 = vst [vmem:[#allocation31_spill] sm:$0xff] %v7448_v24  ;;  %v7472_v24 = vor.u32 %v6462_v9, %v5797_v27 }
 0x143   :  { %10444 = vst [vmem:[#allocation35_spill] sm:$0xff] %v7472_v24 }
 0x144   :  { %842 = vmatmul.bf16.gmra.mxu3 %v7422_v42  ;;  %931 = vmatmul.bf16.gmra.mxu0 %v7424_v44 }
 0x147   :  { %v7432_v46 = vpop.f32.mrf.mxu3 }
 0x148   :  { %10439 = vst [vmem:[#allocation30_spill] sm:$0xff] %v7432_v46  ;;  %v7458_v56 = vpop.f32.mrf.mxu1 }
 0x149   :  { %v7434_v0 = vpop.f32.mrf.mxu0  ;;  %10443 = vst [vmem:[#allocation34_spill] sm:$0xff] %v7458_v56 }
 0x14f   :  { %v7450_v46 = vpop.f32.mrf.mxu3 }
 0x150   :  { %10441 = vst [vmem:[#allocation32_spill] sm:$0xff] %v7450_v46 }
 0x151   :  { %v897_v49 = vpop.f32.mrf.mxu0 }
 0x154   :  { %847 = vmatmul.bf16.gmra.mxu3 %v7452_v23  ;;  %936 = vmatmul.bf16.gmra.mxu0 %v7454_v32  ;;  %v7476_v32 = vpop.f32.mrf.mxu1 }
 0x155   :  { %10446 = vst [vmem:[#allocation37_spill] sm:$0xff] %v7476_v32 }
 0x157   :  { %v808_v6 = vpop.f32.mrf.mxu3 }
 0x158   :  { %v898_v46 = vadd.f32 %v897_v49, %v808_v6  ;;  %v5805_v49 = vld [vmem:[%s10410_s30 + $0xa0] sm:$0xf] }
 0x159   :  { %v899_v40 = vpop.f32.mrf.mxu0 }
 0x15c   :  { %v7484_v27 = vpop.f32.mrf.mxu1 }
 0x15d   :  { %10447 = vst [vmem:[#allocation38_spill] sm:$0xff] %v7484_v27 }
 0x15f   :  { %v810_v12 = vpop.f32.mrf.mxu3 }
 0x160   :  { %v900_v56 = vadd.f32 %v899_v40, %v810_v12  ;;  %v6464_v40 = vld [vmem:[%s10410_s30 + $0xa4] sm:$0xf0] }
 0x161   :  { %v902_v62 = vpop.f32.mrf.mxu0  ;;  %v7495_v41 = vor.u32 %v6464_v40, %v5805_v49  ;;  %v5815_v49 = vld [vmem:[%s10410_s30 + $0xb8] sm:$0xf0] }
 0x162   :  { %v977_v51 = vpack.c.bf16 %v900_v56, %v898_v46  ;;  %v6463_v56 = vld [vmem:[%s10410_s30 + $0xa4] sm:$0xf] }
 0x163   :  { %10448 = vst [vmem:[#allocation39_spill] sm:$0xff] %v7495_v41 }
 0x164   :  { %852 = vmatmul.bf16.gmra.mxu3 %v7472_v24  ;;  %941 = vmatmul.bf16.gmra.mxu0 %v7474_v4  ;;  %v7502_v32 = vpop.f32.mrf.mxu1 }
 0x165   :  { %5859 = vmatmul.msk.bf16.vlgmr.msrb.gmra.mxu1 %vm1013_vm3, %v977_v51  ;;  %v5807_v51 = vld [vmem:[%s10410_s30 + $0xa8] sm:$0xf0]  ;;  %10450 = vst [vmem:[#allocation41_spill] sm:$0xff] %v7502_v32 }
 0x166   :  { %v7497_v63 = vor.u32 %v6463_v56, %v5807_v51 }
 0x167   :  { %v813_v44 = vpop.f32.mrf.mxu3 }
 0x168   :  { %v903_v46 = vadd.f32 %v902_v62, %v813_v44  ;;  %10449 = vst [vmem:[#allocation40_spill] sm:$0xff] %v7497_v63  ;;  %v5813_v44 = vld [vmem:[%s10410_s30 + $0xb0] sm:$0xf]  ;;  %v6466_v62 = vld [vmem:[%s10410_s30 + $0xb4] sm:$0xf0] }
 0x169   :  { %v904_v5 = vpop.f32.mrf.mxu0  ;;  %v7516_v51 = vor.u32 %v6466_v62, %v5813_v44 }
 0x16b   :  { %10451 = vst [vmem:[#allocation42_spill] sm:$0xff] %v7516_v51 }
 0x16f   :  { %v815_v6 = vpop.f32.mrf.mxu3 }
 0x170   :  { %v905_v9 = vadd.f32 %v904_v5, %v815_v6  ;;  %v6465_v5 = vld [vmem:[%s10410_s30 + $0xb4] sm:$0xf] }
 0x171   :  { %v907_v12 = vpop.f32.mrf.mxu0  ;;  %v7518_v6 = vor.u32 %v6465_v5, %v5815_v49 }
 0x172   :  { %v978_v27 = vpack.c.bf16 %v905_v9, %v903_v46  ;;  %v7520_v46 = vpop.f32.mrf.mxu1 }
 0x173   :  { %10452 = vst [vmem:[#allocation43_spill] sm:$0xff] %v7518_v6 }
 0x174   :  { %857 = vmatmul.bf16.gmra.mxu3 %v7495_v41  ;;  %946 = vmatmul.bf16.gmra.mxu0 %v7497_v63  ;;  %10453 = vst [vmem:[#allocation44_spill] sm:$0xff] %v7520_v46 }
 0x175   :  { %5860 = vmatmul.msk.bf16.gmra.mxu1 %vm1013_vm3, %v978_v27 }
 0x177   :  { %v818_v4 = vpop.f32.mrf.mxu3 }
 0x178   :  { %v908_v40 = vadd.f32 %v907_v12, %v818_v4  ;;  %v5821_v4 = vld [vmem:[%s10410_s30 + $0xc0] sm:$0xf]  ;;  %v6467_v12 = vld [vmem:[%s10410_s30 + $0xc4] sm:$0xf] }
 0x179   :  { %v909_v53 = vpop.f32.mrf.mxu0 }
 0x17a   :  { %v7525_v30 = vpop.f32.mrf.mxu1 }
 0x17b   :  { %10454 = vst [vmem:[#allocation45_spill] sm:$0xff] %v7525_v30 }
 0x17f   :  { %v820_v27 = vpop.f32.mrf.mxu3 }
 0x180   :  { %v910_v56 = vadd.f32 %v909_v53, %v820_v27  ;;  %v6468_v53 = vld [vmem:[%s10410_s30 + $0xc4] sm:$0xf0] }
 0x181   :  { %v912_v9 = vpop.f32.mrf.mxu0  ;;  %v7539_v49 = vor.u32 %v6468_v53, %v5821_v4  ;;  %v5831_v4 = vld [vmem:[%s10410_s30 + $0xd8] sm:$0xf0] }
 0x182   :  { %v979_v32 = vpack.c.bf16 %v910_v56, %v908_v40  ;;  %v7545_v30 = vpop.f32.mrf.mxu1 }
 0x183   :  { %10455 = vst [vmem:[#allocation46_spill] sm:$0xff] %v7539_v49 }
 0x184   :  { %862 = vmatmul.bf16.gmra.mxu3 %v7516_v51  ;;  %951 = vmatmul.bf16.gmra.mxu0 %v7518_v6  ;;  %10457 = vst [vmem:[#allocation48_spill] sm:$0xff] %v7545_v30 }
 0x185   :  { %5861 = vmatmul.msk.bf16.gmra.mxu1 %vm1013_vm3, %v979_v32  ;;  %v5823_v32 = vld [vmem:[%s10410_s30 + $0xc8] sm:$0xf0] }
 0x186   :  { %v7541_v27 = vor.u32 %v6467_v12, %v5823_v32 }
 0x187   :  { %v823_v63 = vpop.f32.mrf.mxu3 }
 0x188   :  { %v913_v62 = vadd.f32 %v912_v9, %v823_v63  ;;  %10456 = vst [vmem:[#allocation47_spill] sm:$0xff] %v7541_v27  ;;  %v6470_v63 = vld [vmem:[%s10410_s30 + $0xd4] sm:$0xf0]  ;;  %v6469_v9 = vld [vmem:[%s10410_s30 + $0xd4] sm:$0xf] }
 0x189   :  { %v914_v41 = vpop.f32.mrf.mxu0 }
 0x18a   :  { %v7560_v53 = vpop.f32.mrf.mxu1 }
 0x18b   :  { %10458 = vst [vmem:[#allocation49_spill] sm:$0xff] %v7560_v53 }
 0x18f   :  { %v825_v44 = vpop.f32.mrf.mxu3 }
 0x190   :  { %v915_v5 = vadd.f32 %v914_v41, %v825_v44  ;;  %v5829_v41 = vld [vmem:[%s10410_s30 + $0xd0] sm:$0xf] }
 0x191   :  { %v917_v40 = vpop.f32.mrf.mxu0 }
 0x192   :  { %v980_v56 = vpack.c.bf16 %v915_v5, %v913_v62  ;;  %v7562_v62 = vor.u32 %v6470_v63, %v5829_v41  ;;  %v7564_v5 = vor.u32 %v6469_v9, %v5831_v4 }
 0x194   :  { %867 = vmatmul.bf16.gmra.mxu3 %v7539_v49  ;;  %956 = vmatmul.bf16.gmra.mxu0 %v7541_v27  ;;  %10459 = vst [vmem:[#allocation50_spill] sm:$0xff] %v7562_v62  ;;  %v7569_v49 = vpop.f32.mrf.mxu1 }
 0x195   :  { %5862 = vmatmul.msk.bf16.gmra.mxu1 %vm1013_vm3, %v980_v56  ;;  %10460 = vst [vmem:[#allocation51_spill] sm:$0xff] %v7564_v5 }
 0x196   :  { %10461 = vst [vmem:[#allocation52_spill] sm:$0xff] %v7569_v49 }
 0x197   :  { %v828_v46 = vpop.f32.mrf.mxu3 }
 0x198   :  { %v918_v32 = vadd.f32 %v917_v40, %v828_v46  ;;  %v6472_v46 = vld [vmem:[%s10410_s30 + $0xe4] sm:$0xf0]  ;;  %v6471_v40 = vld [vmem:[%s10410_s30 + $0xe4] sm:$0xf] }
 0x199   :  { %v919_v6 = vpop.f32.mrf.mxu0 }
 0x19c   :  { %v7587_v49 = vpop.f32.mrf.mxu1 }
 0x19d   :  { %10464 = vst [vmem:[#allocation55_spill] sm:$0xff] %v7587_v49 }
 0x19f   :  { %v830_v12 = vpop.f32.mrf.mxu3 }
 0x1a0   :  { %v920_v44 = vadd.f32 %v919_v6, %v830_v12  ;;  %v5837_v6 = vld [vmem:[%s10410_s30 + $0xe0] sm:$0xf] }
 0x1a1   :  { %v922_v56 = vpop.f32.mrf.mxu0  ;;  %v7583_v4 = vor.u32 %v6472_v46, %v5837_v6  ;;  %v5847_v6 = vld [vmem:[%s10410_s30 + $0xf8] sm:$0xf0] }
 0x1a2   :  { %v981_v30 = vpack.c.bf16 %v920_v44, %v918_v32 }
 0x1a3   :  { %10462 = vst [vmem:[#allocation53_spill] sm:$0xff] %v7583_v4 }
 0x1a4   :  { %872 = vmatmul.bf16.gmra.mxu3 %v7562_v62  ;;  %961 = vmatmul.bf16.gmra.mxu0 %v7564_v5  ;;  %v7592_v62 = vpop.f32.mrf.mxu1 }
 0x1a5   :  { %5863 = vmatmul.msk.bf16.gmra.mxu1 %vm1013_vm3, %v981_v30  ;;  %v5839_v30 = vld [vmem:[%s10410_s30 + $0xe8] sm:$0xf0]  ;;  %10465 = vst [vmem:[#allocation56_spill] sm:$0xff] %v7592_v62 }
 0x1a6   :  { %v7585_v12 = vor.u32 %v6471_v40, %v5839_v30 }
 0x1a7   :  { %v833_v27 = vpop.f32.mrf.mxu3 }
 0x1a8   :  { %v923_v63 = vadd.f32 %v922_v56, %v833_v27  ;;  %10463 = vst [vmem:[#allocation54_spill] sm:$0xff] %v7585_v12  ;;  %v6474_v27 = vld [vmem:[%s10410_s30 + $0xf4] sm:$0xf0]  ;;  %v6473_v56 = vld [vmem:[%s10410_s30 + $0xf4] sm:$0xf] }
 0x1a9   :  { %v924_v51 = vpop.f32.mrf.mxu0 }
 0x1ac   :  { %v7613_v62 = vpop.f32.mrf.mxu1 }
 0x1ad   :  { %10468 = vst [vmem:[#allocation59_spill] sm:$0xff] %v7613_v62 }
 0x1af   :  { %v835_v41 = vpop.f32.mrf.mxu3 }
 0x1b0   :  { %v925_v9 = vadd.f32 %v924_v51, %v835_v41  ;;  %v5845_v51 = vld [vmem:[%s10410_s30 + $0xf0] sm:$0xf] }
 0x1b1   :  { %v927_v32 = vpop.f32.mrf.mxu0  ;;  %v7606_v41 = vor.u32 %v6474_v27, %v5845_v51 }
 0x1b2   :  { %v982_v44 = vpack.c.bf16 %v925_v9, %v923_v63  ;;  %v7608_v63 = vor.u32 %v6473_v56, %v5847_v6 }
 0x1b3   :  { %10466 = vst [vmem:[#allocation57_spill] sm:$0xff] %v7606_v41 }
 0x1b4   :  { %877 = vmatmul.bf16.gmra.mxu3 %v7583_v4  ;;  %966 = vmatmul.bf16.gmra.mxu0 %v7585_v12  ;;  %10467 = vst [vmem:[#allocation58_spill] sm:$0xff] %v7608_v63 }
 0x1b5   :  { %5864 = vmatmul.msk.bf16.gmra.mxu1 %vm1013_vm3, %v982_v44 }
 0x1b7   :  { %v838_v53 = vpop.f32.mrf.mxu3 }
 0x1b8   :  { %v928_v40 = vadd.f32 %v927_v32, %v838_v53  ;;  %v7615_v53 = vpop.f32.mrf.mxu1 }
 0x1b9   :  { %v929_v5 = vpop.f32.mrf.mxu0  ;;  %10469 = vst [vmem:[#allocation60_spill] sm:$0xff] %v7615_v53 }
 0x1bf   :  { %v840_v46 = vpop.f32.mrf.mxu3 }
 0x1c0   :  { %v930_v30 = vadd.f32 %v929_v5, %v840_v46  ;;  %v7618_v6 = vpop.f32.mrf.mxu1 }
 0x1c1   :  { %v932_v9 = vpop.f32.mrf.mxu0  ;;  %10470 = vst [vmem:[#allocation61_spill] sm:$0xff] %v7618_v6 }
 0x1c2   :  { %v983_v44 = vpack.c.bf16 %v930_v30, %v928_v40 }
 0x1c4   :  { %882 = vmatmul.bf16.gmra.mxu3 %v7606_v41  ;;  %971 = vmatmul.bf16.gmra.mxu0 %v7608_v63 }
 0x1c5   :  { %5865 = vmatmul.msk.bf16.gmra.mxu1 %vm1013_vm3, %v983_v44 }
 0x1c7   :  { %v843_v49 = vpop.f32.mrf.mxu3 }
 0x1c8   :  { %v933_v24 = vadd.f32 %v932_v9, %v843_v49  ;;  %v7624_v49 = vld [vmem:[%s10332_s7] ss:$0 sm:$0xff] }
 0x1c9   :  { %v934_v12 = vpop.f32.mrf.mxu0 }
 0x1cf   :  { %v845_v4 = vpop.f32.mrf.mxu3 }
 0x1d0   :  { %v935_v5 = vadd.f32 %v934_v12, %v845_v4 }
 0x1d1   :  { %v937_v32 = vpop.f32.mrf.mxu0 }
 0x1d2   :  { %v984_v51 = vpack.c.bf16 %v935_v5, %v933_v24 }
 0x1d5   :  { %5866 = vmatmul.msk.bf16.gmra.mxu1 %vm1013_vm3, %v984_v51 }
 0x1d7   :  { %v848_v27 = vpop.f32.mrf.mxu3 }
 0x1d8   :  { %v938_v40 = vadd.f32 %v937_v32, %v848_v27 }
 0x1d9   :  { %v939_v56 = vpop.f32.mrf.mxu0 }
 0x1df   :  { %v850_v46 = vpop.f32.mrf.mxu3 }
 0x1e0   :  { %v940_v30 = vadd.f32 %v939_v56, %v850_v46 }
 0x1e1   :  { %v942_v44 = vpop.f32.mrf.mxu0 }
 0x1e2   :  { %v985_v62 = vpack.c.bf16 %v940_v30, %v938_v40  ;;  %v1077_v63 = vpop.f32.mrf.mxu1 }
 0x1e3   :  { %v1078_v41 = vadd.f32 %v1077_v63, %v7015_v58 }
 0x1e5   :  { %5867 = vmatmul.msk.bf16.gmra.mxu1 %vm1013_vm3, %v985_v62  ;;  %v1161_v24 = vadd.f32 %v7624_v49, %v1078_v41 }
 0x1e7   :  { %v853_v4 = vpop.f32.mrf.mxu3  ;;  %v1193_v5 = vmax.f32 %v1161_v24, 0.0 }
 0x1e8   :  { %v943_v63 = vadd.f32 %v942_v44, %v853_v4 }
 0x1e9   :  { %v944_v12 = vpop.f32.mrf.mxu0  ;;  %v1225_v27 = vpack.c.bf16 %v1193_v5, %v1193_v5 }
 0x1ea   :  { %v1079_v9 = vpop.f32.mrf.mxu1 }
 0x1eb   :  { %v1080_v32 = vadd.f32 %v1079_v9, %v7049_v26  ;;  %v1289_v41 = vunpack.c.l.b16 %v1225_v27 }
 0x1ed   :  { %v1162_v51 = vadd.f32 %v7624_v49, %v1080_v32 }
 0x1ef   :  { %v1194_v56 = vmax.f32 %v1162_v51, 0.0  ;;  %v855_v58 = vpop.f32.mrf.mxu3 }
 0x1f0   :  { %v945_v46 = vadd.f32 %v944_v12, %v855_v58 }
 0x1f1   :  { %v947_v40 = vpop.f32.mrf.mxu0  ;;  %v1226_v30 = vpack.c.bf16 %v1194_v56, %v1194_v56 }
 0x1f2   :  { %v986_v6 = vpack.c.bf16 %v945_v46, %v943_v63  ;;  %v1082_v53 = vpop.f32.mrf.mxu1 }
 0x1f3   :  { %v1083_v62 = vadd.f32 %v1082_v53, %v7087_v3  ;;  %v1290_v60 = vunpack.c.l.b16 %v1226_v30 }
 0x1f5   :  { %5868 = vmatmul.msk.bf16.gmra.mxu1 %vm1013_vm3, %v986_v6  ;;  %v7632_v24 = vpack.c.b16 %v1290_v60, %v1289_v41  ;;  %v1163_v26 = vadd.f32 %v7624_v49, %v1083_v62 }
 0x1f7   :  { %v858_v9 = vpop.f32.mrf.mxu3  ;;  %v1195_v51 = vmax.f32 %v1163_v26, 0.0 }
 0x1f8   :  { %v948_v3 = vadd.f32 %v947_v40, %v858_v9 }
 0x1f9   :  { %v949_v5 = vpop.f32.mrf.mxu0  ;;  %v1227_v12 = vpack.c.bf16 %v1195_v51, %v1195_v51 }
 0x1fa   :  { %v1084_v32 = vpop.f32.mrf.mxu1 }
 0x1fb   :  { %v1085_v44 = vadd.f32 %v1084_v32, %v7121_v39  ;;  %v1291_v30 = vunpack.c.l.b16 %v1227_v12 }
 0x1fd   :  { %v1164_v4 = vadd.f32 %v7624_v49, %v1085_v44 }
 0x1ff   :  { %v1196_v56 = vmax.f32 %v1164_v4, 0.0  ;;  %v860_v58 = vpop.f32.mrf.mxu3 }
 0x200   :  { %v950_v53 = vadd.f32 %v949_v5, %v860_v58 }
 0x201   :  { %v952_v27 = vpop.f32.mrf.mxu0  ;;  %v1228_v63 = vpack.c.bf16 %v1196_v56, %v1196_v56 }
 0x202   :  { %v987_v6 = vpack.c.bf16 %v950_v53, %v948_v3  ;;  %v1087_v60 = vpop.f32.mrf.mxu1 }
 0x203   :  { %v1088_v46 = vadd.f32 %v1087_v60, %v7147_v7  ;;  %v1292_v62 = vunpack.c.l.b16 %v1228_v63 }
 0x205   :  { %5869 = vmatmul.msk.bf16.gmra.mxu1 %vm1013_vm3, %v987_v6  ;;  %v7639_v41 = vpack.c.b16 %v1292_v62, %v1291_v30  ;;  %v1165_v39 = vadd.f32 %v7624_v49, %v1088_v46 }
 0x207   :  { %v863_v26 = vpop.f32.mrf.mxu3  ;;  %v1197_v44 = vmax.f32 %v1165_v39, 0.0 }
 0x208   :  { %v953_v7 = vadd.f32 %v952_v27, %v863_v26 }
 0x209   :  { %v954_v32 = vpop.f32.mrf.mxu0  ;;  %v1229_v5 = vpack.c.bf16 %v1197_v44, %v1197_v44 }
 0x20a   :  { %v1089_v51 = vpop.f32.mrf.mxu1 }
 0x20b   :  { %v1090_v40 = vadd.f32 %v1089_v51, %v7157_v10  ;;  %v1293_v60 = vunpack.c.l.b16 %v1229_v5 }
 0x20d   :  { %v1166_v9 = vadd.f32 %v7624_v49, %v1090_v40 }
 0x20f   :  { %v1198_v4 = vmax.f32 %v1166_v9, 0.0  ;;  %v865_v56 = vpop.f32.mrf.mxu3 }
 0x210   :  { %v955_v12 = vadd.f32 %v954_v32, %v865_v56 }
 0x211   :  { %v957_v58 = vpop.f32.mrf.mxu0  ;;  %v1230_v3 = vpack.c.bf16 %v1198_v4, %v1198_v4 }
 0x212   :  { %v988_v53 = vpack.c.bf16 %v955_v12, %v953_v7  ;;  %v1092_v63 = vpop.f32.mrf.mxu1 }
 0x213   :  { %v1093_v6 = vadd.f32 %v1092_v63, %v7171_v33  ;;  %v1294_v46 = vunpack.c.l.b16 %v1230_v3 }
 0x215   :  { %5870 = vmatmul.msk.bf16.gmra.mxu1 %vm1013_vm3, %v988_v53  ;;  %v7646_v30 = vpack.c.b16 %v1294_v46, %v1293_v60  ;;  %v1167_v10 = vadd.f32 %v7624_v49, %v1093_v6 }
 0x217   :  { %v868_v62 = vpop.f32.mrf.mxu3  ;;  %v1199_v44 = vmax.f32 %v1167_v10, 0.0 }
 0x218   :  { %v958_v33 = vadd.f32 %v957_v58, %v868_v62 }
 0x219   :  { %v959_v39 = vpop.f32.mrf.mxu0  ;;  %v1231_v32 = vpack.c.bf16 %v1199_v44, %v1199_v44 }
 0x21a   :  { %v1094_v51 = vpop.f32.mrf.mxu1 }
 0x21b   :  { %v1095_v27 = vadd.f32 %v1094_v51, %v7181_v16  ;;  %v1295_v3 = vunpack.c.l.b16 %v1231_v32 }
 0x21d   :  { %v1168_v26 = vadd.f32 %v7624_v49, %v1095_v27 }
 0x21f   :  { %v1200_v40 = vmax.f32 %v1168_v26, 0.0  ;;  %v870_v9 = vpop.f32.mrf.mxu3 }
 0x220   :  { %v960_v5 = vadd.f32 %v959_v39, %v870_v9 }
 0x221   :  { %v962_v4 = vpop.f32.mrf.mxu0  ;;  %v1232_v56 = vpack.c.bf16 %v1200_v40, %v1200_v40 }
 0x222   :  { %v989_v7 = vpack.c.bf16 %v960_v5, %v958_v33  ;;  %v1097_v12 = vpop.f32.mrf.mxu1 }
 0x223   :  { %v1296_v53 = vunpack.c.l.b16 %v1232_v56 }
 0x225   :  { %5871 = vmatmul.msk.bf16.gmra.mxu1 %vm1013_vm3, %v989_v7  ;;  %v7652_v63 = vpack.c.b16 %v1296_v53, %v1295_v3 }
 0x227   :  { %v873_v6 = vpop.f32.mrf.mxu3 }
 0x228   :  { %v963_v10 = vadd.f32 %v962_v4, %v873_v6 }
 0x229   :  { %v964_v60 = vpop.f32.mrf.mxu0 }
 0x22a   :  { %v1099_v16 = vpop.f32.mrf.mxu1 }
 0x22f   :  { %v875_v46 = vpop.f32.mrf.mxu3 }
 0x230   :  { %v965_v51 = vadd.f32 %v964_v60, %v875_v46 }
 0x231   :  { %v967_v44 = vpop.f32.mrf.mxu0 }
 0x232   :  { %v990_v27 = vpack.c.bf16 %v965_v51, %v963_v10  ;;  %v1102_v58 = vpop.f32.mrf.mxu1 }
 0x235   :  { %5872 = vmatmul.msk.bf16.gmra.mxu1 %vm1013_vm3, %v990_v27 }
 0x237   :  { %v878_v62 = vpop.f32.mrf.mxu3 }
 0x238   :  { %v968_v40 = vadd.f32 %v967_v44, %v878_v62 }
 0x239   :  { %v969_v26 = vpop.f32.mrf.mxu0 }
 0x23a   :  { %v1104_v39 = vpop.f32.mrf.mxu1 }
 0x23f   :  { %v880_v32 = vpop.f32.mrf.mxu3 }
 0x240   :  { %v970_v9 = vadd.f32 %v969_v26, %v880_v32  ;;  %v1105_v26 = vadd.f32 %v1104_v39, %v7241_v38 }
 0x241   :  { %v972_v56 = vpop.f32.mrf.mxu0 }
 0x242   :  { %v991_v33 = vpack.c.bf16 %v970_v9, %v968_v40  ;;  %v1107_v5 = vpop.f32.mrf.mxu1  ;;  %v1103_v9 = vadd.f32 %v1102_v58, %v7233_v35 }
 0x243   :  { %v1108_v44 = vadd.f32 %v1107_v5, %v7261_v48  ;;  %v1098_v5 = vadd.f32 %v1097_v12, %v7203_v22 }
 0x244   :  { %v1171_v38 = vadd.f32 %v7624_v49, %v1103_v9 }
 0x245   :  { %5873 = vmatmul.msk.bf16.gmra.mxu1 %vm1013_vm3, %v991_v33  ;;  %v1173_v33 = vadd.f32 %v7624_v49, %v1108_v44 }
 0x247   :  { %v883_v7 = vpop.f32.mrf.mxu3  ;;  %v1205_v39 = vmax.f32 %v1173_v33, 0.0 }
 0x248   :  { %v973_v6 = vadd.f32 %v972_v56, %v883_v7  ;;  %v1172_v7 = vadd.f32 %v7624_v49, %v1105_v26 }
 0x249   :  { %v974_v4 = vpop.f32.mrf.mxu0 }
 0x24a   :  { %v1109_v3 = vpop.f32.mrf.mxu1  ;;  %v1204_v58 = vmax.f32 %v1172_v7, 0.0 }
 0x24b   :  { %v1110_v27 = vadd.f32 %v1109_v3, %v7269_v50  ;;  %v1100_v50 = vadd.f32 %v1099_v16, %v7211_v25  ;;  %v1203_v16 = vmax.f32 %v1171_v38, 0.0 }
 0x24c   :  { %v1236_v44 = vpack.c.bf16 %v1204_v58, %v1204_v58 }
 0x24d   :  { %v1174_v32 = vadd.f32 %v7624_v49, %v1110_v27  ;;  %v1170_v35 = vadd.f32 %v7624_v49, %v1100_v50  ;;  %v1235_v26 = vpack.c.bf16 %v1203_v16, %v1203_v16 }
 0x24e   :  { %v1300_v9 = vunpack.c.l.b16 %v1236_v44 }
 0x24f   :  { %v885_v53 = vpop.f32.mrf.mxu3  ;;  %v1206_v3 = vmax.f32 %v1174_v32, 0.0  ;;  %v1202_v27 = vmax.f32 %v1170_v35, 0.0  ;;  %v1299_v50 = vunpack.c.l.b16 %v1235_v26 }
 0x250   :  { %v975_v60 = vadd.f32 %v974_v4, %v885_v53 }
 0x251   :  { %v1234_v33 = vpack.c.bf16 %v1202_v27, %v1202_v27  ;;  %v1326_v7 = vpack.c.b16 %v1300_v9, %v1299_v50 }
 0x252   :  { %v992_v46 = vpack.c.bf16 %v975_v60, %v973_v6  ;;  %v1112_v10 = vpop.f32.mrf.mxu1  ;;  %v1238_v60 = vpack.c.bf16 %v1206_v3, %v1206_v3 }
 0x253   :  { %v1113_v51 = vadd.f32 %v1112_v10, %v7291_v61  ;;  %v1298_v3 = vunpack.c.l.b16 %v1234_v33 }
 0x254   :  { %v1302_v12 = vunpack.c.l.b16 %v1238_v60 }
 0x255   :  { %5874 = vmatmul.msk.bf16.gmra.mxu1 %vm1013_vm3, %v992_v46  ;;  %v1175_v62 = vadd.f32 %v7624_v49, %v1113_v51  ;;  %v1237_v46 = vpack.c.bf16 %v1205_v39, %v1205_v39 }
 0x257   :  { %v1207_v56 = vmax.f32 %v1175_v62, 0.0  ;;  %v1301_v32 = vunpack.c.l.b16 %v1237_v46 }
 0x259   :  { %v1239_v4 = vpack.c.bf16 %v1207_v56, %v1207_v56 }
 0x25a   :  { %v1114_v40 = vpop.f32.mrf.mxu1 }
 0x25b   :  { %v1115_v61 = vadd.f32 %v1114_v40, %v7301_v1  ;;  %v1169_v1 = vadd.f32 %v7624_v49, %v1098_v5  ;;  %v1303_v10 = vunpack.c.l.b16 %v1239_v4  ;;  %v1327_v40 = vpack.c.b16 %v1302_v12, %v1301_v32 }
 0x25d   :  { %v1176_v48 = vadd.f32 %v7624_v49, %v1115_v61  ;;  %v1201_v62 = vmax.f32 %v1169_v1, 0.0 }
 0x25f   :  { %v1208_v53 = vmax.f32 %v1176_v48, 0.0  ;;  %v1233_v61 = vpack.c.bf16 %v1201_v62, %v1201_v62 }
 0x261   :  { %v1240_v6 = vpack.c.bf16 %v1208_v53, %v1208_v53  ;;  %v1297_v48 = vunpack.c.l.b16 %v1233_v61 }
 0x262   :  { %v7673_v25 = vpop.f32.mrf.mxu1 }
 0x263   :  { %v1304_v51 = vunpack.c.l.b16 %v1240_v6  ;;  %v1325_v5 = vpack.c.b16 %v1298_v3, %v1297_v48  ;;  %v7685_v6 = vpop.f32.mrf.mxu2 }
 0x265   :  { %v1328_v22 = vpack.c.b16 %v1304_v51, %v1303_v10 }
 0x267   :  { %1353 = vmatpush.bf16.msrb.mxu2 %v1328_v22 }
 0x26a   :  { %v7675_v56 = vpop.f32.mrf.mxu1 }
 0x26b   :  { %1354 = vmatpush.bf16.msrb.mxu2 %v1327_v40  ;;  %v7687_v1 = vpop.f32.mrf.mxu2 }
 0x26f   :  { %1355 = vmatpush.bf16.msrb.mxu2 %v1326_v7 }
 0x272   :  { %v7677_v38 = vpop.f32.mrf.mxu1 }
 0x273   :  { %1356 = vmatpush.bf16.msrb.mxu2 %v1325_v5  ;;  %v7690_v16 = vpop.f32.mrf.mxu2 }
 0x277   :  { %1357 = vmatpush.bf16.msrb.mxu2 %v7652_v63 }
 0x27a   :  { %v7680_v39 = vpop.f32.mrf.mxu1 }
 0x27b   :  { %1358 = vmatpush.bf16.msrb.mxu2 %v7646_v30  ;;  %v7692_v30 = vpop.f32.mrf.mxu2 }
 0x27f   :  { %1359 = vmatpush.bf16.msrb.mxu2 %v7639_v41 }
 0x282   :  { %v1127_v4 = vpop.f32.mrf.mxu1 }
 0x283   :  { %1360 = vmatpush.bf16.msrb.mxu2 %v7632_v24  ;;  %v7695_v24 = vpop.f32.mrf.mxu2 }
 0x286   :  { %1361 = vmatmul.bf16.vlgmr.msrb.gmra.mxu2 %v7199_v20 }
 0x28a   :  { %v1129_v53 = vpop.f32.mrf.mxu1 }
 0x28b   :  { %v7697_v51 = vpop.f32.mrf.mxu2 }
 0x292   :  { %v1132_v35 = vpop.f32.mrf.mxu1 }
 0x293   :  { %v7700_v22 = vpop.f32.mrf.mxu2 }
 0x296   :  { %1366 = vmatmul.bf16.gmra.mxu2 %v7229_v34 }
 0x29a   :  { %v1134_v58 = vpop.f32.mrf.mxu1 }
 0x29b   :  { %v7708_v40 = vpop.f32.mrf.mxu2 }
 0x2a2   :  { %v1137_v60 = vpop.f32.mrf.mxu1 }
 0x2a3   :  { %v1138_v7 = vadd.f32 %v1137_v60, %v7044_v17 }
 0x2a6   :  { %1371 = vmatmul.bf16.gmra.mxu2 %v7257_v45 }
 0x2aa   :  { %v1139_v63 = vpop.f32.mrf.mxu1 }
 0x2b2   :  { %v1142_v46 = vpop.f32.mrf.mxu1 }
 0x2b3   :  { %v1143_v9 = vadd.f32 %v1142_v46, %v7116_v28  ;;  %v1135_v28 = vadd.f32 %v1134_v58, %v7434_v0 }
 0x2b5   :  { %v1187_v3 = vadd.f32 %v7624_v49, %v1143_v9 }
 0x2b6   :  { %1376 = vmatmul.bf16.gmra.mxu2 %v7287_v59 }
 0x2ba   :  { %v1144_v41 = vpop.f32.mrf.mxu1 }
 0x2bb   :  { %v1145_v26 = vadd.f32 %v1144_v41, %v7143_v2 }
 0x2bd   :  { %v1188_v61 = vadd.f32 %v7624_v49, %v1145_v26 }
 0x2bf   :  { %v1220_v41 = vmax.f32 %v1188_v61, 0.0 }
 0x2c1   :  { %v1252_v58 = vpack.c.bf16 %v1220_v41, %v1220_v41 }
 0x2c2   :  { %v1147_v10 = vpop.f32.mrf.mxu1 }
 0x2c3   :  { %v1148_v62 = vadd.f32 %v1147_v10, %v7155_v8  ;;  %v1140_v8 = vadd.f32 %v1139_v63, %v7080_v57  ;;  %v7721_v57 = vpop.f32.mrf.mxu2  ;;  %v1133_v63 = vadd.f32 %v1132_v35, %v7426_v37 }
 0x2c5   :  { %v1189_v33 = vadd.f32 %v7624_v49, %v1148_v62  ;;  %v1186_v46 = vadd.f32 %v7624_v49, %v1140_v8  ;;  %v1184_v62 = vadd.f32 %v7624_v49, %v1135_v28 }
 0x2c7   :  { %v1221_v59 = vmax.f32 %v1189_v33, 0.0  ;;  %v1218_v0 = vmax.f32 %v1186_v46, 0.0  ;;  %v1125_v33 = vadd.f32 %v7680_v39, %v7365_v11  ;;  %v1120_v11 = vadd.f32 %v7675_v56, %v7333_v31 }
 0x2c9   :  { %v1253_v17 = vpack.c.bf16 %v1221_v59, %v1221_v59  ;;  %v1180_v39 = vadd.f32 %v7624_v49, %v1125_v33  ;;  %v1178_v41 = vadd.f32 %v7624_v49, %v1120_v11  ;;  %v10475_v11 = vld [vmem:[#allocation19_spill] sm:$0xff] }
 0x2ca   :  { %v1149_v27 = vpop.f32.mrf.mxu1 }
 0x2cb   :  { %v1150_v44 = vadd.f32 %v1149_v27, %v7167_v13  ;;  %v1185_v27 = vadd.f32 %v7624_v49, %v1138_v7  ;;  %v1317_v35 = vunpack.c.l.b16 %v1253_v17  ;;  %v7732_v61 = vpop.f32.mrf.mxu2  ;;  %1381 = vmatmul.bf16.gmra.mxu2 %v7319_v18  ;;  %v1118_v18 = vadd.f32 %v7673_v25, %v7323_v36 }
 0x2cc   :  { %v1210_v36 = vmax.f32 %v1178_v41, 0.0  ;;  %v10478_v41 = vld [vmem:[#allocation46_spill] sm:$0xff] }
 0x2cd   :  { %v1190_v32 = vadd.f32 %v7624_v49, %v1150_v44  ;;  %v1130_v44 = vadd.f32 %v1129_v53, %v7398_v55  ;;  %v1217_v9 = vmax.f32 %v1185_v27, 0.0  ;;  %v1216_v55 = vmax.f32 %v1184_v62, 0.0 }
 0x2ce   :  { %v1250_v53 = vpack.c.bf16 %v1218_v0, %v1218_v0  ;;  %v1177_v27 = vadd.f32 %v7624_v49, %v1118_v18 }
 0x2cf   :  { %v1222_v50 = vmax.f32 %v1190_v32, 0.0  ;;  %v1128_v32 = vadd.f32 %v1127_v4, %v7387_v15  ;;  %v1123_v15 = vadd.f32 %v7677_v38, %v7355_v54  ;;  %v1248_v59 = vpack.c.bf16 %v1216_v55, %v1216_v55 }
 0x2d0   :  { %v1209_v62 = vmax.f32 %v1177_v27, 0.0 }
 0x2d1   :  { %v1181_v4 = vadd.f32 %v7624_v49, %v1128_v32  ;;  %v1179_v54 = vadd.f32 %v7624_v49, %v1123_v15  ;;  %v1312_v31 = vunpack.c.l.b16 %v1248_v59  ;;  %v10476_v59 = vld [vmem:[#allocation42_spill] sm:$0xff] }
 0x2d2   :  { %v1152_v20 = vpop.f32.mrf.mxu1 }
 0x2d3   :  { %v1153_v12 = vadd.f32 %v1152_v20, %v7179_v14  ;;  %v1219_v20 = vmax.f32 %v1187_v3, 0.0  ;;  %v1213_v38 = vmax.f32 %v1181_v4, 0.0  ;;  %v10471_v4 = vld [vmem:[#allocation9_spill] sm:$0xff] }
 0x2d5   :  { %v1191_v34 = vadd.f32 %v7624_v49, %v1153_v12  ;;  %v1251_v37 = vpack.c.bf16 %v1219_v20, %v1219_v20  ;;  %v1211_v20 = vmax.f32 %v1179_v54, 0.0  ;;  %v1245_v17 = vpack.c.bf16 %v1213_v38, %v1213_v38  ;;  %v6480_v54 = vld [vmem:[%s10333_s8 + $0x18] sm:$0xff]  ;;  %v10477_v38 = vld [vmem:[#allocation23_spill] sm:$0xff] }
 0x2d7   :  { %v1223_v14 = vmax.f32 %v1191_v34, 0.0  ;;  %v1315_v7 = vunpack.c.l.b16 %v1251_v37  ;;  %v1243_v0 = vpack.c.bf16 %v1211_v20, %v1211_v20  ;;  %v10480_v20 = vld [vmem:[#allocation50_spill] sm:$0xff] }
 0x2d9   :  { %v1255_v48 = vpack.c.bf16 %v1223_v14, %v1223_v14  ;;  %v1182_v14 = vadd.f32 %v7624_v49, %v1130_v44 }
 0x2da   :  { %v1154_v45 = vpop.f32.mrf.mxu1 }
 0x2db   :  { %v1155_v13 = vadd.f32 %v1154_v45, %v7197_v19  ;;  %v1254_v19 = vpack.c.bf16 %v1222_v50, %v1222_v50  ;;  %v1319_v60 = vunpack.c.l.b16 %v1255_v48  ;;  %v1183_v45 = vadd.f32 %v7624_v49, %v1133_v63  ;;  %v7745_v63 = vpop.f32.mrf.mxu2 }
 0x2dc   :  { %v1214_v3 = vmax.f32 %v1182_v14, 0.0  ;;  %v1314_v48 = vunpack.c.l.b16 %v1250_v53 }
 0x2dd   :  { %v1192_v2 = vadd.f32 %v7624_v49, %v1155_v13  ;;  %v1318_v34 = vunpack.c.l.b16 %v1254_v19  ;;  %v1316_v13 = vunpack.c.l.b16 %v1252_v58  ;;  %v1215_v50 = vmax.f32 %v1183_v45, 0.0 }
 0x2de   :  { %v1212_v19 = vmax.f32 %v1180_v39, 0.0  ;;  %v1309_v58 = vunpack.c.l.b16 %v1245_v17  ;;  %v1241_v49 = vpack.c.bf16 %v1209_v62, %v1209_v62  ;;  %v6483_v39 = vld [vmem:[%s10333_s8 + $0x30] sm:$0xff] }
 0x2df   :  { %v1224_v5 = vmax.f32 %v1192_v2, 0.0  ;;  %v1335_v8 = vpack.c.b16 %v1318_v34, %v1317_v35  ;;  %v1249_v2 = vpack.c.bf16 %v1217_v9, %v1217_v9  ;;  %v1247_v28 = vpack.c.bf16 %v1215_v50, %v1215_v50  ;;  %v10472_v50 = vld [vmem:[#allocation35_spill] sm:$0xff] }
 0x2e0   :  { %v1244_v25 = vpack.c.bf16 %v1212_v19, %v1212_v19  ;;  %v1242_v34 = vpack.c.bf16 %v1210_v36, %v1210_v36  ;;  %v1307_v9 = vunpack.c.l.b16 %v1243_v0  ;;  %v1305_v33 = vunpack.c.l.b16 %v1241_v49  ;;  %v6478_v19 = vld [vmem:[%s10333_s8 + $0x8] sm:$0xff] }
 0x2e1   :  { %v1256_v10 = vpack.c.bf16 %v1224_v5, %v1224_v5  ;;  %v1334_v5 = vpack.c.b16 %v1316_v13, %v1315_v7  ;;  %v1313_v46 = vunpack.c.l.b16 %v1249_v2  ;;  %v10473_v2 = vld [vmem:[#allocation14_spill] sm:$0xff]  ;;  %v10474_v7 = vld [vmem:[#allocation39_spill] sm:$0xff] }
 0x2e2   :  { %v1306_v37 = vunpack.c.l.b16 %v1242_v34 }
 0x2e3   :  { %v1320_v12 = vunpack.c.l.b16 %v1256_v10  ;;  %v1246_v10 = vpack.c.bf16 %v1214_v3, %v1214_v3  ;;  %v1333_v56 = vpack.c.b16 %v1314_v48, %v1313_v46  ;;  %v7748_v45 = vpop.f32.mrf.mxu2  ;;  %1386 = vmatmul.bf16.gmra.mxu2 %v7351_v52  ;;  %v6482_v48 = vld [vmem:[%s10333_s8 + $0x28] sm:$0xff]  ;;  %v6479_v46 = vld [vmem:[%s10333_s8 + $0x10] sm:$0xff] }
 0x2e4   :  { %v1329_v14 = vpack.c.b16 %v1306_v37, %v1305_v33 }
 0x2e5   :  { %v1336_v26 = vpack.c.b16 %v1320_v12, %v1319_v60  ;;  %v1311_v60 = vunpack.c.l.b16 %v1247_v28  ;;  %v1310_v12 = vunpack.c.l.b16 %v1246_v10 }
 0x2e7   :  { %1442 = vmatpush.bf16.msra.mxu3 %v1336_v26  ;;  %v1332_v44 = vpack.c.b16 %v1312_v31, %v1311_v60  ;;  %v1308_v26 = vunpack.c.l.b16 %v1244_v25  ;;  %v1331_v32 = vpack.c.b16 %v1310_v12, %v1309_v58  ;;  %v6477_v31 = vld [vmem:[%s10333_s8] sm:$0xff]  ;;  %v10481_v60 = vld [vmem:[#allocation33_spill] sm:$0xff] }
 0x2e8   :  { %v10482_v12 = vld [vmem:[#allocation53_spill] sm:$0xff] }
 0x2e9   :  { %v1330_v35 = vpack.c.b16 %v1308_v26, %v1307_v9  ;;  %v10483_v26 = vld [vmem:[#allocation36_spill] sm:$0xff]  ;;  %v10484_v9 = vld [vmem:[#allocation57_spill] sm:$0xff] }
 0x2eb   :  { %1443 = vmatpush.bf16.msra.mxu3 %v1335_v8  ;;  %v7751_v55 = vpop.f32.mrf.mxu2 }
 0x2ef   :  { %1444 = vmatpush.bf16.msra.mxu3 %v1334_v5  ;;  %v6481_v5 = vld [vmem:[%s10333_s8 + $0x20] sm:$0xff] }
 0x2f3   :  { %1445 = vmatpush.bf16.msra.mxu3 %v1333_v56  ;;  %v7754_v53 = vpop.f32.mrf.mxu2  ;;  %1391 = vmatmul.bf16.gmra.mxu2 %v7381_v43  ;;  %v10479_v56 = vld [vmem:[#allocation28_spill] sm:$0xff] }
 0x2f7   :  { %1446 = vmatpush.bf16.msra.mxu3 %v1332_v44 }
 0x2fb   :  { %1447 = vmatpush.bf16.msra.mxu3 %v1331_v32  ;;  %v7757_v13 = vpop.f32.mrf.mxu2 }
 0x2ff   :  { %1448 = vmatpush.bf16.msra.mxu3 %v1330_v35 }
 0x303   :  { %1449 = vmatpush.bf16.msra.mxu3 %v1329_v14  ;;  %v7760_v52 = vpop.f32.mrf.mxu2  ;;  %1396 = vmatmul.bf16.gmra.mxu2 %v7422_v42 }
 0x306   :  { %1450 = vmatmul.bf16.vlgmr.msra.gmra.mxu3 %v7201_v21 }
 0x30b   :  { %v7763_v8 = vpop.f32.mrf.mxu2 }
 0x313   :  { %v7766_v15 = vpop.f32.mrf.mxu2  ;;  %1401 = vmatmul.bf16.gmra.mxu2 %v7452_v23  ;;  %v6484_v23 = vld [vmem:[%s10333_s8 + $0x38] sm:$0xff] }
 0x314   :  { %1611 = vmatpush.bf16.msra.mxu0 %v6484_v23 }
 0x316   :  { %1455 = vmatmul.bf16.gmra.mxu3 %v7231_v29 }
 0x318   :  { %1612 = vmatpush.bf16.msra.mxu0 %v6483_v39 }
 0x31b   :  { %v7769_v21 = vpop.f32.mrf.mxu2 }
 0x31c   :  { %1613 = vmatpush.bf16.msra.mxu0 %v6482_v48 }
 0x320   :  { %1614 = vmatpush.bf16.msra.mxu0 %v6481_v5  ;;  %v10486_v5 = vld [vmem:[#allocation43_spill] sm:$0xff] }
 0x323   :  { %v7772_v43 = vpop.f32.mrf.mxu2  ;;  %1406 = vmatmul.bf16.gmra.mxu2 %v10472_v50  ;;  %v10485_v50 = vld [vmem:[#allocation40_spill] sm:$0xff] }
 0x324   :  { %1615 = vmatpush.bf16.msra.mxu0 %v6480_v54 }
 0x326   :  { %1460 = vmatmul.bf16.gmra.mxu3 %v7259_v47 }
 0x328   :  { %1616 = vmatpush.bf16.msra.mxu0 %v6479_v46 }
 0x32b   :  { %v7775_v29 = vpop.f32.mrf.mxu2 }
 0x32c   :  { %1617 = vmatpush.bf16.msra.mxu0 %v6478_v19 }
 0x330   :  { %1618 = vmatpush.bf16.msra.mxu0 %v6477_v31 }
 0x333   :  { %v7778_v42 = vpop.f32.mrf.mxu2  ;;  %1411 = vmatmul.bf16.gmra.mxu2 %v10474_v7 }
 0x336   :  { %1465 = vmatmul.bf16.gmra.mxu3 %v10471_v4 }
 0x33b   :  { %v7781_v47 = vpop.f32.mrf.mxu2 }
 0x343   :  { %v7790_v3 = vpop.f32.mrf.mxu2  ;;  %1416 = vmatmul.bf16.gmra.mxu2 %v10476_v59 }
 0x346   :  { %1470 = vmatmul.bf16.gmra.mxu3 %v10473_v2 }
 0x34b   :  { %v1362_v18 = vpop.f32.mrf.mxu2 }
 0x353   :  { %v1364_v28 = vpop.f32.mrf.mxu2  ;;  %1421 = vmatmul.bf16.gmra.mxu2 %v10478_v41 }
 0x356   :  { %1475 = vmatmul.bf16.gmra.mxu3 %v10475_v11 }
 0x35b   :  { %v1367_v10 = vpop.f32.mrf.mxu2 }
 0x363   :  { %v1369_v27 = vpop.f32.mrf.mxu2  ;;  %1426 = vmatmul.bf16.gmra.mxu2 %v10480_v20 }
 0x366   :  { %1480 = vmatmul.bf16.gmra.mxu3 %v10477_v38 }
 0x36b   :  { %v1372_v17 = vpop.f32.mrf.mxu2 }
 0x373   :  { %v1374_v25 = vpop.f32.mrf.mxu2  ;;  %1431 = vmatmul.bf16.gmra.mxu2 %v10482_v12 }
 0x376   :  { %1485 = vmatmul.bf16.gmra.mxu3 %v10479_v56 }
 0x37b   :  { %v1377_v62 = vpop.f32.mrf.mxu2 }
 0x383   :  { %v1379_v49 = vpop.f32.mrf.mxu2  ;;  %1436 = vmatmul.bf16.gmra.mxu2 %v10484_v9 }
 0x386   :  { %1490 = vmatmul.bf16.gmra.mxu3 %v10481_v60 }
 0x389   :  { %v1451_v36 = vpop.f32.mrf.mxu3 }
 0x38a   :  { %v1452_v0 = vadd.f32 %v1451_v36, %v1362_v18  ;;  %v10488_v36 = vld [vmem:[#allocation51_spill] sm:$0xff] }
 0x38b   :  { %v1382_v35 = vpop.f32.mrf.mxu2 }
 0x391   :  { %v1453_v44 = vpop.f32.mrf.mxu3 }
 0x392   :  { %v1454_v58 = vadd.f32 %v1453_v44, %v1364_v28 }
 0x393   :  { %v1384_v7 = vpop.f32.mrf.mxu2 }
 0x394   :  { %v1531_v34 = vpack.c.bf16 %v1454_v58, %v1452_v0 }
 0x396   :  { %1495 = vmatmul.bf16.gmra.mxu3 %v10483_v26  ;;  %1619 = vmatmul.bf16.vlgmr.msra.gmra.mxu0 %v1531_v34  ;;  %v6492_v34 = vld [vmem:[%s10335_s10 + $0x38] sm:$0xff] }
 0x397   :  { %1848 = vmatpush.bf16.msra.mxu1 %v6492_v34  ;;  %v10492_v34 = vld [vmem:[#allocation10_spill] sm:$0xff] }
 0x399   :  { %v1456_v32 = vpop.f32.mrf.mxu3 }
 0x39a   :  { %v1457_v33 = vadd.f32 %v1456_v32, %v1367_v10  ;;  %v10487_v10 = vld [vmem:[#allocation47_spill] sm:$0xff]  ;;  %v10489_v32 = vld [vmem:[#allocation54_spill] sm:$0xff] }
 0x39b   :  { %v1387_v11 = vpop.f32.mrf.mxu2 }
 0x3a1   :  { %v1458_v37 = vpop.f32.mrf.mxu3 }
 0x3a2   :  { %v1459_v14 = vadd.f32 %v1458_v37, %v1369_v27  ;;  %v6490_v37 = vld [vmem:[%s10335_s10 + $0x28] sm:$0xff] }
 0x3a3   :  { %v1389_v54 = vpop.f32.mrf.mxu2 }
 0x3a4   :  { %v1532_v4 = vpack.c.bf16 %v1459_v14, %v1457_v33  ;;  %v6489_v33 = vld [vmem:[%s10335_s10 + $0x20] sm:$0xff] }
 0x3a6   :  { %1500 = vmatmul.bf16.gmra.mxu3 %v10485_v50  ;;  %1624 = vmatmul.bf16.gmra.mxu0 %v1532_v4 }
 0x3a9   :  { %v1461_v2 = vpop.f32.mrf.mxu3 }
 0x3aa   :  { %v1462_v39 = vadd.f32 %v1461_v2, %v1372_v17  ;;  %v6488_v2 = vld [vmem:[%s10335_s10 + $0x18] sm:$0xff] }
 0x3ab   :  { %v1392_v41 = vpop.f32.mrf.mxu2 }
 0x3b1   :  { %v1463_v23 = vpop.f32.mrf.mxu3 }
 0x3b2   :  { %v1464_v59 = vadd.f32 %v1463_v23, %v1374_v25 }
 0x3b3   :  { %v1394_v56 = vpop.f32.mrf.mxu2 }
 0x3b4   :  { %v1533_v48 = vpack.c.bf16 %v1464_v59, %v1462_v39  ;;  %v6487_v39 = vld [vmem:[%s10335_s10 + $0x10] sm:$0xff] }
 0x3b6   :  { %1505 = vmatmul.bf16.gmra.mxu3 %v10486_v5  ;;  %1629 = vmatmul.bf16.gmra.mxu0 %v1533_v48  ;;  %v6486_v48 = vld [vmem:[%s10335_s10 + $0x8] sm:$0xff] }
 0x3b9   :  { %v1466_v18 = vpop.f32.mrf.mxu3 }
 0x3ba   :  { %v1467_v28 = vadd.f32 %v1466_v18, %v1377_v62  ;;  %v6485_v18 = vld [vmem:[%s10335_s10] sm:$0xff] }
 0x3bb   :  { %v1397_v25 = vpop.f32.mrf.mxu2 }
 0x3c1   :  { %v1468_v38 = vpop.f32.mrf.mxu3 }
 0x3c2   :  { %v1469_v46 = vadd.f32 %v1468_v38, %v1379_v49  ;;  %v6491_v49 = vld [vmem:[%s10335_s10 + $0x30] sm:$0xff] }
 0x3c3   :  { %v1399_v0 = vpop.f32.mrf.mxu2  ;;  %1849 = vmatpush.bf16.msra.mxu1 %v6491_v49 }
 0x3c4   :  { %v1534_v19 = vpack.c.bf16 %v1469_v46, %v1467_v28 }
 0x3c6   :  { %1510 = vmatmul.bf16.gmra.mxu3 %v10487_v10  ;;  %1634 = vmatmul.bf16.gmra.mxu0 %v1534_v19 }
 0x3c7   :  { %1850 = vmatpush.bf16.msra.mxu1 %v6490_v37 }
 0x3c9   :  { %v1471_v31 = vpop.f32.mrf.mxu3 }
 0x3ca   :  { %v1472_v20 = vadd.f32 %v1471_v31, %v1382_v35 }
 0x3cb   :  { %v1402_v35 = vpop.f32.mrf.mxu2  ;;  %1851 = vmatpush.bf16.msra.mxu1 %v6489_v33  ;;  %v2006_v33 = vld [vmem:[%s10336_s3 + $0x8] sm:$0xff] }
 0x3cf   :  { %1852 = vmatpush.bf16.msra.mxu1 %v6488_v2 }
 0x3d1   :  { %v1473_v27 = vpop.f32.mrf.mxu3 }
 0x3d2   :  { %v1474_v17 = vadd.f32 %v1473_v27, %v1384_v7 }
 0x3d3   :  { %v1404_v23 = vpop.f32.mrf.mxu2  ;;  %1853 = vmatpush.bf16.msra.mxu1 %v6487_v39 }
 0x3d4   :  { %v1535_v60 = vpack.c.bf16 %v1474_v17, %v1472_v20 }
 0x3d6   :  { %1515 = vmatmul.bf16.gmra.mxu3 %v10488_v36  ;;  %1639 = vmatmul.bf16.gmra.mxu0 %v1535_v60  ;;  %v10491_v60 = vld [vmem:[#allocation7_spill] sm:$0xff] }
 0x3d7   :  { %1854 = vmatpush.bf16.msra.mxu1 %v6486_v48  ;;  %v2007_v48 = vld [vmem:[%s10336_s3 + $0x10] sm:$0xff] }
 0x3d9   :  { %v1476_v12 = vpop.f32.mrf.mxu3 }
 0x3da   :  { %v1477_v62 = vadd.f32 %v1476_v12, %v1387_v11  ;;  %v10490_v11 = vld [vmem:[#allocation58_spill] sm:$0xff] }
 0x3db   :  { %v1407_v5 = vpop.f32.mrf.mxu2  ;;  %1855 = vmatpush.bf16.msra.mxu1 %v6485_v18  ;;  %v7853_v12 = vld [vmem:[%s10334_s9] ss:$0 sm:$0xff] }
 0x3e1   :  { %v1478_v44 = vpop.f32.mrf.mxu3 }
 0x3e2   :  { %v1479_v58 = vadd.f32 %v1478_v44, %v1389_v54  ;;  %v6748_v44 = vmov 0  }
 0x3e3   :  { %v1409_v19 = vpop.f32.mrf.mxu2  ;;  %6609 = vset.pattern.permute.xlu0 %v6748_v44  ;;  %6610 = vset.pattern.permute.xlu1 %v6748_v44 }
 0x3e4   :  { %v1536_v26 = vpack.c.bf16 %v1479_v58, %v1477_v62  ;;  %6611 = vset.pattern.permute.xlu2 %v6748_v44  ;;  %2049 = vperm.xlu1 %6610, %v2007_v48  }
 0x3e6   :  { %1520 = vmatmul.bf16.gmra.mxu3 %v10489_v32  ;;  %1644 = vmatmul.bf16.gmra.mxu0 %v1536_v26 }
 0x3e9   :  { %v1481_v9 = vpop.f32.mrf.mxu3 }
 0x3ea   :  { %v1482_v4 = vadd.f32 %v1481_v9, %v1392_v41 }
 0x3eb   :  { %v1412_v20 = vpop.f32.mrf.mxu2 }
 0x3f1   :  { %v1483_v14 = vpop.f32.mrf.mxu3 }
 0x3f2   :  { %v1484_v50 = vadd.f32 %v1483_v14, %v1394_v56 }
 0x3f3   :  { %v1414_v32 = vpop.f32.mrf.mxu2 }
 0x3f4   :  { %v1537_v7 = vpack.c.bf16 %v1484_v50, %v1482_v4 }
 0x3f6   :  { %1525 = vmatmul.bf16.gmra.mxu3 %v10490_v11  ;;  %1649 = vmatmul.bf16.gmra.mxu0 %v1537_v7  ;;  %v10493_v11 = vld [vmem:[#allocation12_spill] sm:$0xff] }
 0x3f9   :  { %v1486_v59 = vpop.f32.mrf.mxu3 }
 0x3fa   :  { %v1487_v38 = vadd.f32 %v1486_v59, %v1397_v25 }
 0x401   :  { %v1488_v54 = vpop.f32.mrf.mxu3 }
 0x402   :  { %v1489_v28 = vadd.f32 %v1488_v54, %v1399_v0  ;;  %v2005_v0 = vld [vmem:[%s10336_s3] sm:$0xff] }
 0x403   :  { %2039 = vperm.xlu0 %6609, %v2005_v0  }
 0x404   :  { %v1538_v46 = vpack.c.bf16 %v1489_v28, %v1487_v38 }
 0x406   :  { %1654 = vmatmul.bf16.gmra.mxu0 %v1538_v46 }
 0x409   :  { %v1491_v41 = vpop.f32.mrf.mxu3 }
 0x40a   :  { %v1492_v31 = vadd.f32 %v1491_v41, %v1402_v35 }
 0x40b   :  { %2044 = vperm.xlu0 %6609, %v2006_v33  }
 0x411   :  { %v1493_v10 = vpop.f32.mrf.mxu3 }
 0x412   :  { %v1494_v56 = vadd.f32 %v1493_v10, %v1404_v23  ;;  %v1417_v23 = vpop.f32.mrf.mxu2 }
 0x413   :  { %v1620_v27 = vpop.f32.mrf.mxu0 }
 0x414   :  { %v1539_v17 = vpack.c.bf16 %v1494_v56, %v1492_v31  ;;  %v1621_v36 = vadd.f32 %v1620_v27, %v10491_v60  ;;  %v2008_v31 = vld [vmem:[%s10336_s3 + $0x18] sm:$0xff] }
 0x415   :  { %2054 = vperm.xlu1 %6610, %v2008_v31  }
 0x416   :  { %1659 = vmatmul.bf16.gmra.mxu0 %v1539_v17  ;;  %v1704_v58 = vadd.f32 %v7853_v12, %v1621_v36 }
 0x418   :  { %v1736_v9 = vmax.f32 %v1704_v58, 0.0 }
 0x419   :  { %v1496_v25 = vpop.f32.mrf.mxu3 }
 0x41a   :  { %v1497_v14 = vadd.f32 %v1496_v25, %v1407_v5  ;;  %v10494_v5 = vld [vmem:[#allocation15_spill] sm:$0xff]  ;;  %v1419_v10 = vpop.f32.mrf.mxu2  ;;  %v10495_v25 = vld [vmem:[#allocation17_spill] sm:$0xff] }
 0x41b   :  { %v1622_v62 = vpop.f32.mrf.mxu0 }
 0x41c   :  { %v1623_v26 = vadd.f32 %v1622_v62, %v10492_v34 }
 0x41e   :  { %v1705_v49 = vadd.f32 %v7853_v12, %v1623_v26  ;;  %v10496_v26 = vld [vmem:[#allocation20_spill] sm:$0xff] }
 0x420   :  { %v1737_v37 = vmax.f32 %v1705_v49, 0.0 }
 0x421   :  { %v1498_v35 = vpop.f32.mrf.mxu3 }
 0x422   :  { %v1768_v4 = vpack.c.bf16 %v1737_v37, %v1736_v9  ;;  %v1499_v50 = vadd.f32 %v1498_v35, %v1409_v19  ;;  %v1422_v58 = vpop.f32.mrf.mxu2 }
 0x423   :  { %v1625_v2 = vpop.f32.mrf.mxu0 }
 0x424   :  { %v1540_v7 = vpack.c.bf16 %v1499_v50, %v1497_v14  ;;  %1856 = vmatmul.bf16.vlgmr.msra.gmra.mxu1 %v1768_v4  ;;  %v1626_v39 = vadd.f32 %v1625_v2, %v10493_v11 }
 0x426   :  { %1664 = vmatmul.bf16.gmra.mxu0 %v1540_v7  ;;  %v1706_v54 = vadd.f32 %v7853_v12, %v1626_v39  ;;  %v10497_v7 = vld [vmem:[#allocation24_spill] sm:$0xff] }
 0x428   :  { %v1738_v46 = vmax.f32 %v1706_v54, 0.0  ;;  %v10498_v54 = vld [vmem:[#allocation26_spill] sm:$0xff] }
 0x429   :  { %v1501_v59 = vpop.f32.mrf.mxu3 }
 0x42a   :  { %v1502_v56 = vadd.f32 %v1501_v59, %v1412_v20  ;;  %v1424_v2 = vpop.f32.mrf.mxu2  ;;  %v2011_v59 = vld [vmem:[%s10336_s3 + $0x30] sm:$0xff] }
 0x42b   :  { %v1627_v18 = vpop.f32.mrf.mxu0  ;;  %2069 = vperm.xlu0 %6609, %v2011_v59   ;;  %v2015_v59 = vld [vmem:[%s10336_s3 + $0x50] sm:$0xff] }
 0x42c   :  { %v1628_v38 = vadd.f32 %v1627_v18, %v10494_v5 }
 0x42e   :  { %v1707_v28 = vadd.f32 %v7853_v12, %v1628_v38 }
 0x430   :  { %v1739_v41 = vmax.f32 %v1707_v28, 0.0 }
 0x431   :  { %v1503_v19 = vpop.f32.mrf.mxu3 }
 0x432   :  { %v1504_v27 = vadd.f32 %v1503_v19, %v1414_v32  ;;  %v1769_v17 = vpack.c.bf16 %v1739_v41, %v1738_v46  ;;  %v1427_v38 = vpop.f32.mrf.mxu2  ;;  %v2009_v19 = vld [vmem:[%s10336_s3 + $0x20] sm:$0xff] }
 0x433   :  { %v1630_v60 = vpop.f32.mrf.mxu0  ;;  %2059 = vperm.xlu2 %6611, %v2009_v19   ;;  %v2013_v19 = vld [vmem:[%s10336_s3 + $0x40] sm:$0xff] }
 0x434   :  { %v1541_v36 = vpack.c.bf16 %v1504_v27, %v1502_v56  ;;  %1861 = vmatmul.bf16.gmra.mxu1 %v1769_v17  ;;  %v1631_v44 = vadd.f32 %v1630_v60, %v10495_v25 }
 0x436   :  { %1669 = vmatmul.bf16.gmra.mxu0 %v1541_v36  ;;  %v1708_v34 = vadd.f32 %v7853_v12, %v1631_v44  ;;  %v10499_v36 = vld [vmem:[#allocation29_spill] sm:$0xff] }
 0x438   :  { %v1740_v37 = vmax.f32 %v1708_v34, 0.0 }
 0x439   :  { %v1506_v0 = vpop.f32.mrf.mxu3 }
 0x43a   :  { %v1507_v35 = vadd.f32 %v1506_v0, %v1417_v23  ;;  %v1429_v44 = vpop.f32.mrf.mxu2 }
 0x43b   :  { %v1632_v62 = vpop.f32.mrf.mxu0 }
 0x43c   :  { %v1633_v49 = vadd.f32 %v1632_v62, %v10496_v26  ;;  %v2010_v62 = vld [vmem:[%s10336_s3 + $0x28] sm:$0xff] }
 0x43d   :  { %2064 = vperm.xlu2 %6611, %v2010_v62   ;;  %v10500_v26 = vld [vmem:[#allocation31_spill] sm:$0xff] }
 0x43e   :  { %v1709_v9 = vadd.f32 %v7853_v12, %v1633_v49 }
 0x440   :  { %v1741_v20 = vmax.f32 %v1709_v9, 0.0 }
 0x441   :  { %v1508_v32 = vpop.f32.mrf.mxu3 }
 0x442   :  { %v1509_v33 = vadd.f32 %v1508_v32, %v1419_v10  ;;  %v1770_v14 = vpack.c.bf16 %v1741_v20, %v1740_v37  ;;  %v2012_v10 = vld [vmem:[%s10336_s3 + $0x38] sm:$0xff] }
 0x443   :  { %v1635_v4 = vpop.f32.mrf.mxu0  ;;  %2074 = vperm.xlu1 %6610, %v2012_v10  }
 0x444   :  { %v1542_v50 = vpack.c.bf16 %v1509_v33, %v1507_v35  ;;  %1866 = vmatmul.bf16.gmra.mxu1 %v1770_v14  ;;  %v1636_v11 = vadd.f32 %v1635_v4, %v10497_v7  ;;  %v2014_v35 = vld [vmem:[%s10336_s3 + $0x48] sm:$0xff] }
 0x445   :  { %2084 = vperm.xlu0 %6609, %v2014_v35   ;;  %2079 = vperm.xlu2 %6611, %v2013_v19  }
 0x446   :  { %1674 = vmatmul.bf16.gmra.mxu0 %v1542_v50  ;;  %v1710_v18 = vadd.f32 %v7853_v12, %v1636_v11  ;;  %v1432_v50 = vpop.f32.mrf.mxu2  ;;  %v10501_v11 = vld [vmem:[#allocation34_spill] sm:$0xff] }
 0x448   :  { %v1742_v28 = vmax.f32 %v1710_v18, 0.0 }
 0x449   :  { %v1511_v39 = vpop.f32.mrf.mxu3 }
 0x44a   :  { %v1512_v31 = vadd.f32 %v1511_v39, %v1422_v58 }
 0x44b   :  { %v1637_v48 = vpop.f32.mrf.mxu0  ;;  %2089 = vperm.xlu1 %6610, %v2015_v59   ;;  %v2016_v59 = vld [vmem:[%s10336_s3 + $0x58] sm:$0xff] }
 0x44c   :  { %v1638_v23 = vadd.f32 %v1637_v48, %v10498_v54 }
 0x44d   :  { %2094 = vperm.xlu2 %6611, %v2016_v59  }
 0x44e   :  { %v1711_v5 = vadd.f32 %v7853_v12, %v1638_v23  ;;  %v10502_v23 = vld [vmem:[#allocation37_spill] sm:$0xff] }
 0x450   :  { %v1743_v46 = vmax.f32 %v1711_v5, 0.0 }
 0x451   :  { %v1513_v41 = vpop.f32.mrf.mxu3 }
 0x452   :  { %v1514_v56 = vadd.f32 %v1513_v41, %v1424_v2  ;;  %v1771_v27 = vpack.c.bf16 %v1743_v46, %v1742_v28 }
 0x453   :  { %v1640_v17 = vpop.f32.mrf.mxu0 }
 0x454   :  { %v1543_v60 = vpack.c.bf16 %v1514_v56, %v1512_v31  ;;  %1871 = vmatmul.bf16.gmra.mxu1 %v1771_v27  ;;  %v1641_v25 = vadd.f32 %v1640_v17, %v10499_v36 }
 0x456   :  { %1679 = vmatmul.bf16.gmra.mxu0 %v1543_v60  ;;  %v1712_v58 = vadd.f32 %v7853_v12, %v1641_v25  ;;  %v10503_v25 = vld [vmem:[#allocation38_spill] sm:$0xff] }
 0x458   :  { %v1744_v37 = vmax.f32 %v1712_v58, 0.0 }
 0x459   :  { %v1516_v0 = vpop.f32.mrf.mxu3 }
 0x45a   :  { %v1517_v33 = vadd.f32 %v1516_v0, %v1427_v38  ;;  %v1434_v38 = vpop.f32.mrf.mxu2  ;;  %v2017_v0 = vld [vmem:[%s10336_s3 + $0x60] sm:$0xff] }
 0x45b   :  { %v1642_v34 = vpop.f32.mrf.mxu0  ;;  %2099 = vperm.xlu0 %6609, %v2017_v0  }
 0x45c   :  { %v1643_v49 = vadd.f32 %v1642_v34, %v10500_v26  ;;  %v10504_v26 = vld [vmem:[#allocation41_spill] sm:$0xff] }
 0x45e   :  { %v1713_v9 = vadd.f32 %v7853_v12, %v1643_v49 }
 0x460   :  { %v1745_v20 = vmax.f32 %v1713_v9, 0.0 }
 0x461   :  { %v1518_v32 = vpop.f32.mrf.mxu3 }
 0x462   :  { %v1519_v14 = vadd.f32 %v1518_v32, %v1429_v44  ;;  %v1772_v4 = vpack.c.bf16 %v1745_v20, %v1744_v37  ;;  %v1437_v36 = vpop.f32.mrf.mxu2 }
 0x463   :  { %v1645_v2 = vpop.f32.mrf.mxu0 }
 0x464   :  { %v1544_v7 = vpack.c.bf16 %v1519_v14, %v1517_v33  ;;  %1876 = vmatmul.bf16.gmra.mxu1 %v1772_v4  ;;  %v1646_v39 = vadd.f32 %v1645_v2, %v10501_v11  ;;  %v2018_v33 = vld [vmem:[%s10336_s3 + $0x68] sm:$0xff]  ;;  %v10505_v11 = vld [vmem:[#allocation44_spill] sm:$0xff] }
 0x465   :  { %2104 = vperm.xlu1 %6610, %v2018_v33  }
 0x466   :  { %1684 = vmatmul.bf16.gmra.mxu0 %v1544_v7  ;;  %v1714_v54 = vadd.f32 %v7853_v12, %v1646_v39 }
 0x468   :  { %v1746_v46 = vmax.f32 %v1714_v54, 0.0  ;;  %v10506_v54 = vld [vmem:[#allocation45_spill] sm:$0xff] }
 0x469   :  { %v1521_v48 = vpop.f32.mrf.mxu3 }
 0x46a   :  { %v1522_v31 = vadd.f32 %v1521_v48, %v1432_v50  ;;  %v1439_v32 = vpop.f32.mrf.mxu2 }
 0x46b   :  { %v1647_v18 = vpop.f32.mrf.mxu0 }
 0x46c   :  { %v1648_v5 = vadd.f32 %v1647_v18, %v10502_v23 }
 0x46e   :  { %v1715_v28 = vadd.f32 %v7853_v12, %v1648_v5 }
 0x470   :  { %v1747_v41 = vmax.f32 %v1715_v28, 0.0 }
 0x471   :  { %v1523_v10 = vpop.f32.mrf.mxu3 }
 0x472   :  { %v1524_v56 = vadd.f32 %v1523_v10, %v1434_v38  ;;  %v1773_v27 = vpack.c.bf16 %v1747_v41, %v1746_v46  ;;  %v2020_v46 = vld [vmem:[%s10336_s3 + $0x78] sm:$0xff]  ;;  %v10507_v10 = vld [vmem:[#allocation48_spill] sm:$0xff] }
 0x473   :  { %v1650_v17 = vpop.f32.mrf.mxu0  ;;  %2114 = vperm.xlu0 %6609, %v2020_v46  }
 0x474   :  { %v1545_v60 = vpack.c.bf16 %v1524_v56, %v1522_v31  ;;  %1881 = vmatmul.bf16.gmra.mxu1 %v1773_v27  ;;  %v1651_v44 = vadd.f32 %v1650_v17, %v10503_v25  ;;  %v2021_v56 = vld [vmem:[%s10336_s3 + $0x80] sm:$0xff] }
 0x475   :  { %2119 = vperm.xlu1 %6610, %v2021_v56  }
 0x476   :  { %1689 = vmatmul.bf16.gmra.mxu0 %v1545_v60  ;;  %v1716_v58 = vadd.f32 %v7853_v12, %v1651_v44  ;;  %v10508_v60 = vld [vmem:[#allocation49_spill] sm:$0xff] }
 0x478   :  { %v1748_v37 = vmax.f32 %v1716_v58, 0.0 }
 0x479   :  { %v1526_v62 = vpop.f32.mrf.mxu3 }
 0x47a   :  { %v1527_v14 = vadd.f32 %v1526_v62, %v1437_v36 }
 0x47b   :  { %v1652_v34 = vpop.f32.mrf.mxu0 }
 0x47c   :  { %v1653_v49 = vadd.f32 %v1652_v34, %v10504_v26  ;;  %v2019_v34 = vld [vmem:[%s10336_s3 + $0x70] sm:$0xff]  ;;  %v7945_v26 = vld [vmem:[%s10337_s11] ss:$0 sm:$0xff] }
 0x47d   :  { %2109 = vperm.xlu2 %6611, %v2019_v34  }
 0x47e   :  { %v1717_v9 = vadd.f32 %v7853_v12, %v1653_v49 }
 0x480   :  { %v1749_v20 = vmax.f32 %v1717_v9, 0.0 }
 0x481   :  { %v1528_v35 = vpop.f32.mrf.mxu3 }
 0x482   :  { %v1529_v4 = vadd.f32 %v1528_v35, %v1439_v32  ;;  %v1774_v50 = vpack.c.bf16 %v1749_v20, %v1748_v37  ;;  %v10509_v20 = vld [vmem:[#allocation52_spill] sm:$0xff]  ;;  %v2040_v35 = vpop.permute.xlu0 %2039 }
 0x483   :  { %v1655_v2 = vpop.f32.mrf.mxu0 }
 0x484   :  { %v1546_v7 = vpack.c.bf16 %v1529_v4, %v1527_v14  ;;  %1886 = vmatmul.bf16.gmra.mxu1 %v1774_v50  ;;  %v1656_v39 = vadd.f32 %v1655_v2, %v10505_v11  ;;  %v2023_v14 = vld [vmem:[%s10336_s3 + $0x90] sm:$0xff] }
 0x485   :  { %2129 = vperm.xlu0 %6609, %v2023_v14  }
 0x486   :  { %1694 = vmatmul.bf16.gmra.mxu0 %v1546_v7  ;;  %v1718_v18 = vadd.f32 %v7853_v12, %v1656_v39  ;;  %v10510_v7 = vld [vmem:[#allocation55_spill] sm:$0xff] }
 0x488   :  { %v1750_v38 = vmax.f32 %v1718_v18, 0.0 }
 0x48b   :  { %v1657_v48 = vpop.f32.mrf.mxu0 }
 0x48c   :  { %v1658_v23 = vadd.f32 %v1657_v48, %v10506_v54 }
 0x48e   :  { %v1719_v5 = vadd.f32 %v7853_v12, %v1658_v23  ;;  %v2024_v23 = vld [vmem:[%s10336_s3 + $0x98] sm:$0xff] }
 0x48f   :  { %2134 = vperm.xlu1 %6610, %v2024_v23   ;;  %v10513_v23 = vld [vmem:[#allocation60_spill] sm:$0xff] }
 0x490   :  { %v1751_v28 = vmax.f32 %v1719_v5, 0.0  ;;  %v2045_v5 = vpop.permute.xlu0 %2044 }
 0x492   :  { %v1775_v41 = vpack.c.bf16 %v1751_v28, %v1750_v38 }
 0x493   :  { %v1660_v19 = vpop.f32.mrf.mxu0 }
 0x494   :  { %1891 = vmatmul.bf16.gmra.mxu1 %v1775_v41  ;;  %v1661_v31 = vadd.f32 %v1660_v19, %v10507_v10 }
 0x496   :  { %v1720_v17 = vadd.f32 %v7853_v12, %v1661_v31 }
 0x498   :  { %v1752_v44 = vmax.f32 %v1720_v17, 0.0 }
 0x49b   :  { %v1662_v27 = vpop.f32.mrf.mxu0 }
 0x49c   :  { %v1663_v36 = vadd.f32 %v1662_v27, %v10508_v60  ;;  %v10511_v27 = vld [vmem:[#allocation56_spill] sm:$0xff] }
 0x49e   :  { %v1721_v25 = vadd.f32 %v7853_v12, %v1663_v36  ;;  %v2050_v36 = vpop.permute.xlu1 %2049 }
 0x4a0   :  { %v1753_v0 = vmax.f32 %v1721_v25, 0.0  ;;  %v2022_v25 = vld [vmem:[%s10336_s3 + $0x88] sm:$0xff] }
 0x4a1   :  { %v1857_v62 = vpop.f32.mrf.mxu1  ;;  %2124 = vperm.xlu2 %6611, %v2022_v25  }
 0x4a2   :  { %v1858_v58 = vadd.f32 %v1857_v62, %v7685_v6  ;;  %v1776_v49 = vpack.c.bf16 %v1753_v0, %v1752_v44 }
 0x4a3   :  { %v1665_v9 = vpop.f32.mrf.mxu0 }
 0x4a4   :  { %1896 = vmatmul.bf16.gmra.mxu1 %v1776_v49  ;;  %v1941_v37 = vadd.f32 %v7945_v26, %v1858_v58  ;;  %v1666_v32 = vadd.f32 %v1665_v9, %v10509_v20  ;;  %v10512_v58 = vld [vmem:[#allocation59_spill] sm:$0xff] }
 0x4a6   :  { %6617 = vtanh.f32 %v1941_v37  ;;  %v1722_v50 = vadd.f32 %v7853_v12, %v1666_v32 }
 0x4a8   :  { %v1754_v48 = vmax.f32 %v1722_v50, 0.0 }
 0x4a9   :  { %v1859_v33 = vpop.f32.mrf.mxu1 }
 0x4aa   :  { %v1860_v6 = vadd.f32 %v1859_v33, %v7687_v1 }
 0x4ab   :  { %v1667_v4 = vpop.f32.mrf.mxu0 }
 0x4ac   :  { %v1942_v2 = vadd.f32 %v7945_v26, %v1860_v6  ;;  %v1668_v11 = vadd.f32 %v1667_v4, %v10510_v7  ;;  %v6618_v59 = vpop.eup %6617  ;;  %v2055_v6 = vpop.permute.xlu1 %2054 }
 0x4ad   :  { %v2197_v28 = vmul.f32 %v6618_v59, %v2040_v35 }
 0x4ae   :  { %6619 = vtanh.f32 %v1942_v2  ;;  %v1723_v39 = vadd.f32 %v7853_v12, %v1668_v11 }
 0x4af   :  { %v2230_v31 = vsel %vm2229_vm4, %v2197_v28, 0.0  ;;  %v2027_v28 = vld [vmem:[%s10336_s3 + $0xb0] sm:$0xff] }
 0x4b0   :  { %v1755_v18 = vmax.f32 %v1723_v39, 0.0  ;;  %2149 = vperm.xlu1 %6610, %v2027_v28   ;;  %v10515_v28 = vld [vmem:[#allocation2_spill] sm:$0xff] }
 0x4b1   :  { %v1862_v54 = vpop.f32.mrf.mxu1 }
 0x4b2   :  { %v1863_v1 = vadd.f32 %v1862_v54, %v7690_v16  ;;  %v1777_v38 = vpack.c.bf16 %v1755_v18, %v1754_v48 }
 0x4b3   :  { %v1670_v46 = vpop.f32.mrf.mxu0 }
 0x4b4   :  { %v6620_v41 = vpop.eup %6619  ;;  %1901 = vmatmul.bf16.gmra.mxu1 %v1777_v38  ;;  %v1943_v10 = vadd.f32 %v7945_v26, %v1863_v1  ;;  %v1671_v17 = vadd.f32 %v1670_v46, %v10511_v27 }
 0x4b5   :  { %v2198_v19 = vmul.f32 %v6620_v41, %v2045_v5 }
 0x4b6   :  { %6621 = vtanh.f32 %v1943_v10  ;;  %v1724_v62 = vadd.f32 %v7853_v12, %v1671_v17  ;;  %v10514_v17 = vld [vmem:[#allocation61_spill] sm:$0xff] }
 0x4b7   :  { %v2231_v56 = vsel %vm2229_vm4, %v2198_v19, 0.0 }
 0x4b8   :  { %v2232_v60 = vadd.f32 %v2231_v56, %v2230_v31  ;;  %v1756_v32 = vmax.f32 %v1724_v62, 0.0 }
 0x4b9   :  { %v1864_v16 = vpop.f32.mrf.mxu1 }
 0x4ba   :  { %v1865_v44 = vadd.f32 %v1864_v16, %v7692_v30  ;;  %v2233_v37 = vrot.slane %v2232_v60, 4  ;;  %v2026_v30 = vld [vmem:[%s10336_s3 + $0xa8] sm:$0xff] }
 0x4bb   :  { %v1672_v0 = vpop.f32.mrf.mxu0  ;;  %2144 = vperm.xlu0 %6609, %v2026_v30  }
 0x4bc   :  { %v1944_v34 = vadd.f32 %v7945_v26, %v1865_v44  ;;  %v1673_v49 = vadd.f32 %v1672_v0, %v10512_v58  ;;  %v6622_v20 = vpop.eup %6621  ;;  %v2234_v50 = vadd.f32 %v2233_v37, %v2232_v60  ;;  %v6540_v58 = vld [vmem:[%s10338_s13 + $0x74] sm:$0xf0] }
 0x4bd   :  { %v2199_v2 = vmul.f32 %v6622_v20, %v2050_v36  ;;  %v6061_v20 = vld [vmem:[%s10338_s13 + $0xf0] sm:$0xf] }
 0x4be   :  { %6623 = vtanh.f32 %v1944_v34  ;;  %v1725_v9 = vadd.f32 %v7853_v12, %v1673_v49  ;;  %v2235_v48 = vrot.slane %v2234_v50, 2 }
 0x4bf   :  { %v2239_v18 = vsel %vm2229_vm4, %v2199_v2, 0.0 }
 0x4c0   :  { %v1757_v35 = vmax.f32 %v1725_v9, 0.0  ;;  %v2236_v19 = vadd.f32 %v2235_v48, %v2234_v50  ;;  %v2025_v9 = vld [vmem:[%s10336_s3 + $0xa0] sm:$0xff] }
 0x4c1   :  { %v1867_v33 = vpop.f32.mrf.mxu1  ;;  %2139 = vperm.xlu2 %6611, %v2025_v9   ;;  %v10516_v9 = vld [vmem:[#allocation3_spill] sm:$0xff] }
 0x4c2   :  { %v1868_v14 = vadd.f32 %v1867_v33, %v7695_v24  ;;  %v1778_v4 = vpack.c.bf16 %v1757_v35, %v1756_v32  ;;  %v2060_v24 = vpop.permute.xlu2 %2059  ;;  %v2237_v25 = vrot.slane %v2236_v19, 1  ;;  %v6556_v32 = vld [vmem:[%s10338_s13 + $0xf4] sm:$0xf0] }
 0x4c3   :  { %v1675_v7 = vpop.f32.mrf.mxu0 }
 0x4c4   :  { %v6624_v11 = vpop.eup %6623  ;;  %1906 = vmatmul.bf16.gmra.mxu1 %v1778_v4  ;;  %v1945_v59 = vadd.f32 %v7945_v26, %v1868_v14  ;;  %v1676_v1 = vadd.f32 %v1675_v7, %v10513_v23  ;;  %v2238_v7 = vadd.f32 %v2237_v25, %v2236_v19  ;;  %v5981_v19 = vld [vmem:[%s10338_s13 + $0x50] sm:$0xf] }
 0x4c5   :  { %v2200_v39 = vmul.f32 %v6624_v11, %v2055_v6  ;;  %v6062_v6 = vor.u32 %v6556_v32, %v6061_v20  ;;  %v6534_v20 = vld [vmem:[%s10338_s13 + $0x44] sm:$0xf0]  ;;  %v6037_v32 = vld [vmem:[%s10338_s13 + $0xc0] sm:$0xf] }
 0x4c6   :  { %6625 = vtanh.f32 %v1945_v59  ;;  %v1726_v31 = vadd.f32 %v7853_v12, %v1676_v1  ;;  %v6053_v59 = vld [vmem:[%s10338_s13 + $0xe0] sm:$0xf] }
 0x4c7   :  { %v2240_v54 = vsel %vm2229_vm4, %v2200_v39, 0.0  ;;  %3096 = vmatpush.bf16.msrb.mxu3 %v6062_v6  ;;  %v5989_v39 = vld [vmem:[%s10338_s13 + $0x60] sm:$0xf] }
 0x4c8   :  { %v2241_v5 = vadd.f32 %v2240_v54, %v2239_v18  ;;  %v1758_v0 = vmax.f32 %v1726_v31, 0.0  ;;  %v6554_v54 = vld [vmem:[%s10338_s13 + $0xe4] sm:$0xf0] }
 0x4c9   :  { %v1869_v38 = vpop.f32.mrf.mxu1 }
 0x4ca   :  { %v2242_v46 = vrot.slane %v2241_v5, 4  ;;  %v1870_v41 = vadd.f32 %v1869_v38, %v7697_v51  ;;  %v5997_v51 = vld [vmem:[%s10338_s13 + $0x70] sm:$0xf]  ;;  %v2065_v30 = vpop.permute.xlu2 %2064 }
 0x4cb   :  { %v1677_v10 = vpop.f32.mrf.mxu0  ;;  %v5998_v37 = vor.u32 %v6540_v58, %v5997_v51 }
 0x4cc   :  { %v2243_v56 = vadd.f32 %v2242_v46, %v2241_v5  ;;  %v1946_v27 = vadd.f32 %v7945_v26, %v1870_v41  ;;  %v1678_v60 = vadd.f32 %v1677_v10, %v10514_v17  ;;  %v6626_v44 = vpop.eup %6625  ;;  %v6054_v5 = vor.u32 %v6554_v54, %v6053_v59  ;;  %v6536_v10 = vld [vmem:[%s10338_s13 + $0x54] sm:$0xf0]  ;;  %v6045_v17 = vld [vmem:[%s10338_s13 + $0xd0] sm:$0xf]  ;;  %v2070_v59 = vpop.permute.xlu0 %2069 }
 0x4cd   :  { %v2201_v4 = vmul.f32 %v6626_v44, %v2060_v24  ;;  %3007 = vmatpush.bf16.msra.mxu2 %v5998_v37  ;;  %v6125_v44 = vld [vmem:[%s10338_s13 + $0x170] sm:$0xf]  ;;  %v5973_v37 = vld [vmem:[%s10338_s13 + $0x40] sm:$0xf] }
 0x4ce   :  { %v2244_v36 = vrot.slane %v2243_v56, 2  ;;  %6627 = vtanh.f32 %v1946_v27  ;;  %v1727_v16 = vadd.f32 %v7853_v12, %v1678_v60  ;;  %3097 = vmatpush.bf16.msrb.mxu3 %v6054_v5  ;;  %v5982_v27 = vor.u32 %v6536_v10, %v5981_v19  ;;  %v6552_v60 = vld [vmem:[%s10338_s13 + $0xd4] sm:$0xf0]  ;;  %v6109_v10 = vld [vmem:[%s10338_s13 + $0x150] sm:$0xf] }
 0x4cf   :  { %v2248_v24 = vsel %vm2229_vm4, %v2201_v4, 0.0  ;;  %v6046_v25 = vor.u32 %v6552_v60, %v6045_v17 }
 0x4d0   :  { %v2245_v62 = vadd.f32 %v2244_v36, %v2243_v56  ;;  %v1759_v34 = vmax.f32 %v1727_v16, 0.0  ;;  %v2029_v56 = vld [vmem:[%s10336_s3 + $0xc0] sm:$0xff] }
 0x4d1   :  { %v1872_v49 = vpop.f32.mrf.mxu1  ;;  %2159 = vperm.xlu0 %6609, %v2029_v56  }
 0x4d2   :  { %v2246_v35 = vrot.slane %v2245_v62, 1  ;;  %v1873_v33 = vadd.f32 %v1872_v49, %v7700_v22  ;;  %v1779_v14 = vpack.c.bf16 %v1759_v34, %v1758_v0  ;;  %v6538_v22 = vld [vmem:[%s10338_s13 + $0x64] sm:$0xf0]  ;;  %v6572_v0 = vld [vmem:[%s10338_s13 + $0x174] sm:$0xf0]  ;;  %3098 = vmatpush.bf16.msrb.mxu3 %v6046_v25 }
 0x4d3   :  { %v1680_v50 = vpop.f32.mrf.mxu0  ;;  %v5990_v18 = vor.u32 %v6538_v22, %v5989_v39  ;;  %v6126_v34 = vor.u32 %v6572_v0, %v6125_v44  ;;  %v6530_v25 = vld [vmem:[%s10338_s13 + $0x24] sm:$0xf0]  ;;  %v6021_v44 = vld [vmem:[%s10338_s13 + $0xa0] sm:$0xf] }
 0x4d4   :  { %v6628_v2 = vpop.eup %6627  ;;  %v2247_v11 = vadd.f32 %v2246_v35, %v2245_v62  ;;  %1911 = vmatmul.bf16.gmra.mxu1 %v1779_v14  ;;  %v1947_v1 = vadd.f32 %v7945_v26, %v1873_v33  ;;  %v1681_v46 = vadd.f32 %v1680_v50, %v10515_v28  ;;  %v5974_v35 = vor.u32 %v6534_v20, %v5973_v37  ;;  %v6550_v33 = vld [vmem:[%s10338_s13 + $0xc4] sm:$0xf0]  ;;  %v10517_v37 = vld [vmem:[#allocation4_spill] sm:$0xff] }
 0x4d5   :  { %v2202_v48 = vmul.f32 %v6628_v2, %v2065_v30  ;;  %3008 = vmatpush.bf16.msra.mxu2 %v5990_v18  ;;  %3185 = vmatpush.bf16.msrb.mxu0 %v6126_v34  ;;  %v6117_v30 = vld [vmem:[%s10338_s13 + $0x160] sm:$0xf]  ;;  %v6570_v14 = vld [vmem:[%s10338_s13 + $0x164] sm:$0xf0]  ;;  %v6038_v50 = vor.u32 %v6550_v33, %v6037_v32  ;;  %v6532_v18 = vld [vmem:[%s10338_s13 + $0x34] sm:$0xf0] }
 0x4d6   :  { %v8018_v23 = vsel %vm5607_vm5, %v2247_v11, %v2238_v7  ;;  %6629 = vtanh.f32 %v1947_v1  ;;  %v1728_v51 = vadd.f32 %v7853_v12, %v1681_v46  ;;  %v6118_v2 = vor.u32 %v6570_v14, %v6117_v30  ;;  %v2030_v1 = vld [vmem:[%s10336_s3 + $0xc8] sm:$0xff]  ;;  %v2075_v46 = vpop.permute.xlu1 %2074  ;;  %v5949_v30 = vld [vmem:[%s10338_s13 + $0x10] sm:$0xf] }
 0x4d7   :  { %v2249_v38 = vsel %vm2229_vm4, %v2202_v48, 0.0  ;;  %3099 = vmatpush.bf16.msrb.mxu3 %v6038_v50  ;;  %v5965_v48 = vld [vmem:[%s10338_s13 + $0x30] sm:$0xf]  ;;  %2164 = vperm.xlu1 %6610, %v2030_v1   ;;  %v6546_v34 = vld [vmem:[%s10338_s13 + $0xa4] sm:$0xf0] }
 0x4d8   :  { %v2250_v41 = vadd.f32 %v2249_v38, %v2248_v24  ;;  %v1760_v11 = vmax.f32 %v1728_v51, 0.0  ;;  %v5966_v5 = vor.u32 %v6532_v18, %v5965_v48  ;;  %v6029_v24 = vld [vmem:[%s10338_s13 + $0xb0] sm:$0xf]  ;;  %v6548_v38 = vld [vmem:[%s10338_s13 + $0xb4] sm:$0xf0] }
 0x4d9   :  { %v1874_v31 = vpop.f32.mrf.mxu1  ;;  %3009 = vmatpush.bf16.msra.mxu2 %v5982_v27  ;;  %3186 = vmatpush.bf16.msrb.mxu0 %v6118_v2  ;;  %v6030_v19 = vor.u32 %v6548_v38, %v6029_v24  ;;  %v6101_v51 = vld [vmem:[%s10338_s13 + $0x140] sm:$0xf]  ;;  %v6013_v50 = vld [vmem:[%s10338_s13 + $0x90] sm:$0xf]  ;;  %v6544_v2 = vld [vmem:[%s10338_s13 + $0x94] sm:$0xf0] }
 0x4da   :  { %v2251_v36 = vrot.slane %v2250_v41, 4  ;;  %v1875_v16 = vadd.f32 %v1874_v31, %v7708_v40  ;;  %v6568_v31 = vld [vmem:[%s10338_s13 + $0x154] sm:$0xf0]  ;;  %v6093_v1 = vld [vmem:[%s10338_s13 + $0x130] sm:$0xf] }
 0x4db   :  { %v1682_v62 = vpop.f32.mrf.mxu0  ;;  %v6110_v17 = vor.u32 %v6568_v31, %v6109_v10  ;;  %3100 = vmatpush.bf16.msrb.mxu3 %v6030_v19  ;;  %v10518_v38 = vld [vmem:[#allocation5_spill] sm:$0xff]  ;;  %v6526_v19 = vld [vmem:[%s10338_s13 + $0x4] sm:$0xf0]  ;;  %v6005_v10 = vld [vmem:[%s10338_s13 + $0x80] sm:$0xf] }
 0x4dc   :  { %v2252_v58 = vadd.f32 %v2251_v36, %v2250_v41  ;;  %v1948_v49 = vadd.f32 %v7945_v26, %v1875_v16  ;;  %v1683_v40 = vadd.f32 %v1682_v62, %v10516_v9  ;;  %v6630_v7 = vpop.eup %6629  ;;  %v5957_v16 = vld [vmem:[%s10338_s13 + $0x20] sm:$0xf]  ;;  %v6022_v9 = vor.u32 %v6546_v34, %v6021_v44  ;;  %v6582_v44 = vld [vmem:[%s10338_s13 + $0x1c4] sm:$0xf0] }
 0x4dd   :  { %3010 = vmatpush.bf16.msra.mxu2 %v5974_v35  ;;  %v2203_v56 = vmul.f32 %v6630_v7, %v2070_v59  ;;  %3187 = vmatpush.bf16.msrb.mxu0 %v6110_v17  ;;  %v5958_v62 = vor.u32 %v6530_v25, %v5957_v16  ;;  %v6562_v17 = vld [vmem:[%s10338_s13 + $0x124] sm:$0xf0]  ;;  %v6165_v25 = vld [vmem:[%s10338_s13 + $0x1c0] sm:$0xf] }
 0x4de   :  { %v2253_v6 = vrot.slane %v2252_v58, 2  ;;  %6631 = vtanh.f32 %v1948_v49  ;;  %v1729_v4 = vadd.f32 %v7853_v12, %v1683_v40  ;;  %v6166_v34 = vor.u32 %v6582_v44, %v6165_v25  ;;  %v10520_v25 = vld [vmem:[#allocation8_spill] sm:$0xff] }
 0x4df   :  { %v2257_v40 = vsel %vm2229_vm4, %v2203_v56, 0.0  ;;  %3101 = vmatpush.bf16.msrb.mxu3 %v6022_v9  ;;  %v6542_v56 = vld [vmem:[%s10338_s13 + $0x84] sm:$0xf0] }
 0x4e0   :  { %v2254_v39 = vadd.f32 %v2253_v6, %v2252_v58  ;;  %v1761_v22 = vmax.f32 %v1729_v4, 0.0  ;;  %v6566_v58 = vld [vmem:[%s10338_s13 + $0x144] sm:$0xf0]  ;;  %v2028_v6 = vld [vmem:[%s10336_s3 + $0xb8] sm:$0xff]  ;;  %v6006_v16 = vor.u32 %v6542_v56, %v6005_v10 }
 0x4e1   :  { %v8074_v54 = vpop.f32.mrf.mxu1  ;;  %3011 = vmatpush.bf16.msra.mxu2 %v5966_v5  ;;  %v6102_v35 = vor.u32 %v6566_v58, %v6101_v51  ;;  %2154 = vperm.xlu2 %6611, %v2028_v6   ;;  %v6564_v5 = vld [vmem:[%s10338_s13 + $0x134] sm:$0xf0]  ;;  %v2406_v51 = vld [vmem:[%s10339_s5] sm:$0xff]  ;;  %v2407_v9 = vld [vmem:[%s10339_s5 + $0x8] sm:$0xff] }
 0x4e2   :  { %v2255_v28 = vrot.slane %v2254_v39, 1  ;;  %v1780_v41 = vpack.c.bf16 %v1761_v22, %v1760_v11  ;;  %v6173_v11 = vld [vmem:[%s10338_s13 + $0x1d0] sm:$0xf]  ;;  %v6014_v22 = vor.u32 %v6544_v2, %v6013_v50  ;;  %v2410_v58 = vld [vmem:[%s10339_s5 + $0x20] sm:$0xff] }
 0x4e3   :  { %v1685_v27 = vpop.f32.mrf.mxu0  ;;  %3188 = vmatpush.bf16.msrb.mxu0 %v6102_v35  ;;  %v6077_v35 = vld [vmem:[%s10338_s13 + $0x110] sm:$0xf] }
 0x4e4   :  { %v6632_v60 = vpop.eup %6631  ;;  %v2256_v36 = vadd.f32 %v2255_v28, %v2254_v39  ;;  %1916 = vmatmul.bf16.gmra.mxu1 %v1780_v41  ;;  %v1686_v20 = vadd.f32 %v1685_v27, %v10517_v37  ;;  %v6584_v39 = vld [vmem:[%s10338_s13 + $0x1d4] sm:$0xf0]  ;;  %3102 = vmatpush.bf16.msrb.mxu3 %v6014_v22  ;;  %v5941_v41 = vld [vmem:[%s10338_s13] sm:$0xf] }
 0x4e5   :  { %v2204_v0 = vmul.f32 %v6632_v60, %v2075_v46  ;;  %3012 = vmatpush.bf16.msra.mxu2 %v5958_v62  ;;  %v6174_v18 = vor.u32 %v6584_v39, %v6173_v11  ;;  %v6094_v46 = vor.u32 %v6564_v5, %v6093_v1  ;;  %v5942_v31 = vor.u32 %v6526_v19, %v5941_v41  ;;  %v6085_v27 = vld [vmem:[%s10338_s13 + $0x120] sm:$0xf]  ;;  %v6580_v11 = vld [vmem:[%s10338_s13 + $0x1b4] sm:$0xf0] }
 0x4e6   :  { %v8111_v49 = vsel %vm5609_vm6, %v2256_v36, %v8018_v23  ;;  %v6528_v23 = vld [vmem:[%s10338_s13 + $0x14] sm:$0xf0]  ;;  %v1730_v59 = vadd.f32 %v7853_v12, %v1686_v20  ;;  %v6086_v62 = vor.u32 %v6562_v17, %v6085_v27  ;;  %v8181_v20 = vpack.c.bf16 %v2410_v58, %v2406_v51  ;;  %v10519_v41 = vld [vmem:[#allocation6_spill] sm:$0xff]  ;;  %v6141_v27 = vld [vmem:[%s10338_s13 + $0x190] sm:$0xf] }
 0x4e7   :  { %v2258_v32 = vsel %vm2229_vm4, %v2204_v0, 0.0  ;;  %v5950_v4 = vor.u32 %v6528_v23, %v5949_v30  ;;  %3276 = vmatpush.bf16.msrb.mxu1 %v6174_v18  ;;  %3189 = vmatpush.bf16.msrb.mxu0 %v6094_v46  ;;  %v2032_v23 = vld [vmem:[%s10336_s3 + $0xd8] sm:$0xff]  ;;  %v6558_v18 = vld [vmem:[%s10338_s13 + $0x104] sm:$0xf0]  ;;  %v2408_v46 = vld [vmem:[%s10339_s5 + $0x10] sm:$0xff] }
 0x4e8   :  { %v2259_v33 = vadd.f32 %v2258_v32, %v2257_v40  ;;  %v1762_v0 = vmax.f32 %v1730_v59, 0.0  ;;  %3103 = vmatpush.bf16.msrb.mxu3 %v6006_v16  ;;  %v2411_v32 = vld [vmem:[%s10339_s5 + $0x28] sm:$0xff]  ;;  %2174 = vperm.xlu0 %6609, %v2032_v23   ;;  %v6576_v17 = vld [vmem:[%s10338_s13 + $0x194] sm:$0xf0] }
 0x4e9   :  { %v8122_v14 = vpop.f32.mrf.mxu1  ;;  %3013 = vmatpush.bf16.msra.mxu2 %v5950_v4  ;;  %v8195_v6 = vpack.c.bf16 %v2411_v32, %v2407_v9  ;;  %v2414_v9 = vld [vmem:[%s10339_s5 + $0x40] sm:$0xff] }
 0x4ea   :  { %v2260_v7 = vrot.slane %v2259_v33, 4  ;;  %v1880_v51 = vadd.f32 %v8122_v14, %v7732_v61  ;;  %v2419_v61 = vld [vmem:[%s10339_s5 + $0x68] sm:$0xff]  ;;  %v1878_v14 = vadd.f32 %v8074_v54, %v7721_v57 }
 0x4eb   :  { %v1687_v48 = vpop.f32.mrf.mxu0  ;;  %3277 = vmatpush.bf16.msrb.mxu1 %v6166_v34  ;;  %3190 = vmatpush.bf16.msrb.mxu0 %v6086_v62  ;;  %v6133_v62 = vld [vmem:[%s10338_s13 + $0x180] sm:$0xf]  ;;  %v6574_v34 = vld [vmem:[%s10338_s13 + $0x184] sm:$0xf0] }
 0x4ec   :  { %v2261_v24 = vadd.f32 %v2260_v7, %v2259_v33  ;;  %v1688_v28 = vadd.f32 %v1687_v48, %v10518_v38  ;;  %v6560_v33 = vld [vmem:[%s10338_s13 + $0x114] sm:$0xf0]  ;;  %v6157_v7 = vld [vmem:[%s10338_s13 + $0x1b0] sm:$0xf]  ;;  %3104 = vmatmul.bf16.vlgmr.msrb.gmra.mxu3 %v8195_v6  ;;  %v6069_v48 = vld [vmem:[%s10338_s13 + $0x100] sm:$0xf]  ;;  %v6134_v58 = vor.u32 %v6574_v34, %v6133_v62  ;;  %v1949_v54 = vadd.f32 %v7945_v26, %v1878_v14 }
 0x4ed   :  { %3014 = vmatpush.bf16.msra.mxu2 %v5942_v31  ;;  %v6078_v2 = vor.u32 %v6560_v33, %v6077_v35  ;;  %v6158_v22 = vor.u32 %v6580_v11, %v6157_v7  ;;  %v6070_v5 = vor.u32 %v6558_v18, %v6069_v48  ;;  %v6578_v38 = vld [vmem:[%s10338_s13 + $0x1a4] sm:$0xf0]  ;;  %v2033_v31 = vld [vmem:[%s10336_s3 + $0xe0] sm:$0xff]  ;;  %v1950_v7 = vadd.f32 %v7945_v26, %v1880_v51  ;;  %v2036_v14 = vld [vmem:[%s10336_s3 + $0xf8] sm:$0xff] }
 0x4ee   :  { %v2262_v60 = vrot.slane %v2261_v24, 2  ;;  %v1731_v36 = vadd.f32 %v7853_v12, %v1688_v28  ;;  %2179 = vperm.xlu1 %6610, %v2033_v31   ;;  %v10521_v48 = vld [vmem:[#allocation11_spill] sm:$0xff] }
 0x4ef   :  { %3278 = vmatpush.bf16.msrb.mxu1 %v6158_v22  ;;  %3191 = vmatpush.bf16.msrb.mxu0 %v6078_v2  ;;  %v2080_v22 = vpop.permute.xlu2 %2079  ;;  %6633 = vtanh.f32 %v1950_v7  ;;  %v2423_v62 = vld [vmem:[%s10339_s5 + $0x88] sm:$0xff] }
 0x4f0   :  { %v2263_v40 = vadd.f32 %v2262_v60, %v2261_v24  ;;  %v1763_v37 = vmax.f32 %v1731_v36, 0.0  ;;  %3015 = vmatmul.bf16.vlgmr.msra.gmra.mxu2 %v8181_v20  ;;  %v6149_v24 = vld [vmem:[%s10338_s13 + $0x1a0] sm:$0xf]  ;;  %v6142_v36 = vor.u32 %v6576_v17, %v6141_v27  ;;  %v10522_v27 = vld [vmem:[#allocation13_spill] sm:$0xff] }
 0x4f1   :  { %v1882_v30 = vpop.f32.mrf.mxu1  ;;  %v6150_v28 = vor.u32 %v6578_v38, %v6149_v24  ;;  %v2035_v38 = vld [vmem:[%s10336_s3 + $0xf0] sm:$0xff] }
 0x4f2   :  { %v2264_v4 = vrot.slane %v2263_v40, 1  ;;  %v1781_v50 = vpack.c.bf16 %v1763_v37, %v1762_v0  ;;  %2189 = vperm.xlu0 %6609, %v2035_v38  }
 0x4f3   :  { %v1690_v39 = vpop.f32.mrf.mxu0  ;;  %3279 = vmatpush.bf16.msrb.mxu1 %v6150_v28  ;;  %3192 = vmatpush.bf16.msrb.mxu0 %v6070_v5  ;;  %v2085_v5 = vpop.permute.xlu0 %2084 }
 0x4f4   :  { %v2265_v59 = vadd.f32 %v2264_v4, %v2263_v40  ;;  %1921 = vmatmul.bf16.gmra.mxu1 %v1781_v50  ;;  %v1691_v19 = vadd.f32 %v1690_v39, %v10519_v41  ;;  %v2415_v40 = vld [vmem:[%s10339_s5 + $0x48] sm:$0xff]  ;;  %v2031_v4 = vld [vmem:[%s10336_s3 + $0xd0] sm:$0xff] }
 0x4f5   :  { %v8271_v50 = vpack.c.bf16 %v2419_v61, %v2415_v40  ;;  %2169 = vperm.xlu2 %6611, %v2031_v4   ;;  %v2427_v40 = vld [vmem:[%s10339_s5 + $0xa8] sm:$0xff] }
 0x4f6   :  { %v8213_v1 = vsel %vm5611_vm7, %v2265_v59, %v8111_v49  ;;  %v2412_v49 = vld [vmem:[%s10339_s5 + $0x30] sm:$0xff]  ;;  %v1732_v16 = vadd.f32 %v7853_v12, %v1691_v19  ;;  %v6745_v19 = vld [vmem:[%s10334_s9] ss:$0 sm:$0xff]  ;;  %2194 = vperm.xlu1 %6610, %v2036_v14  }
 0x4f7   :  { %v8231_v56 = vpack.c.bf16 %v2412_v49, %v2408_v46  ;;  %3280 = vmatpush.bf16.msrb.mxu1 %v6142_v36  ;;  %v2090_v46 = vpop.permute.xlu1 %2089 }
 0x4f8   :  { %v1764_v37 = vmax.f32 %v1732_v16, 0.0  ;;  %v2095_v16 = vpop.permute.xlu2 %2094 }
 0x4f9   :  { %v1884_v10 = vpop.f32.mrf.mxu1  ;;  %3193 = vmatmul.bf16.vlgmr.msrb.gmra.mxu0 %v8231_v56 }
 0x4fa   :  { %v1885_v32 = vadd.f32 %v1884_v10, %v7748_v45  ;;  %v1883_v45 = vadd.f32 %v1882_v30, %v7745_v63  ;;  %v2420_v30 = vld [vmem:[%s10339_s5 + $0x70] sm:$0xff] }
 0x4fb   :  { %v1692_v60 = vpop.f32.mrf.mxu0  ;;  %3281 = vmatpush.bf16.msrb.mxu1 %v6134_v58 }
 0x4fc   :  { %v1693_v44 = vadd.f32 %v1692_v60, %v10520_v25  ;;  %3109 = vmatmul.bf16.gmra.mxu3 %v8271_v50  ;;  %v1952_v57 = vadd.f32 %v7945_v26, %v1885_v32  ;;  %v1951_v59 = vadd.f32 %v7945_v26, %v1883_v45  ;;  %v6634_v60 = vpop.eup %6633 }
 0x4fd   :  { %v2206_v51 = vmul.f32 %v6634_v60, %v2085_v5  ;;  %v2428_v5 = vld [vmem:[%s10339_s5 + $0xb0] sm:$0xff] }
 0x4fe   :  { %v1733_v0 = vadd.f32 %v7853_v12, %v1693_v44  ;;  %v2418_v12 = vld [vmem:[%s10339_s5 + $0x60] sm:$0xff]  ;;  %6635 = vtanh.f32 %v1952_v57 }
 0x4ff   :  { %v8261_v33 = vpack.c.bf16 %v2418_v12, %v2414_v9  ;;  %6637 = vtanh.f32 %v1949_v54  ;;  %v2422_v44 = vld [vmem:[%s10339_s5 + $0x80] sm:$0xff]  ;;  %v2267_v57 = vsel %vm2229_vm4, %v2206_v51, 0.0 }
 0x500   :  { %v1765_v35 = vmax.f32 %v1733_v0, 0.0  ;;  %6639 = vtanh.f32 %v1951_v59  ;;  %v2426_v0 = vld [vmem:[%s10339_s5 + $0xa0] sm:$0xff] }
 0x501   :  { %v1887_v23 = vpop.f32.mrf.mxu1  ;;  %3020 = vmatmul.bf16.gmra.mxu2 %v8261_v33  ;;  %v8310_v12 = vpack.c.bf16 %v2426_v0, %v2422_v44  ;;  %v2431_v44 = vld [vmem:[%s10339_s5 + $0xc8] sm:$0xff] }
 0x502   :  { %v1782_v2 = vpack.c.bf16 %v1765_v35, %v1764_v37  ;;  %v1888_v11 = vadd.f32 %v1887_v23, %v7751_v55  ;;  %v2416_v55 = vld [vmem:[%s10339_s5 + $0x50] sm:$0xff]  ;;  %v2100_v35 = vpop.permute.xlu0 %2099  ;;  %v8318_v23 = vpack.c.bf16 %v2427_v40, %v2423_v62 }
 0x503   :  { %v1695_v39 = vpop.f32.mrf.mxu0  ;;  %v8292_v28 = vpack.c.bf16 %v2420_v30, %v2416_v55 }
 0x504   :  { %1926 = vmatmul.bf16.gmra.mxu1 %v1782_v2  ;;  %v1953_v63 = vadd.f32 %v7945_v26, %v1888_v11  ;;  %v1696_v18 = vadd.f32 %v1695_v39, %v10521_v48  ;;  %v6636_v36 = vpop.eup %6635  ;;  %v2105_v2 = vpop.permute.xlu1 %2104 }
 0x505   :  { %v2208_v32 = vmul.f32 %v6636_v36, %v2095_v16  ;;  %v2409_v36 = vld [vmem:[%s10339_s5 + $0x18] sm:$0xff] }
 0x506   :  { %6641 = vtanh.f32 %v1953_v63  ;;  %v1734_v10 = vadd.f32 %v6745_v19, %v1696_v18  ;;  %v2424_v18 = vld [vmem:[%s10339_s5 + $0x90] sm:$0xff]  ;;  %v2413_v16 = vld [vmem:[%s10339_s5 + $0x38] sm:$0xff] }
 0x507   :  { %v2276_v59 = vsel %vm2229_vm4, %v2208_v32, 0.0  ;;  %v8359_v51 = vpack.c.bf16 %v2413_v16, %v2409_v36  ;;  %v2439_v36 = vld [vmem:[%s10339_s5 + $0x108] sm:$0xff] }
 0x508   :  { %v1766_v58 = vmax.f32 %v1734_v10, 0.0 }
 0x509   :  { %v1889_v24 = vpop.f32.mrf.mxu1  ;;  %3198 = vmatmul.bf16.gmra.mxu0 %v8292_v28 }
 0x50a   :  { %v1890_v49 = vadd.f32 %v1889_v24, %v7754_v53  ;;  %v6638_v53 = vpop.eup %6637 }
 0x50b   :  { %v1697_v41 = vpop.f32.mrf.mxu0  ;;  %v6640_v34 = vpop.eup %6639  ;;  %v2205_v4 = vmul.f32 %v6638_v53, %v2080_v22  ;;  %v2434_v53 = vld [vmem:[%s10339_s5 + $0xe0] sm:$0xff] }
 0x50c   :  { %v1954_v31 = vadd.f32 %v7945_v26, %v1890_v49  ;;  %v1698_v17 = vadd.f32 %v1697_v41, %v10522_v27  ;;  %v6642_v37 = vpop.eup %6641  ;;  %v2207_v11 = vmul.f32 %v6640_v34, %v2090_v46  ;;  %3114 = vmatmul.bf16.gmra.mxu3 %v8318_v23  ;;  %v2034_v41 = vld [vmem:[%s10336_s3 + $0xe8] sm:$0xff]  ;;  %v2110_v34 = vpop.permute.xlu2 %2109 }
 0x50d   :  { %v2209_v54 = vmul.f32 %v6642_v37, %v2100_v35  ;;  %v2266_v22 = vsel %vm2229_vm4, %v2205_v4, 0.0  ;;  %2184 = vperm.xlu2 %6611, %v2034_v41  }
 0x50e   :  { %6643 = vtanh.f32 %v1954_v31  ;;  %v1735_v25 = vadd.f32 %v6745_v19, %v1698_v17  ;;  %v2268_v55 = vadd.f32 %v2267_v57, %v2266_v22  ;;  %v2275_v30 = vsel %vm2229_vm4, %v2207_v11, 0.0 }
 0x50f   :  { %v2277_v24 = vadd.f32 %v2276_v59, %v2275_v30  ;;  %v2284_v38 = vsel %vm2229_vm4, %v2209_v54, 0.0  ;;  %v8339_v19 = vpack.c.bf16 %v2428_v5, %v2424_v18  ;;  %v2432_v59 = vld [vmem:[%s10339_s5 + $0xd0] sm:$0xff] }
 0x510   :  { %v1767_v9 = vmax.f32 %v1735_v25, 0.0  ;;  %v2269_v31 = vrot.slane %v2268_v55, 4 }
 0x511   :  { %v1892_v61 = vpop.f32.mrf.mxu1  ;;  %3025 = vmatmul.bf16.gmra.mxu2 %v8310_v12  ;;  %v2278_v27 = vrot.slane %v2277_v24, 4 }
 0x512   :  { %v1893_v45 = vadd.f32 %v1892_v61, %v7757_v13  ;;  %v1783_v7 = vpack.c.bf16 %v1767_v9, %v1766_v58  ;;  %v2270_v25 = vadd.f32 %v2269_v31, %v2268_v55  ;;  %v2435_v9 = vld [vmem:[%s10339_s5 + $0xe8] sm:$0xff]  ;;  %v2115_v61 = vpop.permute.xlu0 %2114  ;;  %v2421_v31 = vld [vmem:[%s10339_s5 + $0x78] sm:$0xff] }
 0x513   :  { %v2279_v62 = vadd.f32 %v2278_v27, %v2277_v24  ;;  %v8366_v32 = vpack.c.bf16 %v2435_v9, %v2431_v44 }
 0x514   :  { %v6644_v39 = vpop.eup %6643  ;;  %1931 = vmatmul.bf16.gmra.mxu1 %v1783_v7  ;;  %v1955_v13 = vadd.f32 %v7945_v26, %v1893_v45  ;;  %v2271_v14 = vrot.slane %v2270_v25, 2 }
 0x515   :  { %v2210_v63 = vmul.f32 %v6644_v39, %v2105_v2  ;;  %v2280_v2 = vrot.slane %v2279_v62, 2 }
 0x516   :  { %6645 = vtanh.f32 %v1955_v13  ;;  %v2272_v57 = vadd.f32 %v2271_v14, %v2270_v25 }
 0x517   :  { %v2285_v48 = vsel %vm2229_vm4, %v2210_v63, 0.0  ;;  %v2436_v63 = vld [vmem:[%s10339_s5 + $0xf0] sm:$0xff]  ;;  %v2281_v22 = vadd.f32 %v2280_v2, %v2279_v62  ;;  %v2443_v62 = vld [vmem:[%s10339_s5 + $0x128] sm:$0xff] }
 0x518   :  { %v2286_v46 = vadd.f32 %v2285_v48, %v2284_v38  ;;  %v8382_v48 = vpack.c.bf16 %v2436_v63, %v2432_v59  ;;  %v2273_v24 = vrot.slane %v2272_v57, 1  ;;  %v2444_v59 = vld [vmem:[%s10339_s5 + $0x130] sm:$0xff] }
 0x519   :  { %v1894_v49 = vpop.f32.mrf.mxu1  ;;  %3203 = vmatmul.bf16.gmra.mxu0 %v8339_v19  ;;  %v2282_v38 = vrot.slane %v2281_v22, 1 }
 0x51a   :  { %v1895_v10 = vadd.f32 %v1894_v49, %v7760_v52  ;;  %v2287_v60 = vrot.slane %v2286_v46, 4  ;;  %v2430_v52 = vld [vmem:[%s10339_s5 + $0xc0] sm:$0xff] }
 0x51b   :  { %v8361_v58 = vpack.c.bf16 %v2434_v53, %v2430_v52  ;;  %v2283_v25 = vadd.f32 %v2282_v38, %v2281_v22  ;;  %v2120_v53 = vpop.permute.xlu1 %2119  ;;  %v2447_v38 = vld [vmem:[%s10339_s5 + $0x148] sm:$0xff] }
 0x51c   :  { %v1956_v17 = vadd.f32 %v7945_v26, %v1895_v10  ;;  %v6646_v0 = vpop.eup %6645  ;;  %v2288_v40 = vadd.f32 %v2287_v60, %v2286_v46  ;;  %3119 = vmatmul.bf16.gmra.mxu3 %v8366_v32  ;;  %v2417_v10 = vld [vmem:[%s10339_s5 + $0x58] sm:$0xff]  ;;  %v2442_v60 = vld [vmem:[%s10339_s5 + $0x120] sm:$0xff] }
 0x51d   :  { %v2211_v4 = vmul.f32 %v6646_v0, %v2110_v34  ;;  %v8402_v44 = vpack.c.bf16 %v2421_v31, %v2417_v10 }
 0x51e   :  { %6647 = vtanh.f32 %v1956_v17  ;;  %v2289_v7 = vrot.slane %v2288_v40, 2  ;;  %v2274_v17 = vadd.f32 %v2273_v24, %v2272_v57  ;;  %v2450_v24 = vld [vmem:[%s10339_s5 + $0x160] sm:$0xff] }
 0x51f   :  { %v2293_v54 = vsel %vm2229_vm4, %v2211_v4, 0.0 }
 0x520   :  { %v2290_v55 = vadd.f32 %v2289_v7, %v2288_v40  ;;  %v8409_v40 = vpack.c.bf16 %v2443_v62, %v2439_v36  ;;  %v5614_v4 = vsel %vm5613_vm9, %v2274_v17, %v8213_v1  ;;  %v2440_v1 = vld [vmem:[%s10339_s5 + $0x110] sm:$0xff] }
 0x521   :  { %v1897_v37 = vpop.f32.mrf.mxu1  ;;  %3030 = vmatmul.bf16.gmra.mxu2 %v8361_v58  ;;  %v5616_v7 = vsel %vm5615_vm10, %v2283_v25, %v5614_v4  ;;  %v8434_v22 = vpack.c.bf16 %v2444_v59, %v2440_v1  ;;  %v2455_v1 = vld [vmem:[%s10339_s5 + $0x188] sm:$0xff] }
 0x522   :  { %v1898_v35 = vadd.f32 %v1897_v37, %v7763_v8  ;;  %v2291_v41 = vrot.slane %v2290_v55, 1 }
 0x523   :  { %v2135_v36 = vpop.permute.xlu1 %2134 }
 0x524   :  { %v6648_v45 = vpop.eup %6647  ;;  %6179 = vmatmul.msk.bf16.vlgmr.msrb.gmra.mxu1 %vm2958_vm8, %v8359_v51  ;;  %v1957_v39 = vadd.f32 %v7945_v26, %v1898_v35  ;;  %v2292_v34 = vadd.f32 %v2291_v41, %v2290_v55  ;;  %v8440_v55 = vld [vmem:[%s10337_s11] ss:$0 sm:$0xff]  ;;  %v2130_v41 = vpop.permute.xlu0 %2129 }
 0x525   :  { %v2212_v11 = vmul.f32 %v6648_v45, %v2115_v61  ;;  %v2125_v61 = vpop.permute.xlu2 %2124 }
 0x526   :  { %6649 = vtanh.f32 %v1957_v39 }
 0x527   :  { %v2294_v8 = vsel %vm2229_vm4, %v2212_v11, 0.0 }
 0x528   :  { %v2295_v13 = vadd.f32 %v2294_v8, %v2293_v54 }
 0x529   :  { %v1899_v30 = vpop.f32.mrf.mxu1  ;;  %3208 = vmatmul.bf16.gmra.mxu0 %v8382_v48 }
 0x52a   :  { %v2296_v18 = vrot.slane %v2295_v13, 4  ;;  %v1900_v5 = vadd.f32 %v1899_v30, %v7766_v15  ;;  %v2438_v15 = vld [vmem:[%s10339_s5 + $0x100] sm:$0xff] }
 0x52b   :  { %v8404_v0 = vpack.c.bf16 %v2442_v60, %v2438_v15 }
 0x52c   :  { %v2297_v46 = vadd.f32 %v2296_v18, %v2295_v13  ;;  %v1958_v49 = vadd.f32 %v7945_v26, %v1900_v5  ;;  %v6650_v16 = vpop.eup %6649  ;;  %3124 = vmatmul.bf16.gmra.mxu3 %v8409_v40  ;;  %v2425_v18 = vld [vmem:[%s10339_s5 + $0x98] sm:$0xff] }
 0x52d   :  { %v2213_v14 = vmul.f32 %v6650_v16, %v2120_v53  ;;  %v2429_v5 = vld [vmem:[%s10339_s5 + $0xb8] sm:$0xff] }
 0x52e   :  { %v2298_v27 = vrot.slane %v2297_v46, 2  ;;  %6651 = vtanh.f32 %v1958_v49  ;;  %v8459_v10 = vpack.c.bf16 %v2429_v5, %v2425_v18  ;;  %v2459_v5 = vld [vmem:[%s10339_s5 + $0x1a8] sm:$0xff] }
 0x52f   :  { %v2302_v54 = vsel %vm2229_vm4, %v2213_v14, 0.0 }
 0x530   :  { %v2299_v52 = vadd.f32 %v2298_v27, %v2297_v46  ;;  %v2451_v27 = vld [vmem:[%s10339_s5 + $0x168] sm:$0xff] }
 0x531   :  { %v1902_v9 = vpop.f32.mrf.mxu1  ;;  %3035 = vmatmul.bf16.gmra.mxu2 %v8404_v0  ;;  %v8466_v15 = vpack.c.bf16 %v2451_v27, %v2447_v38 }
 0x532   :  { %v2300_v37 = vrot.slane %v2299_v52, 1  ;;  %v1903_v35 = vadd.f32 %v1902_v9, %v7769_v21  ;;  %v5618_v21 = vsel %vm5617_vm11, %v2292_v34, %v5616_v7 }
 0x534   :  { %v6652_v45 = vpop.eup %6651  ;;  %v2301_v2 = vadd.f32 %v2300_v37, %v2299_v52  ;;  %6180 = vmatmul.msk.bf16.gmra.mxu1 %vm2958_vm8, %v8402_v44  ;;  %v1959_v39 = vadd.f32 %v7945_v26, %v1903_v35  ;;  %v2452_v37 = vld [vmem:[%s10339_s5 + $0x170] sm:$0xff] }
 0x535   :  { %v2214_v11 = vmul.f32 %v6652_v45, %v2125_v61 }
 0x536   :  { %v5620_v57 = vsel %vm5619_vm12, %v2301_v2, %v5618_v21  ;;  %6653 = vtanh.f32 %v1959_v39  ;;  %v2433_v39 = vld [vmem:[%s10339_s5 + $0xd8] sm:$0xff] }
 0x537   :  { %v2303_v8 = vsel %vm2229_vm4, %v2214_v11, 0.0  ;;  %5630 = vst.msk [vmem:[%s10340_s19] sm:$0xff] %vm2229_vm4, %v5620_v57  ;;  %v2437_v57 = vld [vmem:[%s10339_s5 + $0xf8] sm:$0xff] }
 0x538   :  { %v2304_v26 = vadd.f32 %v2303_v8, %v2302_v54  ;;  %v2458_v8 = vld [vmem:[%s10339_s5 + $0x1a0] sm:$0xff] }
 0x539   :  { %v1904_v63 = vpop.f32.mrf.mxu1  ;;  %3213 = vmatmul.bf16.gmra.mxu0 %v8434_v22 }
 0x53a   :  { %v1905_v13 = vadd.f32 %v1904_v63, %v7772_v43  ;;  %v2446_v43 = vld [vmem:[%s10339_s5 + $0x140] sm:$0xff]  ;;  %v2305_v49 = vrot.slane %v2304_v26, 4 }
 0x53b   :  { %v8461_v31 = vpack.c.bf16 %v2450_v24, %v2446_v43  ;;  %v8509_v24 = vpack.c.bf16 %v2459_v5, %v2455_v1  ;;  %v2467_v1 = vld [vmem:[%s10339_s5 + $0x1e8] sm:$0xff] }
 0x53c   :  { %v1960_v30 = vadd.f32 %v8440_v55, %v1905_v13  ;;  %v6654_v46 = vpop.eup %6653  ;;  %3129 = vmatmul.bf16.gmra.mxu3 %v8466_v15  ;;  %v2306_v52 = vadd.f32 %v2305_v49, %v2304_v26  ;;  %v2140_v13 = vpop.permute.xlu2 %2139 }
 0x53d   :  { %v2215_v16 = vmul.f32 %v6654_v46, %v2130_v41  ;;  %v2145_v49 = vpop.permute.xlu0 %2144 }
 0x53e   :  { %6655 = vtanh.f32 %v1960_v30  ;;  %v2307_v35 = vrot.slane %v2306_v52, 2  ;;  %v8502_v30 = vpack.c.bf16 %v2437_v57, %v2433_v39 }
 0x53f   :  { %v2311_v34 = vsel %vm2229_vm4, %v2215_v16, 0.0 }
 0x540   :  { %v2308_v7 = vadd.f32 %v2307_v35, %v2306_v52 }
 0x541   :  { %v1907_v17 = vpop.f32.mrf.mxu1  ;;  %3040 = vmatmul.bf16.gmra.mxu2 %v8461_v31 }
 0x542   :  { %v1908_v60 = vadd.f32 %v1907_v17, %v7775_v29  ;;  %v2448_v29 = vld [vmem:[%s10339_s5 + $0x150] sm:$0xff]  ;;  %v2309_v26 = vrot.slane %v2308_v7, 1 }
 0x543   :  { %v8482_v4 = vpack.c.bf16 %v2452_v37, %v2448_v29 }
 0x544   :  { %v6656_v25 = vpop.eup %6655  ;;  %6181 = vmatmul.msk.bf16.gmra.mxu1 %vm2958_vm8, %v8459_v10  ;;  %v1961_v62 = vadd.f32 %v8440_v55, %v1908_v60  ;;  %v2310_v17 = vadd.f32 %v2309_v26, %v2308_v7 }
 0x545   :  { %v2216_v53 = vmul.f32 %v6656_v25, %v2135_v36 }
 0x546   :  { %6657 = vtanh.f32 %v1961_v62  ;;  %v2460_v62 = vld [vmem:[%s10339_s5 + $0x1b0] sm:$0xff] }
 0x547   :  { %v2312_v9 = vsel %vm2229_vm4, %v2216_v53, 0.0  ;;  %v2456_v53 = vld [vmem:[%s10339_s5 + $0x190] sm:$0xff] }
 0x548   :  { %v2313_v61 = vadd.f32 %v2312_v9, %v2311_v34  ;;  %v8526_v29 = vpack.c.bf16 %v2460_v62, %v2456_v53  ;;  %v2453_v62 = vld [vmem:[%s10339_s5 + $0x178] sm:$0xff] }
 0x549   :  { %v1909_v14 = vpop.f32.mrf.mxu1  ;;  %3218 = vmatmul.bf16.gmra.mxu0 %v8482_v4 }
 0x54a   :  { %v2314_v45 = vrot.slane %v2313_v61, 4  ;;  %v1910_v2 = vadd.f32 %v1909_v14, %v7778_v42  ;;  %v2454_v42 = vld [vmem:[%s10339_s5 + $0x180] sm:$0xff] }
 0x54b   :  { %v8504_v18 = vpack.c.bf16 %v2458_v8, %v2454_v42 }
 0x54c   :  { %v2315_v11 = vadd.f32 %v2314_v45, %v2313_v61  ;;  %v1962_v21 = vadd.f32 %v8440_v55, %v1910_v2  ;;  %v6658_v59 = vpop.eup %6657  ;;  %3134 = vmatmul.bf16.gmra.mxu3 %v8509_v24  ;;  %v2441_v45 = vld [vmem:[%s10339_s5 + $0x118] sm:$0xff] }
 0x54d   :  { %v2217_v41 = vmul.f32 %v6658_v59, %v2140_v13  ;;  %v2445_v2 = vld [vmem:[%s10339_s5 + $0x138] sm:$0xff]  ;;  %v2155_v13 = vpop.permute.xlu2 %2154 }
 0x54e   :  { %v2316_v54 = vrot.slane %v2315_v11, 2  ;;  %6659 = vtanh.f32 %v1962_v21  ;;  %v2463_v21 = vld [vmem:[%s10339_s5 + $0x1c8] sm:$0xff]  ;;  %v8546_v42 = vpack.c.bf16 %v2445_v2, %v2441_v45 }
 0x54f   :  { %v2320_v52 = vsel %vm2229_vm4, %v2217_v41, 0.0  ;;  %v8555_v26 = vpack.c.bf16 %v2467_v1, %v2463_v21  ;;  %v2475_v2 = vld [vmem:[%s10339_s5 + $0x228] sm:$0xff]  ;;  %v2472_v1 = vld [vmem:[%s10339_s5 + $0x210] sm:$0xff] }
 0x550   :  { %v2317_v63 = vadd.f32 %v2316_v54, %v2315_v11  ;;  %v2462_v11 = vld [vmem:[%s10339_s5 + $0x1c0] sm:$0xff]  ;;  %v2150_v54 = vpop.permute.xlu1 %2149 }
 0x551   :  { %v1912_v43 = vpop.f32.mrf.mxu1  ;;  %3045 = vmatmul.bf16.gmra.mxu2 %v8504_v18 }
 0x552   :  { %v2318_v38 = vrot.slane %v2317_v63, 1  ;;  %v1913_v46 = vadd.f32 %v1912_v43, %v7781_v47 }
 0x554   :  { %v6660_v27 = vpop.eup %6659  ;;  %v2319_v60 = vadd.f32 %v2318_v38, %v2317_v63  ;;  %6182 = vmatmul.msk.bf16.gmra.mxu1 %vm2958_vm8, %v8502_v30  ;;  %v1963_v25 = vadd.f32 %v8440_v55, %v1913_v46 }
 0x555   :  { %v2218_v36 = vmul.f32 %v6660_v27, %v2145_v49 }
 0x556   :  { %v5621_v16 = vsel %vm5607_vm5, %v2319_v60, %v2310_v17  ;;  %6661 = vtanh.f32 %v1963_v25  ;;  %v2464_v17 = vld [vmem:[%s10339_s5 + $0x1d0] sm:$0xff] }
 0x557   :  { %v2321_v47 = vsel %vm2229_vm4, %v2218_v36, 0.0  ;;  %v2468_v60 = vld [vmem:[%s10339_s5 + $0x1f0] sm:$0xff] }
 0x558   :  { %v2322_v34 = vadd.f32 %v2321_v47, %v2320_v52  ;;  %v8570_v52 = vpack.c.bf16 %v2468_v60, %v2464_v17  ;;  %v10525_v17 = vld [vmem:[#allocation18_spill] sm:$0xff] }
 0x559   :  { %v1914_v9 = vpop.f32.mrf.mxu1  ;;  %3223 = vmatmul.bf16.gmra.mxu0 %v8526_v29 }
 0x55a   :  { %v2323_v37 = vrot.slane %v2322_v34, 4  ;;  %v1915_v35 = vadd.f32 %v1914_v9, %v7790_v3  ;;  %v2466_v3 = vld [vmem:[%s10339_s5 + $0x1e0] sm:$0xff] }
 0x55b   :  { %v8548_v8 = vpack.c.bf16 %v2466_v3, %v2462_v11  ;;  %v2470_v9 = vld [vmem:[%s10339_s5 + $0x200] sm:$0xff] }
 0x55c   :  { %v2324_v61 = vadd.f32 %v2323_v37, %v2322_v34  ;;  %v1964_v14 = vadd.f32 %v8440_v55, %v1915_v35  ;;  %v6662_v39 = vpop.eup %6661  ;;  %3139 = vmatmul.bf16.gmra.mxu3 %v8555_v26  ;;  %v2474_v37 = vld [vmem:[%s10339_s5 + $0x220] sm:$0xff]  ;;  %v2471_v35 = vld [vmem:[%s10339_s5 + $0x208] sm:$0xff] }
 0x55d   :  { %v2219_v5 = vmul.f32 %v6662_v39, %v2150_v54  ;;  %v8590_v45 = vpack.c.bf16 %v2474_v37, %v2470_v9  ;;  %v8595_v11 = vpack.c.bf16 %v2475_v2, %v2471_v35  ;;  %v2483_v35 = vld [vmem:[%s10339_s5 + $0x268] sm:$0xff] }
 0x55e   :  { %v2325_v7 = vrot.slane %v2324_v61, 2  ;;  %6663 = vtanh.f32 %v1964_v14 }
 0x55f   :  { %v2329_v41 = vsel %vm2229_vm4, %v2219_v5, 0.0  ;;  %10523 = vst [vmem:[#allocation9_spill] sm:$0xff] %v8595_v11 }
 0x560   :  { %v2326_v57 = vadd.f32 %v2325_v7, %v2324_v61 }
 0x561   :  { %v8553_v59 = vpop.f32.mrf.mxu1  ;;  %3050 = vmatmul.bf16.gmra.mxu2 %v8548_v8 }
 0x562   :  { %v2327_v63 = vrot.slane %v2326_v57, 1 }
 0x564   :  { %v6664_v43 = vpop.eup %6663  ;;  %v2328_v38 = vadd.f32 %v2327_v63, %v2326_v57  ;;  %6183 = vmatmul.msk.bf16.gmra.mxu1 %vm2958_vm8, %v8546_v42  ;;  %v2476_v63 = vld [vmem:[%s10339_s5 + $0x230] sm:$0xff] }
 0x565   :  { %v2220_v46 = vmul.f32 %v6664_v43, %v2155_v13  ;;  %v8610_v5 = vpack.c.bf16 %v2476_v63, %v2472_v1 }
 0x566   :  { %v5622_v49 = vsel %vm5609_vm6, %v2328_v38, %v5621_v16  ;;  %v2449_v16 = vld [vmem:[%s10339_s5 + $0x158] sm:$0xff] }
 0x567   :  { %v2330_v27 = vsel %vm2229_vm4, %v2220_v46, 0.0  ;;  %v8588_v14 = vpack.c.bf16 %v2453_v62, %v2449_v16  ;;  %10524 = vst [vmem:[#allocation35_spill] sm:$0xff] %v8610_v5  ;;  %v2457_v38 = vld [vmem:[%s10339_s5 + $0x198] sm:$0xff]  ;;  %v2479_v16 = vld [vmem:[%s10339_s5 + $0x248] sm:$0xff]  ;;  %v10526_v62 = vld [vmem:[#allocation22_spill] sm:$0xff] }
 0x568   :  { %v2331_v36 = vadd.f32 %v2330_v27, %v2329_v41  ;;  %v2461_v46 = vld [vmem:[%s10339_s5 + $0x1b8] sm:$0xff] }
 0x569   :  { %v1919_v25 = vpop.f32.mrf.mxu1  ;;  %3228 = vmatmul.bf16.gmra.mxu0 %v8570_v52  ;;  %v8630_v9 = vpack.c.bf16 %v2461_v46, %v2457_v38 }
 0x56a   :  { %v2332_v47 = vrot.slane %v2331_v36, 4  ;;  %v1920_v60 = vadd.f32 %v1919_v25, %v10525_v17 }
 0x56b   :  { %10527 = vst [vmem:[#allocation14_spill] sm:$0xff] %v8630_v9 }
 0x56c   :  { %v2333_v53 = vadd.f32 %v2332_v47, %v2331_v36  ;;  %3144 = vmatmul.bf16.gmra.mxu3 %v8595_v11  ;;  %v2478_v47 = vld [vmem:[%s10339_s5 + $0x240] sm:$0xff]  ;;  %v1966_v63 = vadd.f32 %v8440_v55, %v1920_v60  ;;  %v2480_v60 = vld [vmem:[%s10339_s5 + $0x250] sm:$0xff] }
 0x56e   :  { %v2334_v34 = vrot.slane %v2333_v53, 2  ;;  %6665 = vtanh.f32 %v1966_v63 }
 0x56f   :  { %v3105_v54 = vpop.f32.mrf.mxu3 }
 0x570   :  { %v2335_v61 = vadd.f32 %v2334_v34, %v2333_v53  ;;  %v2482_v53 = vld [vmem:[%s10339_s5 + $0x260] sm:$0xff] }
 0x571   :  { %v1922_v7 = vpop.f32.mrf.mxu1  ;;  %3055 = vmatmul.bf16.gmra.mxu2 %v8590_v45  ;;  %v8634_v25 = vpack.c.bf16 %v2482_v53, %v2478_v47  ;;  %v2165_v47 = vpop.permute.xlu1 %2164 }
 0x572   :  { %v2336_v3 = vrot.slane %v2335_v61, 1 }
 0x573   :  { %v3016_v57 = vpop.f32.mrf.mxu2  ;;  %10528 = vst [vmem:[#allocation39_spill] sm:$0xff] %v8634_v25 }
 0x574   :  { %v2337_v21 = vadd.f32 %v2336_v3, %v2335_v61  ;;  %6184 = vmatmul.msk.bf16.gmra.mxu1 %vm2958_vm8, %v8588_v14  ;;  %v10529_v61 = vld [vmem:[#allocation16_spill] sm:$0xff] }
 0x575   :  { %v1918_v2 = vadd.f32 %v8553_v59, %v10529_v61 }
 0x576   :  { %v8602_v39 = vsel %vm5611_vm7, %v2337_v21, %v5622_v49  ;;  %v3194_v43 = vpop.f32.mrf.mxu0  ;;  %v3106_v49 = vadd.f32 %v3105_v54, %v3016_v57  ;;  %v8641_v21 = vpack.c.bf16 %v2483_v35, %v2479_v16  ;;  %v10531_v57 = vld [vmem:[#allocation21_spill] sm:$0xff] }
 0x577   :  { %v3107_v27 = vpop.f32.mrf.mxu3  ;;  %v1923_v54 = vadd.f32 %v1922_v7, %v10531_v57  ;;  %v1965_v59 = vadd.f32 %v8440_v55, %v1918_v2 }
 0x578   :  { %v8632_v37 = vadd.f32 %v3194_v43, %v3106_v49  ;;  %10530 = vst [vmem:[#allocation19_spill] sm:$0xff] %v8641_v21  ;;  %v2160_v49 = vpop.permute.xlu0 %2159 }
 0x579   :  { %v1924_v13 = vpop.f32.mrf.mxu1  ;;  %3233 = vmatmul.bf16.gmra.mxu0 %v8610_v5  ;;  %v1967_v7 = vadd.f32 %v8440_v55, %v1923_v54  ;;  %v2465_v54 = vld [vmem:[%s10339_s5 + $0x1d8] sm:$0xff]  ;;  %v10536_v5 = vld [vmem:[#allocation30_spill] sm:$0xff] }
 0x57a   :  { %v1925_v34 = vadd.f32 %v1924_v13, %v10526_v62  ;;  %v10532_v13 = vld [vmem:[#allocation25_spill] sm:$0xff]  ;;  %v2170_v62 = vpop.permute.xlu2 %2169 }
 0x57b   :  { %v3018_v41 = vpop.f32.mrf.mxu2 }
 0x57c   :  { %v3108_v36 = vadd.f32 %v3107_v27, %v3018_v41  ;;  %3149 = vmatmul.bf16.gmra.mxu3 %v8641_v21  ;;  %v1968_v46 = vadd.f32 %v8440_v55, %v1925_v34  ;;  %v10534_v34 = vld [vmem:[#allocation27_spill] sm:$0xff] }
 0x57e   :  { %v3196_v1 = vpop.f32.mrf.mxu0  ;;  %6667 = vtanh.f32 %v1968_v46 }
 0x57f   :  { %v8646_v38 = vadd.f32 %v3196_v1, %v3108_v36  ;;  %v3110_v27 = vpop.f32.mrf.mxu3  ;;  %v2484_v36 = vld [vmem:[%s10339_s5 + $0x270] sm:$0xff]  ;;  %6669 = vtanh.f32 %v1965_v59  ;;  %v2469_v1 = vld [vmem:[%s10339_s5 + $0x1f8] sm:$0xff] }
 0x580   :  { %v8662_v16 = vpack.c.bf16 %v2484_v36, %v2480_v60  ;;  %6671 = vtanh.f32 %v1967_v7  ;;  %v2175_v57 = vpop.permute.xlu0 %2174  ;;  %v2490_v60 = vld [vmem:[%s10339_s5 + $0x2a0] sm:$0xff]  ;;  %v2487_v36 = vld [vmem:[%s10339_s5 + $0x288] sm:$0xff] }
 0x581   :  { %v1927_v3 = vpop.f32.mrf.mxu1  ;;  %3060 = vmatmul.bf16.gmra.mxu2 %v8634_v25 }
 0x582   :  { %v1928_v43 = vadd.f32 %v1927_v3, %v10532_v13  ;;  %10533 = vst [vmem:[#allocation42_spill] sm:$0xff] %v8662_v16  ;;  %v6666_v3 = vpop.eup %6665 }
 0x584   :  { %6185 = vmatmul.msk.bf16.gmra.mxu1 %vm2958_vm8, %v8630_v9  ;;  %v3021_v41 = vpop.f32.mrf.mxu2  ;;  %v1969_v17 = vadd.f32 %v8440_v55, %v1928_v43  ;;  %v6668_v63 = vpop.eup %6667 }
 0x585   :  { %v3111_v13 = vadd.f32 %v3110_v27, %v3021_v41  ;;  %v6670_v59 = vpop.eup %6669 }
 0x586   :  { %v3199_v61 = vpop.f32.mrf.mxu0  ;;  %6673 = vtanh.f32 %v1969_v17  ;;  %v2486_v17 = vld [vmem:[%s10339_s5 + $0x280] sm:$0xff]  ;;  %v2221_v25 = vmul.f32 %v6670_v59, %v2160_v49 }
 0x587   :  { %v3112_v46 = vpop.f32.mrf.mxu3  ;;  %v8684_v41 = vadd.f32 %v3199_v61, %v3111_v13  ;;  %v8686_v27 = vpack.c.bf16 %v2490_v60, %v2486_v17 }
 0x589   :  { %v1929_v53 = vpop.f32.mrf.mxu1  ;;  %3238 = vmatmul.bf16.gmra.mxu0 %v8662_v16  ;;  %v2180_v16 = vpop.permute.xlu1 %2179 }
 0x58a   :  { %v1930_v35 = vadd.f32 %v1929_v53, %v10534_v34  ;;  %v6672_v53 = vpop.eup %6671  ;;  %v2222_v34 = vmul.f32 %v6666_v3, %v2165_v47  ;;  %v2185_v47 = vpop.permute.xlu2 %2184 }
 0x58c   :  { %v1970_v2 = vadd.f32 %v8440_v55, %v1930_v35  ;;  %v3023_v43 = vpop.f32.mrf.mxu2  ;;  %v8682_v35 = vpack.c.bf16 %v2469_v1, %v2465_v54  ;;  %v2223_v54 = vmul.f32 %v6672_v53, %v2170_v62  ;;  %v2339_v13 = vsel %vm2229_vm4, %v2222_v34, 0.0  ;;  %v2492_v53 = vld [vmem:[%s10339_s5 + $0x2b0] sm:$0xff] }
 0x58d   :  { %v3113_v7 = vadd.f32 %v3112_v46, %v3023_v43  ;;  %v6674_v43 = vpop.eup %6673  ;;  %v2224_v46 = vmul.f32 %v6668_v63, %v2175_v57 }
 0x58e   :  { %6675 = vtanh.f32 %v1970_v2  ;;  %v2491_v2 = vld [vmem:[%s10339_s5 + $0x2a8] sm:$0xff]  ;;  %v3201_v3 = vpop.f32.mrf.mxu0  ;;  %v2225_v57 = vmul.f32 %v6674_v43, %v2180_v16  ;;  %v2347_v17 = vsel %vm2229_vm4, %v2223_v54, 0.0  ;;  %v2488_v16 = vld [vmem:[%s10339_s5 + $0x290] sm:$0xff] }
 0x58f   :  { %v8691_v9 = vpack.c.bf16 %v2491_v2, %v2487_v36  ;;  %v8694_v61 = vadd.f32 %v3201_v3, %v3113_v7  ;;  %v2348_v49 = vsel %vm2229_vm4, %v2224_v46, 0.0  ;;  %v3115_v59 = vpop.f32.mrf.mxu3  ;;  %v8713_v43 = vpack.c.bf16 %v2492_v53, %v2488_v16  ;;  %v10538_v46 = vld [vmem:[#allocation32_spill] sm:$0xff] }
 0x590   :  { %v2349_v34 = vadd.f32 %v2348_v49, %v2347_v17  ;;  %v2473_v49 = vld [vmem:[%s10339_s5 + $0x218] sm:$0xff] }
 0x591   :  { %v1932_v21 = vpop.f32.mrf.mxu1  ;;  %10535 = vst [vmem:[#allocation23_spill] sm:$0xff] %v8691_v9  ;;  %3065 = vmatmul.bf16.gmra.mxu2 %v8686_v27  ;;  %3154 = vmatmul.bf16.gmra.mxu3 %v8691_v9 }
 0x592   :  { %v1933_v11 = vadd.f32 %v1932_v21, %v10536_v5  ;;  %v2338_v5 = vsel %vm2229_vm4, %v2221_v25, 0.0  ;;  %v2356_v25 = vsel %vm2229_vm4, %v2225_v57, 0.0  ;;  %10537 = vst [vmem:[#allocation46_spill] sm:$0xff] %v8713_v43  ;;  %v2477_v57 = vld [vmem:[%s10339_s5 + $0x238] sm:$0xff] }
 0x593   :  { %v2340_v7 = vadd.f32 %v2339_v13, %v2338_v5  ;;  %v2350_v13 = vrot.slane %v2349_v34, 4 }
 0x594   :  { %v6676_v1 = vpop.eup %6675  ;;  %6186 = vmatmul.msk.bf16.gmra.mxu1 %vm2958_vm8, %v8682_v35  ;;  %v1971_v21 = vadd.f32 %v8440_v55, %v1933_v11  ;;  %v3026_v62 = vpop.f32.mrf.mxu2 }
 0x595   :  { %v2226_v63 = vmul.f32 %v6676_v1, %v2185_v47  ;;  %v3116_v36 = vadd.f32 %v3115_v59, %v3026_v62  ;;  %v2341_v54 = vrot.slane %v2340_v7, 4  ;;  %v2351_v53 = vadd.f32 %v2350_v13, %v2349_v34 }
 0x596   :  { %6677 = vtanh.f32 %v1971_v21  ;;  %v3204_v3 = vpop.f32.mrf.mxu0 }
 0x597   :  { %v2357_v60 = vsel %vm2229_vm4, %v2226_v63, 0.0  ;;  %v8716_v1 = vadd.f32 %v3204_v3, %v3116_v36  ;;  %v3117_v62 = vpop.f32.mrf.mxu3  ;;  %v2342_v59 = vadd.f32 %v2341_v54, %v2340_v7  ;;  %v2495_v36 = vld [vmem:[%s10339_s5 + $0x2c8] sm:$0xff] }
 0x598   :  { %v2358_v11 = vadd.f32 %v2357_v60, %v2356_v25  ;;  %v2498_v60 = vld [vmem:[%s10339_s5 + $0x2e0] sm:$0xff]  ;;  %v2190_v25 = vpop.permute.xlu0 %2189  ;;  %v2499_v7 = vld [vmem:[%s10339_s5 + $0x2e8] sm:$0xff] }
 0x599   :  { %v1934_v2 = vpop.f32.mrf.mxu1  ;;  %3243 = vmatmul.bf16.gmra.mxu0 %v8713_v43  ;;  %v8742_v54 = vpack.c.bf16 %v2499_v7, %v2495_v36  ;;  %v2343_v43 = vrot.slane %v2342_v59, 2  ;;  %v2500_v7 = vld [vmem:[%s10339_s5 + $0x2f0] sm:$0xff] }
 0x59a   :  { %v1935_v47 = vadd.f32 %v1934_v2, %v10538_v46  ;;  %v2359_v5 = vrot.slane %v2358_v11, 4  ;;  %v8735_v2 = vpack.c.bf16 %v2477_v57, %v2473_v49  ;;  %v2352_v57 = vrot.slane %v2351_v53, 2 }
 0x59b   :  { %10541 = vst [vmem:[#allocation33_spill] sm:$0xff] %v8742_v54 }
 0x59c   :  { %v1972_v63 = vadd.f32 %v8440_v55, %v1935_v47  ;;  %v3028_v21 = vpop.f32.mrf.mxu2  ;;  %v2494_v55 = vld [vmem:[%s10339_s5 + $0x2c0] sm:$0xff]  ;;  %v6678_v16 = vpop.eup %6677  ;;  %10539 = vst [vmem:[#allocation28_spill] sm:$0xff] %v8735_v2  ;;  %v2360_v47 = vadd.f32 %v2359_v5, %v2358_v11 }
 0x59d   :  { %v3118_v17 = vadd.f32 %v3117_v62, %v3028_v21  ;;  %v8737_v46 = vpack.c.bf16 %v2498_v60, %v2494_v55  ;;  %v2195_v21 = vpop.permute.xlu1 %2194  ;;  %v2227_v34 = vmul.f32 %v6678_v16, %v2190_v25  ;;  %v2344_v60 = vadd.f32 %v2343_v43, %v2342_v59  ;;  %v2496_v25 = vld [vmem:[%s10339_s5 + $0x2d0] sm:$0xff] }
 0x59e   :  { %6679 = vtanh.f32 %v1972_v63  ;;  %v3206_v62 = vpop.f32.mrf.mxu0  ;;  %v2361_v11 = vrot.slane %v2360_v47, 2 }
 0x59f   :  { %10540 = vst [vmem:[#allocation50_spill] sm:$0xff] %v8737_v46  ;;  %v8747_v13 = vadd.f32 %v3206_v62, %v3118_v17  ;;  %v2365_v36 = vsel %vm2229_vm4, %v2227_v34, 0.0 }
 0x5a1   :  { %v3283_v3 = vpop.f32.mrf.mxu1  ;;  %3070 = vmatmul.bf16.gmra.mxu2 %v8737_v46  ;;  %3159 = vmatmul.bf16.gmra.mxu3 %v8742_v54  ;;  %v2362_v54 = vadd.f32 %v2361_v11, %v2360_v47  ;;  %v2485_v47 = vld [vmem:[%s10339_s5 + $0x278] sm:$0xff] }
 0x5a2   :  { %v8745_v63 = vadd.f32 %v3283_v3, %v8632_v37  ;;  %v3120_v37 = vpop.f32.mrf.mxu3  ;;  %v2353_v3 = vadd.f32 %v2352_v57, %v2351_v53  ;;  %v2481_v53 = vld [vmem:[%s10339_s5 + $0x258] sm:$0xff] }
 0x5a4   :  { %10542 = vst [vmem:[#allocation53_spill] sm:$0xff] %v8745_v63  ;;  %v6680_v49 = vpop.eup %6679  ;;  %6187 = vmatmul.msk.bf16.gmra.mxu1 %vm2958_vm8, %v8735_v2  ;;  %v3031_v55 = vpop.f32.mrf.mxu2  ;;  %v2363_v63 = vrot.slane %v2362_v54, 1 }
 0x5a5   :  { %v2228_v5 = vmul.f32 %v6680_v49, %v2195_v21  ;;  %v3121_v17 = vadd.f32 %v3120_v37, %v3031_v55  ;;  %v8761_v49 = vpack.c.bf16 %v2500_v7, %v2496_v25  ;;  %v2354_v37 = vrot.slane %v2353_v3, 1  ;;  %v2506_v25 = vld [vmem:[%s10339_s5 + $0x320] sm:$0xff]  ;;  %v2503_v7 = vld [vmem:[%s10339_s5 + $0x308] sm:$0xff] }
 0x5a6   :  { %v3209_v34 = vpop.f32.mrf.mxu0 }
 0x5a7   :  { %v2366_v16 = vsel %vm2229_vm4, %v2228_v5, 0.0  ;;  %10543 = vst [vmem:[#allocation36_spill] sm:$0xff] %v8761_v49  ;;  %v2345_v5 = vrot.slane %v2344_v60, 1  ;;  %v8766_v55 = vadd.f32 %v3209_v34, %v3121_v17  ;;  %v2502_v17 = vld [vmem:[%s10339_s5 + $0x300] sm:$0xff] }
 0x5a8   :  { %v2367_v62 = vadd.f32 %v2366_v16, %v2365_v36  ;;  %v8786_v34 = vpack.c.bf16 %v2506_v25, %v2502_v17  ;;  %v2489_v25 = vld [vmem:[%s10339_s5 + $0x298] sm:$0xff] }
 0x5a9   :  { %v3285_v21 = vpop.f32.mrf.mxu1  ;;  %3248 = vmatmul.bf16.gmra.mxu0 %v8761_v49  ;;  %v2346_v36 = vadd.f32 %v2345_v5, %v2344_v60  ;;  %v2507_v60 = vld [vmem:[%s10339_s5 + $0x328] sm:$0xff]  ;;  %v2364_v5 = vadd.f32 %v2363_v63, %v2362_v54 }
 0x5aa   :  { %v2368_v43 = vrot.slane %v2367_v62, 4  ;;  %v8764_v59 = vadd.f32 %v3285_v21, %v8646_v38  ;;  %v3122_v11 = vpop.f32.mrf.mxu3 }
 0x5ac   :  { %10544 = vst [vmem:[#allocation57_spill] sm:$0xff] %v8764_v59  ;;  %v2369_v2 = vadd.f32 %v2368_v43, %v2367_v62  ;;  %v3033_v38 = vpop.f32.mrf.mxu2  ;;  %v2355_v62 = vadd.f32 %v2354_v37, %v2353_v3  ;;  %v8784_v43 = vpack.c.bf16 %v2485_v47, %v2481_v53  ;;  %v2504_v47 = vld [vmem:[%s10339_s5 + $0x310] sm:$0xff] }
 0x5ad   :  { %v3123_v16 = vadd.f32 %v3122_v11, %v3033_v38  ;;  %v8791_v11 = vpack.c.bf16 %v2507_v60, %v2503_v7  ;;  %v2493_v7 = vld [vmem:[%s10339_s5 + $0x2b8] sm:$0xff] }
 0x5ae   :  { %v2370_v57 = vrot.slane %v2369_v2, 2  ;;  %v3211_v46 = vpop.f32.mrf.mxu0 }
 0x5af   :  { %v8796_v9 = vadd.f32 %v3211_v46, %v3123_v16 }
 0x5b0   :  { %v2371_v21 = vadd.f32 %v2370_v57, %v2369_v2  ;;  %v5624_v2 = vsel %vm5613_vm9, %v2346_v36, %v8602_v39  ;;  %v2508_v39 = vld [vmem:[%s10339_s5 + $0x330] sm:$0xff] }
 0x5b1   :  { %v3288_v38 = vpop.f32.mrf.mxu1  ;;  %3075 = vmatmul.bf16.gmra.mxu2 %v8786_v34  ;;  %3164 = vmatmul.bf16.gmra.mxu3 %v8791_v11  ;;  %v5625_v54 = vsel %vm5615_vm10, %v2355_v62, %v5624_v2  ;;  %v8817_v57 = vpack.c.bf16 %v2508_v39, %v2504_v47  ;;  %v8840_v2 = vpack.c.bf16 %v2493_v7, %v2489_v25 }
 0x5b2   :  { %v2372_v49 = vrot.slane %v2371_v21, 1  ;;  %v8794_v59 = vadd.f32 %v3288_v38, %v8684_v41  ;;  %v5626_v63 = vsel %vm5617_vm11, %v2364_v5, %v5625_v54  ;;  %v3125_v37 = vpop.f32.mrf.mxu3  ;;  %v2514_v5 = vld [vmem:[%s10339_s5 + $0x360] sm:$0xff]  ;;  %v2511_v38 = vld [vmem:[%s10339_s5 + $0x348] sm:$0xff] }
 0x5b3   :  { %10545 = vst [vmem:[#allocation40_spill] sm:$0xff] %v8840_v2  ;;  %v2515_v54 = vld [vmem:[%s10339_s5 + $0x368] sm:$0xff] }
 0x5b4   :  { %v2373_v3 = vadd.f32 %v2372_v49, %v2371_v21  ;;  %6188 = vmatmul.msk.bf16.gmra.mxu1 %vm2958_vm8, %v8784_v43  ;;  %v3036_v41 = vpop.f32.mrf.mxu2 }
 0x5b5   :  { %v3126_v53 = vadd.f32 %v3125_v37, %v3036_v41  ;;  %v8847_v41 = vpack.c.bf16 %v2515_v54, %v2511_v38 }
 0x5b6   :  { %v5627_v46 = vsel %vm5619_vm12, %v2373_v3, %v5626_v63  ;;  %v3214_v16 = vpop.f32.mrf.mxu0 }
 0x5b7   :  { %5631 = vst.msk [vmem:[%s10340_s19 + $0x8] sm:$0xff] %vm2229_vm4, %v5627_v46  ;;  %v8822_v17 = vadd.f32 %v3214_v16, %v3126_v53  ;;  %v2512_v16 = vld [vmem:[%s10339_s5 + $0x350] sm:$0xff] }
 0x5b8   :  { %10546 = vst [vmem:[#allocation43_spill] sm:$0xff] %v8847_v41 }
 0x5b9   :  { %v3290_v49 = vpop.f32.mrf.mxu1  ;;  %3253 = vmatmul.bf16.gmra.mxu0 %v8817_v57 }
 0x5ba   :  { %v8820_v36 = vadd.f32 %v3290_v49, %v8694_v61  ;;  %v3127_v21 = vpop.f32.mrf.mxu3  ;;  %v2510_v61 = vld [vmem:[%s10339_s5 + $0x340] sm:$0xff] }
 0x5bb   :  { %v8842_v3 = vpack.c.bf16 %v2514_v5, %v2510_v61  ;;  %v2497_v61 = vld [vmem:[%s10339_s5 + $0x2d8] sm:$0xff] }
 0x5bc   :  { %v3038_v62 = vpop.f32.mrf.mxu2  ;;  %v2501_v5 = vld [vmem:[%s10339_s5 + $0x2f8] sm:$0xff] }
 0x5bd   :  { %v3128_v60 = vadd.f32 %v3127_v21, %v3038_v62 }
 0x5be   :  { %v3216_v46 = vpop.f32.mrf.mxu0 }
 0x5bf   :  { %v8852_v53 = vadd.f32 %v3216_v46, %v3128_v60  ;;  %v2522_v46 = vld [vmem:[%s10339_s5 + $0x3a0] sm:$0xff] }
 0x5c1   :  { %v3293_v63 = vpop.f32.mrf.mxu1  ;;  %3080 = vmatmul.bf16.gmra.mxu2 %v8842_v3  ;;  %3169 = vmatmul.bf16.gmra.mxu3 %v8847_v41 }
 0x5c2   :  { %v8850_v37 = vadd.f32 %v3293_v63, %v8716_v1  ;;  %v3130_v39 = vpop.f32.mrf.mxu3  ;;  %v2516_v1 = vld [vmem:[%s10339_s5 + $0x370] sm:$0xff] }
 0x5c3   :  { %v8864_v7 = vpack.c.bf16 %v2516_v1, %v2512_v16  ;;  %v2523_v16 = vld [vmem:[%s10339_s5 + $0x3a8] sm:$0xff]  ;;  %v6539_v1 = vld [vmem:[%s10338_s13 + $0x74] sm:$0xf] }
 0x5c4   :  { %10547 = vst [vmem:[#allocation47_spill] sm:$0xff] %v8850_v37  ;;  %6189 = vmatmul.msk.bf16.gmra.mxu1 %vm2958_vm8, %v8840_v2  ;;  %v3041_v47 = vpop.f32.mrf.mxu2 }
 0x5c5   :  { %v3131_v49 = vadd.f32 %v3130_v39, %v3041_v47  ;;  %10548 = vst [vmem:[#allocation51_spill] sm:$0xff] %v8864_v7  ;;  %v2519_v47 = vld [vmem:[%s10339_s5 + $0x388] sm:$0xff]  ;;  %v8887_v39 = vpack.c.bf16 %v2501_v5, %v2497_v61  ;;  %v6555_v61 = vld [vmem:[%s10338_s13 + $0xf4] sm:$0xf]  ;;  %v6063_v5 = vld [vmem:[%s10338_s13 + $0xf8] sm:$0xf0] }
 0x5c6   :  { %v3219_v21 = vpop.f32.mrf.mxu0 }
 0x5c7   :  { %v8869_v60 = vadd.f32 %v3219_v21, %v3131_v49  ;;  %10550 = vst [vmem:[#allocation58_spill] sm:$0xff] %v8887_v39 }
 0x5c9   :  { %v3295_v25 = vpop.f32.mrf.mxu1  ;;  %3258 = vmatmul.bf16.gmra.mxu0 %v8864_v7  ;;  %v6066_v7 = vor.u32 %v6555_v61, %v6063_v5  ;;  %v2520_v5 = vld [vmem:[%s10339_s5 + $0x390] sm:$0xff] }
 0x5ca   :  { %v8867_v62 = vadd.f32 %v3295_v25, %v8747_v13  ;;  %v3132_v54 = vpop.f32.mrf.mxu3  ;;  %v2518_v13 = vld [vmem:[%s10339_s5 + $0x380] sm:$0xff]  ;;  %v5999_v25 = vld [vmem:[%s10338_s13 + $0x78] sm:$0xf0] }
 0x5cb   :  { %v8889_v49 = vpack.c.bf16 %v2522_v46, %v2518_v13  ;;  %3452 = vmatpush.bf16.msra.mxu3 %v6066_v7  ;;  %v6535_v7 = vld [vmem:[%s10338_s13 + $0x54] sm:$0xf] }
 0x5cc   :  { %10549 = vst [vmem:[#allocation54_spill] sm:$0xff] %v8867_v62  ;;  %v3043_v38 = vpop.f32.mrf.mxu2 }
 0x5cd   :  { %v3133_v63 = vadd.f32 %v3132_v54, %v3043_v38  ;;  %10551 = vst [vmem:[#allocation7_spill] sm:$0xff] %v8889_v49  ;;  %v8900_v38 = vpack.c.bf16 %v2523_v16, %v2519_v47  ;;  %v6002_v54 = vor.u32 %v6539_v1, %v5999_v25  ;;  %v6537_v47 = vld [vmem:[%s10338_s13 + $0x64] sm:$0xf]  ;;  %v6055_v1 = vld [vmem:[%s10338_s13 + $0xe8] sm:$0xf0] }
 0x5ce   :  { %v3221_v46 = vpop.f32.mrf.mxu0 }
 0x5cf   :  { %10552 = vst [vmem:[#allocation10_spill] sm:$0xff] %v8900_v38  ;;  %v8911_v62 = vadd.f32 %v3221_v46, %v3133_v63  ;;  %3363 = vmatpush.bf16.msrb.mxu2 %v6002_v54  ;;  %v6553_v63 = vld [vmem:[%s10338_s13 + $0xe4] sm:$0xf]  ;;  %v2524_v46 = vld [vmem:[%s10339_s5 + $0x3b0] sm:$0xff] }
 0x5d0   :  { %v6058_v54 = vor.u32 %v6553_v63, %v6055_v1  ;;  %v8944_v1 = vpack.c.bf16 %v2524_v46, %v2520_v5  ;;  %v6533_v46 = vld [vmem:[%s10338_s13 + $0x44] sm:$0xf] }
 0x5d1   :  { %v3298_v21 = vpop.f32.mrf.mxu1  ;;  %3085 = vmatmul.bf16.gmra.mxu2 %v8889_v49  ;;  %3174 = vmatmul.bf16.gmra.mxu3 %v8900_v38  ;;  %v6127_v38 = vld [vmem:[%s10338_s13 + $0x178] sm:$0xf0] }
 0x5d2   :  { %v8909_v13 = vadd.f32 %v3298_v21, %v8766_v55  ;;  %v5991_v55 = vld [vmem:[%s10338_s13 + $0x68] sm:$0xf0]  ;;  %v3135_v21 = vpop.f32.mrf.mxu3  ;;  %3453 = vmatpush.bf16.msra.mxu3 %v6058_v54  ;;  %10554 = vst [vmem:[#allocation15_spill] sm:$0xff] %v8944_v1 }
 0x5d3   :  { %v5994_v16 = vor.u32 %v6537_v47, %v5991_v55  ;;  %v5983_v47 = vld [vmem:[%s10338_s13 + $0x58] sm:$0xf0]  ;;  %v6551_v55 = vld [vmem:[%s10338_s13 + $0xd4] sm:$0xf] }
 0x5d4   :  { %10553 = vst [vmem:[#allocation12_spill] sm:$0xff] %v8909_v13  ;;  %6190 = vmatmul.msk.bf16.gmra.mxu1 %vm2958_vm8, %v8887_v39  ;;  %v3046_v25 = vpop.f32.mrf.mxu2 }
 0x5d5   :  { %v3136_v61 = vadd.f32 %v3135_v21, %v3046_v25  ;;  %3364 = vmatpush.bf16.msrb.mxu2 %v5994_v16  ;;  %v5986_v25 = vor.u32 %v6535_v7, %v5983_v47  ;;  %v6047_v16 = vld [vmem:[%s10338_s13 + $0xd8] sm:$0xf0]  ;;  %v6571_v21 = vld [vmem:[%s10338_s13 + $0x174] sm:$0xf]  ;;  %v5975_v7 = vld [vmem:[%s10338_s13 + $0x48] sm:$0xf0] }
 0x5d6   :  { %v3224_v13 = vpop.f32.mrf.mxu0  ;;  %v6050_v54 = vor.u32 %v6551_v55, %v6047_v16  ;;  %v6130_v5 = vor.u32 %v6571_v21, %v6127_v38  ;;  %v6549_v47 = vld [vmem:[%s10338_s13 + $0xc4] sm:$0xf]  ;;  %v6119_v55 = vld [vmem:[%s10338_s13 + $0x168] sm:$0xf0] }
 0x5d7   :  { %v8967_v49 = vadd.f32 %v3224_v13, %v3136_v61  ;;  %v6569_v38 = vld [vmem:[%s10338_s13 + $0x164] sm:$0xf]  ;;  %v2505_v13 = vld [vmem:[%s10339_s5 + $0x318] sm:$0xff] }
 0x5d8   :  { %3541 = vmatpush.bf16.msra.mxu0 %v6130_v5  ;;  %v6122_v16 = vor.u32 %v6569_v38, %v6119_v55  ;;  %v2509_v61 = vld [vmem:[%s10339_s5 + $0x338] sm:$0xff]  ;;  %3454 = vmatpush.bf16.msra.mxu3 %v6050_v54  ;;  %v2530_v5 = vld [vmem:[%s10339_s5 + $0x3e0] sm:$0xff] }
 0x5d9   :  { %v3300_v63 = vpop.f32.mrf.mxu1  ;;  %3365 = vmatpush.bf16.msrb.mxu2 %v5986_v25  ;;  %3263 = vmatmul.bf16.gmra.mxu0 %v8944_v1  ;;  %v2526_v25 = vld [vmem:[%s10339_s5 + $0x3c0] sm:$0xff] }
 0x5da   :  { %v8956_v39 = vadd.f32 %v3300_v63, %v8796_v9  ;;  %v6039_v9 = vld [vmem:[%s10338_s13 + $0xc8] sm:$0xf0]  ;;  %v5978_v63 = vor.u32 %v6533_v46, %v5975_v7  ;;  %v3137_v41 = vpop.f32.mrf.mxu3  ;;  %v8994_v7 = vpack.c.bf16 %v2509_v61, %v2505_v13  ;;  %v8996_v54 = vpack.c.bf16 %v2530_v5, %v2526_v25  ;;  %v6567_v13 = vld [vmem:[%s10338_s13 + $0x154] sm:$0xf]  ;;  %v6111_v5 = vld [vmem:[%s10338_s13 + $0x158] sm:$0xf0] }
 0x5db   :  { %v6042_v21 = vor.u32 %v6549_v47, %v6039_v9  ;;  %v2527_v46 = vld [vmem:[%s10339_s5 + $0x3c8] sm:$0xff]  ;;  %v5967_v47 = vld [vmem:[%s10338_s13 + $0x38] sm:$0xf0] }
 0x5dc   :  { %10555 = vst [vmem:[#allocation17_spill] sm:$0xff] %v8956_v39  ;;  %v3048_v39 = vpop.f32.mrf.mxu2  ;;  %3542 = vmatpush.bf16.msra.mxu0 %v6122_v16  ;;  %v6031_v16 = vld [vmem:[%s10338_s13 + $0xb8] sm:$0xf0] }
 0x5dd   :  { %v3138_v2 = vadd.f32 %v3137_v41, %v3048_v39  ;;  %10556 = vst [vmem:[#allocation20_spill] sm:$0xff] %v8994_v7  ;;  %3366 = vmatpush.bf16.msrb.mxu2 %v5978_v63  ;;  %v2531_v41 = vld [vmem:[%s10339_s5 + $0x3e8] sm:$0xff]  ;;  %v6531_v39 = vld [vmem:[%s10338_s13 + $0x34] sm:$0xf]  ;;  %3455 = vmatpush.bf16.msra.mxu3 %v6042_v21 }
 0x5de   :  { %10557 = vst [vmem:[#allocation24_spill] sm:$0xff] %v8996_v54  ;;  %v9007_v38 = vpack.c.bf16 %v2531_v41, %v2527_v46  ;;  %v5970_v55 = vor.u32 %v6531_v39, %v5967_v47  ;;  %v6547_v63 = vld [vmem:[%s10338_s13 + $0xb4] sm:$0xf]  ;;  %v3226_v25 = vpop.f32.mrf.mxu0  ;;  %v6114_v41 = vor.u32 %v6567_v13, %v6111_v5  ;;  %v6175_v39 = vld [vmem:[%s10338_s13 + $0x1d8] sm:$0xf0] }
 0x5df   :  { %v6034_v21 = vor.u32 %v6547_v63, %v6031_v16  ;;  %v9024_v46 = vadd.f32 %v3226_v25, %v3138_v2  ;;  %v6529_v2 = vld [vmem:[%s10338_s13 + $0x24] sm:$0xf]  ;;  %v6023_v63 = vld [vmem:[%s10338_s13 + $0xa8] sm:$0xf0] }
 0x5e0   :  { %10558 = vst [vmem:[#allocation26_spill] sm:$0xff] %v9007_v38  ;;  %3543 = vmatpush.bf16.msra.mxu0 %v6114_v41  ;;  %v6103_v41 = vld [vmem:[%s10338_s13 + $0x148] sm:$0xf0] }
 0x5e1   :  { %v3303_v9 = vpop.f32.mrf.mxu1  ;;  %3090 = vmatmul.bf16.gmra.mxu2 %v8996_v54  ;;  %3179 = vmatmul.bf16.gmra.mxu3 %v9007_v38  ;;  %v2528_v38 = vld [vmem:[%s10339_s5 + $0x3d0] sm:$0xff] }
 0x5e2   :  { %v9019_v61 = vadd.f32 %v3303_v9, %v8822_v17  ;;  %3367 = vmatpush.bf16.msrb.mxu2 %v5970_v55  ;;  %v6583_v17 = vld [vmem:[%s10338_s13 + $0x1d4] sm:$0xf]  ;;  %3456 = vmatpush.bf16.msra.mxu3 %v6034_v21  ;;  %v5959_v9 = vld [vmem:[%s10338_s13 + $0x28] sm:$0xf0]  ;;  %v6545_v55 = vld [vmem:[%s10338_s13 + $0xa4] sm:$0xf]  ;;  %v3140_v13 = vpop.f32.mrf.mxu3 }
 0x5e3   :  { %v6178_v47 = vor.u32 %v6583_v17, %v6175_v39  ;;  %v5962_v25 = vor.u32 %v6529_v2, %v5959_v9  ;;  %v6026_v5 = vor.u32 %v6545_v55, %v6023_v63  ;;  %v6565_v21 = vld [vmem:[%s10338_s13 + $0x144] sm:$0xf]  ;;  %v2532_v2 = vld [vmem:[%s10339_s5 + $0x3f0] sm:$0xff]  ;;  %v5951_v55 = vld [vmem:[%s10338_s13 + $0x18] sm:$0xf0] }
 0x5e4   :  { %10559 = vst [vmem:[#allocation29_spill] sm:$0xff] %v9019_v61  ;;  %6191 = vmatmul.msk.bf16.gmra.mxu1 %vm2958_vm8, %v8994_v7  ;;  %v3051_v16 = vpop.f32.mrf.mxu2  ;;  %v6106_v39 = vor.u32 %v6565_v21, %v6103_v41  ;;  %v6527_v9 = vld [vmem:[%s10338_s13 + $0x14] sm:$0xf]  ;;  %v6095_v41 = vld [vmem:[%s10338_s13 + $0x138] sm:$0xf0] }
 0x5e5   :  { %v3141_v17 = vadd.f32 %v3140_v13, %v3051_v16  ;;  %3632 = vmatpush.bf16.msra.mxu1 %v6178_v47  ;;  %v6543_v47 = vld [vmem:[%s10338_s13 + $0x94] sm:$0xf]  ;;  %v9069_v16 = vpack.c.bf16 %v2532_v2, %v2528_v38  ;;  %v5954_v13 = vor.u32 %v6527_v9, %v5951_v55  ;;  %v6525_v2 = vld [vmem:[%s10338_s13 + $0x4] sm:$0xf]  ;;  %v5943_v9 = vld [vmem:[%s10338_s13 + $0x8] sm:$0xf0] }
 0x5e6   :  { %3368 = vmatpush.bf16.msrb.mxu2 %v5962_v25  ;;  %3457 = vmatpush.bf16.msra.mxu3 %v6026_v5  ;;  %v6015_v25 = vld [vmem:[%s10338_s13 + $0x98] sm:$0xf0]  ;;  %v6563_v21 = vld [vmem:[%s10338_s13 + $0x134] sm:$0xf]  ;;  %v3229_v5 = vpop.f32.mrf.mxu0  ;;  %v6541_v55 = vld [vmem:[%s10338_s13 + $0x84] sm:$0xf] }
 0x5e7   :  { %3544 = vmatpush.bf16.msra.mxu0 %v6106_v39  ;;  %v6018_v39 = vor.u32 %v6543_v47, %v6015_v25  ;;  %v6098_v38 = vor.u32 %v6563_v21, %v6095_v41  ;;  %v9092_v61 = vadd.f32 %v3229_v5, %v3141_v17  ;;  %v6561_v47 = vld [vmem:[%s10338_s13 + $0x124] sm:$0xf]  ;;  %v5946_v25 = vor.u32 %v6525_v2, %v5943_v9  ;;  %v2513_v21 = vld [vmem:[%s10339_s5 + $0x358] sm:$0xff]  ;;  %v6167_v2 = vld [vmem:[%s10338_s13 + $0x1c8] sm:$0xf0] }
 0x5e8   :  { %v2517_v17 = vld [vmem:[%s10339_s5 + $0x378] sm:$0xff] }
 0x5e9   :  { %v3305_v63 = vpop.f32.mrf.mxu1  ;;  %3268 = vmatmul.bf16.gmra.mxu0 %v9069_v16  ;;  %v9116_v37 = vpack.c.bf16 %v2517_v17, %v2513_v21 }
 0x5ea   :  { %v9081_v7 = vadd.f32 %v3305_v63, %v8852_v53  ;;  %v6007_v53 = vld [vmem:[%s10338_s13 + $0x88] sm:$0xf0]  ;;  %3369 = vmatpush.bf16.msrb.mxu2 %v5954_v13  ;;  %3458 = vmatpush.bf16.msra.mxu3 %v6018_v39  ;;  %v6581_v13 = vld [vmem:[%s10338_s13 + $0x1c4] sm:$0xf]  ;;  %v6559_v39 = vld [vmem:[%s10338_s13 + $0x114] sm:$0xf] }
 0x5eb   :  { %v6087_v63 = vld [vmem:[%s10338_s13 + $0x128] sm:$0xf0]  ;;  %v6010_v41 = vor.u32 %v6541_v55, %v6007_v53  ;;  %3545 = vmatpush.bf16.msra.mxu0 %v6098_v38  ;;  %v6170_v1 = vor.u32 %v6581_v13, %v6167_v2  ;;  %v6079_v38 = vld [vmem:[%s10338_s13 + $0x118] sm:$0xf0] }
 0x5ec   :  { %10560 = vst [vmem:[#allocation31_spill] sm:$0xff] %v9081_v7  ;;  %v3053_v5 = vpop.f32.mrf.mxu2  ;;  %v3142_v7 = vpop.f32.mrf.mxu3  ;;  %v6090_v54 = vor.u32 %v6561_v47, %v6087_v63  ;;  %v6579_v63 = vld [vmem:[%s10338_s13 + $0x1b4] sm:$0xf] }
 0x5ed   :  { %v3143_v9 = vadd.f32 %v3142_v7, %v3053_v5  ;;  %3633 = vmatpush.bf16.msra.mxu1 %v6170_v1  ;;  %v6082_v7 = vor.u32 %v6559_v39, %v6079_v38  ;;  %v6071_v1 = vld [vmem:[%s10338_s13 + $0x108] sm:$0xf0] }
 0x5ee   :  { %3370 = vmatpush.bf16.msrb.mxu2 %v5946_v25  ;;  %3459 = vmatpush.bf16.msra.mxu3 %v6010_v41  ;;  %v3231_v47 = vpop.f32.mrf.mxu0  ;;  %v6159_v25 = vld [vmem:[%s10338_s13 + $0x1b8] sm:$0xf0] }
 0x5ef   :  { %3546 = vmatpush.bf16.msra.mxu0 %v6090_v54  ;;  %v9133_v21 = vadd.f32 %v3231_v47, %v3143_v9  ;;  %v6162_v17 = vor.u32 %v6579_v63, %v6159_v25  ;;  %v6143_v47 = vld [vmem:[%s10338_s13 + $0x198] sm:$0xf0] }
 0x5f0   :  { %v2521_v25 = vld [vmem:[%s10339_s5 + $0x398] sm:$0xff] }
 0x5f1   :  { %v3308_v55 = vpop.f32.mrf.mxu1  ;;  %3371 = vmatmul.bf16.vlgmr.msrb.gmra.mxu2 %v8181_v20  ;;  %3460 = vmatmul.bf16.vlgmr.msra.gmra.mxu3 %v8195_v6  ;;  %v6577_v20 = vld [vmem:[%s10338_s13 + $0x1a4] sm:$0xf]  ;;  %v6151_v6 = vld [vmem:[%s10338_s13 + $0x1a8] sm:$0xf0] }
 0x5f2   :  { %v9125_v53 = vadd.f32 %v3308_v55, %v8869_v60  ;;  %v6557_v60 = vld [vmem:[%s10338_s13 + $0x104] sm:$0xf]  ;;  %3634 = vmatpush.bf16.msra.mxu1 %v6162_v17  ;;  %v6154_v2 = vor.u32 %v6577_v20, %v6151_v6  ;;  %v6575_v55 = vld [vmem:[%s10338_s13 + $0x194] sm:$0xf] }
 0x5f3   :  { %3547 = vmatpush.bf16.msra.mxu0 %v6082_v7  ;;  %v6074_v5 = vor.u32 %v6557_v60, %v6071_v1  ;;  %v6146_v63 = vor.u32 %v6575_v55, %v6143_v47  ;;  %v6573_v1 = vld [vmem:[%s10338_s13 + $0x184] sm:$0xf] }
 0x5f4   :  { %6192 = vmatmul.msk.bf16.gmra.mxu1 %vm2958_vm8, %v9116_v37  ;;  %v3056_v54 = vpop.f32.mrf.mxu2  ;;  %v3145_v41 = vpop.f32.mrf.mxu3 }
 0x5f5   :  { %v3146_v13 = vadd.f32 %v3145_v41, %v3056_v54  ;;  %v6135_v54 = vld [vmem:[%s10338_s13 + $0x188] sm:$0xf0] }
 0x5f6   :  { %3635 = vmatpush.bf16.msra.mxu1 %v6154_v2  ;;  %v3234_v38 = vpop.f32.mrf.mxu0 }
 0x5f7   :  { %3548 = vmatpush.bf16.msra.mxu0 %v6074_v5  ;;  %v3235_v7 = vadd.f32 %v3234_v38, %v3146_v13  ;;  %v6138_v5 = vor.u32 %v6573_v1, %v6135_v54 }
 0x5f9   :  { %v3310_v9 = vpop.f32.mrf.mxu1 }
 0x5fa   :  { %v9152_v39 = vadd.f32 %v3310_v9, %v8911_v62  ;;  %v2525_v62 = vld [vmem:[%s10339_s5 + $0x3b8] sm:$0xff]  ;;  %3549 = vmatmul.bf16.vlgmr.msra.gmra.mxu0 %v8231_v56  ;;  %3636 = vmatpush.bf16.msra.mxu1 %v6146_v63 }
 0x5fb   :  { %v9173_v20 = vpack.c.bf16 %v2525_v62, %v2521_v25 }
 0x5fc   :  { %v3058_v17 = vpop.f32.mrf.mxu2  ;;  %v3147_v60 = vpop.f32.mrf.mxu3 }
 0x5fd   :  { %v3148_v41 = vadd.f32 %v3147_v60, %v3058_v17 }
 0x5fe   :  { %3637 = vmatpush.bf16.msra.mxu1 %v6138_v5  ;;  %v3236_v56 = vpop.f32.mrf.mxu0 }
 0x5ff   :  { %v3237_v2 = vadd.f32 %v3236_v56, %v3148_v41 }
 0x601   :  { %v3313_v6 = vpop.f32.mrf.mxu1  ;;  %3376 = vmatmul.bf16.gmra.mxu2 %v8261_v33  ;;  %3465 = vmatmul.bf16.gmra.mxu3 %v8271_v50  ;;  %v2533_v33 = vld [vmem:[%s10339_s5 + $0x3f8] sm:$0xff] }
 0x602   :  { %v9176_v13 = vadd.f32 %v3313_v6, %v8967_v49  ;;  %v2529_v49 = vld [vmem:[%s10339_s5 + $0x3d8] sm:$0xff] }
 0x603   :  { %v9192_v1 = vpack.c.bf16 %v2533_v33, %v2529_v49 }
 0x604   :  { %6193 = vmatmul.msk.bf16.gmra.mxu1 %vm2958_vm8, %v9173_v20  ;;  %v3061_v9 = vpop.f32.mrf.mxu2  ;;  %v3150_v38 = vpop.f32.mrf.mxu3 }
 0x605   :  { %v3151_v55 = vadd.f32 %v3150_v38, %v3061_v9 }
 0x606   :  { %v3239_v25 = vpop.f32.mrf.mxu0 }
 0x607   :  { %v3240_v62 = vadd.f32 %v3239_v25, %v3151_v55 }
 0x609   :  { %v3315_v47 = vpop.f32.mrf.mxu1 }
 0x60a   :  { %v9183_v63 = vadd.f32 %v3315_v47, %v9024_v46  ;;  %3554 = vmatmul.bf16.gmra.mxu0 %v8292_v28 }
 0x60c   :  { %v3063_v50 = vpop.f32.mrf.mxu2  ;;  %v3152_v17 = vpop.f32.mrf.mxu3 }
 0x60d   :  { %v3153_v60 = vadd.f32 %v3152_v17, %v3063_v50 }
 0x60e   :  { %v3241_v41 = vpop.f32.mrf.mxu0 }
 0x60f   :  { %v3242_v5 = vadd.f32 %v3241_v41, %v3153_v60 }
 0x611   :  { %v3318_v54 = vpop.f32.mrf.mxu1  ;;  %3381 = vmatmul.bf16.gmra.mxu2 %v8310_v12  ;;  %3470 = vmatmul.bf16.gmra.mxu3 %v8318_v23 }
 0x612   :  { %v9195_v46 = vadd.f32 %v3318_v54, %v9092_v61 }
 0x614   :  { %6194 = vmatmul.msk.bf16.gmra.mxu1 %vm2958_vm8, %v9192_v1  ;;  %v3066_v6 = vpop.f32.mrf.mxu2  ;;  %v3155_v28 = vpop.f32.mrf.mxu3 }
 0x615   :  { %v3156_v56 = vadd.f32 %v3155_v28, %v3066_v6 }
 0x616   :  { %v3244_v55 = vpop.f32.mrf.mxu0 }
 0x617   :  { %v3245_v47 = vadd.f32 %v3244_v55, %v3156_v56 }
 0x619   :  { %v3320_v9 = vpop.f32.mrf.mxu1 }
 0x61a   :  { %v9202_v38 = vadd.f32 %v3320_v9, %v9133_v21  ;;  %3559 = vmatmul.bf16.gmra.mxu0 %v8339_v19 }
 0x61c   :  { %v3068_v61 = vpop.f32.mrf.mxu2  ;;  %v3157_v25 = vpop.f32.mrf.mxu3 }
 0x61d   :  { %v3158_v49 = vadd.f32 %v3157_v25, %v3068_v61 }
 0x61e   :  { %v3246_v50 = vpop.f32.mrf.mxu0 }
 0x61f   :  { %v3247_v17 = vadd.f32 %v3246_v50, %v3158_v49 }
 0x621   :  { %v3323_v12 = vpop.f32.mrf.mxu1  ;;  %3386 = vmatmul.bf16.gmra.mxu2 %v8361_v58  ;;  %3475 = vmatmul.bf16.gmra.mxu3 %v8366_v32 }
 0x622   :  { %v9205_v33 = vadd.f32 %v3323_v12, %v3235_v7 }
 0x624   :  { %6195 = vmatmul.msk.bf16.vlgmr.msra.gmra.mxu1 %vm2958_vm8, %v8359_v51  ;;  %v3071_v23 = vpop.f32.mrf.mxu2  ;;  %v3160_v21 = vpop.f32.mrf.mxu3 }
 0x625   :  { %v3161_v60 = vadd.f32 %v3160_v21, %v3071_v23 }
 0x626   :  { %v3249_v41 = vpop.f32.mrf.mxu0 }
 0x627   :  { %v3250_v6 = vadd.f32 %v3249_v41, %v3161_v60 }
 0x629   :  { %v3325_v54 = vpop.f32.mrf.mxu1 }
 0x62a   :  { %v9211_v19 = vadd.f32 %v3325_v54, %v3237_v2  ;;  %3564 = vmatmul.bf16.gmra.mxu0 %v8382_v48 }
 0x62c   :  { %v3073_v7 = vpop.f32.mrf.mxu2  ;;  %v3162_v28 = vpop.f32.mrf.mxu3 }
 0x62d   :  { %v3163_v56 = vadd.f32 %v3162_v28, %v3073_v7 }
 0x62e   :  { %v3251_v55 = vpop.f32.mrf.mxu0 }
 0x62f   :  { %v3252_v51 = vadd.f32 %v3251_v55, %v3163_v56 }
 0x631   :  { %v3328_v9 = vpop.f32.mrf.mxu1  ;;  %3391 = vmatmul.bf16.gmra.mxu2 %v8404_v0  ;;  %3480 = vmatmul.bf16.gmra.mxu3 %v8409_v40 }
 0x632   :  { %v9214_v58 = vadd.f32 %v3328_v9, %v3240_v62 }
 0x634   :  { %6196 = vmatmul.msk.bf16.gmra.mxu1 %vm2958_vm8, %v8402_v44  ;;  %v3076_v32 = vpop.f32.mrf.mxu2  ;;  %v3165_v2 = vpop.f32.mrf.mxu3 }
 0x635   :  { %v3166_v61 = vadd.f32 %v3165_v2, %v3076_v32 }
 0x636   :  { %v3254_v49 = vpop.f32.mrf.mxu0 }
 0x637   :  { %v3255_v12 = vadd.f32 %v3254_v49, %v3166_v61 }
 0x639   :  { %v3330_v25 = vpop.f32.mrf.mxu1 }
 0x63a   :  { %v9220_v48 = vadd.f32 %v3330_v25, %v3242_v5  ;;  %3569 = vmatmul.bf16.gmra.mxu0 %v8434_v22 }
 0x63c   :  { %v3078_v62 = vpop.f32.mrf.mxu2  ;;  %v3167_v50 = vpop.f32.mrf.mxu3 }
 0x63d   :  { %v3168_v23 = vadd.f32 %v3167_v50, %v3078_v62 }
 0x63e   :  { %v3256_v60 = vpop.f32.mrf.mxu0 }
 0x63f   :  { %v3257_v44 = vadd.f32 %v3256_v60, %v3168_v23 }
 0x641   :  { %v3333_v21 = vpop.f32.mrf.mxu1  ;;  %3396 = vmatmul.bf16.gmra.mxu2 %v8461_v31  ;;  %3485 = vmatmul.bf16.gmra.mxu3 %v8466_v15 }
 0x642   :  { %v9223_v0 = vadd.f32 %v3333_v21, %v3245_v47 }
 0x644   :  { %6197 = vmatmul.msk.bf16.gmra.mxu1 %vm2958_vm8, %v8459_v10  ;;  %v3081_v40 = vpop.f32.mrf.mxu2  ;;  %v3170_v5 = vpop.f32.mrf.mxu3 }
 0x645   :  { %v3171_v54 = vadd.f32 %v3170_v5, %v3081_v40 }
 0x646   :  { %v3259_v7 = vpop.f32.mrf.mxu0 }
 0x647   :  { %v3260_v28 = vadd.f32 %v3259_v7, %v3171_v54 }
 0x649   :  { %v3335_v41 = vpop.f32.mrf.mxu1 }
 0x64a   :  { %v9229_v22 = vadd.f32 %v3335_v41, %v3247_v17  ;;  %3574 = vmatmul.bf16.gmra.mxu0 %v8482_v4 }
 0x64c   :  { %v3083_v47 = vpop.f32.mrf.mxu2  ;;  %v3172_v56 = vpop.f32.mrf.mxu3 }
 0x64d   :  { %v3173_v9 = vadd.f32 %v3172_v56, %v3083_v47 }
 0x64e   :  { %v3261_v32 = vpop.f32.mrf.mxu0 }
 0x64f   :  { %v3262_v10 = vadd.f32 %v3261_v32, %v3173_v9 }
 0x651   :  { %v3338_v55 = vpop.f32.mrf.mxu1  ;;  %3401 = vmatmul.bf16.gmra.mxu2 %v8504_v18  ;;  %3490 = vmatmul.bf16.gmra.mxu3 %v8509_v24 }
 0x652   :  { %v9232_v31 = vadd.f32 %v3338_v55, %v3250_v6 }
 0x654   :  { %6198 = vmatmul.msk.bf16.gmra.mxu1 %vm2958_vm8, %v8502_v30  ;;  %v3086_v15 = vpop.f32.mrf.mxu2  ;;  %v3175_v17 = vpop.f32.mrf.mxu3 }
 0x655   :  { %v3176_v2 = vadd.f32 %v3175_v17, %v3086_v15 }
 0x656   :  { %v3264_v25 = vpop.f32.mrf.mxu0 }
 0x657   :  { %v3265_v49 = vadd.f32 %v3264_v25, %v3176_v2  ;;  %v10562_v2 = vld [vmem:[#allocation35_spill] sm:$0xff] }
 0x659   :  { %v3340_v61 = vpop.f32.mrf.mxu1 }
 0x65a   :  { %v9238_v4 = vadd.f32 %v3340_v61, %v3252_v51  ;;  %3579 = vmatmul.bf16.gmra.mxu0 %v8526_v29 }
 0x65c   :  { %v3088_v6 = vpop.f32.mrf.mxu2  ;;  %v3177_v62 = vpop.f32.mrf.mxu3 }
 0x65d   :  { %v3178_v50 = vadd.f32 %v3177_v62, %v3088_v6 }
 0x65e   :  { %v3266_v21 = vpop.f32.mrf.mxu0 }
 0x65f   :  { %v3267_v30 = vadd.f32 %v3266_v21, %v3178_v50  ;;  %v10564_v50 = vld [vmem:[#allocation39_spill] sm:$0xff] }
 0x660   :  { %v10566_v21 = vld [vmem:[#allocation19_spill] sm:$0xff] }
 0x661   :  { %v3343_v23 = vpop.f32.mrf.mxu1  ;;  %3406 = vmatmul.bf16.gmra.mxu2 %v8548_v8  ;;  %3495 = vmatmul.bf16.gmra.mxu3 %v8555_v26  ;;  %v10561_v26 = vld [vmem:[#allocation9_spill] sm:$0xff] }
 0x662   :  { %v9241_v18 = vadd.f32 %v3343_v23, %v3255_v12  ;;  %v10565_v23 = vld [vmem:[#allocation14_spill] sm:$0xff] }
 0x664   :  { %6199 = vmatmul.msk.bf16.gmra.mxu1 %vm2958_vm8, %v8546_v42  ;;  %v3091_v24 = vpop.f32.mrf.mxu2  ;;  %v3180_v51 = vpop.f32.mrf.mxu3 }
 0x665   :  { %v3181_v60 = vadd.f32 %v3180_v51, %v3091_v24 }
 0x666   :  { %v3269_v5 = vpop.f32.mrf.mxu0 }
 0x667   :  { %v3270_v54 = vadd.f32 %v3269_v5, %v3181_v60 }
 0x669   :  { %v3345_v40 = vpop.f32.mrf.mxu1 }
 0x66a   :  { %v9247_v29 = vadd.f32 %v3345_v40, %v3257_v44  ;;  %3584 = vmatmul.bf16.gmra.mxu0 %v8570_v52 }
 0x66c   :  { %v3093_v12 = vpop.f32.mrf.mxu2  ;;  %v3182_v41 = vpop.f32.mrf.mxu3 }
 0x66d   :  { %v3183_v7 = vadd.f32 %v3182_v41, %v3093_v12  ;;  %v10568_v41 = vld [vmem:[#allocation42_spill] sm:$0xff] }
 0x66e   :  { %v3271_v56 = vpop.f32.mrf.mxu0 }
 0x66f   :  { %v3272_v42 = vadd.f32 %v3271_v56, %v3183_v7 }
 0x671   :  { %v3348_v47 = vpop.f32.mrf.mxu1  ;;  %3411 = vmatmul.bf16.gmra.mxu2 %v8590_v45  ;;  %3500 = vmatmul.bf16.gmra.mxu3 %v10561_v26 }
 0x672   :  { %v9250_v8 = vadd.f32 %v3348_v47, %v3260_v28 }
 0x674   :  { %6200 = vmatmul.msk.bf16.gmra.mxu1 %vm2958_vm8, %v8588_v14  ;;  %v3372_v44 = vpop.f32.mrf.mxu2  ;;  %v3461_v9 = vpop.f32.mrf.mxu3 }
 0x675   :  { %v3462_v55 = vadd.f32 %v3461_v9, %v3372_v44 }
 0x677   :  { %v3550_v15 = vpop.f32.mrf.mxu0 }
 0x678   :  { %v3551_v17 = vadd.f32 %v3550_v15, %v3462_v55  ;;  %v10570_v55 = vld [vmem:[#allocation23_spill] sm:$0xff] }
 0x679   :  { %v3350_v32 = vpop.f32.mrf.mxu1 }
 0x67a   :  { %v9256_v52 = vadd.f32 %v3350_v32, %v3262_v10  ;;  %3589 = vmatmul.bf16.gmra.mxu0 %v10562_v2 }
 0x67c   :  { %v3374_v28 = vpop.f32.mrf.mxu2  ;;  %v3463_v61 = vpop.f32.mrf.mxu3 }
 0x67d   :  { %v3464_v25 = vadd.f32 %v3463_v61, %v3374_v28 }
 0x67f   :  { %v3552_v62 = vpop.f32.mrf.mxu0 }
 0x680   :  { %v3553_v14 = vadd.f32 %v3552_v62, %v3464_v25 }
 0x681   :  { %v3353_v6 = vpop.f32.mrf.mxu1  ;;  %3416 = vmatmul.bf16.gmra.mxu2 %v10564_v50  ;;  %3505 = vmatmul.bf16.gmra.mxu3 %v10566_v21 }
 0x682   :  { %v9259_v45 = vadd.f32 %v3353_v6, %v3265_v49  ;;  %v10572_v6 = vld [vmem:[#allocation46_spill] sm:$0xff] }
 0x684   :  { %10563 = vst [vmem:[#allocation34_spill] sm:$0xff] %v9259_v45  ;;  %6201 = vmatmul.msk.bf16.gmra.mxu1 %vm2958_vm8, %v10565_v23  ;;  %v3377_v10 = vpop.f32.mrf.mxu2  ;;  %v3466_v24 = vpop.f32.mrf.mxu3 }
 0x685   :  { %v3467_v51 = vadd.f32 %v3466_v24, %v3377_v10  ;;  %v10574_v24 = vld [vmem:[#allocation53_spill] sm:$0xff] }
 0x687   :  { %v3555_v5 = vpop.f32.mrf.mxu0 }
 0x688   :  { %v3556_v12 = vadd.f32 %v3555_v5, %v3467_v51 }
 0x689   :  { %v3355_v60 = vpop.f32.mrf.mxu1 }
 0x68a   :  { %v9265_v40 = vadd.f32 %v3355_v60, %v3267_v30  ;;  %3594 = vmatmul.bf16.gmra.mxu0 %v10568_v41  ;;  %v10575_v60 = vld [vmem:[#allocation28_spill] sm:$0xff] }
 0x68c   :  { %10567 = vst [vmem:[#allocation37_spill] sm:$0xff] %v9265_v40  ;;  %v3379_v49 = vpop.f32.mrf.mxu2  ;;  %v3468_v7 = vpop.f32.mrf.mxu3 }
 0x68d   :  { %v3469_v47 = vadd.f32 %v3468_v7, %v3379_v49 }
 0x68f   :  { %v3557_v44 = vpop.f32.mrf.mxu0 }
 0x690   :  { %v3558_v9 = vadd.f32 %v3557_v44, %v3469_v47 }
 0x691   :  { %v3358_v56 = vpop.f32.mrf.mxu1  ;;  %3421 = vmatmul.bf16.gmra.mxu2 %v8686_v27  ;;  %3510 = vmatmul.bf16.gmra.mxu3 %v10570_v55  ;;  %v10577_v55 = vld [vmem:[#allocation57_spill] sm:$0xff] }
 0x692   :  { %v9268_v26 = vadd.f32 %v3358_v56, %v3270_v54 }
 0x694   :  { %10569 = vst [vmem:[#allocation38_spill] sm:$0xff] %v9268_v26  ;;  %6202 = vmatmul.msk.bf16.gmra.mxu1 %vm2958_vm8, %v8682_v35  ;;  %v3382_v30 = vpop.f32.mrf.mxu2  ;;  %v3471_v32 = vpop.f32.mrf.mxu3  ;;  %v10573_v35 = vld [vmem:[#allocation50_spill] sm:$0xff] }
 0x695   :  { %v3472_v15 = vadd.f32 %v3471_v32, %v3382_v30  ;;  %v10578_v30 = vld [vmem:[#allocation36_spill] sm:$0xff] }
 0x697   :  { %v3560_v61 = vpop.f32.mrf.mxu0 }
 0x698   :  { %v3561_v25 = vadd.f32 %v3560_v61, %v3472_v15 }
 0x699   :  { %v3360_v2 = vpop.f32.mrf.mxu1 }
 0x69a   :  { %v9274_v28 = vadd.f32 %v3360_v2, %v3272_v42  ;;  %3599 = vmatmul.bf16.gmra.mxu0 %v10572_v6  ;;  %v10576_v42 = vld [vmem:[#allocation33_spill] sm:$0xff] }
 0x69c   :  { %10571 = vst [vmem:[#allocation41_spill] sm:$0xff] %v9274_v28  ;;  %v3384_v54 = vpop.f32.mrf.mxu2  ;;  %v3473_v62 = vpop.f32.mrf.mxu3 }
 0x69d   :  { %v3474_v50 = vadd.f32 %v3473_v62, %v3384_v54 }
 0x69f   :  { %v3562_v21 = vpop.f32.mrf.mxu0 }
 0x6a0   :  { %v3563_v10 = vadd.f32 %v3562_v21, %v3474_v50 }
 0x6a1   :  { %v3639_v23 = vpop.f32.mrf.mxu1  ;;  %3426 = vmatmul.bf16.gmra.mxu2 %v10573_v35  ;;  %3515 = vmatmul.bf16.gmra.mxu3 %v10576_v42 }
 0x6a2   :  { %v3640_v27 = vadd.f32 %v3639_v23, %v3551_v17 }
 0x6a4   :  { %v3719_v51 = vpack.c.bf16 %v3640_v27, %v10574_v24  ;;  %6203 = vmatmul.msk.bf16.gmra.mxu1 %vm2958_vm8, %v10575_v60  ;;  %v3387_v5 = vpop.f32.mrf.mxu2  ;;  %v3476_v41 = vpop.f32.mrf.mxu3 }
 0x6a5   :  { %v3477_v49 = vadd.f32 %v3476_v41, %v3387_v5 }
 0x6a6   :  { %v3949_v32 = vunpack.c.l.b16 %v3719_v51  ;;  %v3950_v15 = vunpack.c.h.b16 %v3719_v51 }
 0x6a7   :  { %v3565_v56 = vpop.f32.mrf.mxu0 }
 0x6a8   :  { %v3566_v44 = vadd.f32 %v3565_v56, %v3477_v49 }
 0x6a9   :  { %v3641_v7 = vpop.f32.mrf.mxu1 }
 0x6aa   :  { %v3642_v47 = vadd.f32 %v3641_v7, %v3553_v14  ;;  %3604 = vmatmul.bf16.gmra.mxu0 %v10578_v30 }
 0x6ac   :  { %v3720_v17 = vpack.c.bf16 %v3642_v47, %v10577_v55  ;;  %v3389_v6 = vpop.f32.mrf.mxu2  ;;  %v3478_v54 = vpop.f32.mrf.mxu3 }
 0x6ad   :  { %v3479_v62 = vadd.f32 %v3478_v54, %v3389_v6 }
 0x6ae   :  { %v3951_v2 = vunpack.c.l.b16 %v3720_v17  ;;  %v3952_v61 = vunpack.c.h.b16 %v3720_v17 }
 0x6af   :  { %v3567_v14 = vpop.f32.mrf.mxu0 }
 0x6b0   :  { %v9284_v50 = vpack.c.b16 %v3951_v2, %v3949_v32  ;;  %v9286_v23 = vpack.c.b16 %v3952_v61, %v3950_v15  ;;  %v3568_v35 = vadd.f32 %v3567_v14, %v3479_v62 }
 0x6b1   :  { %v3644_v27 = vpop.f32.mrf.mxu1  ;;  %3431 = vmatmul.bf16.gmra.mxu2 %v8786_v34  ;;  %3520 = vmatmul.bf16.gmra.mxu3 %v8791_v11 }
 0x6b2   :  { %v3645_v21 = vadd.f32 %v3644_v27, %v3556_v12 }
 0x6b4   :  { %v3721_v24 = vpack.c.bf16 %v3645_v21, %v8794_v59  ;;  %6204 = vmatmul.msk.bf16.gmra.mxu1 %vm2958_vm8, %v8784_v43  ;;  %v3392_v51 = vpop.f32.mrf.mxu2  ;;  %v3481_v60 = vpop.f32.mrf.mxu3  ;;  %v10582_v21 = vld [vmem:[#allocation54_spill] sm:$0xff] }
 0x6b5   :  { %v3482_v42 = vadd.f32 %v3481_v60, %v3392_v51 }
 0x6b6   :  { %v3953_v47 = vunpack.c.l.b16 %v3721_v24  ;;  %v3954_v34 = vunpack.c.h.b16 %v3721_v24  ;;  %v10583_v24 = vld [vmem:[#allocation51_spill] sm:$0xff] }
 0x6b7   :  { %v3570_v49 = vpop.f32.mrf.mxu0 }
 0x6b8   :  { %v3571_v7 = vadd.f32 %v3570_v49, %v3482_v42 }
 0x6b9   :  { %v3646_v5 = vpop.f32.mrf.mxu1 }
 0x6ba   :  { %v3647_v41 = vadd.f32 %v3646_v5, %v3558_v9  ;;  %3609 = vmatmul.bf16.gmra.mxu0 %v8817_v57  ;;  %v10579_v9 = vld [vmem:[#allocation47_spill] sm:$0xff] }
 0x6bb   :  { %v10581_v57 = vld [vmem:[#allocation43_spill] sm:$0xff] }
 0x6bc   :  { %v3722_v12 = vpack.c.bf16 %v3647_v41, %v8820_v36  ;;  %v3394_v55 = vpop.f32.mrf.mxu2  ;;  %v3483_v17 = vpop.f32.mrf.mxu3  ;;  %v10580_v36 = vld [vmem:[#allocation40_spill] sm:$0xff] }
 0x6be   :  { %v3955_v56 = vunpack.c.l.b16 %v3722_v12  ;;  %v3956_v59 = vunpack.c.h.b16 %v3722_v12 }
 0x6bf   :  { %v3572_v15 = vpop.f32.mrf.mxu0 }
 0x6c0   :  { %v9295_v43 = vpack.c.b16 %v3955_v56, %v3953_v47  ;;  %v9297_v11 = vpack.c.b16 %v3956_v59, %v3954_v34  ;;  %v10584_v56 = vld [vmem:[#allocation7_spill] sm:$0xff] }
 0x6c1   :  { %v3649_v30 = vpop.f32.mrf.mxu1  ;;  %3436 = vmatmul.bf16.gmra.mxu2 %v8842_v3  ;;  %3525 = vmatmul.bf16.gmra.mxu3 %v10581_v57 }
 0x6c2   :  { %v3650_v32 = vadd.f32 %v3649_v30, %v3561_v25  ;;  %v10586_v30 = vld [vmem:[#allocation58_spill] sm:$0xff] }
 0x6c4   :  { %v3723_v2 = vpack.c.bf16 %v3650_v32, %v10579_v9  ;;  %6205 = vmatmul.msk.bf16.gmra.mxu1 %vm2958_vm8, %v10580_v36  ;;  %v3397_v61 = vpop.f32.mrf.mxu2  ;;  %v3486_v6 = vpop.f32.mrf.mxu3  ;;  %v10587_v32 = vld [vmem:[#allocation10_spill] sm:$0xff] }
 0x6c6   :  { %v3957_v25 = vunpack.c.l.b16 %v3723_v2  ;;  %v3958_v51 = vunpack.c.h.b16 %v3723_v2 }
 0x6c7   :  { %v3575_v27 = vpop.f32.mrf.mxu0 }
 0x6c9   :  { %v3651_v54 = vpop.f32.mrf.mxu1 }
 0x6ca   :  { %v3652_v62 = vadd.f32 %v3651_v54, %v3563_v10  ;;  %3614 = vmatmul.bf16.gmra.mxu0 %v10583_v24  ;;  %v10585_v10 = vld [vmem:[#allocation12_spill] sm:$0xff] }
 0x6cc   :  { %v3724_v14 = vpack.c.bf16 %v3652_v62, %v10582_v21  ;;  %v3399_v42 = vpop.f32.mrf.mxu2  ;;  %v3488_v5 = vpop.f32.mrf.mxu3  ;;  %v10588_v62 = vld [vmem:[#allocation17_spill] sm:$0xff] }
 0x6ce   :  { %v3959_v60 = vunpack.c.l.b16 %v3724_v14  ;;  %v3960_v3 = vunpack.c.h.b16 %v3724_v14  ;;  %v10589_v14 = vld [vmem:[#allocation15_spill] sm:$0xff] }
 0x6cf   :  { %v3577_v34 = vpop.f32.mrf.mxu0 }
 0x6d0   :  { %v9306_v41 = vpack.c.b16 %v3959_v60, %v3957_v25  ;;  %v9308_v49 = vpack.c.b16 %v3960_v3, %v3958_v51 }
 0x6d1   :  { %v3654_v12 = vpop.f32.mrf.mxu1  ;;  %3441 = vmatmul.bf16.gmra.mxu2 %v10584_v56  ;;  %3530 = vmatmul.bf16.gmra.mxu3 %v10587_v32  ;;  %v10590_v32 = vld [vmem:[#allocation24_spill] sm:$0xff] }
 0x6d2   :  { %v3655_v47 = vadd.f32 %v3654_v12, %v3566_v44 }
 0x6d4   :  { %v3725_v59 = vpack.c.bf16 %v3655_v47, %v10585_v10  ;;  %6206 = vmatmul.msk.bf16.gmra.mxu1 %vm2958_vm8, %v10586_v30  ;;  %v3402_v9 = vpop.f32.mrf.mxu2  ;;  %v3491_v2 = vpop.f32.mrf.mxu3 }
 0x6d6   :  { %v3961_v44 = vunpack.c.l.b16 %v3725_v59  ;;  %v3962_v24 = vunpack.c.h.b16 %v3725_v59  ;;  %v10593_v59 = vld [vmem:[#allocation26_spill] sm:$0xff] }
 0x6d7   :  { %v3580_v54 = vpop.f32.mrf.mxu0 }
 0x6d9   :  { %v3656_v36 = vpop.f32.mrf.mxu1 }
 0x6da   :  { %v3657_v57 = vadd.f32 %v3656_v36, %v3568_v35  ;;  %3619 = vmatmul.bf16.gmra.mxu0 %v10589_v14  ;;  %v3484_v35 = vadd.f32 %v3483_v17, %v3394_v55  ;;  %v10591_v36 = vld [vmem:[#allocation29_spill] sm:$0xff] }
 0x6dc   :  { %v3726_v21 = vpack.c.bf16 %v3657_v57, %v10588_v62  ;;  %v3404_v60 = vpop.f32.mrf.mxu2  ;;  %v3493_v3 = vpop.f32.mrf.mxu3  ;;  %v10592_v62 = vld [vmem:[#allocation20_spill] sm:$0xff]  ;;  %v3573_v28 = vadd.f32 %v3572_v15, %v3484_v35 }
 0x6de   :  { %v3963_v25 = vunpack.c.l.b16 %v3726_v21  ;;  %v3964_v51 = vunpack.c.h.b16 %v3726_v21 }
 0x6df   :  { %v3582_v30 = vpop.f32.mrf.mxu0 }
 0x6e0   :  { %v9317_v12 = vpack.c.b16 %v3963_v25, %v3961_v44  ;;  %v9319_v47 = vpack.c.b16 %v3964_v51, %v3962_v24  ;;  %v10594_v51 = vld [vmem:[#allocation31_spill] sm:$0xff] }
 0x6e1   :  { %v3659_v56 = vpop.f32.mrf.mxu1  ;;  %3446 = vmatmul.bf16.gmra.mxu2 %v10590_v32  ;;  %3535 = vmatmul.bf16.gmra.mxu3 %v10593_v59 }
 0x6e2   :  { %v3660_v10 = vadd.f32 %v3659_v56, %v3571_v7  ;;  %v3487_v56 = vadd.f32 %v3486_v6, %v3397_v61 }
 0x6e4   :  { %v3727_v57 = vpack.c.bf16 %v3660_v10, %v10591_v36  ;;  %6207 = vmatmul.msk.bf16.gmra.mxu1 %vm2958_vm8, %v10592_v62  ;;  %v3407_v21 = vpop.f32.mrf.mxu2  ;;  %v3496_v14 = vpop.f32.mrf.mxu3  ;;  %v3576_v35 = vadd.f32 %v3575_v27, %v3487_v56 }
 0x6e6   :  { %v3965_v55 = vunpack.c.l.b16 %v3727_v57  ;;  %v3966_v17 = vunpack.c.h.b16 %v3727_v57 }
 0x6e7   :  { %v9326_v24 = vpop.f32.mrf.mxu0 }
 0x6e9   :  { %v3661_v44 = vpop.f32.mrf.mxu1 }
 0x6ea   :  { %v3662_v25 = vadd.f32 %v3661_v44, %v3573_v28  ;;  %3624 = vmatmul.bf16.gmra.mxu0 %v9069_v16  ;;  %v3489_v44 = vadd.f32 %v3488_v5, %v3399_v42 }
 0x6ec   :  { %v3728_v7 = vpack.c.bf16 %v3662_v25, %v10594_v51  ;;  %v3409_v36 = vpop.f32.mrf.mxu2  ;;  %v3498_v62 = vpop.f32.mrf.mxu3  ;;  %v3578_v25 = vadd.f32 %v3577_v34, %v3489_v44 }
 0x6ee   :  { %v3967_v10 = vunpack.c.l.b16 %v3728_v7  ;;  %v3968_v32 = vunpack.c.h.b16 %v3728_v7 }
 0x6ef   :  { %v3587_v28 = vpop.f32.mrf.mxu0 }
 0x6f0   :  { %v9330_v26 = vpack.c.b16 %v3967_v10, %v3965_v55  ;;  %v9332_v59 = vpack.c.b16 %v3968_v32, %v3966_v17  ;;  %v3492_v32 = vadd.f32 %v3491_v2, %v3402_v9 }
 0x6f1   :  { %v3664_v15 = vpop.f32.mrf.mxu1 }
 0x6f2   :  { %v3665_v61 = vadd.f32 %v3664_v15, %v3576_v35  ;;  %v3581_v44 = vadd.f32 %v3580_v54, %v3492_v32  ;;  %v3497_v54 = vadd.f32 %v3496_v14, %v3407_v21 }
 0x6f4   :  { %6208 = vmatmul.msk.bf16.gmra.mxu1 %vm2958_vm8, %v9116_v37  ;;  %v3412_v6 = vpop.f32.mrf.mxu2  ;;  %v3501_v16 = vpop.f32.mrf.mxu3  ;;  %v3729_v7 = vpack.c.bf16 %v3665_v61, %v9125_v53  ;;  %v3494_v53 = vadd.f32 %v3493_v3, %v3404_v60 }
 0x6f5   :  { %v3502_v57 = vadd.f32 %v3501_v16, %v3412_v6 }
 0x6f6   :  { %v3969_v27 = vunpack.c.l.b16 %v3729_v7  ;;  %v3970_v56 = vunpack.c.h.b16 %v3729_v7  ;;  %v3583_v9 = vadd.f32 %v3582_v30, %v3494_v53 }
 0x6f7   :  { %v3590_v55 = vpop.f32.mrf.mxu0 }
 0x6f8   :  { %v3591_v10 = vadd.f32 %v3590_v55, %v3502_v57 }
 0x6f9   :  { %v3666_v51 = vpop.f32.mrf.mxu1 }
 0x6fa   :  { %v3667_v40 = vadd.f32 %v3666_v51, %v3578_v25 }
 0x6fc   :  { %v3730_v17 = vpack.c.bf16 %v3667_v40, %v9152_v39  ;;  %v3414_v45 = vpop.f32.mrf.mxu2  ;;  %v3503_v37 = vpop.f32.mrf.mxu3 }
 0x6fe   :  { %v3971_v42 = vunpack.c.l.b16 %v3730_v17  ;;  %v3972_v5 = vunpack.c.h.b16 %v3730_v17 }
 0x6ff   :  { %v3592_v6 = vpop.f32.mrf.mxu0 }
 0x700   :  { %v9338_v15 = vpack.c.b16 %v3971_v42, %v3969_v27  ;;  %v9340_v35 = vpack.c.b16 %v3972_v5, %v3970_v56  ;;  %v3586_v5 = vadd.f32 %v9326_v24, %v3497_v54 }
 0x701   :  { %v3669_v34 = vpop.f32.mrf.mxu1 }
 0x702   :  { %v3670_v61 = vadd.f32 %v3669_v34, %v3581_v44  ;;  %v3499_v34 = vadd.f32 %v3498_v62, %v3409_v36 }
 0x704   :  { %6209 = vmatmul.msk.bf16.gmra.mxu1 %vm2958_vm8, %v9173_v20  ;;  %v3417_v39 = vpop.f32.mrf.mxu2  ;;  %v3506_v40 = vpop.f32.mrf.mxu3  ;;  %v3731_v25 = vpack.c.bf16 %v3670_v61, %v9176_v13  ;;  %v3588_v44 = vadd.f32 %v3587_v28, %v3499_v34 }
 0x705   :  { %v3507_v2 = vadd.f32 %v3506_v40, %v3417_v39 }
 0x706   :  { %v3973_v17 = vunpack.c.l.b16 %v3731_v25  ;;  %v3974_v60 = vunpack.c.h.b16 %v3731_v25 }
 0x707   :  { %v3595_v51 = vpop.f32.mrf.mxu0 }
 0x708   :  { %v9345_v7 = vadd.f32 %v3595_v51, %v3507_v2 }
 0x709   :  { %v3671_v16 = vpop.f32.mrf.mxu1 }
 0x70a   :  { %v3672_v57 = vadd.f32 %v3671_v16, %v3583_v9 }
 0x70c   :  { %v3732_v55 = vpack.c.bf16 %v3672_v57, %v9183_v63  ;;  %v9348_v20 = vpop.f32.mrf.mxu2  ;;  %v3508_v27 = vpop.f32.mrf.mxu3 }
 0x70e   :  { %v3975_v3 = vunpack.c.l.b16 %v3732_v55  ;;  %v3976_v32 = vunpack.c.h.b16 %v3732_v55 }
 0x70f   :  { %v9351_v13 = vpop.f32.mrf.mxu0 }
 0x710   :  { %v4025_v56 = vpack.c.b16 %v3975_v3, %v3973_v17  ;;  %v4026_v30 = vpack.c.b16 %v3976_v32, %v3974_v60  ;;  %v3504_v17 = vadd.f32 %v3503_v37, %v3414_v45 }
 0x711   :  { %v3674_v42 = vpop.f32.mrf.mxu1 }
 0x712   :  { %v3675_v63 = vadd.f32 %v3674_v42, %v3586_v5  ;;  %v3593_v32 = vadd.f32 %v3592_v6, %v3504_v17 }
 0x714   :  { %6210 = vmatmul.msk.bf16.gmra.mxu1 %vm2958_vm8, %v9192_v1  ;;  %v3422_v21 = vpop.f32.mrf.mxu2  ;;  %v3511_v14 = vpop.f32.mrf.mxu3  ;;  %v3733_v39 = vpack.c.bf16 %v3675_v63, %v9195_v46 }
 0x715   :  { %v3512_v53 = vadd.f32 %v3511_v14, %v3422_v21 }
 0x716   :  { %v3977_v16 = vunpack.c.l.b16 %v3733_v39  ;;  %v3978_v25 = vunpack.c.h.b16 %v3733_v39 }
 0x717   :  { %v3600_v9 = vpop.f32.mrf.mxu0 }
 0x718   :  { %v9356_v2 = vadd.f32 %v3600_v9, %v3512_v53  ;;  %v3509_v53 = vadd.f32 %v3508_v27, %v9348_v20 }
 0x719   :  { %v3676_v61 = vpop.f32.mrf.mxu1 }
 0x71a   :  { %v3677_v40 = vadd.f32 %v3676_v61, %v3588_v44  ;;  %v3598_v39 = vadd.f32 %v9351_v13, %v3509_v53 }
 0x71c   :  { %v3734_v24 = vpack.c.bf16 %v3677_v40, %v9202_v38  ;;  %v9359_v57 = vpop.f32.mrf.mxu2  ;;  %v9361_v1 = vpop.f32.mrf.mxu3 }
 0x71e   :  { %v3979_v36 = vunpack.c.l.b16 %v3734_v24  ;;  %v3980_v62 = vunpack.c.h.b16 %v3734_v24 }
 0x71f   :  { %v9363_v46 = vpop.f32.mrf.mxu0 }
 0x720   :  { %v4027_v51 = vpack.c.b16 %v3979_v36, %v3977_v16  ;;  %v4028_v28 = vpack.c.b16 %v3980_v62, %v3978_v25  ;;  %v3514_v36 = vadd.f32 %v9361_v1, %v9359_v57 }
 0x721   :  { %v3679_v55 = vpop.f32.mrf.mxu1 }
 0x722   :  { %v3680_v54 = vadd.f32 %v3679_v55, %v3591_v10  ;;  %4077 = vmatpush.bf16.msra.mxu2 %v4027_v51  ;;  %4255 = vmatpush.bf16.msrb.mxu0 %v4028_v28  ;;  %v6221_v28 = vld [vmem:[%s10341_s4 + $0x10] sm:$0xf]  ;;  %v6496_v55 = vld [vmem:[%s10341_s4 + $0x14] sm:$0xf0] }
 0x724   :  { %v3735_v60 = vpack.c.bf16 %v3680_v54, %v9205_v33  ;;  %v3427_v38 = vpop.f32.mrf.mxu2  ;;  %v3516_v3 = vpop.f32.mrf.mxu3 }
 0x725   :  { %v3517_v42 = vadd.f32 %v3516_v3, %v3427_v38 }
 0x726   :  { %4078 = vmatpush.bf16.msra.mxu2 %v4025_v56  ;;  %4256 = vmatpush.bf16.msrb.mxu0 %v4026_v30  ;;  %v3981_v45 = vunpack.c.l.b16 %v3735_v60  ;;  %v3982_v37 = vunpack.c.h.b16 %v3735_v60 }
 0x727   :  { %v3605_v10 = vpop.f32.mrf.mxu0 }
 0x728   :  { %v9368_v63 = vadd.f32 %v3605_v10, %v3517_v42 }
 0x729   :  { %v3681_v5 = vpop.f32.mrf.mxu1 }
 0x72a   :  { %v3682_v34 = vadd.f32 %v3681_v5, %v3593_v32  ;;  %4079 = vmatpush.bf16.msra.mxu2 %v9338_v15  ;;  %4257 = vmatpush.bf16.msrb.mxu0 %v9340_v35 }
 0x72c   :  { %v3736_v21 = vpack.c.bf16 %v3682_v34, %v9211_v19  ;;  %v3429_v6 = vpop.f32.mrf.mxu2  ;;  %v3518_v30 = vpop.f32.mrf.mxu3 }
 0x72d   :  { %v3519_v32 = vadd.f32 %v3518_v30, %v3429_v6 }
 0x72e   :  { %v3983_v33 = vunpack.c.l.b16 %v3736_v21  ;;  %v3984_v56 = vunpack.c.h.b16 %v3736_v21  ;;  %4080 = vmatpush.bf16.msra.mxu2 %v9330_v26  ;;  %4258 = vmatpush.bf16.msrb.mxu0 %v9332_v59 }
 0x72f   :  { %v3607_v19 = vpop.f32.mrf.mxu0 }
 0x730   :  { %v9373_v14 = vpack.c.b16 %v3983_v33, %v3981_v45  ;;  %v9375_v15 = vpack.c.b16 %v3984_v56, %v3982_v37  ;;  %v3608_v34 = vadd.f32 %v3607_v19, %v3519_v32  ;;  %v6229_v37 = vld [vmem:[%s10341_s4 + $0x20] sm:$0xf]  ;;  %v6498_v33 = vld [vmem:[%s10341_s4 + $0x24] sm:$0xf0] }
 0x731   :  { %v3684_v35 = vpop.f32.mrf.mxu1  ;;  %v6502_v32 = vld [vmem:[%s10341_s4 + $0x44] sm:$0xf0] }
 0x732   :  { %v3685_v44 = vadd.f32 %v3684_v35, %v9345_v7  ;;  %4081 = vmatpush.bf16.msra.mxu2 %v9317_v12  ;;  %4259 = vmatpush.bf16.msrb.mxu0 %v9319_v47  ;;  %v6213_v12 = vld [vmem:[%s10341_s4] sm:$0xf] }
 0x734   :  { %v3737_v26 = vpack.c.bf16 %v3685_v44, %v9214_v58  ;;  %v3432_v59 = vpop.f32.mrf.mxu2  ;;  %v3521_v61 = vpop.f32.mrf.mxu3  ;;  %v6494_v58 = vld [vmem:[%s10341_s4 + $0x4] sm:$0xf0] }
 0x735   :  { %v3522_v40 = vadd.f32 %v3521_v61, %v3432_v59  ;;  %v9394_v20 = vor.u32 %v6494_v58, %v6213_v12 }
 0x736   :  { %4082 = vmatpush.bf16.msra.mxu2 %v9306_v41  ;;  %4260 = vmatpush.bf16.msrb.mxu0 %v9308_v49  ;;  %v3985_v27 = vunpack.c.l.b16 %v3737_v26  ;;  %v3986_v13 = vunpack.c.h.b16 %v3737_v26 }
 0x737   :  { %v3610_v41 = vpop.f32.mrf.mxu0 }
 0x738   :  { %v3611_v49 = vadd.f32 %v3610_v41, %v3522_v40 }
 0x739   :  { %v3686_v9 = vpop.f32.mrf.mxu1 }
 0x73a   :  { %v3687_v7 = vadd.f32 %v3686_v9, %v3598_v39  ;;  %4083 = vmatpush.bf16.msra.mxu2 %v9295_v43  ;;  %4261 = vmatpush.bf16.msrb.mxu0 %v9297_v11 }
 0x73c   :  { %v3738_v47 = vpack.c.bf16 %v3687_v7, %v9220_v48  ;;  %v3434_v42 = vpop.f32.mrf.mxu2  ;;  %v3523_v5 = vpop.f32.mrf.mxu3 }
 0x73e   :  { %v3987_v24 = vunpack.c.l.b16 %v3738_v47  ;;  %v3988_v43 = vunpack.c.h.b16 %v3738_v47  ;;  %4084 = vmatpush.bf16.msra.mxu2 %v9284_v50  ;;  %4262 = vmatpush.bf16.msrb.mxu0 %v9286_v23  ;;  %v3603_v50 = vadd.f32 %v9363_v46, %v3514_v36  ;;  %v6237_v47 = vld [vmem:[%s10341_s4 + $0x30] sm:$0xf] }
 0x73f   :  { %v3612_v21 = vpop.f32.mrf.mxu0 }
 0x740   :  { %v9398_v11 = vpack.c.b16 %v3987_v24, %v3985_v27  ;;  %v9400_v16 = vpack.c.b16 %v3988_v43, %v3986_v13  ;;  %v6500_v27 = vld [vmem:[%s10341_s4 + $0x34] sm:$0xf0] }
 0x741   :  { %v3689_v25 = vpop.f32.mrf.mxu1  ;;  %4085 = vmatmul.bf16.vlgmr.msra.gmra.mxu2 %v9394_v20  ;;  %4263 = vmatmul.bf16.vlgmr.msrb.gmra.mxu0 %v9394_v20  ;;  %v9449_v43 = vor.u32 %v6500_v27, %v6237_v47 }
 0x742   :  { %v3690_v48 = vadd.f32 %v3689_v25, %v9356_v2  ;;  %v9416_v2 = vor.u32 %v6496_v55, %v6221_v28 }
 0x744   :  { %v3739_v62 = vpack.c.bf16 %v3690_v48, %v9223_v0  ;;  %v3437_v44 = vpop.f32.mrf.mxu2  ;;  %v3526_v19 = vpop.f32.mrf.mxu3 }
 0x746   :  { %v3989_v17 = vunpack.c.l.b16 %v3739_v62  ;;  %v3990_v57 = vunpack.c.h.b16 %v3739_v62 }
 0x747   :  { %v3615_v39 = vpop.f32.mrf.mxu0 }
 0x749   :  { %v3691_v51 = vpop.f32.mrf.mxu1 }
 0x74a   :  { %v3692_v23 = vadd.f32 %v3691_v51, %v3603_v50 }
 0x74c   :  { %v3740_v54 = vpack.c.bf16 %v3692_v23, %v9229_v22  ;;  %v3439_v7 = vpop.f32.mrf.mxu2  ;;  %v3528_v58 = vpop.f32.mrf.mxu3 }
 0x74d   :  { %v3529_v55 = vadd.f32 %v3528_v58, %v3439_v7  ;;  %v6504_v7 = vld [vmem:[%s10341_s4 + $0x54] sm:$0xf0] }
 0x74e   :  { %v3991_v1 = vunpack.c.l.b16 %v3740_v54  ;;  %v3992_v0 = vunpack.c.h.b16 %v3740_v54  ;;  %v10596_v58 = vld [vmem:[#allocation37_spill] sm:$0xff] }
 0x74f   :  { %v3617_v24 = vpop.f32.mrf.mxu0 }
 0x750   :  { %v9418_v60 = vpack.c.b16 %v3991_v1, %v3989_v17  ;;  %v9420_v46 = vpack.c.b16 %v3992_v0, %v3990_v57  ;;  %v3618_v57 = vadd.f32 %v3617_v24, %v3529_v55 }
 0x751   :  { %v3694_v38 = vpop.f32.mrf.mxu1  ;;  %4090 = vmatmul.bf16.gmra.mxu2 %v9416_v2  ;;  %4268 = vmatmul.bf16.gmra.mxu0 %v9416_v2 }
 0x752   :  { %v3695_v3 = vadd.f32 %v3694_v38, %v9368_v63  ;;  %v9433_v63 = vor.u32 %v6498_v33, %v6229_v37 }
 0x754   :  { %v3741_v22 = vpack.c.bf16 %v3695_v3, %v9232_v31  ;;  %v3442_v28 = vpop.f32.mrf.mxu2  ;;  %v6245_v3 = vld [vmem:[%s10341_s4 + $0x40] sm:$0xf] }
 0x756   :  { %v3993_v6 = vunpack.c.l.b16 %v3741_v22  ;;  %v3994_v31 = vunpack.c.h.b16 %v3741_v22 }
 0x757   :  { %v3620_v17 = vpop.f32.mrf.mxu0 }
 0x759   :  { %v3696_v10 = vpop.f32.mrf.mxu1 }
 0x75a   :  { %v3697_v45 = vadd.f32 %v3696_v10, %v3608_v34  ;;  %v9465_v10 = vor.u32 %v6502_v32, %v6245_v3  ;;  %v6261_v3 = vld [vmem:[%s10341_s4 + $0x60] sm:$0xf]  ;;  %v6506_v32 = vld [vmem:[%s10341_s4 + $0x64] sm:$0xf0] }
 0x75c   :  { %v3742_v56 = vpack.c.bf16 %v3697_v45, %v9238_v4  ;;  %v3524_v4 = vadd.f32 %v3523_v5, %v3434_v42  ;;  %v3444_v42 = vpop.f32.mrf.mxu2 }
 0x75e   :  { %v3995_v30 = vunpack.c.l.b16 %v3742_v56  ;;  %v3996_v35 = vunpack.c.h.b16 %v3742_v56  ;;  %v3613_v9 = vadd.f32 %v3612_v21, %v3524_v4 }
 0x760   :  { %v9435_v53 = vpack.c.b16 %v3995_v30, %v3993_v6  ;;  %v9437_v26 = vpack.c.b16 %v3996_v35, %v3994_v31  ;;  %v3622_v6 = vpop.f32.mrf.mxu0 }
 0x761   :  { %v3699_v59 = vpop.f32.mrf.mxu1  ;;  %4095 = vmatmul.bf16.gmra.mxu2 %v9433_v63  ;;  %4273 = vmatmul.bf16.gmra.mxu0 %v9433_v63 }
 0x762   :  { %v3700_v61 = vadd.f32 %v3699_v59, %v3611_v49  ;;  %v3527_v49 = vadd.f32 %v3526_v19, %v3437_v44 }
 0x764   :  { %v3743_v40 = vpack.c.bf16 %v3700_v61, %v9241_v18  ;;  %v3616_v23 = vadd.f32 %v3615_v39, %v3527_v49  ;;  %v3447_v44 = vpop.f32.mrf.mxu2  ;;  %v10595_v39 = vld [vmem:[#allocation34_spill] sm:$0xff] }
 0x766   :  { %v3997_v18 = vunpack.c.l.b16 %v3743_v40  ;;  %v3998_v25 = vunpack.c.h.b16 %v3743_v40 }
 0x769   :  { %v3701_v12 = vpop.f32.mrf.mxu1 }
 0x76a   :  { %v3702_v41 = vadd.f32 %v3701_v12, %v3613_v9  ;;  %v6253_v9 = vld [vmem:[%s10341_s4 + $0x50] sm:$0xf]  ;;  %v3625_v12 = vpop.f32.mrf.mxu0 }
 0x76b   :  { %v9477_v27 = vor.u32 %v6504_v7, %v6253_v9 }
 0x76c   :  { %v3744_v13 = vpack.c.bf16 %v3702_v41, %v9247_v29  ;;  %v3531_v29 = vpop.f32.mrf.mxu3 }
 0x76d   :  { %v3532_v5 = vadd.f32 %v3531_v29, %v3442_v28 }
 0x76e   :  { %v3999_v48 = vunpack.c.l.b16 %v3744_v13  ;;  %v4000_v36 = vunpack.c.h.b16 %v3744_v13 }
 0x76f   :  { %v3621_v30 = vadd.f32 %v3620_v17, %v3532_v5  ;;  %v9489_v5 = vor.u32 %v6506_v32, %v6261_v3  ;;  %v6592_v32 = vld [vmem:[%s10342_s15 + $0x38] sm:$0xff] }
 0x770   :  { %v9451_v62 = vpack.c.b16 %v3999_v48, %v3997_v18  ;;  %v9453_v50 = vpack.c.b16 %v4000_v36, %v3998_v25  ;;  %v3449_v25 = vpop.f32.mrf.mxu2  ;;  %4682 = vmatpush.bf16.msrb.mxu2 %v6592_v32 }
 0x771   :  { %v3704_v51 = vpop.f32.mrf.mxu1  ;;  %4100 = vmatmul.bf16.gmra.mxu2 %v9449_v43  ;;  %4278 = vmatmul.bf16.gmra.mxu0 %v9449_v43 }
 0x772   :  { %v3705_v54 = vadd.f32 %v3704_v51, %v3616_v23  ;;  %v3627_v55 = vpop.f32.mrf.mxu0 }
 0x774   :  { %v3745_v0 = vpack.c.bf16 %v3705_v54, %v9250_v8  ;;  %v3533_v34 = vpop.f32.mrf.mxu3 }
 0x775   :  { %v3534_v35 = vadd.f32 %v3533_v34, %v3444_v42 }
 0x776   :  { %v4001_v21 = vunpack.c.l.b16 %v3745_v0  ;;  %v4002_v45 = vunpack.c.h.b16 %v3745_v0 }
 0x777   :  { %v3623_v59 = vadd.f32 %v3622_v6, %v3534_v35 }
 0x779   :  { %v3706_v1 = vpop.f32.mrf.mxu1 }
 0x77a   :  { %v3707_v38 = vadd.f32 %v3706_v1, %v3618_v57  ;;  %v10597_v1 = vld [vmem:[#allocation38_spill] sm:$0xff] }
 0x77c   :  { %v3746_v22 = vpack.c.bf16 %v3707_v38, %v9256_v52  ;;  %v3536_v19 = vpop.f32.mrf.mxu3 }
 0x77d   :  { %v3537_v47 = vadd.f32 %v3536_v19, %v3447_v44 }
 0x77e   :  { %v4003_v37 = vunpack.c.l.b16 %v3746_v22  ;;  %v4004_v8 = vunpack.c.h.b16 %v3746_v22  ;;  %v10598_v22 = vld [vmem:[#allocation41_spill] sm:$0xff] }
 0x77f   :  { %v3626_v28 = vadd.f32 %v3625_v12, %v3537_v47  ;;  %v6301_v47 = vld [vmem:[%s10341_s4 + $0xb0] sm:$0xf] }
 0x780   :  { %v4039_v33 = vpack.c.b16 %v4003_v37, %v4001_v21  ;;  %v4040_v56 = vpack.c.b16 %v4004_v8, %v4002_v45 }
 0x781   :  { %v3709_v31 = vpop.f32.mrf.mxu1  ;;  %4105 = vmatmul.bf16.gmra.mxu2 %v9465_v10  ;;  %4283 = vmatmul.bf16.gmra.mxu0 %v9465_v10 }
 0x782   :  { %v3710_v52 = vadd.f32 %v3709_v31, %v3621_v30  ;;  %v6269_v31 = vld [vmem:[%s10341_s4 + $0x70] sm:$0xf]  ;;  %v6508_v30 = vld [vmem:[%s10341_s4 + $0x74] sm:$0xf0] }
 0x783   :  { %v9499_v35 = vor.u32 %v6508_v30, %v6269_v31 }
 0x784   :  { %v3747_v4 = vpack.c.bf16 %v3710_v52, %v10595_v39  ;;  %v3538_v51 = vpop.f32.mrf.mxu3  ;;  %v6293_v39 = vld [vmem:[%s10341_s4 + $0xa0] sm:$0xf] }
 0x785   :  { %v3539_v29 = vadd.f32 %v3538_v51, %v3449_v25  ;;  %v6501_v25 = vld [vmem:[%s10341_s4 + $0x44] sm:$0xf]  ;;  %v6309_v51 = vld [vmem:[%s10341_s4 + $0xc0] sm:$0xf] }
 0x786   :  { %v4005_v13 = vunpack.c.l.b16 %v3747_v4  ;;  %v4006_v49 = vunpack.c.h.b16 %v3747_v4  ;;  %v6514_v4 = vld [vmem:[%s10341_s4 + $0xa4] sm:$0xf0] }
 0x787   :  { %v3628_v17 = vadd.f32 %v3627_v55, %v3539_v29  ;;  %v9575_v7 = vor.u32 %v6514_v4, %v6293_v39  ;;  %v6585_v4 = vld [vmem:[%s10342_s15] sm:$0xff] }
 0x789   :  { %v3711_v61 = vpop.f32.mrf.mxu1 }
 0x78a   :  { %v3712_v40 = vadd.f32 %v3711_v61, %v3623_v59  ;;  %v6497_v59 = vld [vmem:[%s10341_s4 + $0x24] sm:$0xf]  ;;  %v6231_v61 = vld [vmem:[%s10341_s4 + $0x28] sm:$0xf0] }
 0x78b   :  { %v9573_v9 = vor.u32 %v6497_v59, %v6231_v61 }
 0x78c   :  { %v3748_v41 = vpack.c.bf16 %v3712_v40, %v10596_v58  ;;  %v6499_v58 = vld [vmem:[%s10341_s4 + $0x34] sm:$0xf] }
 0x78e   :  { %v4007_v24 = vunpack.c.l.b16 %v3748_v41  ;;  %v4008_v18 = vunpack.c.h.b16 %v3748_v41  ;;  %v6239_v41 = vld [vmem:[%s10341_s4 + $0x38] sm:$0xf0] }
 0x790   :  { %v4041_v48 = vpack.c.b16 %v4007_v24, %v4005_v13  ;;  %v4042_v36 = vpack.c.b16 %v4008_v18, %v4006_v49  ;;  %v6516_v13 = vld [vmem:[%s10341_s4 + $0xb4] sm:$0xf0]  ;;  %v9595_v49 = vor.u32 %v6499_v58, %v6239_v41  ;;  %v6509_v41 = vld [vmem:[%s10341_s4 + $0x84] sm:$0xf] }
 0x791   :  { %v3714_v23 = vpop.f32.mrf.mxu1  ;;  %4110 = vmatmul.bf16.gmra.mxu2 %v9477_v27  ;;  %4288 = vmatmul.bf16.gmra.mxu0 %v9477_v27  ;;  %v9597_v24 = vor.u32 %v6516_v13, %v6301_v47  ;;  %v6279_v47 = vld [vmem:[%s10341_s4 + $0x88] sm:$0xf0] }
 0x792   :  { %v3715_v54 = vadd.f32 %v3714_v23, %v3626_v28  ;;  %v6518_v23 = vld [vmem:[%s10341_s4 + $0xc4] sm:$0xf0]  ;;  %v9725_v13 = vor.u32 %v6509_v41, %v6279_v47 }
 0x793   :  { %v9621_v29 = vor.u32 %v6518_v23, %v6309_v51 }
 0x794   :  { %v3749_v0 = vpack.c.bf16 %v3715_v54, %v10597_v1  ;;  %v6503_v54 = vld [vmem:[%s10341_s4 + $0x54] sm:$0xf]  ;;  %v6520_v1 = vld [vmem:[%s10341_s4 + $0xd4] sm:$0xf0]  ;;  %10601 = vst [vmem:[#allocation48_spill] sm:$0xff] %v9725_v13 }
 0x796   :  { %v4009_v34 = vunpack.c.l.b16 %v3749_v0  ;;  %v4010_v21 = vunpack.c.h.b16 %v3749_v0 }
 0x799   :  { %v3716_v57 = vpop.f32.mrf.mxu1 }
 0x79a   :  { %v3717_v38 = vadd.f32 %v3716_v57, %v3628_v17  ;;  %v6255_v17 = vld [vmem:[%s10341_s4 + $0x58] sm:$0xf0]  ;;  %v6317_v57 = vld [vmem:[%s10341_s4 + $0xd0] sm:$0xf] }
 0x79b   :  { %v9640_v0 = vor.u32 %v6503_v54, %v6255_v17  ;;  %v9644_v3 = vor.u32 %v6520_v1, %v6317_v57  ;;  %v6511_v57 = vld [vmem:[%s10341_s4 + $0x94] sm:$0xf]  ;;  %v6287_v1 = vld [vmem:[%s10341_s4 + $0x98] sm:$0xf0] }
 0x79c   :  { %v3750_v42 = vpack.c.bf16 %v3717_v38, %v10598_v22  ;;  %v6591_v22 = vld [vmem:[%s10342_s15 + $0x30] sm:$0xff] }
 0x79d   :  { %4683 = vmatpush.bf16.msrb.mxu2 %v6591_v22 }
 0x79e   :  { %v4011_v45 = vunpack.c.l.b16 %v3750_v42  ;;  %v4012_v37 = vunpack.c.h.b16 %v3750_v42 }
 0x7a0   :  { %v4043_v8 = vpack.c.b16 %v4011_v45, %v4009_v34  ;;  %v4044_v6 = vpack.c.b16 %v4012_v37, %v4010_v21  ;;  %v6590_v34 = vld [vmem:[%s10342_s15 + $0x28] sm:$0xff]  ;;  %v6505_v21 = vld [vmem:[%s10341_s4 + $0x64] sm:$0xf]  ;;  %v6325_v37 = vld [vmem:[%s10341_s4 + $0xe0] sm:$0xf] }
 0x7a1   :  { %4115 = vmatmul.bf16.gmra.mxu2 %v9489_v5  ;;  %4293 = vmatmul.bf16.gmra.mxu0 %v9489_v5  ;;  %v6263_v45 = vld [vmem:[%s10341_s4 + $0x68] sm:$0xf0] }
 0x7a2   :  { %4166 = vmatpush.bf16.msrb.mxu3 %v4043_v8  ;;  %4344 = vmatpush.bf16.msrb.mxu1 %v4044_v6  ;;  %v6522_v8 = vld [vmem:[%s10341_s4 + $0xe4] sm:$0xf0]  ;;  %v6589_v6 = vld [vmem:[%s10342_s15 + $0x20] sm:$0xff]  ;;  %v9675_v31 = vor.u32 %v6505_v21, %v6263_v45  ;;  %v9751_v45 = vor.u32 %v6511_v57, %v6287_v1  ;;  %v6515_v1 = vld [vmem:[%s10341_s4 + $0xb4] sm:$0xf] }
 0x7a3   :  { %4684 = vmatpush.bf16.msrb.mxu2 %v6590_v34  ;;  %v9677_v30 = vor.u32 %v6522_v8, %v6325_v37 }
 0x7a4   :  { %10602 = vst [vmem:[#allocation49_spill] sm:$0xff] %v9751_v45 }
 0x7a5   :  { %10599 = vst [vmem:[#allocation44_spill] sm:$0xff] %v9677_v30 }
 0x7a6   :  { %4167 = vmatpush.bf16.msrb.mxu3 %v4041_v48  ;;  %4345 = vmatpush.bf16.msrb.mxu1 %v4042_v36  ;;  %v6247_v36 = vld [vmem:[%s10341_s4 + $0x48] sm:$0xf0] }
 0x7a7   :  { %v9619_v28 = vor.u32 %v6501_v25, %v6247_v36  ;;  %4685 = vmatpush.bf16.msrb.mxu2 %v6589_v6  ;;  %v9732_v36 = vld [vmem:[%s10343_s14] sm:$0x3] }
 0x7a8   :  { %v9737_v51 = vperm.slane %v9732_v36, 0 }
 0x7aa   :  { %4168 = vmatpush.bf16.msrb.mxu3 %v4039_v33  ;;  %4346 = vmatpush.bf16.msrb.mxu1 %v4040_v56  ;;  %v6493_v33 = vld [vmem:[%s10341_s4 + $0x4] sm:$0xf] }
 0x7ae   :  { %4169 = vmatpush.bf16.msrb.mxu3 %v9451_v62  ;;  %4347 = vmatpush.bf16.msrb.mxu1 %v9453_v50  ;;  %v6215_v62 = vld [vmem:[%s10341_s4 + $0x8] sm:$0xf0]  ;;  %v6512_v50 = vld [vmem:[%s10341_s4 + $0x94] sm:$0xf0] }
 0x7b1   :  { %4120 = vmatmul.bf16.gmra.mxu2 %v9499_v35  ;;  %4298 = vmatmul.bf16.gmra.mxu0 %v9499_v35 }
 0x7b2   :  { %4170 = vmatpush.bf16.msrb.mxu3 %v9435_v53  ;;  %4348 = vmatpush.bf16.msrb.mxu1 %v9437_v26  ;;  %v6277_v53 = vld [vmem:[%s10341_s4 + $0x80] sm:$0xf] }
 0x7b6   :  { %4171 = vmatpush.bf16.msrb.mxu3 %v9418_v60  ;;  %4349 = vmatpush.bf16.msrb.mxu1 %v9420_v46  ;;  %v6510_v60 = vld [vmem:[%s10341_s4 + $0x84] sm:$0xf0]  ;;  %v9523_v46 = vor.u32 %v6493_v33, %v6215_v62  ;;  %v6588_v62 = vld [vmem:[%s10342_s15 + $0x18] sm:$0xff] }
 0x7b7   :  { %v9525_v26 = vor.u32 %v6510_v60, %v6277_v53  ;;  %4686 = vmatpush.bf16.msrb.mxu2 %v6588_v62  ;;  %v6587_v53 = vld [vmem:[%s10342_s15 + $0x10] sm:$0xff] }
 0x7b8   :  { %v6507_v60 = vld [vmem:[%s10341_s4 + $0x74] sm:$0xf] }
 0x7ba   :  { %4172 = vmatpush.bf16.msrb.mxu3 %v9398_v11  ;;  %4350 = vmatpush.bf16.msrb.mxu1 %v9400_v16  ;;  %v6495_v16 = vld [vmem:[%s10341_s4 + $0x14] sm:$0xf] }
 0x7bb   :  { %4687 = vmatpush.bf16.msrb.mxu2 %v6587_v53 }
 0x7be   :  { %4173 = vmatpush.bf16.msrb.mxu3 %v9373_v14  ;;  %4351 = vmatpush.bf16.msrb.mxu1 %v9375_v15  ;;  %v6223_v14 = vld [vmem:[%s10341_s4 + $0x18] sm:$0xf0]  ;;  %v6285_v15 = vld [vmem:[%s10341_s4 + $0x90] sm:$0xf] }
 0x7bf   :  { %v9549_v52 = vor.u32 %v6495_v16, %v6223_v14  ;;  %v9551_v44 = vor.u32 %v6512_v50, %v6285_v15  ;;  %v6271_v16 = vld [vmem:[%s10341_s4 + $0x78] sm:$0xf0]  ;;  %v6333_v14 = vld [vmem:[%s10341_s4 + $0xf0] sm:$0xf]  ;;  %v6524_v15 = vld [vmem:[%s10341_s4 + $0xf4] sm:$0xf0] }
 0x7c0   :  { %v6586_v50 = vld [vmem:[%s10342_s15 + $0x8] sm:$0xff]  ;;  %v9707_v61 = vor.u32 %v6507_v60, %v6271_v16  ;;  %v9709_v39 = vor.u32 %v6524_v15, %v6333_v14 }
 0x7c1   :  { %4174 = vmatmul.bf16.vlgmr.msrb.gmra.mxu3 %v9523_v46  ;;  %4125 = vmatmul.bf16.gmra.mxu2 %v9525_v26  ;;  %v6295_v60 = vld [vmem:[%s10341_s4 + $0xa8] sm:$0xf0] }
 0x7c2   :  { %4352 = vmatmul.bf16.vlgmr.msrb.gmra.mxu1 %v9523_v46  ;;  %4303 = vmatmul.bf16.gmra.mxu0 %v9525_v26  ;;  %10600 = vst [vmem:[#allocation45_spill] sm:$0xff] %v9707_v61 }
 0x7c3   :  { %4688 = vmatpush.bf16.msrb.mxu2 %v6586_v50 }
 0x7c4   :  { %v9533_v11 = vpop.f32.mrf.mxu2 }
 0x7c5   :  { %v4087_v54 = vadd.f32 %v9533_v11, %v9737_v51 }
 0x7c7   :  { %4689 = vmatpush.bf16.msrb.mxu2 %v6585_v4 }
 0x7cc   :  { %v9547_v56 = vpop.f32.mrf.mxu2 }
 0x7cd   :  { %v4089_v32 = vadd.f32 %v9547_v56, %v9737_v51  ;;  %v6513_v56 = vld [vmem:[%s10341_s4 + $0xa4] sm:$0xf] }
 0x7ce   :  { %v9769_v41 = vor.u32 %v6513_v56, %v6295_v60 }
 0x7d0   :  { %10603 = vst [vmem:[#allocation52_spill] sm:$0xff] %v9769_v41 }
 0x7d1   :  { %4179 = vmatmul.bf16.gmra.mxu3 %v9549_v52  ;;  %4130 = vmatmul.bf16.gmra.mxu2 %v9551_v44 }
 0x7d2   :  { %4357 = vmatmul.bf16.gmra.mxu1 %v9549_v52  ;;  %4308 = vmatmul.bf16.gmra.mxu0 %v9551_v44 }
 0x7d4   :  { %v9557_v19 = vpop.f32.mrf.mxu2 }
 0x7d5   :  { %v4092_v53 = vadd.f32 %v9557_v19, %v9737_v51 }
 0x7dc   :  { %v9571_v40 = vpop.f32.mrf.mxu2 }
 0x7dd   :  { %v4094_v16 = vadd.f32 %v9571_v40, %v9737_v51 }
 0x7e1   :  { %4184 = vmatmul.bf16.gmra.mxu3 %v9573_v9  ;;  %4135 = vmatmul.bf16.gmra.mxu2 %v9575_v7 }
 0x7e2   :  { %4362 = vmatmul.bf16.gmra.mxu1 %v9573_v9  ;;  %4313 = vmatmul.bf16.gmra.mxu0 %v9575_v7 }
 0x7e4   :  { %v9581_v12 = vpop.f32.mrf.mxu2 }
 0x7e5   :  { %v4097_v57 = vadd.f32 %v9581_v12, %v9737_v51 }
 0x7ec   :  { %v9599_v18 = vpop.f32.mrf.mxu2 }
 0x7f1   :  { %4189 = vmatmul.bf16.gmra.mxu3 %v9595_v49  ;;  %4140 = vmatmul.bf16.gmra.mxu2 %v9597_v24 }
 0x7f2   :  { %4367 = vmatmul.bf16.gmra.mxu1 %v9595_v49  ;;  %4318 = vmatmul.bf16.gmra.mxu0 %v9597_v24 }
 0x7f4   :  { %v9608_v48 = vpop.f32.mrf.mxu2 }
 0x7f5   :  { %v4102_v60 = vadd.f32 %v9608_v48, %v9737_v51 }
 0x7fc   :  { %v9626_v55 = vpop.f32.mrf.mxu2 }
 0x801   :  { %4194 = vmatmul.bf16.gmra.mxu3 %v9619_v28  ;;  %4145 = vmatmul.bf16.gmra.mxu2 %v9621_v29 }
 0x802   :  { %4372 = vmatmul.bf16.gmra.mxu1 %v9619_v28 }
 0x804   :  { %v9642_v38 = vpop.f32.mrf.mxu2 }
 0x80c   :  { %v9655_v42 = vpop.f32.mrf.mxu2 }
 0x811   :  { %4199 = vmatmul.bf16.gmra.mxu3 %v9640_v0  ;;  %4150 = vmatmul.bf16.gmra.mxu2 %v9644_v3 }
 0x812   :  { %4377 = vmatmul.bf16.gmra.mxu1 %v9640_v0 }
 0x814   :  { %v9680_v33 = vpop.f32.mrf.mxu2 }
 0x81c   :  { %v9705_v59 = vpop.f32.mrf.mxu2 }
 0x821   :  { %4204 = vmatmul.bf16.gmra.mxu3 %v9675_v31  ;;  %4155 = vmatmul.bf16.gmra.mxu2 %v9677_v30 }
 0x822   :  { %4382 = vmatmul.bf16.gmra.mxu1 %v9675_v31 }
 0x824   :  { %v9717_v58 = vpop.f32.mrf.mxu2 }
 0x82c   :  { %v9727_v25 = vpop.f32.mrf.mxu2 }
 0x831   :  { %4209 = vmatmul.bf16.gmra.mxu3 %v9707_v61  ;;  %4160 = vmatmul.bf16.gmra.mxu2 %v9709_v39 }
 0x832   :  { %4387 = vmatmul.bf16.gmra.mxu1 %v9707_v61 }
 0x834   :  { %v9741_v17 = vpop.f32.mrf.mxu2 }
 0x83c   :  { %v9755_v6 = vpop.f32.mrf.mxu2 }
 0x841   :  { %4214 = vmatmul.bf16.gmra.mxu3 %v9725_v13 }
 0x842   :  { %4392 = vmatmul.bf16.gmra.mxu1 %v9725_v13 }
 0x844   :  { %v4175_v23 = vpop.f32.mrf.mxu3  ;;  %v9767_v50 = vpop.f32.mrf.mxu2 }
 0x845   :  { %v4176_v22 = vadd.f32 %v4175_v23, %v4087_v54 }
 0x847   :  { %v4433_v37 = vmax.f32 %v4176_v22, 0.0  ;;  %v4099_v22 = vadd.f32 %v9599_v18, %v9737_v51  ;;  %v6517_v18 = vld [vmem:[%s10341_s4 + $0xc4] sm:$0xf] }
 0x84c   :  { %v4177_v34 = vpop.f32.mrf.mxu3  ;;  %v9775_v40 = vpop.f32.mrf.mxu2 }
 0x84d   :  { %v4178_v21 = vadd.f32 %v4177_v34, %v4089_v32  ;;  %v6303_v32 = vld [vmem:[%s10341_s4 + $0xb8] sm:$0xf0] }
 0x84f   :  { %v4435_v11 = vmax.f32 %v4178_v21, 0.0 }
 0x851   :  { %v4497_v8 = vpack.c.bf16 %v4435_v11, %v4433_v37  ;;  %4219 = vmatmul.bf16.gmra.mxu3 %v9751_v45  ;;  %v9785_v11 = vor.u32 %v6515_v1, %v6303_v32  ;;  %v4553_v1 = vld [vmem:[%s10342_s15 + $0x60] sm:$0xf] }
 0x852   :  { %4397 = vmatmul.bf16.gmra.mxu1 %v9751_v45  ;;  %v4603_v32 = vunpack.c.l.b16 %v4553_v1 }
 0x853   :  { %4690 = vmatmul.bf16.vlgmr.msrb.gmra.mxu2 %v4497_v8  ;;  %10604 = vst [vmem:[#allocation55_spill] sm:$0xff] %v9785_v11 }
 0x854   :  { %v4180_v62 = vpop.f32.mrf.mxu3 }
 0x855   :  { %v4181_v14 = vadd.f32 %v4180_v62, %v4092_v53  ;;  %v9787_v62 = vpop.f32.mrf.mxu2 }
 0x857   :  { %v4437_v47 = vmax.f32 %v4181_v14, 0.0  ;;  %v4104_v14 = vadd.f32 %v9626_v55, %v9737_v51 }
 0x85c   :  { %v4182_v15 = vpop.f32.mrf.mxu3 }
 0x85d   :  { %v4183_v4 = vadd.f32 %v4182_v15, %v4094_v16  ;;  %v6311_v16 = vld [vmem:[%s10341_s4 + $0xc8] sm:$0xf0]  ;;  %v9801_v15 = vpop.f32.mrf.mxu2 }
 0x85f   :  { %v4439_v19 = vmax.f32 %v4183_v4, 0.0 }
 0x861   :  { %4224 = vmatmul.bf16.gmra.mxu3 %v9769_v41  ;;  %v4499_v23 = vpack.c.bf16 %v4439_v19, %v4437_v47 }
 0x862   :  { %4402 = vmatmul.bf16.gmra.mxu1 %v9769_v41 }
 0x863   :  { %4695 = vmatmul.bf16.gmra.mxu2 %v4499_v23  ;;  %v9803_v23 = vor.u32 %v6517_v18, %v6311_v16 }
 0x864   :  { %v4185_v54 = vpop.f32.mrf.mxu3 }
 0x865   :  { %v4186_v34 = vadd.f32 %v4185_v54, %v4097_v57  ;;  %10605 = vst [vmem:[#allocation56_spill] sm:$0xff] %v9803_v23 }
 0x867   :  { %v4441_v8 = vmax.f32 %v4186_v34, 0.0  ;;  %v9809_v34 = vpop.f32.mrf.mxu2 }
 0x86c   :  { %v4187_v21 = vpop.f32.mrf.mxu3 }
 0x86d   :  { %v4188_v37 = vadd.f32 %v4187_v21, %v4099_v22  ;;  %v4616_v22 = vpack.c.b16 %v4603_v32, %v4603_v32  ;;  %v6595_v32 = vld [vmem:[%s10342_s15 + $0x50] sm:$0xff] }
 0x86f   :  { %v4443_v12 = vmax.f32 %v4188_v37, 0.0  ;;  %v4680_v21 = vsel %vm4678_vm13, %v4616_v22, 0  ;;  %v4107_v37 = vadd.f32 %v9642_v38, %v9737_v51 }
 0x870   :  { %4774 = vmatpush.bf16.msra.mxu3 %v4680_v21  ;;  %v6594_v21 = vld [vmem:[%s10342_s15 + $0x48] sm:$0xff] }
 0x871   :  { %4229 = vmatmul.bf16.gmra.mxu3 %v9785_v11  ;;  %v4501_v53 = vpack.c.bf16 %v4443_v12, %v4441_v8  ;;  %v9813_v8 = vpop.f32.mrf.mxu0  ;;  %v9815_v12 = vpop.f32.mrf.mxu1 }
 0x872   :  { %4407 = vmatmul.bf16.gmra.mxu1 %v9785_v11 }
 0x873   :  { %4700 = vmatmul.bf16.gmra.mxu2 %v4501_v53  ;;  %v6519_v53 = vld [vmem:[%s10341_s4 + $0xd4] sm:$0xf] }
 0x874   :  { %v4190_v56 = vpop.f32.mrf.mxu3 }
 0x875   :  { %v4191_v4 = vadd.f32 %v4190_v56, %v4102_v60  ;;  %v6319_v56 = vld [vmem:[%s10341_s4 + $0xd8] sm:$0xf0]  ;;  %v4109_v60 = vadd.f32 %v9655_v42, %v9737_v51 }
 0x876   :  { %v9825_v38 = vor.u32 %v6519_v53, %v6319_v56  ;;  %v6521_v56 = vld [vmem:[%s10341_s4 + $0xe4] sm:$0xf] }
 0x877   :  { %v4445_v54 = vmax.f32 %v4191_v4, 0.0  ;;  %v9827_v4 = vpop.f32.mrf.mxu2 }
 0x878   :  { %10606 = vst [vmem:[#allocation59_spill] sm:$0xff] %v9825_v38 }
 0x879   :  { %v4355_v42 = vpop.f32.mrf.mxu1 }
 0x87c   :  { %v4192_v47 = vpop.f32.mrf.mxu3 }
 0x87d   :  { %v4193_v19 = vadd.f32 %v4192_v47, %v4104_v14 }
 0x87f   :  { %v4447_v48 = vmax.f32 %v4193_v19, 0.0 }
 0x881   :  { %4234 = vmatmul.bf16.gmra.mxu3 %v9803_v23  ;;  %v4503_v57 = vpack.c.bf16 %v4447_v48, %v4445_v54  ;;  %v4266_v54 = vpop.f32.mrf.mxu0  ;;  %4323 = vmatmul.bf16.gmra.mxu0 %v9621_v29  ;;  %v6596_v48 = vld [vmem:[%s10342_s15 + $0x58] sm:$0xff]  ;;  %v9847_v53 = vpop.f32.mrf.mxu1 }
 0x882   :  { %4412 = vmatmul.bf16.gmra.mxu1 %v9803_v23  ;;  %4775 = vmatpush.bf16.msra.mxu3 %v6596_v48 }
 0x883   :  { %4705 = vmatmul.bf16.gmra.mxu2 %v4503_v57 }
 0x884   :  { %v4195_v55 = vpop.f32.mrf.mxu3 }
 0x885   :  { %v4196_v18 = vadd.f32 %v4195_v55, %v4107_v37  ;;  %v4112_v55 = vadd.f32 %v9680_v33, %v9737_v51  ;;  %v9845_v37 = vpop.f32.mrf.mxu2  ;;  %v4114_v33 = vadd.f32 %v9705_v59, %v9737_v51 }
 0x886   :  { %4776 = vmatpush.bf16.msra.mxu3 %v6595_v32 }
 0x887   :  { %v4449_v47 = vmax.f32 %v4196_v18, 0.0 }
 0x889   :  { %v9840_v22 = vpop.f32.mrf.mxu0  ;;  %v4360_v23 = vpop.f32.mrf.mxu1 }
 0x88a   :  { %4777 = vmatpush.bf16.msra.mxu3 %v6594_v21 }
 0x88c   :  { %v4197_v16 = vpop.f32.mrf.mxu3 }
 0x88d   :  { %v4198_v14 = vadd.f32 %v4197_v16, %v4109_v60  ;;  %v6327_v60 = vld [vmem:[%s10341_s4 + $0xe8] sm:$0xf0]  ;;  %v9865_v59 = vpop.f32.mrf.mxu2 }
 0x88f   :  { %v4451_v19 = vmax.f32 %v4198_v14, 0.0  ;;  %v6593_v14 = vld [vmem:[%s10342_s15 + $0x40] sm:$0xff] }
 0x890   :  { %4778 = vmatpush.bf16.msra.mxu3 %v6593_v14 }
 0x891   :  { %4239 = vmatmul.bf16.gmra.mxu3 %v9825_v38  ;;  %v4505_v57 = vpack.c.bf16 %v4451_v19, %v4449_v47  ;;  %v9860_v19 = vor.u32 %v6521_v56, %v6327_v60  ;;  %v4271_v32 = vpop.f32.mrf.mxu0  ;;  %4328 = vmatmul.bf16.gmra.mxu0 %v9644_v3  ;;  %v9871_v60 = vpop.f32.mrf.mxu1 }
 0x892   :  { %4417 = vmatmul.bf16.gmra.mxu1 %v9825_v38  ;;  %v9886_v38 = vperm.slane %v9732_v36, 1  ;;  %v4122_v36 = vadd.f32 %v9741_v17, %v9737_v51 }
 0x893   :  { %4710 = vmatmul.bf16.gmra.mxu2 %v4505_v57  ;;  %10607 = vst [vmem:[#allocation60_spill] sm:$0xff] %v9860_v19 }
 0x894   :  { %v4200_v1 = vpop.f32.mrf.mxu3 }
 0x895   :  { %v4201_v18 = vadd.f32 %v4200_v1, %v4112_v55  ;;  %v4117_v55 = vadd.f32 %v9717_v58, %v9737_v51 }
 0x897   :  { %v4453_v48 = vmax.f32 %v4201_v18, 0.0  ;;  %v6335_v18 = vld [vmem:[%s10341_s4 + $0xf8] sm:$0xf0] }
 0x899   :  { %v9869_v56 = vpop.f32.mrf.mxu0  ;;  %v4365_v13 = vpop.f32.mrf.mxu1 }
 0x89c   :  { %v4202_v16 = vpop.f32.mrf.mxu3 }
 0x89d   :  { %v4203_v47 = vadd.f32 %v4202_v16, %v4114_v33  ;;  %v6523_v33 = vld [vmem:[%s10341_s4 + $0xf4] sm:$0xf]  ;;  %v4119_v16 = vadd.f32 %v9727_v25, %v9737_v51  ;;  %v4265_v25 = vadd.f32 %v9813_v8, %v9886_v38 }
 0x89f   :  { %v4455_v57 = vmax.f32 %v4203_v47, 0.0 }
 0x8a1   :  { %4244 = vmatmul.bf16.gmra.mxu3 %v9860_v19  ;;  %v4507_v21 = vpack.c.bf16 %v4455_v57, %v4453_v48  ;;  %v9881_v48 = vpop.f32.mrf.mxu2  ;;  %v9883_v57 = vor.u32 %v6523_v33, %v6335_v18  ;;  %v4276_v41 = vpop.f32.mrf.mxu0  ;;  %4333 = vmatmul.bf16.gmra.mxu0 %v9677_v30  ;;  %v4354_v18 = vadd.f32 %v9815_v12, %v4265_v25 }
 0x8a2   :  { %4422 = vmatmul.bf16.gmra.mxu1 %v9860_v19 }
 0x8a3   :  { %4715 = vmatmul.bf16.gmra.mxu2 %v4507_v21  ;;  %10608 = vst [vmem:[#allocation61_spill] sm:$0xff] %v9883_v57  ;;  %v4434_v8 = vmax.f32 %v4354_v18, 0.0 }
 0x8a4   :  { %v4205_v1 = vpop.f32.mrf.mxu3 }
 0x8a5   :  { %v4206_v14 = vadd.f32 %v4205_v1, %v4117_v55  ;;  %v4267_v1 = vadd.f32 %v4266_v54, %v9886_v38 }
 0x8a7   :  { %v4457_v21 = vmax.f32 %v4206_v14, 0.0 }
 0x8a9   :  { %v9896_v33 = vpop.f32.mrf.mxu2  ;;  %v9899_v14 = vpop.f32.mrf.mxu0 }
 0x8ac   :  { %v4207_v47 = vpop.f32.mrf.mxu3 }
 0x8ad   :  { %v4208_v58 = vadd.f32 %v4207_v47, %v4119_v16  ;;  %v4356_v16 = vadd.f32 %v4355_v42, %v4267_v1  ;;  %v4124_v47 = vadd.f32 %v9755_v6, %v9737_v51  ;;  %v4270_v6 = vadd.f32 %v9840_v22, %v9886_v38 }
 0x8ae   :  { %v4272_v1 = vadd.f32 %v4271_v32, %v9886_v38 }
 0x8af   :  { %v4459_v11 = vmax.f32 %v4208_v58, 0.0  ;;  %v4436_v58 = vmax.f32 %v4356_v16, 0.0  ;;  %v4359_v18 = vadd.f32 %v9847_v53, %v4270_v6  ;;  %v4275_v6 = vadd.f32 %v9869_v56, %v9886_v38 }
 0x8b0   :  { %v4361_v16 = vadd.f32 %v4360_v23, %v4272_v1 }
 0x8b1   :  { %4249 = vmatmul.bf16.gmra.mxu3 %v9883_v57  ;;  %v4509_v45 = vpack.c.bf16 %v4459_v11, %v4457_v21  ;;  %v9901_v11 = vpop.f32.mrf.mxu1  ;;  %v4498_v19 = vpack.c.bf16 %v4436_v58, %v4434_v8  ;;  %v4281_v61 = vpop.f32.mrf.mxu0  ;;  %4338 = vmatmul.bf16.gmra.mxu0 %v9709_v39  ;;  %v4438_v22 = vmax.f32 %v4359_v18, 0.0 }
 0x8b2   :  { %v9906_v12 = vpop.f32.mrf.mxu2  ;;  %v4440_v58 = vmax.f32 %v4361_v16, 0.0 }
 0x8b3   :  { %4720 = vmatmul.bf16.gmra.mxu2 %v4509_v45 }
 0x8b4   :  { %v4210_v55 = vpop.f32.mrf.mxu3 }
 0x8b5   :  { %v4211_v54 = vadd.f32 %v4210_v55, %v4122_v36  ;;  %v4127_v36 = vadd.f32 %v9767_v50, %v9737_v51 }
 0x8b7   :  { %v4461_v17 = vmax.f32 %v4211_v54, 0.0 }
 0x8b9   :  { %v4370_v25 = vpop.f32.mrf.mxu1  ;;  %4427 = vmatmul.bf16.gmra.mxu1 %v9883_v57 }
 0x8ba   :  { %v9922_v8 = vpop.f32.mrf.mxu2 }
 0x8bc   :  { %v4212_v45 = vpop.f32.mrf.mxu3 }
 0x8bd   :  { %v4213_v21 = vadd.f32 %v4212_v45, %v4124_v47  ;;  %v9916_v47 = vpop.f32.mrf.mxu0 }
 0x8bf   :  { %v4463_v30 = vmax.f32 %v4213_v21, 0.0  ;;  %v4500_v21 = vpack.c.bf16 %v4440_v58, %v4438_v22  ;;  %v4134_v58 = vadd.f32 %v9801_v15, %v9737_v51  ;;  %v4282_v15 = vadd.f32 %v4281_v61, %v9886_v38 }
 0x8c1   :  { %6387 = vmatmul.msk.bf16.vlgmr.msra.gmra.mxu3 %vm4629_vm14, %v4498_v19  ;;  %v4511_v42 = vpack.c.bf16 %v4463_v30, %v4461_v17  ;;  %v9918_v19 = vpop.f32.mrf.mxu1  ;;  %v4129_v30 = vadd.f32 %v9775_v40, %v9737_v51  ;;  %v4277_v40 = vadd.f32 %v4276_v41, %v9886_v38 }
 0x8c2   :  { %v9928_v18 = vpop.f32.mrf.mxu2 }
 0x8c3   :  { %4725 = vmatmul.bf16.gmra.mxu2 %v4511_v42  ;;  %v4366_v16 = vadd.f32 %v4365_v13, %v4277_v40 }
 0x8c4   :  { %v4215_v55 = vpop.f32.mrf.mxu3 }
 0x8c5   :  { %v4216_v32 = vadd.f32 %v4215_v55, %v4127_v36  ;;  %v4286_v42 = vpop.f32.mrf.mxu0  ;;  %v4132_v55 = vadd.f32 %v9787_v62, %v9737_v51  ;;  %v4364_v36 = vadd.f32 %v9871_v60, %v4275_v6  ;;  %v4444_v56 = vmax.f32 %v4366_v16, 0.0 }
 0x8c6   :  { %v4280_v6 = vadd.f32 %v9899_v14, %v9886_v38 }
 0x8c7   :  { %v4465_v17 = vmax.f32 %v4216_v32, 0.0  ;;  %v4442_v32 = vmax.f32 %v4364_v36, 0.0  ;;  %v4371_v36 = vadd.f32 %v4370_v25, %v4282_v15 }
 0x8c9   :  { %v4375_v53 = vpop.f32.mrf.mxu1  ;;  %v4448_v14 = vmax.f32 %v4371_v36, 0.0 }
 0x8cc   :  { %v4217_v54 = vpop.f32.mrf.mxu3 }
 0x8cd   :  { %v4218_v45 = vadd.f32 %v4217_v54, %v4129_v30  ;;  %v4289_v30 = vpop.f32.mrf.mxu0 }
 0x8cf   :  { %v4467_v50 = vmax.f32 %v4218_v45, 0.0 }
 0x8d1   :  { %6388 = vmatmul.msk.bf16.gmra.mxu3 %vm4629_vm14, %v4500_v21  ;;  %v4513_v23 = vpack.c.bf16 %v4467_v50, %v4465_v17  ;;  %v9933_v22 = vpop.f32.mrf.mxu1  ;;  %v9937_v21 = vpop.f32.mrf.mxu2  ;;  %v4502_v17 = vpack.c.bf16 %v4444_v56, %v4442_v32  ;;  %v4139_v56 = vadd.f32 %v9827_v4, %v9737_v51  ;;  %v4287_v4 = vadd.f32 %v4286_v42, %v9886_v38 }
 0x8d3   :  { %4730 = vmatmul.bf16.gmra.mxu2 %v4513_v23 }
 0x8d4   :  { %v4220_v1 = vpop.f32.mrf.mxu3 }
 0x8d5   :  { %v4221_v54 = vadd.f32 %v4220_v1, %v4132_v55  ;;  %v4291_v62 = vpop.f32.mrf.mxu0  ;;  %v4137_v1 = vadd.f32 %v9809_v34, %v9737_v51  ;;  %v4369_v55 = vadd.f32 %v9901_v11, %v4280_v6  ;;  %v4285_v6 = vadd.f32 %v9916_v47, %v9886_v38 }
 0x8d7   :  { %v4469_v50 = vmax.f32 %v4221_v54, 0.0  ;;  %v4446_v54 = vmax.f32 %v4369_v55, 0.0  ;;  %v4376_v55 = vadd.f32 %v4375_v53, %v4287_v4  ;;  %v4290_v53 = vadd.f32 %v4289_v30, %v9886_v38 }
 0x8d8   :  { %v4147_v4 = vadd.f32 %v9881_v48, %v9737_v51 }
 0x8d9   :  { %v4380_v60 = vpop.f32.mrf.mxu1 }
 0x8dc   :  { %v4222_v41 = vpop.f32.mrf.mxu3 }
 0x8dd   :  { %v4223_v45 = vadd.f32 %v4222_v41, %v4134_v58  ;;  %v4294_v16 = vpop.f32.mrf.mxu0  ;;  %v9946_v58 = vpop.f32.mrf.mxu2 }
 0x8df   :  { %v4471_v23 = vmax.f32 %v4223_v45, 0.0 }
 0x8e1   :  { %6389 = vmatmul.msk.bf16.gmra.mxu3 %vm4629_vm14, %v4502_v17  ;;  %v4515_v13 = vpack.c.bf16 %v4471_v23, %v4469_v50  ;;  %v9948_v32 = vpop.f32.mrf.mxu1  ;;  %v4504_v17 = vpack.c.bf16 %v4448_v14, %v4446_v54  ;;  %v4144_v54 = vadd.f32 %v9865_v59, %v9737_v51 }
 0x8e3   :  { %4735 = vmatmul.bf16.gmra.mxu2 %v4515_v13 }
 0x8e4   :  { %v4225_v40 = vpop.f32.mrf.mxu3 }
 0x8e5   :  { %v4226_v41 = vadd.f32 %v4225_v40, %v4137_v1  ;;  %v4296_v34 = vpop.f32.mrf.mxu0  ;;  %v9953_v13 = vpop.f32.mrf.mxu2  ;;  %v4142_v40 = vadd.f32 %v9845_v37, %v9737_v51  ;;  %v4374_v1 = vadd.f32 %v9918_v19, %v4285_v6 }
 0x8e7   :  { %v4473_v50 = vmax.f32 %v4226_v41, 0.0  ;;  %v4450_v14 = vmax.f32 %v4374_v1, 0.0  ;;  %v4452_v41 = vmax.f32 %v4376_v55, 0.0 }
 0x8e9   :  { %v4385_v25 = vpop.f32.mrf.mxu1 }
 0x8ec   :  { %v4227_v61 = vpop.f32.mrf.mxu3 }
 0x8ed   :  { %v4228_v45 = vadd.f32 %v4227_v61, %v4139_v56  ;;  %v4299_v36 = vpop.f32.mrf.mxu0 }
 0x8ef   :  { %v4475_v23 = vmax.f32 %v4228_v45, 0.0  ;;  %v9965_v45 = vpop.f32.mrf.mxu2 }
 0x8f1   :  { %6390 = vmatmul.msk.bf16.gmra.mxu3 %vm4629_vm14, %v4504_v17  ;;  %v4517_v11 = vpack.c.bf16 %v4475_v23, %v4473_v50  ;;  %v9961_v56 = vpop.f32.mrf.mxu1  ;;  %v4506_v17 = vpack.c.bf16 %v4452_v41, %v4450_v14 }
 0x8f3   :  { %4740 = vmatmul.bf16.gmra.mxu2 %v4517_v11  ;;  %v4292_v11 = vadd.f32 %v4291_v62, %v9886_v38 }
 0x8f4   :  { %v4230_v15 = vpop.f32.mrf.mxu3 }
 0x8f5   :  { %v4231_v61 = vadd.f32 %v4230_v15, %v4142_v40  ;;  %v4301_v37 = vpop.f32.mrf.mxu0  ;;  %v4379_v40 = vadd.f32 %v9933_v22, %v4290_v53  ;;  %v4381_v1 = vadd.f32 %v4380_v60, %v4292_v11  ;;  %v4295_v22 = vadd.f32 %v4294_v16, %v9886_v38 }
 0x8f6   :  { %v4297_v60 = vadd.f32 %v4296_v34, %v9886_v38  ;;  %v4152_v53 = vadd.f32 %v9906_v12, %v9737_v51 }
 0x8f7   :  { %v4477_v50 = vmax.f32 %v4231_v61, 0.0  ;;  %v9972_v15 = vpop.f32.mrf.mxu2  ;;  %v4454_v14 = vmax.f32 %v4379_v40, 0.0  ;;  %v4456_v41 = vmax.f32 %v4381_v1, 0.0  ;;  %v4384_v11 = vadd.f32 %v9948_v32, %v4295_v22 }
 0x8f8   :  { %v4154_v40 = vadd.f32 %v9922_v8, %v9737_v51 }
 0x8f9   :  { %v4390_v6 = vpop.f32.mrf.mxu1 }
 0x8fc   :  { %v4232_v47 = vpop.f32.mrf.mxu3 }
 0x8fd   :  { %v4233_v42 = vadd.f32 %v4232_v47, %v4144_v54  ;;  %v4304_v55 = vpop.f32.mrf.mxu0  ;;  %v4149_v54 = vadd.f32 %v9896_v33, %v9737_v51 }
 0x8ff   :  { %v4479_v23 = vmax.f32 %v4233_v42, 0.0  ;;  %v4508_v42 = vpack.c.bf16 %v4456_v41, %v4454_v14 }
 0x901   :  { %6391 = vmatmul.msk.bf16.gmra.mxu3 %vm4629_vm14, %v4506_v17  ;;  %v4519_v19 = vpack.c.bf16 %v4479_v23, %v4477_v50  ;;  %v4393_v47 = vpop.f32.mrf.mxu1  ;;  %v9977_v23 = vpop.f32.mrf.mxu2 }
 0x903   :  { %4745 = vmatmul.bf16.gmra.mxu2 %v4519_v19 }
 0x904   :  { %v4235_v59 = vpop.f32.mrf.mxu3 }
 0x905   :  { %v4236_v30 = vadd.f32 %v4235_v59, %v4147_v4  ;;  %v4306_v19 = vpop.f32.mrf.mxu0  ;;  %v4386_v59 = vadd.f32 %v4385_v25, %v4297_v60  ;;  %v4300_v25 = vadd.f32 %v4299_v36, %v9886_v38 }
 0x907   :  { %v4481_v17 = vmax.f32 %v4236_v30, 0.0  ;;  %v4460_v14 = vmax.f32 %v4386_v59, 0.0  ;;  %v4389_v22 = vadd.f32 %v9961_v56, %v4300_v25 }
 0x909   :  { %v4395_v4 = vpop.f32.mrf.mxu1  ;;  %v9987_v1 = vpop.f32.mrf.mxu2 }
 0x90c   :  { %v4237_v61 = vpop.f32.mrf.mxu3 }
 0x90d   :  { %v4238_v62 = vadd.f32 %v4237_v61, %v4149_v54  ;;  %v4458_v54 = vmax.f32 %v4384_v11, 0.0  ;;  %v4309_v30 = vpop.f32.mrf.mxu0  ;;  %v4462_v11 = vmax.f32 %v4389_v22, 0.0 }
 0x90f   :  { %v4483_v50 = vmax.f32 %v4238_v62, 0.0  ;;  %v4510_v61 = vpack.c.bf16 %v4460_v14, %v4458_v54 }
 0x911   :  { %6392 = vmatmul.msk.bf16.gmra.mxu3 %vm4629_vm14, %v4508_v42  ;;  %v4521_v48 = vpack.c.bf16 %v4483_v50, %v4481_v17  ;;  %v4398_v32 = vpop.f32.mrf.mxu1  ;;  %v4302_v17 = vadd.f32 %v4301_v37, %v9886_v38  ;;  %v9992_v50 = vpop.f32.mrf.mxu2 }
 0x913   :  { %4750 = vmatmul.bf16.gmra.mxu2 %v4521_v48  ;;  %v4157_v48 = vadd.f32 %v9928_v18, %v9737_v51  ;;  %v4391_v60 = vadd.f32 %v4390_v6, %v4302_v17  ;;  %v4305_v6 = vadd.f32 %v4304_v55, %v9886_v38 }
 0x914   :  { %v4240_v33 = vpop.f32.mrf.mxu3 }
 0x915   :  { %v4241_v16 = vadd.f32 %v4240_v33, %v4152_v53  ;;  %v4311_v33 = vpop.f32.mrf.mxu0  ;;  %v4159_v53 = vadd.f32 %v9937_v21, %v9737_v51  ;;  %v4464_v59 = vmax.f32 %v4391_v60, 0.0 }
 0x917   :  { %v4485_v62 = vmax.f32 %v4241_v16, 0.0  ;;  %v4512_v16 = vpack.c.bf16 %v4464_v59, %v4462_v11 }
 0x919   :  { %v4400_v54 = vpop.f32.mrf.mxu1  ;;  %v9999_v14 = vpop.f32.mrf.mxu2 }
 0x91c   :  { %v4242_v41 = vpop.f32.mrf.mxu3 }
 0x91d   :  { %v4243_v34 = vadd.f32 %v4242_v41, %v4154_v40  ;;  %v4314_v56 = vpop.f32.mrf.mxu0 }
 0x91f   :  { %v4487_v42 = vmax.f32 %v4243_v34, 0.0 }
 0x921   :  { %6393 = vmatmul.msk.bf16.gmra.mxu3 %vm4629_vm14, %v4510_v61  ;;  %v4523_v12 = vpack.c.bf16 %v4487_v42, %v4485_v62  ;;  %v4307_v61 = vadd.f32 %v4306_v19, %v9886_v38  ;;  %v4403_v62 = vpop.f32.mrf.mxu1  ;;  %v4162_v42 = vadd.f32 %v9946_v58, %v9737_v51  ;;  %v10006_v17 = vpop.f32.mrf.mxu2 }
 0x923   :  { %4755 = vmatmul.bf16.gmra.mxu2 %v4523_v12  ;;  %v4394_v12 = vadd.f32 %v4393_v47, %v4305_v6  ;;  %v4396_v25 = vadd.f32 %v4395_v4, %v4307_v61  ;;  %v4310_v4 = vadd.f32 %v4309_v30, %v9886_v38 }
 0x924   :  { %v4245_v8 = vpop.f32.mrf.mxu3 }
 0x925   :  { %v4246_v40 = vadd.f32 %v4245_v8, %v4157_v48  ;;  %v4164_v8 = vadd.f32 %v9953_v13, %v9737_v51  ;;  %v4466_v48 = vmax.f32 %v4394_v12, 0.0  ;;  %v4468_v22 = vmax.f32 %v4396_v25, 0.0  ;;  %v4316_v55 = vpop.f32.mrf.mxu0 }
 0x927   :  { %v4489_v41 = vmax.f32 %v4246_v40, 0.0  ;;  %v4514_v19 = vpack.c.bf16 %v4468_v22, %v4466_v48 }
 0x929   :  { %v10011_v47 = vpop.f32.mrf.mxu2 }
 0x92c   :  { %v4247_v36 = vpop.f32.mrf.mxu3 }
 0x92d   :  { %v4248_v37 = vadd.f32 %v4247_v36, %v4159_v53  ;;  %v4405_v36 = vpop.f32.mrf.mxu1  ;;  %v4319_v13 = vpop.f32.mrf.mxu0 }
 0x92f   :  { %v4491_v34 = vmax.f32 %v4248_v37, 0.0  ;;  %v4312_v37 = vadd.f32 %v4311_v33, %v9886_v38 }
 0x931   :  { %6394 = vmatmul.msk.bf16.gmra.mxu3 %vm4629_vm14, %v4512_v16  ;;  %v4525_v18 = vpack.c.bf16 %v4491_v34, %v4489_v41  ;;  %v4399_v16 = vadd.f32 %v4398_v32, %v4310_v4  ;;  %v4401_v41 = vadd.f32 %v4400_v54, %v4312_v37  ;;  %v4315_v32 = vadd.f32 %v4314_v56, %v9886_v38 }
 0x933   :  { %4760 = vmatmul.bf16.gmra.mxu2 %v4525_v18  ;;  %v4470_v6 = vmax.f32 %v4399_v16, 0.0  ;;  %v4472_v61 = vmax.f32 %v4401_v41, 0.0 }
 0x934   :  { %v4250_v21 = vpop.f32.mrf.mxu3 }
 0x935   :  { %v4251_v60 = vadd.f32 %v4250_v21, %v4162_v42  ;;  %v4408_v18 = vpop.f32.mrf.mxu1  ;;  %v4516_v25 = vpack.c.bf16 %v4472_v61, %v4470_v6  ;;  %v4321_v48 = vpop.f32.mrf.mxu0 }
 0x937   :  { %v4493_v59 = vmax.f32 %v4251_v60, 0.0 }
 0x93c   :  { %v4252_v53 = vpop.f32.mrf.mxu3 }
 0x93d   :  { %v4253_v11 = vadd.f32 %v4252_v53, %v4164_v8  ;;  %v4410_v60 = vpop.f32.mrf.mxu1  ;;  %v10026_v53 = vpop.f32.mrf.mxu2 }
 0x93f   :  { %v4495_v40 = vmax.f32 %v4253_v11, 0.0 }
 0x941   :  { %6395 = vmatmul.msk.bf16.gmra.mxu3 %vm4629_vm14, %v4514_v19  ;;  %v4527_v58 = vpack.c.bf16 %v4495_v40, %v4493_v59  ;;  %v4324_v59 = vpop.f32.mrf.mxu0 }
 0x943   :  { %4765 = vmatmul.bf16.gmra.mxu2 %v4527_v58 }
 0x944   :  { %v4780_v51 = vpop.f32.mrf.mxu3 }
 0x945   :  { %v4781_v34 = vadd.f32 %v4780_v51, %v9965_v45  ;;  %v4317_v45 = vadd.f32 %v4316_v55, %v9886_v38  ;;  %v4413_v51 = vpop.f32.mrf.mxu1  ;;  %v10030_v41 = vpop.f32.mrf.mxu2 }
 0x947   :  { %v4860_v42 = vpack.c.bf16 %v4781_v34, %v4781_v34  ;;  %v4406_v11 = vadd.f32 %v4405_v36, %v4317_v45 }
 0x949   :  { %v10017_v30 = vunpack.c.l.b16 %v4860_v42  ;;  %v4476_v58 = vmax.f32 %v4406_v11, 0.0 }
 0x94c   :  { %v4782_v21 = vpop.f32.mrf.mxu3 }
 0x94d   :  { %v4783_v12 = vadd.f32 %v4782_v21, %v9972_v15  ;;  %v4404_v15 = vadd.f32 %v4403_v62, %v4315_v32  ;;  %v4322_v62 = vadd.f32 %v4321_v48, %v9886_v38 }
 0x94f   :  { %v4861_v8 = vpack.c.bf16 %v4783_v12, %v4783_v12  ;;  %v4474_v40 = vmax.f32 %v4404_v15, 0.0  ;;  %v4411_v42 = vadd.f32 %v4410_v60, %v4322_v62  ;;  %v4415_v12 = vpop.f32.mrf.mxu1 }
 0x951   :  { %v10019_v33 = vunpack.c.l.b16 %v4861_v8  ;;  %6396 = vmatmul.msk.bf16.gmra.mxu3 %vm4629_vm14, %v4516_v25  ;;  %v4518_v55 = vpack.c.bf16 %v4476_v58, %v4474_v40  ;;  %v10042_v8 = vpop.f32.mrf.mxu2  ;;  %v4480_v45 = vmax.f32 %v4411_v42, 0.0 }
 0x954   :  { %v4785_v22 = vpop.f32.mrf.mxu3 }
 0x955   :  { %v4786_v19 = vadd.f32 %v4785_v22, %v9977_v23  ;;  %v4320_v23 = vadd.f32 %v4319_v13, %v9886_v38 }
 0x957   :  { %v4862_v37 = vpack.c.bf16 %v4786_v19, %v4786_v19  ;;  %v4409_v21 = vadd.f32 %v4408_v18, %v4320_v23  ;;  %v4418_v18 = vpop.f32.mrf.mxu1 }
 0x959   :  { %v10032_v34 = vunpack.c.l.b16 %v4862_v37  ;;  %v4478_v32 = vmax.f32 %v4409_v21, 0.0  ;;  %v10054_v37 = vpop.f32.mrf.mxu2 }
 0x95b   :  { %v4520_v48 = vpack.c.bf16 %v4480_v45, %v4478_v32 }
 0x95c   :  { %v4787_v4 = vpop.f32.mrf.mxu3 }
 0x95d   :  { %v4788_v56 = vadd.f32 %v4787_v4, %v9987_v1  ;;  %v4326_v1 = vpop.f32.mrf.mxu0 }
 0x95e   :  { %v4327_v60 = vadd.f32 %v4326_v1, %v9886_v38 }
 0x95f   :  { %v4863_v16 = vpack.c.bf16 %v4788_v56, %v4788_v56  ;;  %v4420_v42 = vpop.f32.mrf.mxu1 }
 0x961   :  { %v10034_v6 = vunpack.c.l.b16 %v4863_v16  ;;  %6397 = vmatmul.msk.bf16.gmra.mxu3 %vm4629_vm14, %v4518_v55  ;;  %v4416_v55 = vadd.f32 %v4415_v12, %v4327_v60  ;;  %v4721_v32 = vpop.f32.mrf.mxu2 }
 0x964   :  { %v4790_v61 = vpop.f32.mrf.mxu3 }
 0x965   :  { %v4791_v25 = vadd.f32 %v4790_v61, %v9992_v50  ;;  %v4329_v11 = vpop.f32.mrf.mxu0  ;;  %v4325_v50 = vadd.f32 %v4324_v59, %v9886_v38  ;;  %v4484_v61 = vmax.f32 %v4416_v55, 0.0 }
 0x966   :  { %v4330_v12 = vadd.f32 %v4329_v11, %v9886_v38 }
 0x967   :  { %v4864_v15 = vpack.c.bf16 %v4791_v25, %v4791_v25  ;;  %v4414_v56 = vadd.f32 %v4413_v51, %v4325_v50 }
 0x968   :  { %v4419_v50 = vadd.f32 %v4418_v18, %v4330_v12 }
 0x969   :  { %v10045_v40 = vunpack.c.l.b16 %v4864_v15  ;;  %v4482_v62 = vmax.f32 %v4414_v56, 0.0 }
 0x96a   :  { %v4486_v56 = vmax.f32 %v4419_v50, 0.0 }
 0x96b   :  { %v4522_v1 = vpack.c.bf16 %v4484_v61, %v4482_v62 }
 0x96c   :  { %v4792_v22 = vpop.f32.mrf.mxu3 }
 0x96d   :  { %v4793_v13 = vadd.f32 %v4792_v22, %v9999_v14  ;;  %v4331_v16 = vpop.f32.mrf.mxu0 }
 0x96f   :  { %v4865_v19 = vpack.c.bf16 %v4793_v13, %v4793_v13 }
 0x971   :  { %v10047_v58 = vunpack.c.l.b16 %v4865_v19  ;;  %6398 = vmatmul.msk.bf16.gmra.mxu3 %vm4629_vm14, %v4520_v48  ;;  %v4423_v19 = vpop.f32.mrf.mxu1 }
 0x974   :  { %v4795_v14 = vpop.f32.mrf.mxu3 }
 0x975   :  { %v4796_v23 = vadd.f32 %v4795_v14, %v10006_v17  ;;  %v4334_v51 = vpop.f32.mrf.mxu0  ;;  %v4332_v17 = vadd.f32 %v4331_v16, %v9886_v38  ;;  %v4723_v14 = vpop.f32.mrf.mxu2 }
 0x976   :  { %v4335_v16 = vadd.f32 %v4334_v51, %v9886_v38 }
 0x977   :  { %v4866_v25 = vpack.c.bf16 %v4796_v23, %v4796_v23  ;;  %v4421_v60 = vadd.f32 %v4420_v42, %v4332_v17 }
 0x979   :  { %v10058_v22 = vunpack.c.l.b16 %v4866_v25  ;;  %v4488_v55 = vmax.f32 %v4421_v60, 0.0 }
 0x97b   :  { %v4524_v61 = vpack.c.bf16 %v4488_v55, %v4486_v56 }
 0x97c   :  { %v4797_v21 = vpop.f32.mrf.mxu3 }
 0x97d   :  { %v4798_v59 = vadd.f32 %v4797_v21, %v10011_v47  ;;  %v4336_v62 = vpop.f32.mrf.mxu0  ;;  %v4425_v21 = vpop.f32.mrf.mxu1 }
 0x97e   :  { %v4726_v11 = vpop.f32.mrf.mxu2  ;;  %v4337_v25 = vadd.f32 %v4336_v62, %v9886_v38 }
 0x97f   :  { %v4867_v45 = vpack.c.bf16 %v4798_v59, %v4798_v59 }
 0x981   :  { %v10060_v15 = vunpack.c.l.b16 %v4867_v45  ;;  %6399 = vmatmul.msk.bf16.gmra.mxu3 %vm4629_vm14, %v4522_v1  ;;  %v4424_v1 = vadd.f32 %v4423_v19, %v4335_v16  ;;  %v4426_v45 = vadd.f32 %v4425_v21, %v4337_v25 }
 0x983   :  { %v4490_v42 = vmax.f32 %v4424_v1, 0.0  ;;  %v4492_v12 = vmax.f32 %v4426_v45, 0.0 }
 0x984   :  { %v4800_v48 = vpop.f32.mrf.mxu3 }
 0x985   :  { %v10068_v47 = vadd.f32 %v4800_v48, %v10026_v53  ;;  %v4339_v53 = vpop.f32.mrf.mxu0  ;;  %v4428_v18 = vpop.f32.mrf.mxu1  ;;  %v4526_v50 = vpack.c.bf16 %v4492_v12, %v4490_v42 }
 0x986   :  { %v4728_v17 = vpop.f32.mrf.mxu2  ;;  %v4340_v56 = vadd.f32 %v4339_v53, %v9886_v38 }
 0x988   :  { %v4429_v54 = vadd.f32 %v4428_v18, %v4340_v56 }
 0x98a   :  { %v4494_v19 = vmax.f32 %v4429_v54, 0.0 }
 0x98c   :  { %v4802_v23 = vpop.f32.mrf.mxu3 }
 0x98d   :  { %v4341_v60 = vpop.f32.mrf.mxu0  ;;  %v4430_v51 = vpop.f32.mrf.mxu1 }
 0x98e   :  { %v4342_v55 = vadd.f32 %v4341_v60, %v9886_v38  ;;  %v4731_v62 = vpop.f32.mrf.mxu2 }
 0x990   :  { %v4431_v36 = vadd.f32 %v4430_v51, %v4342_v55  ;;  %v4803_v51 = vadd.f32 %v4802_v23, %v10030_v41 }
 0x991   :  { %6400 = vmatmul.msk.bf16.gmra.mxu3 %vm4629_vm14, %v4524_v61 }
 0x992   :  { %v4496_v21 = vmax.f32 %v4431_v36, 0.0 }
 0x994   :  { %v4805_v59 = vpop.f32.mrf.mxu3  ;;  %v4528_v25 = vpack.c.bf16 %v4496_v21, %v4494_v19 }
 0x995   :  { %v4806_v54 = vadd.f32 %v4805_v59, %v10042_v8 }
 0x996   :  { %v4733_v1 = vpop.f32.mrf.mxu2 }
 0x99c   :  { %v4807_v48 = vpop.f32.mrf.mxu3 }
 0x99d   :  { %v4808_v60 = vadd.f32 %v4807_v48, %v10054_v37  ;;  %v4868_v48 = vpack.c.bf16 %v10068_v47, %v10068_v47 }
 0x99e   :  { %v4736_v12 = vpop.f32.mrf.mxu2 }
 0x99f   :  { %v4871_v19 = vpack.c.bf16 %v4808_v60, %v4808_v60  ;;  %v4936_v23 = vunpack.c.l.b16 %v4868_v48 }
 0x9a1   :  { %6401 = vmatmul.msk.bf16.gmra.mxu3 %vm4629_vm14, %v4526_v50 }
 0x9a4   :  { %v4810_v61 = vpop.f32.mrf.mxu3 }
 0x9a5   :  { %v4811_v53 = vadd.f32 %v4810_v61, %v4721_v32 }
 0x9a7   :  { %v4872_v36 = vpack.c.bf16 %v4811_v53, %v4811_v53 }
 0x9a9   :  { %v4940_v32 = vunpack.c.l.b16 %v4872_v36 }
 0x9ac   :  { %v4812_v16 = vpop.f32.mrf.mxu3 }
 0x9ad   :  { %v4813_v50 = vadd.f32 %v4812_v16, %v4723_v14  ;;  %v4870_v16 = vpack.c.bf16 %v4806_v54, %v4806_v54 }
 0x9af   :  { %v4873_v57 = vpack.c.bf16 %v4813_v50, %v4813_v50  ;;  %v4938_v8 = vunpack.c.l.b16 %v4870_v16 }
 0x9b1   :  { %6402 = vmatmul.msk.bf16.gmra.mxu3 %vm4629_vm14, %v4528_v25  ;;  %v4941_v21 = vunpack.c.l.b16 %v4873_v57  ;;  %v4738_v25 = vpop.f32.mrf.mxu2 }
 0x9b3   :  { %v4966_v37 = vpack.c.b16 %v4941_v21, %v4940_v32 }
 0x9b4   :  { %v4815_v45 = vpop.f32.mrf.mxu3 }
 0x9b5   :  { %v4816_v42 = vadd.f32 %v4815_v45, %v4726_v11 }
 0x9b7   :  { %v4874_v13 = vpack.c.bf16 %v4816_v42, %v4816_v42 }
 0x9b9   :  { %v4942_v56 = vunpack.c.l.b16 %v4874_v13  ;;  %v4741_v42 = vpop.f32.mrf.mxu2 }
 0x9bc   :  { %v4817_v4 = vpop.f32.mrf.mxu3 }
 0x9bd   :  { %v4818_v38 = vadd.f32 %v4817_v4, %v4728_v17  ;;  %v4869_v4 = vpack.c.bf16 %v4803_v51, %v4803_v51  ;;  %v4939_v17 = vunpack.c.l.b16 %v4871_v19  ;;  %v10611_v19 = vpack.c.b16 %v10034_v6, %v10032_v34 }
 0x9bf   :  { %v4875_v18 = vpack.c.bf16 %v4818_v38, %v4818_v38  ;;  %v4937_v13 = vunpack.c.l.b16 %v4869_v4  ;;  %v4965_v61 = vpack.c.b16 %v4939_v17, %v4938_v8 }
 0x9c1   :  { %v4943_v55 = vunpack.c.l.b16 %v4875_v18  ;;  %v4964_v50 = vpack.c.b16 %v4937_v13, %v4936_v23  ;;  %v10609_v18 = vpack.c.b16 %v10060_v15, %v10058_v22  ;;  %v4743_v54 = vpop.f32.mrf.mxu2  ;;  %v10612_v22 = vpack.c.b16 %v10019_v33, %v10017_v30 }
 0x9c3   :  { %v4967_v11 = vpack.c.b16 %v4943_v55, %v4942_v56 }
 0x9c4   :  { %v4820_v14 = vpop.f32.mrf.mxu3 }
 0x9c5   :  { %4992 = vmatpush.bf16.msra.mxu0 %v4967_v11  ;;  %v4821_v59 = vadd.f32 %v4820_v14, %v4731_v62 }
 0x9c7   :  { %v4876_v57 = vpack.c.bf16 %v4821_v59, %v4821_v59 }
 0x9c9   :  { %4993 = vmatpush.bf16.msra.mxu0 %v4966_v37  ;;  %v10082_v38 = vunpack.c.l.b16 %v4876_v57  ;;  %v4746_v15 = vpop.f32.mrf.mxu2 }
 0x9cc   :  { %v4822_v41 = vpop.f32.mrf.mxu3 }
 0x9cd   :  { %v4823_v45 = vadd.f32 %v4822_v41, %v4733_v1  ;;  %4994 = vmatpush.bf16.msra.mxu0 %v4965_v61  ;;  %v10610_v1 = vpack.c.b16 %v10047_v58, %v10045_v40 }
 0x9cf   :  { %v4877_v53 = vpack.c.bf16 %v4823_v45, %v4823_v45 }
 0x9d1   :  { %v10084_v60 = vunpack.c.l.b16 %v4877_v53  ;;  %4995 = vmatpush.bf16.msra.mxu0 %v4964_v50 }
 0x9d3   :  { %v4968_v47 = vpack.c.b16 %v10084_v60, %v10082_v38  ;;  %v10169_v38 = vld [vmem:[%s10345_s16] ss:$0 sm:$0xff] }
 0x9d4   :  { %v4825_v62 = vpop.f32.mrf.mxu3 }
 0x9d5   :  { %4996 = vmatpush.bf16.msra.mxu0 %v10609_v18  ;;  %v4826_v36 = vadd.f32 %v4825_v62, %v4736_v12 }
 0x9d7   :  { %v4878_v55 = vpack.c.bf16 %v4826_v36, %v4826_v36 }
 0x9d9   :  { %4997 = vmatpush.bf16.msra.mxu0 %v10610_v1  ;;  %v10097_v11 = vunpack.c.l.b16 %v4878_v55 }
 0x9dc   :  { %v4827_v56 = vpop.f32.mrf.mxu3 }
 0x9dd   :  { %v4828_v51 = vadd.f32 %v4827_v56, %v4738_v25  ;;  %4998 = vmatpush.bf16.msra.mxu0 %v10611_v19  ;;  %v4748_v25 = vpop.f32.mrf.mxu2 }
 0x9df   :  { %v4879_v21 = vpack.c.bf16 %v4828_v51, %v4828_v51 }
 0x9e1   :  { %v10099_v14 = vunpack.c.l.b16 %v4879_v21  ;;  %4999 = vmatpush.bf16.msra.mxu0 %v10612_v22 }
 0x9e3   :  { %v4969_v40 = vpack.c.b16 %v10099_v14, %v10097_v11  ;;  %v10615_v11 = vld [vmem:[#allocation48_spill] sm:$0xff] }
 0x9e4   :  { %v4830_v58 = vpop.f32.mrf.mxu3  ;;  %5000 = vmatmul.bf16.vlgmr.msra.gmra.mxu0 %v9394_v20 }
 0x9e5   :  { %v4831_v12 = vadd.f32 %v4830_v58, %v4741_v42  ;;  %v4751_v37 = vpop.f32.mrf.mxu2 }
 0x9e7   :  { %v4880_v6 = vpack.c.bf16 %v4831_v12, %v4831_v12 }
 0x9e9   :  { %v10107_v4 = vunpack.c.l.b16 %v4880_v6 }
 0x9ec   :  { %v4832_v34 = vpop.f32.mrf.mxu3 }
 0x9ed   :  { %v4833_v16 = vadd.f32 %v4832_v34, %v4743_v54  ;;  %v4753_v61 = vpop.f32.mrf.mxu2 }
 0x9ef   :  { %v4881_v32 = vpack.c.bf16 %v4833_v16, %v4833_v16 }
 0x9f1   :  { %v10109_v17 = vunpack.c.l.b16 %v4881_v32 }
 0x9f3   :  { %v4970_v30 = vpack.c.b16 %v10109_v17, %v10107_v4 }
 0x9f4   :  { %v4835_v33 = vpop.f32.mrf.mxu3  ;;  %5005 = vmatmul.bf16.gmra.mxu0 %v9416_v2 }
 0x9f5   :  { %v4836_v48 = vadd.f32 %v4835_v33, %v4746_v15  ;;  %v4756_v50 = vpop.f32.mrf.mxu2 }
 0x9f7   :  { %v4882_v20 = vpack.c.bf16 %v4836_v48, %v4836_v48 }
 0x9f9   :  { %v4950_v41 = vunpack.c.l.b16 %v4882_v20 }
 0x9fc   :  { %v4837_v8 = vpop.f32.mrf.mxu3 }
 0x9fd   :  { %v4838_v59 = vadd.f32 %v4837_v8, %v4748_v25  ;;  %v4758_v62 = vpop.f32.mrf.mxu2 }
 0x9ff   :  { %v4883_v13 = vpack.c.bf16 %v4838_v59, %v4838_v59 }
 0xa01   :  { %v4951_v23 = vunpack.c.l.b16 %v4883_v13 }
 0xa03   :  { %v4971_v57 = vpack.c.b16 %v4951_v23, %v4950_v41 }
 0xa04   :  { %v4840_v45 = vpop.f32.mrf.mxu3  ;;  %5010 = vmatmul.bf16.gmra.mxu0 %v9433_v63 }
 0xa05   :  { %v4841_v42 = vadd.f32 %v4840_v45, %v4751_v37  ;;  %v4761_v54 = vpop.f32.mrf.mxu2 }
 0xa0c   :  { %v4842_v53 = vpop.f32.mrf.mxu3 }
 0xa0d   :  { %v4763_v1 = vpop.f32.mrf.mxu2  ;;  %v4843_v33 = vadd.f32 %v4842_v53, %v4753_v61 }
 0xa0f   :  { %v4885_v41 = vpack.c.bf16 %v4843_v33, %v4843_v33 }
 0xa11   :  { %v4953_v53 = vunpack.c.l.b16 %v4885_v41  ;;  %v10618_v41 = vld [vmem:[#allocation55_spill] sm:$0xff] }
 0xa14   :  { %v4845_v18 = vpop.f32.mrf.mxu3  ;;  %5015 = vmatmul.bf16.gmra.mxu0 %v9449_v43 }
 0xa15   :  { %v4766_v55 = vpop.f32.mrf.mxu2  ;;  %v4846_v6 = vadd.f32 %v4845_v18, %v4756_v50 }
 0xa17   :  { %v4886_v20 = vpack.c.bf16 %v4846_v6, %v4846_v6  ;;  %v10617_v6 = vld [vmem:[#allocation52_spill] sm:$0xff] }
 0xa19   :  { %v4954_v18 = vunpack.c.l.b16 %v4886_v20 }
 0xa1c   :  { %v4847_v2 = vpop.f32.mrf.mxu3 }
 0xa1d   :  { %v4768_v21 = vpop.f32.mrf.mxu2  ;;  %v4848_v25 = vadd.f32 %v4847_v2, %v4758_v62  ;;  %v4884_v62 = vpack.c.bf16 %v4841_v42, %v4841_v42 }
 0xa1f   :  { %v4887_v37 = vpack.c.bf16 %v4848_v25, %v4848_v25 }
 0xa21   :  { %v4955_v23 = vunpack.c.l.b16 %v4887_v37 }
 0xa23   :  { %v4973_v2 = vpack.c.b16 %v4955_v23, %v4954_v18 }
 0xa24   :  { %v4850_v36 = vpop.f32.mrf.mxu3  ;;  %5020 = vmatmul.bf16.gmra.mxu0 %v9465_v10 }
 0xa25   :  { %v4851_v15 = vadd.f32 %v4850_v36, %v4761_v54  ;;  %v4952_v54 = vunpack.c.l.b16 %v4884_v62 }
 0xa27   :  { %v4888_v16 = vpack.c.bf16 %v4851_v15, %v4851_v15  ;;  %v4972_v36 = vpack.c.b16 %v4953_v53, %v4952_v54 }
 0xa29   :  { %v4956_v59 = vunpack.c.l.b16 %v4888_v16 }
 0xa2c   :  { %v4852_v56 = vpop.f32.mrf.mxu3 }
 0xa2d   :  { %v4853_v63 = vadd.f32 %v4852_v56, %v4763_v1 }
 0xa2f   :  { %v4889_v43 = vpack.c.bf16 %v4853_v63, %v4853_v63 }
 0xa31   :  { %v4957_v48 = vunpack.c.l.b16 %v4889_v43 }
 0xa33   :  { %v4974_v45 = vpack.c.b16 %v4957_v48, %v4956_v59 }
 0xa34   :  { %v4855_v51 = vpop.f32.mrf.mxu3  ;;  %5025 = vmatmul.bf16.gmra.mxu0 %v9477_v27  ;;  %v5230_v27 = vld [vmem:[%s10344_s17 + $0x30] sm:$0x3] }
 0xa35   :  { %v4856_v19 = vadd.f32 %v4855_v51, %v4766_v55  ;;  %v5260_v13 = vunpack.c.l.b16 %v5230_v27  ;;  %v10616_v51 = vld [vmem:[#allocation49_spill] sm:$0xff] }
 0xa37   :  { %v4890_v58 = vpack.c.bf16 %v4856_v19, %v4856_v19  ;;  %v5267_v50 = vpack.c.b16 %v5260_v13, %v5260_v13 }
 0xa39   :  { %v4958_v32 = vunpack.c.l.b16 %v4890_v58  ;;  %v5324_v61 = vsel %vm1062_vm2, %v5267_v50, 0 }
 0xa3a   :  { %5327 = vmatpush.bf16.msra.mxu2 %v5324_v61 }
 0xa3c   :  { %v4857_v22 = vpop.f32.mrf.mxu3 }
 0xa3d   :  { %v4858_v12 = vadd.f32 %v4857_v22, %v4768_v21 }
 0xa3f   :  { %v4891_v34 = vpack.c.bf16 %v4858_v12, %v4858_v12 }
 0xa41   :  { %v4959_v10 = vunpack.c.l.b16 %v4891_v34 }
 0xa43   :  { %v4975_v8 = vpack.c.b16 %v4959_v10, %v4958_v32 }
 0xa44   :  { %5030 = vmatmul.bf16.gmra.mxu0 %v9489_v5  ;;  %v6602_v5 = vld [vmem:[%s10344_s17 + $0x28] sm:$0xff] }
 0xa45   :  { %5081 = vmatpush.bf16.msra.mxu1 %v4975_v8  ;;  %5328 = vmatpush.bf16.msra.mxu2 %v6602_v5 }
 0xa49   :  { %5082 = vmatpush.bf16.msra.mxu1 %v4974_v45 }
 0xa4d   :  { %5083 = vmatpush.bf16.msra.mxu1 %v4973_v2 }
 0xa51   :  { %5084 = vmatpush.bf16.msra.mxu1 %v4972_v36 }
 0xa54   :  { %5035 = vmatmul.bf16.gmra.mxu0 %v9499_v35  ;;  %v6601_v35 = vld [vmem:[%s10344_s17 + $0x20] sm:$0xff] }
 0xa55   :  { %5085 = vmatpush.bf16.msra.mxu1 %v4971_v57  ;;  %5329 = vmatpush.bf16.msra.mxu2 %v6601_v35  ;;  %v10619_v35 = vld [vmem:[#allocation56_spill] sm:$0xff] }
 0xa59   :  { %5086 = vmatpush.bf16.msra.mxu1 %v4970_v30 }
 0xa5d   :  { %5087 = vmatpush.bf16.msra.mxu1 %v4969_v40 }
 0xa61   :  { %5088 = vmatpush.bf16.msra.mxu1 %v4968_v47 }
 0xa64   :  { %5089 = vmatmul.bf16.vlgmr.msra.gmra.mxu1 %v9523_v46  ;;  %5040 = vmatmul.bf16.gmra.mxu0 %v9525_v26  ;;  %v6600_v46 = vld [vmem:[%s10344_s17 + $0x18] sm:$0xff]  ;;  %v5001_v26 = vpop.f32.mrf.mxu0 }
 0xa65   :  { %5330 = vmatpush.bf16.msra.mxu2 %v6600_v46  ;;  %v5002_v47 = vadd.f32 %v10169_v38, %v5001_v26 }
 0xa74   :  { %5094 = vmatmul.bf16.gmra.mxu1 %v9549_v52  ;;  %5045 = vmatmul.bf16.gmra.mxu0 %v9551_v44  ;;  %v5003_v52 = vpop.f32.mrf.mxu0  ;;  %v6599_v44 = vld [vmem:[%s10344_s17 + $0x10] sm:$0xff] }
 0xa75   :  { %5331 = vmatpush.bf16.msra.mxu2 %v6599_v44 }
 0xa84   :  { %5099 = vmatmul.bf16.gmra.mxu1 %v9573_v9  ;;  %5050 = vmatmul.bf16.gmra.mxu0 %v9575_v7  ;;  %v6598_v9 = vld [vmem:[%s10344_s17 + $0x8] sm:$0xff]  ;;  %v5006_v7 = vpop.f32.mrf.mxu0 }
 0xa85   :  { %5332 = vmatpush.bf16.msra.mxu2 %v6598_v9  ;;  %v5007_v55 = vadd.f32 %v10169_v38, %v5006_v7 }
 0xa94   :  { %5104 = vmatmul.bf16.gmra.mxu1 %v9595_v49  ;;  %5055 = vmatmul.bf16.gmra.mxu0 %v9597_v24  ;;  %v6597_v49 = vld [vmem:[%s10344_s17] sm:$0xff]  ;;  %v5008_v24 = vpop.f32.mrf.mxu0 }
 0xa95   :  { %5333 = vmatpush.bf16.msra.mxu2 %v6597_v49  ;;  %v5009_v21 = vadd.f32 %v10169_v38, %v5008_v24 }
 0xaa4   :  { %5109 = vmatmul.bf16.gmra.mxu1 %v9619_v28  ;;  %5060 = vmatmul.bf16.gmra.mxu0 %v9621_v29  ;;  %v10613_v28 = vld [vmem:[#allocation45_spill] sm:$0xff]  ;;  %v5011_v29 = vpop.f32.mrf.mxu0 }
 0xaa5   :  { %v5012_v34 = vadd.f32 %v10169_v38, %v5011_v29 }
 0xab4   :  { %5114 = vmatmul.bf16.gmra.mxu1 %v9640_v0  ;;  %5065 = vmatmul.bf16.gmra.mxu0 %v9644_v3  ;;  %v5013_v0 = vpop.f32.mrf.mxu0  ;;  %v5004_v3 = vadd.f32 %v10169_v38, %v5003_v52 }
 0xab5   :  { %v5014_v10 = vadd.f32 %v10169_v38, %v5013_v0  ;;  %v10620_v0 = vld [vmem:[#allocation59_spill] sm:$0xff] }
 0xabc   :  { %v5016_v14 = vpop.f32.mrf.mxu0 }
 0xabd   :  { %v5017_v13 = vadd.f32 %v10169_v38, %v5016_v14 }
 0xac4   :  { %5119 = vmatmul.bf16.gmra.mxu1 %v9675_v31  ;;  %v10614_v31 = vld [vmem:[#allocation44_spill] sm:$0xff]  ;;  %v5018_v1 = vpop.f32.mrf.mxu0 }
 0xac5   :  { %5070 = vmatmul.bf16.gmra.mxu0 %v10614_v31  ;;  %v5019_v50 = vadd.f32 %v10169_v38, %v5018_v1 }
 0xacc   :  { %v5021_v19 = vpop.f32.mrf.mxu0 }
 0xacd   :  { %v5022_v5 = vadd.f32 %v10169_v38, %v5021_v19 }
 0xad4   :  { %5124 = vmatmul.bf16.gmra.mxu1 %v10613_v28  ;;  %v5023_v43 = vpop.f32.mrf.mxu0 }
 0xad5   :  { %5075 = vmatmul.bf16.gmra.mxu0 %v9709_v39  ;;  %v5024_v26 = vadd.f32 %v10169_v38, %v5023_v43 }
 0xadc   :  { %v5026_v16 = vpop.f32.mrf.mxu0 }
 0xadd   :  { %v5027_v29 = vadd.f32 %v10169_v38, %v5026_v16 }
 0xae1   :  { %v5090_v60 = vpop.f32.mrf.mxu1 }
 0xae2   :  { %v5091_v40 = vadd.f32 %v5090_v60, %v5002_v47 }
 0xae4   :  { %5129 = vmatmul.bf16.gmra.mxu1 %v10615_v11  ;;  %v5170_v30 = vmax.f32 %v5091_v40, 0.0  ;;  %v5028_v20 = vpop.f32.mrf.mxu0 }
 0xae5   :  { %v5029_v47 = vadd.f32 %v10169_v38, %v5028_v20 }
 0xae9   :  { %v5092_v4 = vpop.f32.mrf.mxu1 }
 0xaea   :  { %v5093_v17 = vadd.f32 %v5092_v4, %v5004_v3 }
 0xaec   :  { %v5171_v57 = vmax.f32 %v5093_v17, 0.0  ;;  %v5031_v23 = vpop.f32.mrf.mxu0 }
 0xaee   :  { %v5202_v42 = vpack.c.bf16 %v5171_v57, %v5170_v30  ;;  %v5032_v57 = vadd.f32 %v10169_v38, %v5031_v23 }
 0xaf0   :  { %6427 = vmatmul.msk.bf16.vlgmr.msra.gmra.mxu2 %vm5274_vm15, %v5202_v42  ;;  %v10621_v42 = vld [vmem:[#allocation60_spill] sm:$0xff] }
 0xaf1   :  { %v5095_v56 = vpop.f32.mrf.mxu1 }
 0xaf2   :  { %v5096_v63 = vadd.f32 %v5095_v56, %v5007_v55 }
 0xaf4   :  { %5134 = vmatmul.bf16.gmra.mxu1 %v10616_v51  ;;  %v5172_v58 = vmax.f32 %v5096_v63, 0.0  ;;  %v5033_v36 = vpop.f32.mrf.mxu0 }
 0xaf5   :  { %v5034_v56 = vadd.f32 %v10169_v38, %v5033_v36 }
 0xaf9   :  { %v5097_v22 = vpop.f32.mrf.mxu1 }
 0xafa   :  { %v5098_v15 = vadd.f32 %v5097_v22, %v5009_v21 }
 0xafc   :  { %v5173_v12 = vmax.f32 %v5098_v15, 0.0  ;;  %v5036_v9 = vpop.f32.mrf.mxu0 }
 0xafe   :  { %v5203_v25 = vpack.c.bf16 %v5173_v12, %v5172_v58  ;;  %v5037_v12 = vadd.f32 %v10169_v38, %v5036_v9 }
 0xb00   :  { %6428 = vmatmul.msk.bf16.gmra.mxu2 %vm5274_vm15, %v5203_v25  ;;  %v10622_v25 = vld [vmem:[#allocation61_spill] sm:$0xff] }
 0xb01   :  { %v5100_v39 = vpop.f32.mrf.mxu1 }
 0xb02   :  { %v5101_v32 = vadd.f32 %v5100_v39, %v5012_v34 }
 0xb04   :  { %5139 = vmatmul.bf16.gmra.mxu1 %v10617_v6  ;;  %v5174_v48 = vmax.f32 %v5101_v32, 0.0  ;;  %v5038_v31 = vpop.f32.mrf.mxu0 }
 0xb05   :  { %v5039_v39 = vadd.f32 %v10169_v38, %v5038_v31 }
 0xb09   :  { %v5102_v33 = vpop.f32.mrf.mxu1 }
 0xb0a   :  { %v5103_v37 = vadd.f32 %v5102_v33, %v5014_v10 }
 0xb0c   :  { %v5175_v8 = vmax.f32 %v5103_v37, 0.0  ;;  %v5041_v17 = vpop.f32.mrf.mxu0 }
 0xb0e   :  { %v5204_v27 = vpack.c.bf16 %v5175_v8, %v5174_v48  ;;  %v5042_v48 = vadd.f32 %v10169_v38, %v5041_v17 }
 0xb10   :  { %6429 = vmatmul.msk.bf16.gmra.mxu2 %vm5274_vm15, %v5204_v27 }
 0xb11   :  { %v5105_v59 = vpop.f32.mrf.mxu1 }
 0xb12   :  { %v5106_v45 = vadd.f32 %v5105_v59, %v5017_v13 }
 0xb14   :  { %5144 = vmatmul.bf16.gmra.mxu1 %v10618_v41  ;;  %v5176_v61 = vmax.f32 %v5106_v45, 0.0  ;;  %v5043_v51 = vpop.f32.mrf.mxu0 }
 0xb15   :  { %v5044_v20 = vadd.f32 %v10169_v38, %v5043_v51 }
 0xb19   :  { %v5107_v62 = vpop.f32.mrf.mxu1 }
 0xb1a   :  { %v5108_v18 = vadd.f32 %v5107_v62, %v5019_v50 }
 0xb1c   :  { %v5177_v53 = vmax.f32 %v5108_v18, 0.0  ;;  %v5046_v58 = vpop.f32.mrf.mxu0 }
 0xb1e   :  { %v5205_v2 = vpack.c.bf16 %v5177_v53, %v5176_v61  ;;  %v5047_v61 = vadd.f32 %v10169_v38, %v5046_v58  ;;  %v10211_v53 = vld [vmem:[%s10346_s18] ss:$0 sm:$0xff]  ;;  %s6749_s18 = smov 32  }
 0xb20   :  { %6430 = vmatmul.msk.bf16.gmra.mxu2 %vm5274_vm15, %v5205_v2 }
 0xb21   :  { %v5110_v54 = vpop.f32.mrf.mxu1 }
 0xb22   :  { %v5111_v46 = vadd.f32 %v5110_v54, %v5022_v5 }
 0xb24   :  { %5149 = vmatmul.bf16.gmra.mxu1 %v10619_v35  ;;  %v5178_v7 = vmax.f32 %v5111_v46, 0.0  ;;  %v5048_v10 = vpop.f32.mrf.mxu0 }
 0xb25   :  { %v5049_v36 = vadd.f32 %v10169_v38, %v5048_v10 }
 0xb29   :  { %v5112_v52 = vpop.f32.mrf.mxu1 }
 0xb2a   :  { %v5113_v44 = vadd.f32 %v5112_v52, %v5024_v26 }
 0xb2c   :  { %v5179_v49 = vmax.f32 %v5113_v44, 0.0  ;;  %v5051_v8 = vpop.f32.mrf.mxu0 }
 0xb2e   :  { %v5206_v24 = vpack.c.bf16 %v5179_v49, %v5178_v7 }
 0xb30   :  { %6431 = vmatmul.msk.bf16.gmra.mxu2 %vm5274_vm15, %v5206_v24 }
 0xb31   :  { %v5115_v28 = vpop.f32.mrf.mxu1 }
 0xb32   :  { %v5116_v60 = vadd.f32 %v5115_v28, %v5027_v29 }
 0xb34   :  { %5154 = vmatmul.bf16.gmra.mxu1 %v10620_v0  ;;  %v5180_v40 = vmax.f32 %v5116_v60, 0.0  ;;  %v5053_v62 = vpop.f32.mrf.mxu0  ;;  %v5052_v0 = vadd.f32 %v10169_v38, %v5051_v8 }
 0xb39   :  { %v5117_v11 = vpop.f32.mrf.mxu1 }
 0xb3a   :  { %v5118_v14 = vadd.f32 %v5117_v11, %v5029_v47 }
 0xb3c   :  { %v5181_v3 = vmax.f32 %v5118_v14, 0.0  ;;  %v5056_v26 = vpop.f32.mrf.mxu0 }
 0xb3e   :  { %v5207_v4 = vpack.c.bf16 %v5181_v3, %v5180_v40  ;;  %v5054_v3 = vadd.f32 %v10169_v38, %v5053_v62 }
 0xb40   :  { %6432 = vmatmul.msk.bf16.gmra.mxu2 %vm5274_vm15, %v5207_v4 }
 0xb41   :  { %v5120_v30 = vpop.f32.mrf.mxu1 }
 0xb42   :  { %v5121_v1 = vadd.f32 %v5120_v30, %v5032_v57 }
 0xb44   :  { %5159 = vmatmul.bf16.gmra.mxu1 %v10621_v42  ;;  %v5182_v63 = vmax.f32 %v5121_v1, 0.0  ;;  %v5058_v47 = vpop.f32.mrf.mxu0 }
 0xb49   :  { %v5122_v55 = vpop.f32.mrf.mxu1 }
 0xb4a   :  { %v5123_v19 = vadd.f32 %v5122_v55, %v5034_v56 }
 0xb4c   :  { %v5183_v21 = vmax.f32 %v5123_v19, 0.0  ;;  %v5061_v51 = vpop.f32.mrf.mxu0 }
 0xb4e   :  { %v5208_v22 = vpack.c.bf16 %v5183_v21, %v5182_v63 }
 0xb50   :  { %6433 = vmatmul.msk.bf16.gmra.mxu2 %vm5274_vm15, %v5208_v22  ;;  %v5057_v22 = vadd.f32 %v10169_v38, %v5056_v26 }
 0xb51   :  { %v5125_v15 = vpop.f32.mrf.mxu1 }
 0xb52   :  { %v5126_v43 = vadd.f32 %v5125_v15, %v5037_v12 }
 0xb54   :  { %5164 = vmatmul.bf16.gmra.mxu1 %v10622_v25  ;;  %v5184_v16 = vmax.f32 %v5126_v43, 0.0 }
 0xb59   :  { %v5127_v34 = vpop.f32.mrf.mxu1 }
 0xb5a   :  { %v5128_v6 = vadd.f32 %v5127_v34, %v5039_v39 }
 0xb5c   :  { %v5185_v32 = vmax.f32 %v5128_v6, 0.0 }
 0xb5e   :  { %v5209_v33 = vpack.c.bf16 %v5185_v32, %v5184_v16  ;;  %v5059_v32 = vadd.f32 %v10169_v38, %v5058_v47 }
 0xb60   :  { %6434 = vmatmul.msk.bf16.gmra.mxu2 %vm5274_vm15, %v5209_v33  ;;  %v5063_v33 = vpop.f32.mrf.mxu0 }
 0xb61   :  { %v5130_v37 = vpop.f32.mrf.mxu1 }
 0xb62   :  { %v5131_v27 = vadd.f32 %v5130_v37, %v5042_v48 }
 0xb64   :  { %v5186_v41 = vmax.f32 %v5131_v27, 0.0 }
 0xb69   :  { %v5132_v59 = vpop.f32.mrf.mxu1 }
 0xb6a   :  { %v5133_v13 = vadd.f32 %v5132_v59, %v5044_v20 }
 0xb6c   :  { %v5187_v23 = vmax.f32 %v5133_v13, 0.0 }
 0xb6e   :  { %v5210_v45 = vpack.c.bf16 %v5187_v23, %v5186_v41 }
 0xb70   :  { %6435 = vmatmul.msk.bf16.gmra.mxu2 %vm5274_vm15, %v5210_v45 }
 0xb71   :  { %v5135_v50 = vpop.f32.mrf.mxu1 }
 0xb72   :  { %v5136_v2 = vadd.f32 %v5135_v50, %v5047_v61 }
 0xb73   :  { %v5335_v18 = vpop.f32.mrf.mxu2 }
 0xb74   :  { %v5336_v54 = vadd.f32 %v10211_v53, %v5335_v18  ;;  %v5188_v52 = vmax.f32 %v5136_v2, 0.0 }
 0xb76   :  { %6681 = vtanh.f32 %v5336_v54 }
 0xb79   :  { %v5137_v5 = vpop.f32.mrf.mxu1 }
 0xb7a   :  { %v5138_v35 = vadd.f32 %v5137_v5, %v5049_v36  ;;  %v5062_v36 = vadd.f32 %v10169_v38, %v5061_v51 }
 0xb7b   :  { %v5337_v46 = vpop.f32.mrf.mxu2 }
 0xb7c   :  { %v5189_v44 = vmax.f32 %v5138_v35, 0.0  ;;  %v5338_v9 = vadd.f32 %v10211_v53, %v5337_v46  ;;  %v6682_v24 = vpop.eup %6681  ;;  %v5066_v35 = vpop.f32.mrf.mxu0 }
 0xb7d   :  { %v5447_v31 = vsel %vm2229_vm4, %v6682_v24, 0.0  ;;  %v5067_v51 = vadd.f32 %v10169_v38, %v5066_v35 }
 0xb7e   :  { %v5211_v7 = vpack.c.bf16 %v5189_v44, %v5188_v52  ;;  %6683 = vtanh.f32 %v5338_v9 }
 0xb80   :  { %6436 = vmatmul.msk.bf16.gmra.mxu2 %vm5274_vm15, %v5211_v7 }
 0xb81   :  { %v5140_v49 = vpop.f32.mrf.mxu1 }
 0xb82   :  { %v5141_v14 = vadd.f32 %v5140_v49, %v5052_v0 }
 0xb83   :  { %v5340_v28 = vpop.f32.mrf.mxu2 }
 0xb84   :  { %v6684_v29 = vpop.eup %6683  ;;  %v5341_v40 = vadd.f32 %v10211_v53, %v5340_v28  ;;  %v5190_v57 = vmax.f32 %v5141_v14, 0.0  ;;  %v5064_v28 = vadd.f32 %v10169_v38, %v5063_v33 }
 0xb85   :  { %v5448_v60 = vsel %vm2229_vm4, %v6684_v29, 0.0 }
 0xb86   :  { %v5449_v11 = vadd.f32 %v5448_v60, %v5447_v31  ;;  %6685 = vtanh.f32 %v5341_v40 }
 0xb88   :  { %v5450_v56 = vrot.slane %v5449_v11, 4 }
 0xb89   :  { %v5142_v4 = vpop.f32.mrf.mxu1 }
 0xb8a   :  { %v5143_v17 = vadd.f32 %v5142_v4, %v5054_v3  ;;  %v5451_v21 = vadd.f32 %v5450_v56, %v5449_v11  ;;  %v5068_v3 = vpop.f32.mrf.mxu0 }
 0xb8b   :  { %v5342_v30 = vpop.f32.mrf.mxu2 }
 0xb8c   :  { %v5191_v42 = vmax.f32 %v5143_v17, 0.0  ;;  %v5343_v1 = vadd.f32 %v10211_v53, %v5342_v30  ;;  %v6686_v63 = vpop.eup %6685  ;;  %v5452_v43 = vrot.slane %v5451_v21, 2 }
 0xb8d   :  { %v5456_v12 = vsel %vm2229_vm4, %v6686_v63, 0.0 }
 0xb8e   :  { %v5212_v55 = vpack.c.bf16 %v5191_v42, %v5190_v57  ;;  %6687 = vtanh.f32 %v5343_v1  ;;  %v5453_v37 = vadd.f32 %v5452_v43, %v5451_v21 }
 0xb90   :  { %6437 = vmatmul.msk.bf16.gmra.mxu2 %vm5274_vm15, %v5212_v55  ;;  %v5454_v23 = vrot.slane %v5453_v37, 1 }
 0xb91   :  { %v5145_v19 = vpop.f32.mrf.mxu1 }
 0xb92   :  { %v5146_v34 = vadd.f32 %v5145_v19, %v5057_v22  ;;  %v5455_v2 = vadd.f32 %v5454_v23, %v5453_v37 }
 0xb93   :  { %v5345_v15 = vpop.f32.mrf.mxu2 }
 0xb94   :  { %v6688_v58 = vpop.eup %6687  ;;  %v5346_v16 = vadd.f32 %v10211_v53, %v5345_v15  ;;  %v5192_v27 = vmax.f32 %v5146_v34, 0.0  ;;  %v5071_v15 = vpop.f32.mrf.mxu0 }
 0xb95   :  { %v5457_v25 = vsel %vm2229_vm4, %v6688_v58, 0.0 }
 0xb96   :  { %v5458_v39 = vadd.f32 %v5457_v25, %v5456_v12  ;;  %6689 = vtanh.f32 %v5346_v16  ;;  %v5069_v25 = vadd.f32 %v10169_v38, %v5068_v3 }
 0xb98   :  { %v5459_v6 = vrot.slane %v5458_v39, 4 }
 0xb99   :  { %v5147_v10 = vpop.f32.mrf.mxu1 }
 0xb9a   :  { %v5460_v48 = vadd.f32 %v5459_v6, %v5458_v39  ;;  %v5148_v8 = vadd.f32 %v5147_v10, %v5059_v32 }
 0xb9b   :  { %v5347_v20 = vpop.f32.mrf.mxu2 }
 0xb9c   :  { %v5461_v59 = vrot.slane %v5460_v48, 2  ;;  %v5193_v13 = vmax.f32 %v5148_v8, 0.0  ;;  %v5348_v41 = vadd.f32 %v10211_v53, %v5347_v20  ;;  %v6690_v61 = vpop.eup %6689 }
 0xb9d   :  { %v5465_v52 = vsel %vm2229_vm4, %v6690_v61, 0.0 }
 0xb9e   :  { %v5462_v45 = vadd.f32 %v5461_v59, %v5460_v48  ;;  %v5213_v50 = vpack.c.bf16 %v5193_v13, %v5192_v27  ;;  %6691 = vtanh.f32 %v5348_v41  ;;  %v5073_v27 = vpop.f32.mrf.mxu0  ;;  %v5072_v13 = vadd.f32 %v10169_v38, %v5071_v15 }
 0xba0   :  { %v5463_v62 = vrot.slane %v5462_v45, 1  ;;  %6438 = vmatmul.msk.bf16.gmra.mxu2 %vm5274_vm15, %v5213_v50 }
 0xba1   :  { %v5150_v18 = vpop.f32.mrf.mxu1 }
 0xba2   :  { %v5464_v54 = vadd.f32 %v5463_v62, %v5462_v45  ;;  %v5151_v7 = vadd.f32 %v5150_v18, %v5062_v36  ;;  %v5074_v45 = vadd.f32 %v10169_v38, %v5073_v27 }
 0xba3   :  { %v5350_v5 = vpop.f32.mrf.mxu2 }
 0xba4   :  { %v6692_v46 = vpop.eup %6691  ;;  %v5648_v26 = vsel %vm5607_vm5, %v5464_v54, %v5455_v2  ;;  %v5351_v24 = vadd.f32 %v10211_v53, %v5350_v5  ;;  %v5194_v60 = vmax.f32 %v5151_v7, 0.0 }
 0xba5   :  { %v5466_v44 = vsel %vm2229_vm4, %v6692_v46, 0.0 }
 0xba6   :  { %v5467_v9 = vadd.f32 %v5466_v44, %v5465_v52  ;;  %6693 = vtanh.f32 %v5351_v24  ;;  %v5076_v61 = vpop.f32.mrf.mxu0 }
 0xba7   :  { %v5077_v46 = vadd.f32 %v10169_v38, %v5076_v61 }
 0xba8   :  { %v5468_v49 = vrot.slane %v5467_v9, 4 }
 0xba9   :  { %v5152_v29 = vpop.f32.mrf.mxu1 }
 0xbaa   :  { %v5469_v0 = vadd.f32 %v5468_v49, %v5467_v9  ;;  %v5153_v31 = vadd.f32 %v5152_v29, %v5064_v28 }
 0xbab   :  { %v5352_v47 = vpop.f32.mrf.mxu2 }
 0xbac   :  { %v5470_v11 = vrot.slane %v5469_v0, 2  ;;  %v5195_v14 = vmax.f32 %v5153_v31, 0.0  ;;  %v5353_v40 = vadd.f32 %v10211_v53, %v5352_v47  ;;  %v6694_v42 = vpop.eup %6693 }
 0xbad   :  { %v5474_v63 = vsel %vm2229_vm4, %v6694_v42, 0.0 }
 0xbae   :  { %v5471_v4 = vadd.f32 %v5470_v11, %v5469_v0  ;;  %v5214_v17 = vpack.c.bf16 %v5195_v14, %v5194_v60  ;;  %6695 = vtanh.f32 %v5353_v40  ;;  %v5078_v52 = vpop.f32.mrf.mxu0 }
 0xbaf   :  { %v5079_v24 = vadd.f32 %v10169_v38, %v5078_v52 }
 0xbb0   :  { %v5472_v30 = vrot.slane %v5471_v4, 1  ;;  %6439 = vmatmul.msk.bf16.gmra.mxu2 %vm5274_vm15, %v5214_v17 }
 0xbb1   :  { %v5155_v57 = vpop.f32.mrf.mxu1 }
 0xbb2   :  { %v5473_v1 = vadd.f32 %v5472_v30, %v5471_v4  ;;  %v5156_v12 = vadd.f32 %v5155_v57, %v5067_v51 }
 0xbb3   :  { %v5355_v56 = vpop.f32.mrf.mxu2 }
 0xbb4   :  { %v6696_v55 = vpop.eup %6695  ;;  %v5649_v19 = vsel %vm5609_vm6, %v5473_v1, %v5648_v26  ;;  %v5196_v32 = vmax.f32 %v5156_v12, 0.0  ;;  %v5356_v9 = vadd.f32 %v10211_v53, %v5355_v56 }
 0xbb5   :  { %v5475_v21 = vsel %vm2229_vm4, %v6696_v55, 0.0 }
 0xbb6   :  { %v5476_v22 = vadd.f32 %v5475_v21, %v5474_v63 }
 0xbb8   :  { %v5477_v58 = vrot.slane %v5476_v22, 4 }
 0xbb9   :  { %v5157_v43 = vpop.f32.mrf.mxu1 }
 0xbba   :  { %v5478_v39 = vadd.f32 %v5477_v58, %v5476_v22  ;;  %v5158_v34 = vadd.f32 %v5157_v43, %v5069_v25 }
 0xbbb   :  { %v5357_v6 = vpop.f32.mrf.mxu2 }
 0xbbc   :  { %v5479_v16 = vrot.slane %v5478_v39, 2  ;;  %v5197_v10 = vmax.f32 %v5158_v34, 0.0  ;;  %v5358_v26 = vadd.f32 %v10211_v53, %v5357_v6 }
 0xbbe   :  { %v5480_v33 = vadd.f32 %v5479_v16, %v5478_v39  ;;  %v5215_v37 = vpack.c.bf16 %v5197_v10, %v5196_v32  ;;  %6697 = vtanh.f32 %v5358_v26 }
 0xbc0   :  { %v5481_v48 = vrot.slane %v5480_v33, 1  ;;  %6440 = vmatmul.msk.bf16.gmra.mxu2 %vm5274_vm15, %v5215_v37 }
 0xbc1   :  { %v5160_v8 = vpop.f32.mrf.mxu1 }
 0xbc2   :  { %v5482_v20 = vadd.f32 %v5481_v48, %v5480_v33  ;;  %v5161_v23 = vadd.f32 %v5160_v8, %v5072_v13 }
 0xbc3   :  { %v5360_v59 = vpop.f32.mrf.mxu2 }
 0xbc4   :  { %v10247_v41 = vsel %vm5611_vm7, %v5482_v20, %v5649_v19  ;;  %v5198_v2 = vmax.f32 %v5161_v23, 0.0  ;;  %v5361_v7 = vadd.f32 %v10211_v53, %v5360_v59  ;;  %v6698_v40 = vpop.eup %6697 }
 0xbc5   :  { %v5484_v17 = vsel %vm2229_vm4, %v6698_v40, 0.0 }
 0xbc9   :  { %v5162_v50 = vpop.f32.mrf.mxu1 }
 0xbca   :  { %v5163_v62 = vadd.f32 %v5162_v50, %v5074_v45 }
 0xbcb   :  { %v5362_v18 = vpop.f32.mrf.mxu2 }
 0xbcc   :  { %v5199_v54 = vmax.f32 %v5163_v62, 0.0  ;;  %v5363_v44 = vadd.f32 %v10211_v53, %v5362_v18 }
 0xbce   :  { %v5216_v36 = vpack.c.bf16 %v5199_v54, %v5198_v2  ;;  %6699 = vtanh.f32 %v5363_v44 }
 0xbcf   :  { %6701 = vtanh.f32 %v5356_v9 }
 0xbd0   :  { %6441 = vmatmul.msk.bf16.gmra.mxu2 %vm5274_vm15, %v5216_v36  ;;  %6703 = vtanh.f32 %v5361_v7 }
 0xbd1   :  { %v5165_v5 = vpop.f32.mrf.mxu1 }
 0xbd2   :  { %v5166_v49 = vadd.f32 %v5165_v5, %v5077_v46 }
 0xbd3   :  { %v5365_v35 = vpop.f32.mrf.mxu2 }
 0xbd4   :  { %v5366_v28 = vadd.f32 %v10211_v53, %v5365_v35  ;;  %v5200_v60 = vmax.f32 %v5166_v49, 0.0  ;;  %v6700_v3 = vpop.eup %6699 }
 0xbd5   :  { %v6702_v38 = vpop.eup %6701  ;;  %v5493_v57 = vsel %vm2229_vm4, %v6700_v3, 0.0 }
 0xbd6   :  { %6705 = vtanh.f32 %v5366_v28  ;;  %v6704_v4 = vpop.eup %6703  ;;  %v5483_v56 = vsel %vm2229_vm4, %v6702_v38, 0.0 }
 0xbd7   :  { %v5485_v55 = vadd.f32 %v5484_v17, %v5483_v56  ;;  %v5492_v51 = vsel %vm2229_vm4, %v6704_v4, 0.0 }
 0xbd8   :  { %v5494_v63 = vadd.f32 %v5493_v57, %v5492_v51 }
 0xbd9   :  { %v5167_v29 = vpop.f32.mrf.mxu1  ;;  %v5486_v58 = vrot.slane %v5485_v55, 4 }
 0xbda   :  { %v5168_v0 = vadd.f32 %v5167_v29, %v5079_v24  ;;  %v5495_v12 = vrot.slane %v5494_v63, 4 }
 0xbdb   :  { %v5367_v31 = vpop.f32.mrf.mxu2  ;;  %v5487_v34 = vadd.f32 %v5486_v58, %v5485_v55 }
 0xbdc   :  { %v5201_v47 = vmax.f32 %v5168_v0, 0.0  ;;  %v5368_v11 = vadd.f32 %v10211_v53, %v5367_v31  ;;  %v6706_v30 = vpop.eup %6705  ;;  %v5496_v6 = vadd.f32 %v5495_v12, %v5494_v63 }
 0xbdd   :  { %v5501_v21 = vsel %vm2229_vm4, %v6706_v30, 0.0  ;;  %v5488_v32 = vrot.slane %v5487_v34, 2 }
 0xbde   :  { %v5217_v14 = vpack.c.bf16 %v5201_v47, %v5200_v60  ;;  %6707 = vtanh.f32 %v5368_v11  ;;  %v5497_v33 = vrot.slane %v5496_v6, 2 }
 0xbdf   :  { %v5489_v27 = vadd.f32 %v5488_v32, %v5487_v34 }
 0xbe0   :  { %6442 = vmatmul.msk.bf16.gmra.mxu2 %vm5274_vm15, %v5217_v14  ;;  %v5498_v23 = vadd.f32 %v5497_v33, %v5496_v6 }
 0xbe1   :  { %v5490_v18 = vrot.slane %v5489_v27, 1 }
 0xbe2   :  { %v5499_v61 = vrot.slane %v5498_v23, 1 }
 0xbe3   :  { %v5370_v42 = vpop.f32.mrf.mxu2  ;;  %v5491_v46 = vadd.f32 %v5490_v18, %v5489_v27 }
 0xbe4   :  { %v6708_v1 = vpop.eup %6707  ;;  %v5371_v15 = vadd.f32 %v10211_v53, %v5370_v42  ;;  %v5500_v26 = vadd.f32 %v5499_v61, %v5498_v23 }
 0xbe5   :  { %v5502_v19 = vsel %vm2229_vm4, %v6708_v1, 0.0  ;;  %v5651_v7 = vsel %vm5613_vm9, %v5491_v46, %v10247_v41 }
 0xbe6   :  { %v5503_v22 = vadd.f32 %v5502_v19, %v5501_v21  ;;  %6709 = vtanh.f32 %v5371_v15  ;;  %v5652_v28 = vsel %vm5615_vm10, %v5500_v26, %v5651_v7 }
 0xbe8   :  { %v5504_v25 = vrot.slane %v5503_v22, 4 }
 0xbea   :  { %v5505_v16 = vadd.f32 %v5504_v25, %v5503_v22 }
 0xbeb   :  { %v5372_v43 = vpop.f32.mrf.mxu2 }
 0xbec   :  { %v5373_v39 = vadd.f32 %v10211_v53, %v5372_v43  ;;  %v6710_v10 = vpop.eup %6709  ;;  %v5506_v48 = vrot.slane %v5505_v16, 2 }
 0xbed   :  { %v5510_v20 = vsel %vm2229_vm4, %v6710_v10, 0.0 }
 0xbee   :  { %6711 = vtanh.f32 %v5373_v39  ;;  %v5507_v45 = vadd.f32 %v5506_v48, %v5505_v16 }
 0xbf0   :  { %v5508_v36 = vrot.slane %v5507_v45, 1 }
 0xbf2   :  { %v5509_v44 = vadd.f32 %v5508_v36, %v5507_v45 }
 0xbf3   :  { %v5375_v37 = vpop.f32.mrf.mxu2 }
 0xbf4   :  { %v6712_v8 = vpop.eup %6711  ;;  %v5376_v62 = vadd.f32 %v10211_v53, %v5375_v37  ;;  %v5653_v0 = vsel %vm5617_vm11, %v5509_v44, %v5652_v28 }
 0xbf5   :  { %v5511_v59 = vsel %vm2229_vm4, %v6712_v8, 0.0 }
 0xbf6   :  { %v5512_v13 = vadd.f32 %v5511_v59, %v5510_v20  ;;  %6713 = vtanh.f32 %v5376_v62 }
 0xbf8   :  { %v5513_v50 = vrot.slane %v5512_v13, 4 }
 0xbfa   :  { %v5514_v2 = vadd.f32 %v5513_v50, %v5512_v13 }
 0xbfb   :  { %v5377_v54 = vpop.f32.mrf.mxu2 }
 0xbfc   :  { %v5378_v5 = vadd.f32 %v10211_v53, %v5377_v54  ;;  %v5515_v35 = vrot.slane %v5514_v2, 2  ;;  %v6714_v49 = vpop.eup %6713 }
 0xbfd   :  { %v5519_v47 = vsel %vm2229_vm4, %v6714_v49, 0.0 }
 0xbfe   :  { %6715 = vtanh.f32 %v5378_v5  ;;  %v5516_v52 = vadd.f32 %v5515_v35, %v5514_v2 }
 0xc00   :  { %v5517_v9 = vrot.slane %v5516_v52, 1 }
 0xc02   :  { %v5518_v24 = vadd.f32 %v5517_v9, %v5516_v52 }
 0xc03   :  { %v5380_v29 = vpop.f32.mrf.mxu2 }
 0xc04   :  { %v6716_v31 = vpop.eup %6715  ;;  %v5654_v60 = vsel %vm5619_vm12, %v5518_v24, %v5653_v0  ;;  %v5381_v41 = vadd.f32 %v10211_v53, %v5380_v29 }
 0xc05   :  { %v5520_v11 = vsel %vm2229_vm4, %v6716_v31, 0.0  ;;  %5662 = vrot.lane.b32.xlu2 %v5654_v60, %s6749_s18 }
 0xc06   :  { %v5521_v14 = vadd.f32 %v5520_v11, %v5519_v47  ;;  %6717 = vtanh.f32 %v5381_v41 }
 0xc08   :  { %v5522_v38 = vrot.slane %v5521_v14, 4 }
 0xc0a   :  { %v5523_v17 = vadd.f32 %v5522_v38, %v5521_v14 }
 0xc0b   :  { %v5382_v40 = vpop.f32.mrf.mxu2 }
 0xc0c   :  { %v5383_v3 = vadd.f32 %v10211_v53, %v5382_v40  ;;  %v6718_v4 = vpop.eup %6717  ;;  %v5524_v56 = vrot.slane %v5523_v17, 2 }
 0xc0d   :  { %v5528_v42 = vsel %vm2229_vm4, %v6718_v4, 0.0 }
 0xc0e   :  { %6719 = vtanh.f32 %v5383_v3  ;;  %v5525_v63 = vadd.f32 %v5524_v56, %v5523_v17 }
 0xc10   :  { %v5526_v12 = vrot.slane %v5525_v63, 1 }
 0xc12   :  { %v5527_v34 = vadd.f32 %v5526_v12, %v5525_v63 }
 0xc13   :  { %v5385_v30 = vpop.f32.mrf.mxu2 }
 0xc14   :  { %v6720_v57 = vpop.eup %6719  ;;  %v5386_v19 = vadd.f32 %v10211_v53, %v5385_v30 }
 0xc15   :  { %v5529_v1 = vsel %vm2229_vm4, %v6720_v57, 0.0 }
 0xc16   :  { %v5530_v55 = vadd.f32 %v5529_v1, %v5528_v42  ;;  %6721 = vtanh.f32 %v5386_v19 }
 0xc18   :  { %v5531_v51 = vrot.slane %v5530_v55, 4 }
 0xc1a   :  { %v5532_v21 = vadd.f32 %v5531_v51, %v5530_v55 }
 0xc1b   :  { %v5387_v22 = vpop.f32.mrf.mxu2 }
 0xc1c   :  { %v5533_v15 = vrot.slane %v5532_v21, 2  ;;  %v5388_v58 = vadd.f32 %v10211_v53, %v5387_v22  ;;  %v6722_v39 = vpop.eup %6721 }
 0xc1d   :  { %v5537_v33 = vsel %vm2229_vm4, %v6722_v39, 0.0 }
 0xc1e   :  { %v5534_v25 = vadd.f32 %v5533_v15, %v5532_v21  ;;  %6723 = vtanh.f32 %v5388_v58 }
 0xc20   :  { %v5535_v43 = vrot.slane %v5534_v25, 1 }
 0xc22   :  { %v5536_v6 = vadd.f32 %v5535_v43, %v5534_v25 }
 0xc23   :  { %v5390_v16 = vpop.f32.mrf.mxu2 }
 0xc24   :  { %v6724_v32 = vpop.eup %6723  ;;  %v5655_v10 = vsel %vm5607_vm5, %v5536_v6, %v5527_v34  ;;  %v5391_v27 = vadd.f32 %v10211_v53, %v5390_v16 }
 0xc25   :  { %v5538_v37 = vsel %vm2229_vm4, %v6724_v32, 0.0 }
 0xc26   :  { %v5539_v48 = vadd.f32 %v5538_v37, %v5537_v33  ;;  %6725 = vtanh.f32 %v5391_v27 }
 0xc28   :  { %v5540_v8 = vrot.slane %v5539_v48, 4 }
 0xc2a   :  { %v5541_v20 = vadd.f32 %v5540_v8, %v5539_v48 }
 0xc2b   :  { %v5392_v59 = vpop.f32.mrf.mxu2 }
 0xc2c   :  { %v5542_v13 = vrot.slane %v5541_v20, 2  ;;  %v5393_v23 = vadd.f32 %v10211_v53, %v5392_v59  ;;  %v6726_v62 = vpop.eup %6725 }
 0xc2d   :  { %v5546_v36 = vsel %vm2229_vm4, %v6726_v62, 0.0 }
 0xc2e   :  { %v5543_v45 = vadd.f32 %v5542_v13, %v5541_v20  ;;  %6727 = vtanh.f32 %v5393_v23 }
 0xc30   :  { %v5544_v50 = vrot.slane %v5543_v45, 1 }
 0xc32   :  { %v5545_v18 = vadd.f32 %v5544_v50, %v5543_v45 }
 0xc33   :  { %v5395_v61 = vpop.f32.mrf.mxu2 }
 0xc34   :  { %v6728_v2 = vpop.eup %6727  ;;  %v5656_v54 = vsel %vm5609_vm6, %v5545_v18, %v5655_v10  ;;  %v5396_v47 = vadd.f32 %v10211_v53, %v5395_v61 }
 0xc35   :  { %v5547_v5 = vsel %vm2229_vm4, %v6728_v2, 0.0 }
 0xc36   :  { %v5548_v35 = vadd.f32 %v5547_v5, %v5546_v36 }
 0xc38   :  { %v5549_v46 = vrot.slane %v5548_v35, 4 }
 0xc3a   :  { %v5550_v26 = vadd.f32 %v5549_v46, %v5548_v35 }
 0xc3b   :  { %v5397_v52 = vpop.f32.mrf.mxu2 }
 0xc3c   :  { %v5551_v44 = vrot.slane %v5550_v26, 2  ;;  %v5398_v31 = vadd.f32 %v10211_v53, %v5397_v52 }
 0xc3e   :  { %v5552_v9 = vadd.f32 %v5551_v44, %v5550_v26  ;;  %6729 = vtanh.f32 %v5398_v31 }
 0xc40   :  { %v5553_v7 = vrot.slane %v5552_v9, 1 }
 0xc42   :  { %v5554_v49 = vadd.f32 %v5553_v7, %v5552_v9 }
 0xc43   :  { %v5400_v24 = vpop.f32.mrf.mxu2 }
 0xc44   :  { %v10295_v28 = vsel %vm5611_vm7, %v5554_v49, %v5656_v54  ;;  %v5401_v11 = vadd.f32 %v10211_v53, %v5400_v24  ;;  %v6730_v3 = vpop.eup %6729 }
 0xc45   :  { %v5556_v57 = vsel %vm2229_vm4, %v6730_v3, 0.0 }
 0xc4b   :  { %v5402_v29 = vpop.f32.mrf.mxu2 }
 0xc4c   :  { %v5403_v60 = vadd.f32 %v10211_v53, %v5402_v29 }
 0xc4e   :  { %6731 = vtanh.f32 %v5403_v60 }
 0xc4f   :  { %6733 = vtanh.f32 %v5396_v47 }
 0xc50   :  { %6735 = vtanh.f32 %v5401_v11 }
 0xc53   :  { %v5405_v0 = vpop.f32.mrf.mxu2 }
 0xc54   :  { %v5406_v14 = vadd.f32 %v10211_v53, %v5405_v0  ;;  %v6732_v4 = vpop.eup %6731 }
 0xc55   :  { %v6734_v17 = vpop.eup %6733  ;;  %v5565_v1 = vsel %vm2229_vm4, %v6732_v4, 0.0 }
 0xc56   :  { %6737 = vtanh.f32 %v5406_v14  ;;  %v6736_v30 = vpop.eup %6735  ;;  %v5555_v51 = vsel %vm2229_vm4, %v6734_v17, 0.0 }
 0xc57   :  { %v5557_v19 = vadd.f32 %v5556_v57, %v5555_v51  ;;  %v5564_v63 = vsel %vm2229_vm4, %v6736_v30, 0.0 }
 0xc58   :  { %v5566_v22 = vadd.f32 %v5565_v1, %v5564_v63 }
 0xc59   :  { %v5558_v25 = vrot.slane %v5557_v19, 4 }
 0xc5a   :  { %v5567_v43 = vrot.slane %v5566_v22, 4 }
 0xc5b   :  { %v5407_v41 = vpop.f32.mrf.mxu2  ;;  %v5559_v16 = vadd.f32 %v5558_v25, %v5557_v19 }
 0xc5c   :  { %v5408_v40 = vadd.f32 %v10211_v53, %v5407_v41  ;;  %v6738_v42 = vpop.eup %6737  ;;  %v5568_v32 = vadd.f32 %v5567_v43, %v5566_v22 }
 0xc5d   :  { %v5573_v15 = vsel %vm2229_vm4, %v6738_v42, 0.0  ;;  %v5560_v33 = vrot.slane %v5559_v16, 2 }
 0xc5e   :  { %6739 = vtanh.f32 %v5408_v40  ;;  %v5569_v48 = vrot.slane %v5568_v32, 2 }
 0xc5f   :  { %v5663_v38 = vpop.permute.xlu2 %5662  ;;  %v5561_v20 = vadd.f32 %v5560_v33, %v5559_v16 }
 0xc60   :  { %5669 = vst.msk [vmem:[%s10340_s19] sm:$0xff] %vm5668_vm0, %v5663_v38  ;;  %v5570_v45 = vadd.f32 %v5569_v48, %v5568_v32 }
 0xc61   :  { %v5562_v18 = vrot.slane %v5561_v20, 1 }
 0xc63   :  { %v5410_v56 = vpop.f32.mrf.mxu2  ;;  %v5563_v36 = vadd.f32 %v5562_v18, %v5561_v20 }
 0xc64   :  { %v6740_v55 = vpop.eup %6739  ;;  %v5411_v12 = vadd.f32 %v10211_v53, %v5410_v56 }
 0xc65   :  { %v5574_v21 = vsel %vm2229_vm4, %v6740_v55, 0.0  ;;  %v5658_v52 = vsel %vm5613_vm9, %v5563_v36, %v10295_v28 }
 0xc66   :  { %v5575_v58 = vadd.f32 %v5574_v21, %v5573_v15  ;;  %6741 = vtanh.f32 %v5411_v12 }
 0xc68   :  { %v5576_v39 = vrot.slane %v5575_v58, 4 }
 0xc6a   :  { %v5577_v10 = vadd.f32 %v5576_v39, %v5575_v58 }
 0xc6b   :  { %v5412_v34 = vpop.f32.mrf.mxu2 }
 0xc6c   :  { %v5413_v6 = vadd.f32 %v10211_v53, %v5412_v34  ;;  %v6742_v37 = vpop.eup %6741  ;;  %v5578_v8 = vrot.slane %v5577_v10, 2  ;;  %v5571_v53 = vrot.slane %v5570_v45, 1 }
 0xc6d   :  { %v5582_v59 = vsel %vm2229_vm4, %v6742_v37, 0.0 }
 0xc6e   :  { %6743 = vtanh.f32 %v5413_v6  ;;  %v5579_v50 = vadd.f32 %v5578_v8, %v5577_v10  ;;  %v5572_v5 = vadd.f32 %v5571_v53, %v5570_v45 }
 0xc70   :  { %v5580_v2 = vrot.slane %v5579_v50, 1  ;;  %v5659_v9 = vsel %vm5615_vm10, %v5572_v5, %v5658_v52 }
 0xc72   :  { %v5581_v46 = vadd.f32 %v5580_v2, %v5579_v50 }
 0xc74   :  { %v6744_v27 = vpop.eup %6743  ;;  %v5660_v7 = vsel %vm5617_vm11, %v5581_v46, %v5659_v9 }
 0xc75   :  { %v5583_v13 = vsel %vm2229_vm4, %v6744_v27, 0.0 }
 0xc76   :  { %v5584_v23 = vadd.f32 %v5583_v13, %v5582_v59 }
 0xc78   :  { %v5585_v62 = vrot.slane %v5584_v23, 4 }
 0xc7a   :  { %v5586_v61 = vadd.f32 %v5585_v62, %v5584_v23 }
 0xc7c   :  { %v5587_v54 = vrot.slane %v5586_v61, 2 }
 0xc7e   :  { %v5588_v35 = vadd.f32 %v5587_v54, %v5586_v61 }
 0xc80   :  { %v5589_v26 = vrot.slane %v5588_v35, 1 }
 0xc82   :  { %v5590_v44 = vadd.f32 %v5589_v26, %v5588_v35 }
 0xc84   :  { %v5661_v49 = vsel %vm5619_vm12, %v5590_v44, %v5660_v7 }
 0xc85   :  { %5664 = vrot.lane.b32.xlu0 %v5661_v49, %s6749_s18 }
 0xcf7   :  { %v5665_v24 = vpop.permute.xlu0 %5664 }
 0xcf8   :  { %5670 = vst.msk [vmem:[%s10340_s19 + $0x8] sm:$0xff] %vm5668_vm0, %v5665_v24 }

</bundles_post_ra>
